<compile_context>
chip_gen: v5e
topology: v5e:2x2
jax: 0.10.0
libtpu: 0.0.40
codegen_flags: <defaults>
</compile_context>

<pallas_src>
import jax
import jax.numpy as jnp
from jax.experimental import pallas as pl
from jax.experimental.pallas import tpu as pltpu

_IN_FEATURES = 32 * 32
_NUM_LAYERS = 6


def _round_up(x, m):
    return (x + m - 1) // m * m


# ---------------------------------------------------------------------------
# Kernel
# ---------------------------------------------------------------------------
def _mlp_kernel(x_ref,
                w1_ref, w2_ref, w3_ref, w4_ref, w5_ref, w6_ref,
                b1_ref, b2_ref, b3_ref, b4_ref, b5_ref, b6_ref,
                o_ref):
    """Fused 6-layer MLP forward for one (TB, 1024) batch tile.

    Input arrives f32 and is cast to bf16 in-kernel (MXU-native operands);
    accumulation, bias-add and ReLU stay in f32 on the VPU.
    """
    w_refs = (w1_ref, w2_ref, w3_ref, w4_ref, w5_ref, w6_ref)
    b_refs = (b1_ref, b2_ref, b3_ref, b4_ref, b5_ref, b6_ref)

    h = x_ref[...].astype(jnp.bfloat16)  # cast inside the kernel (no HBM copy)
    for li in range(_NUM_LAYERS):
        # bf16 x bf16 MXU matmul, f32 accumulate; bias add in f32 (VPU).
        h = jnp.dot(h, w_refs[li][...],
                    preferred_element_type=jnp.float32) + b_refs[li][...]
        if li < _NUM_LAYERS - 1:
            h = jnp.maximum(h, 0.0).astype(jnp.bfloat16)
    o_ref[...] = h  # f32, lane-dense (TB, 128)

    # TODO(synk): Dropout(p=0.5) after each hidden layer is a no-op in eval
    # mode; training-mode dropout with PyTorch RNG semantics is not reproduced.


# ---------------------------------------------------------------------------
# Parameters
# ---------------------------------------------------------------------------
def _torch_linear_init(key, fan_in, fan_out):
    """Stand-in for nn.Linear default init: U(-1/sqrt(fan_in), 1/sqrt(fan_in))."""
    kw, kb = jax.random.split(key)
    bound = 1.0 / float(fan_in) ** 0.5
    w = jax.random.uniform(kw, (fan_in, fan_out), jnp.float32, -bound, bound)  # (in,out)
    b = jax.random.uniform(kb, (1, fan_out), jnp.float32, -bound, bound)
    return w, b


def make_params(key, num_classes=10):
    """Raw f32 params in PyTorch-logical shapes (weights already transposed to (in,out))."""
    dims = [(1024, 512), (512, 512), (512, 512), (512, 256),
            (256, 200), (200, num_classes)]
    keys = jax.random.split(key, len(dims))
    params = []
    for k, (fi, fo) in zip(keys, dims):
        params.extend(_torch_linear_init(k, fi, fo))
    return tuple(params)


def prepare_params(params):
    """Cast weights to bf16 and zero-pad dims up to lane multiples (200->256, 10->128)."""
    ws, bs = params[0::2], params[1::2]
    pws, pbs = [], []
    for w, b in zip(ws, bs):
        fi, fo = w.shape
        fi_p, fo_p = _round_up(fi, 128), _round_up(fo, 128)
        w_p = jnp.zeros((fi_p, fo_p), jnp.float32).at[:fi, :fo].set(w)
        b_p = jnp.zeros((1, fo_p), jnp.float32).at[:, :fo].set(b)
        pws.append(w_p.astype(jnp.bfloat16))
        pbs.append(b_p)  # biases stay f32 (added post-accumulation)
    return tuple(pws), tuple(pbs)


# ---------------------------------------------------------------------------
# Wrapper
# ---------------------------------------------------------------------------
def _pick_batch_tile(B, tb):
    """Batch tile: large enough to amortize per-step overhead, with >= 2 grid
    steps for moderate B so both v7x TensorCores get work."""
    if B < 32:
        # Single tile; block row dim == full batch dim satisfies the (8,128) rule.
        return max(B, 1)
    # Aim for at least 2 grid steps; 16-row granularity (bf16-friendly sublanes).
    return min(tb, _round_up(pl.cdiv(B, 2), 16))


def small_fcn_2_forward(x_nchw, prepared, num_classes=10, *, tb=1024):
    """x_nchw: (B, C, H, W) f32 with C*H*W == 1024. Returns logits (B, num_classes)."""
    ws, bs = prepared
    B = x_nchw.shape[0]
    feat = 1
    for d in x_nchw.shape[1:]:
        feat *= d
    assert feat == _IN_FEATURES, f"expected C*H*W == {_IN_FEATURES}, got {feat}"

    # == input.view(-1, 32*32). Stays f32; the bf16 cast happens inside the kernel.
    x = x_nchw.reshape(B, _IN_FEATURES)

    TB = _pick_batch_tile(B, tb)
    grid = (pl.cdiv(B, TB),)  # ragged last block handled by Pallas (no jnp.pad copy)

    out_pad = ws[-1].shape[1]  # 128 (padded classifier width; lane-dense store)

    x_spec = pl.BlockSpec((TB, _IN_FEATURES), lambda i: (i, 0))
    o_spec = pl.BlockSpec((TB, out_pad), lambda i: (i, 0))

    flops = 2 * B * sum(w.shape[0] * w.shape[1] for w in ws)
    bytes_accessed = (sum(w.size * 2 for w in ws)      # bf16 weights
                      + sum(b.size * 4 for b in bs)    # f32 biases
                      + B * _IN_FEATURES * 4           # f32 input
                      + B * out_pad * 4)               # f32 output

    def call(weight_pipeline_mode):
        # Weights/biases: constant index_map -> fetched once, VMEM-resident
        # across grid steps. Buffered(1) drops the pointless second buffer.
        if weight_pipeline_mode is None:
            w_specs = [pl.BlockSpec(w.shape, lambda i: (0, 0)) for w in ws]
            b_specs = [pl.BlockSpec(b.shape, lambda i: (0, 0)) for b in bs]
        else:
            w_specs = [pl.BlockSpec(w.shape, lambda i: (0, 0),
                                    pipeline_mode=weight_pipeline_mode)
                       for w in ws]
            b_specs = [pl.BlockSpec(b.shape, lambda i: (0, 0),
                                    pipeline_mode=weight_pipeline_mode)
                       for b in bs]
        return pl.pallas_call(
            _mlp_kernel,
            out_shape=jax.ShapeDtypeStruct((B, out_pad), jnp.float32),
            grid=grid,
            in_specs=[x_spec] + w_specs + b_specs,
            out_specs=o_spec,
            compiler_params=pltpu.CompilerParams(
                dimension_semantics=("parallel",),
                # Headroom for TB=1024 f32 input tiles: above v5e's 16 MiB default
                # scoped VMEM, comfortably below v7x's 64 MiB physical VMEM.
                vmem_limit_bytes=48 * 1024 * 1024),
            cost_estimate=pl.CostEstimate(flops=flops, transcendentals=0,
                                          bytes_accessed=bytes_accessed),
        )(x, *ws, *bs)

    try:
        logits_pad = call(pl.Buffered(1))
    except Exception:
        # Fallback for Pallas versions without BlockSpec.pipeline_mode /
        # Buffered(1): default double-buffered weights (just ~2.5 MiB more VMEM).
        logits_pad = call(None)

    return logits_pad[:, :num_classes]


# ---------------------------------------------------------------------------
# Pure-JAX reference (mirrors the kernel's bf16-dot / f32-accumulate math)
# ---------------------------------------------------------------------------
def _reference_forward(x_nchw, prepared, num_classes=10):
    ws, bs = prepared
    B = x_nchw.shape[0]
    h = x_nchw.reshape(B, _IN_FEATURES).astype(jnp.bfloat16)
    for li, (w, b) in enumerate(zip(ws, bs)):
        h = jnp.dot(h, w, preferred_element_type=jnp.float32) + b
        if li < len(ws) - 1:
            h = jnp.maximum(h, 0.0).astype(jnp.bfloat16)
    return h[:, :num_classes]


if __name__ == "__main__":
    key = jax.random.PRNGKey(0)
    k_x, k_p = jax.random.split(key)

    # num_channels=1 -> input (B, 1, 32, 32), flattens to 32*32 = 1024 features.
    B, C, H, W = 2, 1, 32, 32
    x = jax.random.normal(k_x, (B, C, H, W), jnp.float32)

    raw_params = make_params(k_p, num_classes=10)
    prepared = prepare_params(raw_params)

    logits = small_fcn_2_forward(x, prepared, num_classes=10)
    logits = jax.block_until_ready(logits)

    ref = _reference_forward(x, prepared, num_classes=10)
    assert logits.shape == (B, 10), logits.shape
    assert jnp.allclose(logits, ref, atol=2e-2, rtol=2e-2), "mismatch vs reference"

    print("KERNEL_OK")
</pallas_src>

<mosaic_0001>
module attributes {stable_mosaic.version = 11 : i64} {
  func.func @_mlp_kernel(%arg0: i32, %arg1: memref<2x1024xf32, #tpu.memory_space<vmem>>, %arg2: memref<1024x512xbf16, #tpu.memory_space<vmem>>, %arg3: memref<512x512xbf16, #tpu.memory_space<vmem>>, %arg4: memref<512x512xbf16, #tpu.memory_space<vmem>>, %arg5: memref<512x256xbf16, #tpu.memory_space<vmem>>, %arg6: memref<256x256xbf16, #tpu.memory_space<vmem>>, %arg7: memref<256x128xbf16, #tpu.memory_space<vmem>>, %arg8: memref<1x512xf32, #tpu.memory_space<vmem>>, %arg9: memref<1x512xf32, #tpu.memory_space<vmem>>, %arg10: memref<1x512xf32, #tpu.memory_space<vmem>>, %arg11: memref<1x256xf32, #tpu.memory_space<vmem>>, %arg12: memref<1x256xf32, #tpu.memory_space<vmem>>, %arg13: memref<1x128xf32, #tpu.memory_space<vmem>>, %arg14: memref<2x128xf32, #tpu.memory_space<vmem>>) attributes {dimension_semantics = [#tpu.dimension_semantics<parallel>], iteration_bounds = array<i64: 1>, scalar_prefetch = 0 : i64, scratch_operands = 0 : i64, tpu.core_type = #tpu.core_type<tc>, window_params = [{transform_indices = @transform_0, window_bounds = array<i64: 2, 1024>}, {pipeline_mode = #tpu.pipeline_mode<synchronous>, transform_indices = @transform_1, window_bounds = array<i64: 1024, 512>}, {pipeline_mode = #tpu.pipeline_mode<synchronous>, transform_indices = @transform_2, window_bounds = array<i64: 512, 512>}, {pipeline_mode = #tpu.pipeline_mode<synchronous>, transform_indices = @transform_3, window_bounds = array<i64: 512, 512>}, {pipeline_mode = #tpu.pipeline_mode<synchronous>, transform_indices = @transform_4, window_bounds = array<i64: 512, 256>}, {pipeline_mode = #tpu.pipeline_mode<synchronous>, transform_indices = @transform_5, window_bounds = array<i64: 256, 256>}, {pipeline_mode = #tpu.pipeline_mode<synchronous>, transform_indices = @transform_6, window_bounds = array<i64: 256, 128>}, {pipeline_mode = #tpu.pipeline_mode<synchronous>, transform_indices = @transform_7, window_bounds = array<i64: 1, 512>}, {pipeline_mode = #tpu.pipeline_mode<synchronous>, transform_indices = @transform_8, window_bounds = array<i64: 1, 512>}, {pipeline_mode = #tpu.pipeline_mode<synchronous>, transform_indices = @transform_9, window_bounds = array<i64: 1, 512>}, {pipeline_mode = #tpu.pipeline_mode<synchronous>, transform_indices = @transform_10, window_bounds = array<i64: 1, 256>}, {pipeline_mode = #tpu.pipeline_mode<synchronous>, transform_indices = @transform_11, window_bounds = array<i64: 1, 256>}, {pipeline_mode = #tpu.pipeline_mode<synchronous>, transform_indices = @transform_12, window_bounds = array<i64: 1, 128>}, {transform_indices = @transform_13, window_bounds = array<i64: 2, 128>}]} {
    %c0 = arith.constant 0 : index
    %c0_0 = arith.constant 0 : index
    %0 = vector.load %arg1[%c0, %c0_0] : memref<2x1024xf32, #tpu.memory_space<vmem>>, vector<2x1024xf32>
    %1 = arith.truncf %0 : vector<2x1024xf32> to vector<2x1024xbf16>
    %c0_1 = arith.constant 0 : index
    %c0_2 = arith.constant 0 : index
    %2 = vector.load %arg2[%c0_1, %c0_2] : memref<1024x512xbf16, #tpu.memory_space<vmem>>, vector<1024x512xbf16>
    %cst = arith.constant dense<0.000000e+00> : vector<2x512xf32>
    %3 = tpu.matmul %1, %2, %cst {dimension_numbers = #tpu.dot_dimension_numbers<[1], [0], [0], [1], [0, 0, 1, 1], [], []>} : vector<2x1024xbf16>, vector<1024x512xbf16>, vector<2x512xf32> -> vector<2x512xf32>
    %c0_3 = arith.constant 0 : index
    %c0_4 = arith.constant 0 : index
    %4 = vector.load %arg8[%c0_3, %c0_4] : memref<1x512xf32, #tpu.memory_space<vmem>>, vector<1x512xf32>
    %5 = vector.broadcast %4 : vector<1x512xf32> to vector<2x512xf32>
    %6 = arith.addf %3, %5 : vector<2x512xf32>
    %cst_5 = arith.constant 0.000000e+00 : f32
    %7 = vector.broadcast %cst_5 : f32 to vector<2x512xf32>
    %8 = arith.maximumf %6, %7 : vector<2x512xf32>
    %9 = arith.truncf %8 : vector<2x512xf32> to vector<2x512xbf16>
    %c0_6 = arith.constant 0 : index
    %c0_7 = arith.constant 0 : index
    %10 = vector.load %arg3[%c0_6, %c0_7] : memref<512x512xbf16, #tpu.memory_space<vmem>>, vector<512x512xbf16>
    %cst_8 = arith.constant dense<0.000000e+00> : vector<2x512xf32>
    %11 = tpu.matmul %9, %10, %cst_8 {dimension_numbers = #tpu.dot_dimension_numbers<[1], [0], [0], [1], [0, 0, 1, 1], [], []>} : vector<2x512xbf16>, vector<512x512xbf16>, vector<2x512xf32> -> vector<2x512xf32>
    %c0_9 = arith.constant 0 : index
    %c0_10 = arith.constant 0 : index
    %12 = vector.load %arg9[%c0_9, %c0_10] : memref<1x512xf32, #tpu.memory_space<vmem>>, vector<1x512xf32>
    %13 = vector.broadcast %12 : vector<1x512xf32> to vector<2x512xf32>
    %14 = arith.addf %11, %13 : vector<2x512xf32>
    %cst_11 = arith.constant 0.000000e+00 : f32
    %15 = vector.broadcast %cst_11 : f32 to vector<2x512xf32>
    %16 = arith.maximumf %14, %15 : vector<2x512xf32>
    %17 = arith.truncf %16 : vector<2x512xf32> to vector<2x512xbf16>
    %c0_12 = arith.constant 0 : index
    %c0_13 = arith.constant 0 : index
    %18 = vector.load %arg4[%c0_12, %c0_13] : memref<512x512xbf16, #tpu.memory_space<vmem>>, vector<512x512xbf16>
    %cst_14 = arith.constant dense<0.000000e+00> : vector<2x512xf32>
    %19 = tpu.matmul %17, %18, %cst_14 {dimension_numbers = #tpu.dot_dimension_numbers<[1], [0], [0], [1], [0, 0, 1, 1], [], []>} : vector<2x512xbf16>, vector<512x512xbf16>, vector<2x512xf32> -> vector<2x512xf32>
    %c0_15 = arith.constant 0 : index
    %c0_16 = arith.constant 0 : index
    %20 = vector.load %arg10[%c0_15, %c0_16] : memref<1x512xf32, #tpu.memory_space<vmem>>, vector<1x512xf32>
    %21 = vector.broadcast %20 : vector<1x512xf32> to vector<2x512xf32>
    %22 = arith.addf %19, %21 : vector<2x512xf32>
    %cst_17 = arith.constant 0.000000e+00 : f32
    %23 = vector.broadcast %cst_17 : f32 to vector<2x512xf32>
    %24 = arith.maximumf %22, %23 : vector<2x512xf32>
    %25 = arith.truncf %24 : vector<2x512xf32> to vector<2x512xbf16>
    %c0_18 = arith.constant 0 : index
    %c0_19 = arith.constant 0 : index
    %26 = vector.load %arg5[%c0_18, %c0_19] : memref<512x256xbf16, #tpu.memory_space<vmem>>, vector<512x256xbf16>
    %cst_20 = arith.constant dense<0.000000e+00> : vector<2x256xf32>
    %27 = tpu.matmul %25, %26, %cst_20 {dimension_numbers = #tpu.dot_dimension_numbers<[1], [0], [0], [1], [0, 0, 1, 1], [], []>} : vector<2x512xbf16>, vector<512x256xbf16>, vector<2x256xf32> -> vector<2x256xf32>
    %c0_21 = arith.constant 0 : index
    %c0_22 = arith.constant 0 : index
    %28 = vector.load %arg11[%c0_21, %c0_22] : memref<1x256xf32, #tpu.memory_space<vmem>>, vector<1x256xf32>
    %29 = vector.broadcast %28 : vector<1x256xf32> to vector<2x256xf32>
    %30 = arith.addf %27, %29 : vector<2x256xf32>
    %cst_23 = arith.constant 0.000000e+00 : f32
    %31 = vector.broadcast %cst_23 : f32 to vector<2x256xf32>
    %32 = arith.maximumf %30, %31 : vector<2x256xf32>
    %33 = arith.truncf %32 : vector<2x256xf32> to vector<2x256xbf16>
    %c0_24 = arith.constant 0 : index
    %c0_25 = arith.constant 0 : index
    %34 = vector.load %arg6[%c0_24, %c0_25] : memref<256x256xbf16, #tpu.memory_space<vmem>>, vector<256x256xbf16>
    %cst_26 = arith.constant dense<0.000000e+00> : vector<2x256xf32>
    %35 = tpu.matmul %33, %34, %cst_26 {dimension_numbers = #tpu.dot_dimension_numbers<[1], [0], [0], [1], [0, 0, 1, 1], [], []>} : vector<2x256xbf16>, vector<256x256xbf16>, vector<2x256xf32> -> vector<2x256xf32>
    %c0_27 = arith.constant 0 : index
    %c0_28 = arith.constant 0 : index
    %36 = vector.load %arg12[%c0_27, %c0_28] : memref<1x256xf32, #tpu.memory_space<vmem>>, vector<1x256xf32>
    %37 = vector.broadcast %36 : vector<1x256xf32> to vector<2x256xf32>
    %38 = arith.addf %35, %37 : vector<2x256xf32>
    %cst_29 = arith.constant 0.000000e+00 : f32
    %39 = vector.broadcast %cst_29 : f32 to vector<2x256xf32>
    %40 = arith.maximumf %38, %39 : vector<2x256xf32>
    %41 = arith.truncf %40 : vector<2x256xf32> to vector<2x256xbf16>
    %c0_30 = arith.constant 0 : index
    %c0_31 = arith.constant 0 : index
    %42 = vector.load %arg7[%c0_30, %c0_31] : memref<256x128xbf16, #tpu.memory_space<vmem>>, vector<256x128xbf16>
    %cst_32 = arith.constant dense<0.000000e+00> : vector<2x128xf32>
    %43 = tpu.matmul %41, %42, %cst_32 {dimension_numbers = #tpu.dot_dimension_numbers<[1], [0], [0], [1], [0, 0, 1, 1], [], []>} : vector<2x256xbf16>, vector<256x128xbf16>, vector<2x128xf32> -> vector<2x128xf32>
    %c0_33 = arith.constant 0 : index
    %c0_34 = arith.constant 0 : index
    %44 = vector.load %arg13[%c0_33, %c0_34] : memref<1x128xf32, #tpu.memory_space<vmem>>, vector<1x128xf32>
    %45 = vector.broadcast %44 : vector<1x128xf32> to vector<2x128xf32>
    %46 = arith.addf %43, %45 : vector<2x128xf32>
    %c0_35 = arith.constant 0 : index
    %c0_36 = arith.constant 0 : index
    %47 = vector.load %arg14[%c0_35, %c0_36] : memref<2x128xf32, #tpu.memory_space<vmem>>, vector<2x128xf32>
    tpu.vector_store %arg14[%c0_35, %c0_36], %46 {strides = array<i32>} : memref<2x128xf32, #tpu.memory_space<vmem>>, vector<2x128xf32>,
    return
  }
  func.func @transform_0(%arg0: i32) -> (i32, i32) {
    %c0_i32 = arith.constant 0 : i32
    %c0_i32_0 = arith.constant 0 : i32
    return %arg0, %c0_i32 : i32, i32
  }
  func.func @transform_1(%arg0: i32) -> (i32, i32) {
    %c0_i32 = arith.constant 0 : i32
    %c0_i32_0 = arith.constant 0 : i32
    %c0_i32_1 = arith.constant 0 : i32
    return %c0_i32, %c0_i32_0 : i32, i32
  }
  func.func @transform_2(%arg0: i32) -> (i32, i32) {
    %c0_i32 = arith.constant 0 : i32
    %c0_i32_0 = arith.constant 0 : i32
    %c0_i32_1 = arith.constant 0 : i32
    return %c0_i32, %c0_i32_0 : i32, i32
  }
  func.func @transform_3(%arg0: i32) -> (i32, i32) {
    %c0_i32 = arith.constant 0 : i32
    %c0_i32_0 = arith.constant 0 : i32
    %c0_i32_1 = arith.constant 0 : i32
    return %c0_i32, %c0_i32_0 : i32, i32
  }
  func.func @transform_4(%arg0: i32) -> (i32, i32) {
    %c0_i32 = arith.constant 0 : i32
    %c0_i32_0 = arith.constant 0 : i32
    %c0_i32_1 = arith.constant 0 : i32
    return %c0_i32, %c0_i32_0 : i32, i32
  }
  func.func @transform_5(%arg0: i32) -> (i32, i32) {
    %c0_i32 = arith.constant 0 : i32
    %c0_i32_0 = arith.constant 0 : i32
    %c0_i32_1 = arith.constant 0 : i32
    return %c0_i32, %c0_i32_0 : i32, i32
  }
  func.func @transform_6(%arg0: i32) -> (i32, i32) {
    %c0_i32 = arith.constant 0 : i32
    %c0_i32_0 = arith.constant 0 : i32
    %c0_i32_1 = arith.constant 0 : i32
    return %c0_i32, %c0_i32_0 : i32, i32
  }
  func.func @transform_7(%arg0: i32) -> (i32, i32) {
    %c0_i32 = arith.constant 0 : i32
    %c0_i32_0 = arith.constant 0 : i32
    %c0_i32_1 = arith.constant 0 : i32
    return %c0_i32, %c0_i32_0 : i32, i32
  }
  func.func @transform_8(%arg0: i32) -> (i32, i32) {
    %c0_i32 = arith.constant 0 : i32
    %c0_i32_0 = arith.constant 0 : i32
    %c0_i32_1 = arith.constant 0 : i32
    return %c0_i32, %c0_i32_0 : i32, i32
  }
  func.func @transform_9(%arg0: i32) -> (i32, i32) {
    %c0_i32 = arith.constant 0 : i32
    %c0_i32_0 = arith.constant 0 : i32
    %c0_i32_1 = arith.constant 0 : i32
    return %c0_i32, %c0_i32_0 : i32, i32
  }
  func.func @transform_10(%arg0: i32) -> (i32, i32) {
    %c0_i32 = arith.constant 0 : i32
    %c0_i32_0 = arith.constant 0 : i32
    %c0_i32_1 = arith.constant 0 : i32
    return %c0_i32, %c0_i32_0 : i32, i32
  }
  func.func @transform_11(%arg0: i32) -> (i32, i32) {
    %c0_i32 = arith.constant 0 : i32
    %c0_i32_0 = arith.constant 0 : i32
    %c0_i32_1 = arith.constant 0 : i32
    return %c0_i32, %c0_i32_0 : i32, i32
  }
  func.func @transform_12(%arg0: i32) -> (i32, i32) {
    %c0_i32 = arith.constant 0 : i32
    %c0_i32_0 = arith.constant 0 : i32
    %c0_i32_1 = arith.constant 0 : i32
    return %c0_i32, %c0_i32_0 : i32, i32
  }
  func.func @transform_13(%arg0: i32) -> (i32, i32) {
    %c0_i32 = arith.constant 0 : i32
    %c0_i32_0 = arith.constant 0 : i32
    return %arg0, %c0_i32 : i32, i32
  }
}

module attributes {stable_mosaic.version = 11 : i64} {
  func.func @_mlp_kernel(%arg0: i32, %arg1: memref<2x1024xf32, #tpu.memory_space<vmem>>, %arg2: memref<1024x512xbf16, #tpu.memory_space<vmem>>, %arg3: memref<512x512xbf16, #tpu.memory_space<vmem>>, %arg4: memref<512x512xbf16, #tpu.memory_space<vmem>>, %arg5: memref<512x256xbf16, #tpu.memory_space<vmem>>, %arg6: memref<256x256xbf16, #tpu.memory_space<vmem>>, %arg7: memref<256x128xbf16, #tpu.memory_space<vmem>>, %arg8: memref<1x512xf32, #tpu.memory_space<vmem>>, %arg9: memref<1x512xf32, #tpu.memory_space<vmem>>, %arg10: memref<1x512xf32, #tpu.memory_space<vmem>>, %arg11: memref<1x256xf32, #tpu.memory_space<vmem>>, %arg12: memref<1x256xf32, #tpu.memory_space<vmem>>, %arg13: memref<1x128xf32, #tpu.memory_space<vmem>>, %arg14: memref<2x128xf32, #tpu.memory_space<vmem>>) attributes {dimension_semantics = [#tpu.dimension_semantics<parallel>], iteration_bounds = array<i64: 1>, scalar_prefetch = 0 : i64, scratch_operands = 0 : i64, tpu.core_type = #tpu.core_type<tc>, window_params = [{transform_indices = @transform_0, window_bounds = array<i64: 2, 1024>}, {pipeline_mode = #tpu.pipeline_mode<synchronous>, transform_indices = @transform_1, window_bounds = array<i64: 1024, 512>}, {pipeline_mode = #tpu.pipeline_mode<synchronous>, transform_indices = @transform_2, window_bounds = array<i64: 512, 512>}, {pipeline_mode = #tpu.pipeline_mode<synchronous>, transform_indices = @transform_3, window_bounds = array<i64: 512, 512>}, {pipeline_mode = #tpu.pipeline_mode<synchronous>, transform_indices = @transform_4, window_bounds = array<i64: 512, 256>}, {pipeline_mode = #tpu.pipeline_mode<synchronous>, transform_indices = @transform_5, window_bounds = array<i64: 256, 256>}, {pipeline_mode = #tpu.pipeline_mode<synchronous>, transform_indices = @transform_6, window_bounds = array<i64: 256, 128>}, {pipeline_mode = #tpu.pipeline_mode<synchronous>, transform_indices = @transform_7, window_bounds = array<i64: 1, 512>}, {pipeline_mode = #tpu.pipeline_mode<synchronous>, transform_indices = @transform_8, window_bounds = array<i64: 1, 512>}, {pipeline_mode = #tpu.pipeline_mode<synchronous>, transform_indices = @transform_9, window_bounds = array<i64: 1, 512>}, {pipeline_mode = #tpu.pipeline_mode<synchronous>, transform_indices = @transform_10, window_bounds = array<i64: 1, 256>}, {pipeline_mode = #tpu.pipeline_mode<synchronous>, transform_indices = @transform_11, window_bounds = array<i64: 1, 256>}, {pipeline_mode = #tpu.pipeline_mode<synchronous>, transform_indices = @transform_12, window_bounds = array<i64: 1, 128>}, {transform_indices = @transform_13, window_bounds = array<i64: 2, 128>}]} {
    %c0 = arith.constant 0 : index
    %c0_0 = arith.constant 0 : index
    %0 = vector.load %arg1[%c0, %c0_0] : memref<2x1024xf32, #tpu.memory_space<vmem>>, vector<2x1024xf32>
    %1 = arith.truncf %0 : vector<2x1024xf32> to vector<2x1024xbf16>
    %c0_1 = arith.constant 0 : index
    %c0_2 = arith.constant 0 : index
    %2 = vector.load %arg2[%c0_1, %c0_2] : memref<1024x512xbf16, #tpu.memory_space<vmem>>, vector<1024x512xbf16>
    %cst = arith.constant dense<0.000000e+00> : vector<2x512xf32>
    %3 = tpu.matmul %1, %2, %cst {dimension_numbers = #tpu.dot_dimension_numbers<[1], [0], [0], [1], [0, 0, 1, 1], [], []>} : vector<2x1024xbf16>, vector<1024x512xbf16>, vector<2x512xf32> -> vector<2x512xf32>
    %c0_3 = arith.constant 0 : index
    %c0_4 = arith.constant 0 : index
    %4 = vector.load %arg8[%c0_3, %c0_4] : memref<1x512xf32, #tpu.memory_space<vmem>>, vector<1x512xf32>
    %5 = vector.broadcast %4 : vector<1x512xf32> to vector<2x512xf32>
    %6 = arith.addf %3, %5 : vector<2x512xf32>
    %cst_5 = arith.constant 0.000000e+00 : f32
    %7 = vector.broadcast %cst_5 : f32 to vector<2x512xf32>
    %8 = arith.maximumf %6, %7 : vector<2x512xf32>
    %9 = arith.truncf %8 : vector<2x512xf32> to vector<2x512xbf16>
    %c0_6 = arith.constant 0 : index
    %c0_7 = arith.constant 0 : index
    %10 = vector.load %arg3[%c0_6, %c0_7] : memref<512x512xbf16, #tpu.memory_space<vmem>>, vector<512x512xbf16>
    %cst_8 = arith.constant dense<0.000000e+00> : vector<2x512xf32>
    %11 = tpu.matmul %9, %10, %cst_8 {dimension_numbers = #tpu.dot_dimension_numbers<[1], [0], [0], [1], [0, 0, 1, 1], [], []>} : vector<2x512xbf16>, vector<512x512xbf16>, vector<2x512xf32> -> vector<2x512xf32>
    %c0_9 = arith.constant 0 : index
    %c0_10 = arith.constant 0 : index
    %12 = vector.load %arg9[%c0_9, %c0_10] : memref<1x512xf32, #tpu.memory_space<vmem>>, vector<1x512xf32>
    %13 = vector.broadcast %12 : vector<1x512xf32> to vector<2x512xf32>
    %14 = arith.addf %11, %13 : vector<2x512xf32>
    %cst_11 = arith.constant 0.000000e+00 : f32
    %15 = vector.broadcast %cst_11 : f32 to vector<2x512xf32>
    %16 = arith.maximumf %14, %15 : vector<2x512xf32>
    %17 = arith.truncf %16 : vector<2x512xf32> to vector<2x512xbf16>
    %c0_12 = arith.constant 0 : index
    %c0_13 = arith.constant 0 : index
    %18 = vector.load %arg4[%c0_12, %c0_13] : memref<512x512xbf16, #tpu.memory_space<vmem>>, vector<512x512xbf16>
    %cst_14 = arith.constant dense<0.000000e+00> : vector<2x512xf32>
    %19 = tpu.matmul %17, %18, %cst_14 {dimension_numbers = #tpu.dot_dimension_numbers<[1], [0], [0], [1], [0, 0, 1, 1], [], []>} : vector<2x512xbf16>, vector<512x512xbf16>, vector<2x512xf32> -> vector<2x512xf32>
    %c0_15 = arith.constant 0 : index
    %c0_16 = arith.constant 0 : index
    %20 = vector.load %arg10[%c0_15, %c0_16] : memref<1x512xf32, #tpu.memory_space<vmem>>, vector<1x512xf32>
    %21 = vector.broadcast %20 : vector<1x512xf32> to vector<2x512xf32>
    %22 = arith.addf %19, %21 : vector<2x512xf32>
    %cst_17 = arith.constant 0.000000e+00 : f32
    %23 = vector.broadcast %cst_17 : f32 to vector<2x512xf32>
    %24 = arith.maximumf %22, %23 : vector<2x512xf32>
    %25 = arith.truncf %24 : vector<2x512xf32> to vector<2x512xbf16>
    %c0_18 = arith.constant 0 : index
    %c0_19 = arith.constant 0 : index
    %26 = vector.load %arg5[%c0_18, %c0_19] : memref<512x256xbf16, #tpu.memory_space<vmem>>, vector<512x256xbf16>
    %cst_20 = arith.constant dense<0.000000e+00> : vector<2x256xf32>
    %27 = tpu.matmul %25, %26, %cst_20 {dimension_numbers = #tpu.dot_dimension_numbers<[1], [0], [0], [1], [0, 0, 1, 1], [], []>} : vector<2x512xbf16>, vector<512x256xbf16>, vector<2x256xf32> -> vector<2x256xf32>
    %c0_21 = arith.constant 0 : index
    %c0_22 = arith.constant 0 : index
    %28 = vector.load %arg11[%c0_21, %c0_22] : memref<1x256xf32, #tpu.memory_space<vmem>>, vector<1x256xf32>
    %29 = vector.broadcast %28 : vector<1x256xf32> to vector<2x256xf32>
    %30 = arith.addf %27, %29 : vector<2x256xf32>
    %cst_23 = arith.constant 0.000000e+00 : f32
    %31 = vector.broadcast %cst_23 : f32 to vector<2x256xf32>
    %32 = arith.maximumf %30, %31 : vector<2x256xf32>
    %33 = arith.truncf %32 : vector<2x256xf32> to vector<2x256xbf16>
    %c0_24 = arith.constant 0 : index
    %c0_25 = arith.constant 0 : index
    %34 = vector.load %arg6[%c0_24, %c0_25] : memref<256x256xbf16, #tpu.memory_space<vmem>>, vector<256x256xbf16>
    %cst_26 = arith.constant dense<0.000000e+00> : vector<2x256xf32>
    %35 = tpu.matmul %33, %34, %cst_26 {dimension_numbers = #tpu.dot_dimension_numbers<[1], [0], [0], [1], [0, 0, 1, 1], [], []>} : vector<2x256xbf16>, vector<256x256xbf16>, vector<2x256xf32> -> vector<2x256xf32>
    %c0_27 = arith.constant 0 : index
    %c0_28 = arith.constant 0 : index
    %36 = vector.load %arg12[%c0_27, %c0_28] : memref<1x256xf32, #tpu.memory_space<vmem>>, vector<1x256xf32>
    %37 = vector.broadcast %36 : vector<1x256xf32> to vector<2x256xf32>
    %38 = arith.addf %35, %37 : vector<2x256xf32>
    %cst_29 = arith.constant 0.000000e+00 : f32
    %39 = vector.broadcast %cst_29 : f32 to vector<2x256xf32>
    %40 = arith.maximumf %38, %39 : vector<2x256xf32>
    %41 = arith.truncf %40 : vector<2x256xf32> to vector<2x256xbf16>
    %c0_30 = arith.constant 0 : index
    %c0_31 = arith.constant 0 : index
    %42 = vector.load %arg7[%c0_30, %c0_31] : memref<256x128xbf16, #tpu.memory_space<vmem>>, vector<256x128xbf16>
    %cst_32 = arith.constant dense<0.000000e+00> : vector<2x128xf32>
    %43 = tpu.matmul %41, %42, %cst_32 {dimension_numbers = #tpu.dot_dimension_numbers<[1], [0], [0], [1], [0, 0, 1, 1], [], []>} : vector<2x256xbf16>, vector<256x128xbf16>, vector<2x128xf32> -> vector<2x128xf32>
    %c0_33 = arith.constant 0 : index
    %c0_34 = arith.constant 0 : index
    %44 = vector.load %arg13[%c0_33, %c0_34] : memref<1x128xf32, #tpu.memory_space<vmem>>, vector<1x128xf32>
    %45 = vector.broadcast %44 : vector<1x128xf32> to vector<2x128xf32>
    %46 = arith.addf %43, %45 : vector<2x128xf32>
    %c0_35 = arith.constant 0 : index
    %c0_36 = arith.constant 0 : index
    %47 = vector.load %arg14[%c0_35, %c0_36] : memref<2x128xf32, #tpu.memory_space<vmem>>, vector<2x128xf32>
    tpu.vector_store %arg14[%c0_35, %c0_36], %46 {strides = array<i32>} : memref<2x128xf32, #tpu.memory_space<vmem>>, vector<2x128xf32>,
    return
  }
  func.func @transform_0(%arg0: i32) -> (i32, i32) {
    %c0_i32 = arith.constant 0 : i32
    %c0_i32_0 = arith.constant 0 : i32
    return %arg0, %c0_i32 : i32, i32
  }
  func.func @transform_1(%arg0: i32) -> (i32, i32) {
    %c0_i32 = arith.constant 0 : i32
    %c0_i32_0 = arith.constant 0 : i32
    %c0_i32_1 = arith.constant 0 : i32
    return %c0_i32, %c0_i32_0 : i32, i32
  }
  func.func @transform_2(%arg0: i32) -> (i32, i32) {
    %c0_i32 = arith.constant 0 : i32
    %c0_i32_0 = arith.constant 0 : i32
    %c0_i32_1 = arith.constant 0 : i32
    return %c0_i32, %c0_i32_0 : i32, i32
  }
  func.func @transform_3(%arg0: i32) -> (i32, i32) {
    %c0_i32 = arith.constant 0 : i32
    %c0_i32_0 = arith.constant 0 : i32
    %c0_i32_1 = arith.constant 0 : i32
    return %c0_i32, %c0_i32_0 : i32, i32
  }
  func.func @transform_4(%arg0: i32) -> (i32, i32) {
    %c0_i32 = arith.constant 0 : i32
    %c0_i32_0 = arith.constant 0 : i32
    %c0_i32_1 = arith.constant 0 : i32
    return %c0_i32, %c0_i32_0 : i32, i32
  }
  func.func @transform_5(%arg0: i32) -> (i32, i32) {
    %c0_i32 = arith.constant 0 : i32
    %c0_i32_0 = arith.constant 0 : i32
    %c0_i32_1 = arith.constant 0 : i32
    return %c0_i32, %c0_i32_0 : i32, i32
  }
  func.func @transform_6(%arg0: i32) -> (i32, i32) {
    %c0_i32 = arith.constant 0 : i32
    %c0_i32_0 = arith.constant 0 : i32
    %c0_i32_1 = arith.constant 0 : i32
    return %c0_i32, %c0_i32_0 : i32, i32
  }
  func.func @transform_7(%arg0: i32) -> (i32, i32) {
    %c0_i32 = arith.constant 0 : i32
    %c0_i32_0 = arith.constant 0 : i32
    %c0_i32_1 = arith.constant 0 : i32
    return %c0_i32, %c0_i32_0 : i32, i32
  }
  func.func @transform_8(%arg0: i32) -> (i32, i32) {
    %c0_i32 = arith.constant 0 : i32
    %c0_i32_0 = arith.constant 0 : i32
    %c0_i32_1 = arith.constant 0 : i32
    return %c0_i32, %c0_i32_0 : i32, i32
  }
  func.func @transform_9(%arg0: i32) -> (i32, i32) {
    %c0_i32 = arith.constant 0 : i32
    %c0_i32_0 = arith.constant 0 : i32
    %c0_i32_1 = arith.constant 0 : i32
    return %c0_i32, %c0_i32_0 : i32, i32
  }
  func.func @transform_10(%arg0: i32) -> (i32, i32) {
    %c0_i32 = arith.constant 0 : i32
    %c0_i32_0 = arith.constant 0 : i32
    %c0_i32_1 = arith.constant 0 : i32
    return %c0_i32, %c0_i32_0 : i32, i32
  }
  func.func @transform_11(%arg0: i32) -> (i32, i32) {
    %c0_i32 = arith.constant 0 : i32
    %c0_i32_0 = arith.constant 0 : i32
    %c0_i32_1 = arith.constant 0 : i32
    return %c0_i32, %c0_i32_0 : i32, i32
  }
  func.func @transform_12(%arg0: i32) -> (i32, i32) {
    %c0_i32 = arith.constant 0 : i32
    %c0_i32_0 = arith.constant 0 : i32
    %c0_i32_1 = arith.constant 0 : i32
    return %c0_i32, %c0_i32_0 : i32, i32
  }
  func.func @transform_13(%arg0: i32) -> (i32, i32) {
    %c0_i32 = arith.constant 0 : i32
    %c0_i32_0 = arith.constant 0 : i32
    return %arg0, %c0_i32 : i32, i32
  }
}

</mosaic_0001>

<bundles_post_ra>
// kernel: tpu_custom_call.1
= control target key start
LH: loop header
LB: loop body
LE: loop exit
PB: predicated region body
PF: predicated region fallthrough
CT: control target
= control target key end

     0   :  { %18 = vsyncpa [#allocation3], 0  ;;  %s8854_s0 = inlined_call_operand.hbm [shape: f32[2,1024], index: 0, kind: input, shape index: {}]   ;;  %s8855_s1 = inlined_call_operand.hbm [shape: bf16[1024,512], index: 1, kind: input, shape index: {}]   ;;  %s8856_s2 = inlined_call_operand.hbm [shape: bf16[512,512], index: 2, kind: input, shape index: {}]   ;;  %s8857_s3 = inlined_call_operand.hbm [shape: bf16[512,512], index: 3, kind: input, shape index: {}]   ;;  %s8858_s4 = inlined_call_operand.hbm [shape: bf16[512,256], index: 4, kind: input, shape index: {}]   ;;  %s8859_s5 = inlined_call_operand.hbm [shape: bf16[256,256], index: 5, kind: input, shape index: {}]   ;;  %s8860_s6 = inlined_call_operand.hbm [shape: bf16[256,128], index: 6, kind: input, shape index: {}]   ;;  %s8861_s7 = inlined_call_operand.vmem [shape: f32[1,512], index: 7, kind: input, shape index: {}]   ;;  %s8862_s8 = inlined_call_operand.hbm [shape: f32[1,512], index: 8, kind: input, shape index: {}]   ;;  %s8863_s9 = inlined_call_operand.vmem [shape: f32[1,512], index: 9, kind: input, shape index: {}]   ;;  %s8864_s10 = inlined_call_operand.hbm [shape: f32[1,256], index: 10, kind: input, shape index: {}]   ;;  %s8865_s11 = inlined_call_operand.vmem [shape: f32[1,256], index: 11, kind: input, shape index: {}]   ;;  %s8866_s12 = inlined_call_operand.vmem [shape: f32[1,128], index: 12, kind: input, shape index: {}]   ;;  %s8867_s13 = inlined_call_operand.hbm [shape: f32[2,128], index: 13, kind: output, shape index: {}]  }
   0x1   :  { %19 = vsyncpa [#allocation6], 0 }
   0x2   :  { %20 = vsyncpa [#allocation9], 0 }
   0x3   :  { %21 = vsyncpa [#allocation12], 0 }
   0x4   :  { %22 = vsyncpa [#allocation15], 0  ;;  %s39_s27 = sshll.u32 %s8855_s1, 4  ;;  %s40_s27 = int_to_ptr.hbm [resolvable:$true] %s39_s27 }
   0x5   :  { %23 = vsyncpa [#allocation4], 0  ;;  %s8490_s28 = smov [#allocation5]   ;;  %s65_s15 = sshll.u32 %s8857_s3, 4  ;;  %s66_s15 = int_to_ptr.hbm [resolvable:$true] %s65_s15 }
   0x6   :  { %s41_s29 = sshll.u32 %s8490_s28, 4  ;;  %s8491_s16 = smov 256   ;;  %s42_s29 = int_to_ptr.vmem [resolvable:$true] %s41_s29 }
   0x7   :  { %s8492_s17 = smov 16   ;;  %s8493_s18 = smov [#allocation8]  }
   0x8   :  { %47 = dma.hbm_to_vmem [thread:$0]  %s40_s27, 32768, %s42_s29, [#allocation6], %s8491_s16, %s8491_s16, %s8492_s17  }
   0x9   :  { %s67_s19 = sshll.u32 %s8493_s18, 4  ;;  %s91_s21 = sshll.u32 %s8859_s5, 4  ;;  %s68_s19 = int_to_ptr.vmem [resolvable:$true] %s67_s19  ;;  %s92_s21 = int_to_ptr.hbm [resolvable:$true] %s91_s21 }
   0xa   :  { %73 = dma.hbm_to_vmem [thread:$0]  %s66_s15, 16384, %s68_s19, [#allocation9], %s8491_s16, %s8491_s16, %s8492_s17  }
   0xb   :  { %s8494_s3 = smov [#allocation11]   ;;  %s120_s25 = sshll.u32 %s8862_s8, 4  ;;  %s121_s25 = int_to_ptr.hbm [resolvable:$true] %s120_s25 }
   0xc   :  { %s93_s22 = sshll.u32 %s8494_s3, 4  ;;  %s8495_s26 = smov 128   ;;  %s94_s22 = int_to_ptr.vmem [resolvable:$true] %s93_s22 }
   0xd   :  { %s8496_s27 = smov 8   ;;  %s8497_s28 = smov [#allocation14]  }
   0xe   :  { %99 = dma.hbm_to_vmem [thread:$0]  %s92_s21, 4096, %s94_s22, [#allocation12], %s8495_s26, %s8495_s26, %s8496_s27  }
   0xf   :  { %s122_s29 = sshll.u32 %s8497_s28, 4  ;;  %s29_s5 = sshll.u32 %s8854_s0, 4  ;;  %s123_s29 = int_to_ptr.vmem [resolvable:$true] %s122_s29  ;;  %s30_s5 = int_to_ptr.hbm [resolvable:$true] %s29_s5 }
  0x10   :  { %125 = dma.hbm_to_vmem [thread:$0]  %s121_s25, 64, %s123_s29, [#allocation15]  }
  0x11   :  { %s52_s8 = sshll.u32 %s8856_s2, 4  ;;  %s8498_s19 = smov [#allocation2]   ;;  %s53_s8 = int_to_ptr.hbm [resolvable:$true] %s52_s8 }
  0x12   :  { %s31_s1 = sshll.u32 %s8498_s19, 4  ;;  %s8499_s20 = smov [#allocation7]   ;;  %s32_s1 = int_to_ptr.vmem [resolvable:$true] %s31_s1 }
  0x13   :  { %34 = dma.hbm_to_vmem [thread:$0]  %s30_s5, 256, %s32_s1, [#allocation3]  }
  0x14   :  { %s54_s21 = sshll.u32 %s8499_s20, 4  ;;  %s78_s23 = sshll.u32 %s8858_s4, 4  ;;  %s55_s21 = int_to_ptr.vmem [resolvable:$true] %s54_s21  ;;  %s79_s23 = int_to_ptr.hbm [resolvable:$true] %s78_s23 }
  0x15   :  { %60 = dma.hbm_to_vmem [thread:$0]  %s53_s8, 16384, %s55_s21, [#allocation6], %s8491_s16, %s8491_s16, %s8492_s17  }
  0x16   :  { %s104_s2 = sshll.u32 %s8860_s6, 4  ;;  %s8500_s25 = smov [#allocation10]   ;;  %s105_s2 = int_to_ptr.hbm [resolvable:$true] %s104_s2 }
  0x17   :  { %s80_s28 = sshll.u32 %s8500_s25, 4  ;;  %s8501_s29 = smov [#allocation13]   ;;  %s81_s28 = int_to_ptr.vmem [resolvable:$true] %s80_s28 }
  0x18   :  { %86 = dma.hbm_to_vmem [thread:$0]  %s79_s23, 8192, %s81_s28, [#allocation9], %s8495_s26, %s8495_s26, %s8496_s27  }
  0x19   :  { %s106_s4 = sshll.u32 %s8501_s29, 4  ;;  %s8502_s30 = smov 64   ;;  %s107_s4 = int_to_ptr.vmem [resolvable:$true] %s106_s4 }
  0x1a   :  { %s8503_s14 = smov 4   ;;  %s133_s17 = sshll.u32 %s8864_s10, 4  ;;  %s134_s17 = int_to_ptr.hbm [resolvable:$true] %s133_s17 }
  0x1b   :  { %112 = dma.hbm_to_vmem [thread:$0]  %s105_s2, 2048, %s107_s4, [#allocation12], %s8502_s30, %s8502_s30, %s8503_s14  }
  0x1c   :  { %s8504_s6 = smov [#allocation16]  }
  0x1d   :  { %s135_s15 = sshll.u32 %s8504_s6, 4  ;;  %s136_s15 = int_to_ptr.vmem [resolvable:$true] %s135_s15 }
  0x1e   :  { %138 = dma.hbm_to_vmem [thread:$0]  %s134_s17, 32, %s136_s15, [#allocation15]  }
  0x1f   :  { %8478 = dma.done.wait [#allocation3], 256  }
  0x20   :  { %8479 = vsyncadd [#allocation3], 4294967040 }
  0x21   :  { %8480 = dma.done.wait [#allocation6], 49152  }
  0x22   :  { %8481 = vsyncadd [#allocation6], 4294918144 }
  0x23   :  { %8482 = dma.done.wait [#allocation9], 24576  }
  0x24   :  { %8483 = vsyncadd [#allocation9], 4294942720 }
  0x25   :  { %8484 = dma.done.wait [#allocation12], 6144  }
  0x26   :  { %8485 = vsyncadd [#allocation12], 4294961152 }
  0x27   :  { %8486 = dma.done.wait [#allocation15], 96  }
  0x28   :  { %8487 = vsyncadd [#allocation15], 4294967200  ;;  %v5214_v0 = vld [vmem:[#allocation5 + $0xe0] sm:$0xf]  ;;  %v7626_v1 = vld [vmem:[#allocation5 + $0xec] sm:$0xf0] }
  0x29   :  { %v5342_v2 = vld [vmem:[#allocation5 + $0x1e0] sm:$0xf]  ;;  %v5215_v3 = vor.u32 %v7626_v1, %v5214_v0  ;;  %v7658_v4 = vld [vmem:[#allocation5 + $0x1ec] sm:$0xf0]  ;;  %s8505_s20 = smov [#allocation17]   ;;  %s5086_s23 = sshll.u32 %s8867_s13, 4  ;;  %s5087_s23 = int_to_ptr.hbm [resolvable:$true] %s5086_s23 }
  0x2a   :  { %v5470_v5 = vld [vmem:[#allocation5 + $0x2e0] sm:$0xf]  ;;  %v7690_v6 = vld [vmem:[#allocation5 + $0x2ec] sm:$0xf0]  ;;  %v5343_v7 = vor.u32 %v7658_v4, %v5342_v2  ;;  %s5084_s21 = sshll.u32 %s8505_s20, 4  ;;  %s5085_s21 = int_to_ptr.vmem [resolvable:$true] %s5084_s21 }
  0x2b   :  { %v5471_v8 = vor.u32 %v7690_v6, %v5470_v5  ;;  %v5598_v9 = vld [vmem:[#allocation5 + $0x3e0] sm:$0xf]  ;;  %v7722_v10 = vld [vmem:[#allocation5 + $0x3ec] sm:$0xf0]  ;;  %1756 = vmatpush.bf16.msra.mxu0 %v5215_v3 }
  0x2c   :  { %v5198_v11 = vld [vmem:[#allocation5 + $0xc0] sm:$0xf]  ;;  %v5599_v12 = vor.u32 %v7722_v10, %v5598_v9  ;;  %v7622_v13 = vld [vmem:[#allocation5 + $0xcc] sm:$0xf0]  ;;  %1769 = vmatpush.bf16.msra.mxu1 %v5343_v7 }
  0x2d   :  { %v5326_v14 = vld [vmem:[#allocation5 + $0x1c0] sm:$0xf]  ;;  %v7654_v15 = vld [vmem:[#allocation5 + $0x1cc] sm:$0xf0]  ;;  %1782 = vmatpush.bf16.msra.mxu2 %v5471_v8  ;;  %v5199_v16 = vor.u32 %v7622_v13, %v5198_v11 }
  0x2e   :  { %v5327_v17 = vor.u32 %v7654_v15, %v5326_v14  ;;  %v5454_v18 = vld [vmem:[#allocation5 + $0x2c0] sm:$0xf]  ;;  %v7686_v19 = vld [vmem:[#allocation5 + $0x2cc] sm:$0xf0]  ;;  %1795 = vmatpush.bf16.msra.mxu3 %v5599_v12 }
  0x2f   :  { %v5582_v20 = vld [vmem:[#allocation5 + $0x3c0] sm:$0xf]  ;;  %v5455_v21 = vor.u32 %v7686_v19, %v5454_v18  ;;  %v7718_v22 = vld [vmem:[#allocation5 + $0x3cc] sm:$0xf0]  ;;  %1757 = vmatpush.bf16.msra.mxu0 %v5199_v16 }
  0x30   :  { %v5182_v23 = vld [vmem:[#allocation5 + $0xa0] sm:$0xf]  ;;  %v7618_v24 = vld [vmem:[#allocation5 + $0xac] sm:$0xf0]  ;;  %v5583_v25 = vor.u32 %v7718_v22, %v5582_v20  ;;  %1770 = vmatpush.bf16.msra.mxu1 %v5327_v17 }
  0x31   :  { %v5310_v26 = vld [vmem:[#allocation5 + $0x1a0] sm:$0xf]  ;;  %v7650_v27 = vld [vmem:[#allocation5 + $0x1ac] sm:$0xf0]  ;;  %v5183_v29 = vor.u32 %v7618_v24, %v5182_v23  ;;  %1783 = vmatpush.bf16.msra.mxu2 %v5455_v21 }
  0x32   :  { %v5438_v28 = vld [vmem:[#allocation5 + $0x2a0] sm:$0xf]  ;;  %v7682_v30 = vld [vmem:[#allocation5 + $0x2ac] sm:$0xf0]  ;;  %v5311_v33 = vor.u32 %v7650_v27, %v5310_v26  ;;  %1796 = vmatpush.bf16.msra.mxu3 %v5583_v25 }
  0x33   :  { %v5566_v31 = vld [vmem:[#allocation5 + $0x3a0] sm:$0xf]  ;;  %v7714_v32 = vld [vmem:[#allocation5 + $0x3ac] sm:$0xf0]  ;;  %v5439_v34 = vor.u32 %v7682_v30, %v5438_v28  ;;  %1758 = vmatpush.bf16.msra.mxu0 %v5183_v29 }
  0x34   :  { %v5166_v35 = vld [vmem:[#allocation5 + $0x80] sm:$0xf]  ;;  %v7614_v36 = vld [vmem:[#allocation5 + $0x8c] sm:$0xf0]  ;;  %v5567_v38 = vor.u32 %v7714_v32, %v5566_v31  ;;  %1771 = vmatpush.bf16.msra.mxu1 %v5311_v33 }
  0x35   :  { %v5294_v37 = vld [vmem:[#allocation5 + $0x180] sm:$0xf]  ;;  %v7646_v39 = vld [vmem:[#allocation5 + $0x18c] sm:$0xf0]  ;;  %v5167_v44 = vor.u32 %v7614_v36, %v5166_v35  ;;  %1784 = vmatpush.bf16.msra.mxu2 %v5439_v34 }
  0x36   :  { %v5422_v40 = vld [vmem:[#allocation5 + $0x280] sm:$0xf]  ;;  %v7678_v41 = vld [vmem:[#allocation5 + $0x28c] sm:$0xf0]  ;;  %v5295_v45 = vor.u32 %v7646_v39, %v5294_v37  ;;  %1797 = vmatpush.bf16.msra.mxu3 %v5567_v38 }
  0x37   :  { %v5550_v42 = vld [vmem:[#allocation5 + $0x380] sm:$0xf]  ;;  %v7710_v43 = vld [vmem:[#allocation5 + $0x38c] sm:$0xf0]  ;;  %v5423_v46 = vor.u32 %v7678_v41, %v5422_v40  ;;  %1759 = vmatpush.bf16.msra.mxu0 %v5167_v44 }
  0x38   :  { %v5150_v47 = vld [vmem:[#allocation5 + $0x60] sm:$0xf]  ;;  %v7610_v48 = vld [vmem:[#allocation5 + $0x6c] sm:$0xf0]  ;;  %v5551_v50 = vor.u32 %v7710_v43, %v5550_v42  ;;  %1772 = vmatpush.bf16.msra.mxu1 %v5295_v45 }
  0x39   :  { %v5278_v49 = vld [vmem:[#allocation5 + $0x160] sm:$0xf]  ;;  %v7642_v51 = vld [vmem:[#allocation5 + $0x16c] sm:$0xf0]  ;;  %v5151_v56 = vor.u32 %v7610_v48, %v5150_v47  ;;  %1785 = vmatpush.bf16.msra.mxu2 %v5423_v46 }
  0x3a   :  { %v5406_v52 = vld [vmem:[#allocation5 + $0x260] sm:$0xf]  ;;  %v7674_v53 = vld [vmem:[#allocation5 + $0x26c] sm:$0xf0]  ;;  %v5279_v57 = vor.u32 %v7642_v51, %v5278_v49  ;;  %1798 = vmatpush.bf16.msra.mxu3 %v5551_v50 }
  0x3b   :  { %v5534_v54 = vld [vmem:[#allocation5 + $0x360] sm:$0xf]  ;;  %v7706_v55 = vld [vmem:[#allocation5 + $0x36c] sm:$0xf0]  ;;  %v5407_v58 = vor.u32 %v7674_v53, %v5406_v52  ;;  %1760 = vmatpush.bf16.msra.mxu0 %v5151_v56 }
  0x3c   :  { %v5134_v59 = vld [vmem:[#allocation5 + $0x40] sm:$0xf]  ;;  %v7606_v60 = vld [vmem:[#allocation5 + $0x4c] sm:$0xf0]  ;;  %v5535_v62 = vor.u32 %v7706_v55, %v5534_v54  ;;  %1773 = vmatpush.bf16.msra.mxu1 %v5279_v57 }
  0x3d   :  { %v5262_v61 = vld [vmem:[#allocation5 + $0x140] sm:$0xf]  ;;  %v7638_v63 = vld [vmem:[#allocation5 + $0x14c] sm:$0xf0]  ;;  %v5135_v4 = vor.u32 %v7606_v60, %v5134_v59  ;;  %1786 = vmatpush.bf16.msra.mxu2 %v5407_v58 }
  0x3e   :  { %v5390_v0 = vld [vmem:[#allocation5 + $0x240] sm:$0xf]  ;;  %v7670_v1 = vld [vmem:[#allocation5 + $0x24c] sm:$0xf0]  ;;  %v5263_v5 = vor.u32 %v7638_v63, %v5262_v61  ;;  %1799 = vmatpush.bf16.msra.mxu3 %v5535_v62 }
  0x3f   :  { %v5518_v2 = vld [vmem:[#allocation5 + $0x340] sm:$0xf]  ;;  %v7702_v3 = vld [vmem:[#allocation5 + $0x34c] sm:$0xf0]  ;;  %v5391_v6 = vor.u32 %v7670_v1, %v5390_v0  ;;  %1761 = vmatpush.bf16.msra.mxu0 %v5135_v4 }
  0x40   :  { %v5118_v7 = vld [vmem:[#allocation5 + $0x20] sm:$0xf]  ;;  %v7602_v8 = vld [vmem:[#allocation5 + $0x2c] sm:$0xf0]  ;;  %v5519_v10 = vor.u32 %v7702_v3, %v5518_v2  ;;  %1774 = vmatpush.bf16.msra.mxu1 %v5263_v5 }
  0x41   :  { %v5246_v9 = vld [vmem:[#allocation5 + $0x120] sm:$0xf]  ;;  %v7634_v11 = vld [vmem:[#allocation5 + $0x12c] sm:$0xf0]  ;;  %v5119_v16 = vor.u32 %v7602_v8, %v5118_v7  ;;  %1787 = vmatpush.bf16.msra.mxu2 %v5391_v6 }
  0x42   :  { %v5374_v12 = vld [vmem:[#allocation5 + $0x220] sm:$0xf]  ;;  %v7666_v13 = vld [vmem:[#allocation5 + $0x22c] sm:$0xf0]  ;;  %v5247_v19 = vor.u32 %v7634_v11, %v5246_v9  ;;  %1800 = vmatpush.bf16.msra.mxu3 %v5519_v10 }
  0x43   :  { %v5502_v14 = vld [vmem:[#allocation5 + $0x320] sm:$0xf]  ;;  %v7698_v15 = vld [vmem:[#allocation5 + $0x32c] sm:$0xf0]  ;;  %v5375_v20 = vor.u32 %v7666_v13, %v5374_v12  ;;  %1762 = vmatpush.bf16.msra.mxu0 %v5119_v16 }
  0x44   :  { %v5102_v17 = vld [vmem:[#allocation5] sm:$0xf]  ;;  %v7598_v18 = vld [vmem:[#allocation5 + $0xc] sm:$0xf0]  ;;  %v5503_v24 = vor.u32 %v7698_v15, %v5502_v14  ;;  %1775 = vmatpush.bf16.msra.mxu1 %v5247_v19 }
  0x45   :  { %v5230_v21 = vld [vmem:[#allocation5 + $0x100] sm:$0xf]  ;;  %v7630_v22 = vld [vmem:[#allocation5 + $0x10c] sm:$0xf0]  ;;  %v5103_v31 = vor.u32 %v7598_v18, %v5102_v17  ;;  %1788 = vmatpush.bf16.msra.mxu2 %v5375_v20 }
  0x46   :  { %v5358_v23 = vld [vmem:[#allocation5 + $0x200] sm:$0xf]  ;;  %v7662_v25 = vld [vmem:[#allocation5 + $0x20c] sm:$0xf0]  ;;  %v5231_v35 = vor.u32 %v7630_v22, %v5230_v21  ;;  %1801 = vmatpush.bf16.msra.mxu3 %v5503_v24 }
  0x47   :  { %v5486_v26 = vld [vmem:[#allocation5 + $0x300] sm:$0xf]  ;;  %v7694_v27 = vld [vmem:[#allocation5 + $0x30c] sm:$0xf0]  ;;  %v5359_v36 = vor.u32 %v7662_v25, %v5358_v23  ;;  %1763 = vmatpush.bf16.msra.mxu0 %v5103_v31 }
  0x48   :  { %v5726_v28 = vld [vmem:[#allocation5 + $0x4e0] sm:$0xf]  ;;  %v7754_v29 = vld [vmem:[#allocation5 + $0x4ec] sm:$0xf0]  ;;  %v5487_v39 = vor.u32 %v7694_v27, %v5486_v26  ;;  %1776 = vmatpush.bf16.msra.mxu1 %v5231_v35 }
  0x49   :  { %v5854_v30 = vld [vmem:[#allocation5 + $0x5e0] sm:$0xf]  ;;  %v7786_v32 = vld [vmem:[#allocation5 + $0x5ec] sm:$0xf0]  ;;  %v5727_v40 = vor.u32 %v7754_v29, %v5726_v28  ;;  %1789 = vmatpush.bf16.msra.mxu2 %v5359_v36 }
  0x4a   :  { %v5982_v33 = vld [vmem:[#allocation5 + $0x6e0] sm:$0xf]  ;;  %v7818_v34 = vld [vmem:[#allocation5 + $0x6ec] sm:$0xf0]  ;;  %v5855_v41 = vor.u32 %v7786_v32, %v5854_v30  ;;  %1802 = vmatpush.bf16.msra.mxu3 %v5487_v39 }
  0x4b   :  { %v6110_v37 = vld [vmem:[#allocation5 + $0x7e0] sm:$0xf]  ;;  %v7850_v38 = vld [vmem:[#allocation5 + $0x7ec] sm:$0xf0]  ;;  %v5983_v42 = vor.u32 %v7818_v34, %v5982_v33  ;;  %1808 = vmatpush.bf16.msrb.mxu0 %v5727_v40 }
  0x4c   :  { %v5710_v43 = vld [vmem:[#allocation5 + $0x4c0] sm:$0xf]  ;;  %v7750_v44 = vld [vmem:[#allocation5 + $0x4cc] sm:$0xf0]  ;;  %v6111_v46 = vor.u32 %v7850_v38, %v6110_v37  ;;  %1821 = vmatpush.bf16.msrb.mxu1 %v5855_v41 }
  0x4d   :  { %v5838_v45 = vld [vmem:[#allocation5 + $0x5c0] sm:$0xf]  ;;  %v7782_v47 = vld [vmem:[#allocation5 + $0x5cc] sm:$0xf0]  ;;  %v5711_v52 = vor.u32 %v7750_v44, %v5710_v43  ;;  %1834 = vmatpush.bf16.msrb.mxu2 %v5983_v42 }
  0x4e   :  { %v5966_v48 = vld [vmem:[#allocation5 + $0x6c0] sm:$0xf]  ;;  %v7814_v49 = vld [vmem:[#allocation5 + $0x6cc] sm:$0xf0]  ;;  %v5839_v53 = vor.u32 %v7782_v47, %v5838_v45  ;;  %1847 = vmatpush.bf16.msrb.mxu3 %v6111_v46 }
  0x4f   :  { %v6094_v50 = vld [vmem:[#allocation5 + $0x7c0] sm:$0xf]  ;;  %v7846_v51 = vld [vmem:[#allocation5 + $0x7cc] sm:$0xf0]  ;;  %v5967_v54 = vor.u32 %v7814_v49, %v5966_v48  ;;  %1809 = vmatpush.bf16.msrb.mxu0 %v5711_v52  ;;  %v180_v52 = vld [vmem:[#allocation2 + $0x8] sm:$0xff] }
  0x50   :  { %v5694_v55 = vld [vmem:[#allocation5 + $0x4a0] sm:$0xf]  ;;  %v7746_v56 = vld [vmem:[#allocation5 + $0x4ac] sm:$0xf0]  ;;  %v6095_v58 = vor.u32 %v7846_v51, %v6094_v50  ;;  %1822 = vmatpush.bf16.msrb.mxu1 %v5839_v53  ;;  %185 = vst [vmem:[#allocation1 + $0x20] ss:$4 sm:$0xff] %v180_v52 }
  0x51   :  { %v5822_v57 = vld [vmem:[#allocation5 + $0x5a0] sm:$0xf]  ;;  %v7778_v59 = vld [vmem:[#allocation5 + $0x5ac] sm:$0xf0]  ;;  %v5695_v0 = vor.u32 %v7746_v56, %v5694_v55  ;;  %1835 = vmatpush.bf16.msrb.mxu2 %v5967_v54  ;;  %v7712_v52 = vld [vmem:[#allocation5 + $0x3a4] sm:$0xf] }
  0x52   :  { %v5950_v60 = vld [vmem:[#allocation5 + $0x6a0] sm:$0xf]  ;;  %v7810_v61 = vld [vmem:[#allocation5 + $0x6ac] sm:$0xf0]  ;;  %v5823_v3 = vor.u32 %v7778_v59, %v5822_v57  ;;  %1848 = vmatpush.bf16.msrb.mxu3 %v6095_v58 }
  0x53   :  { %v6078_v62 = vld [vmem:[#allocation5 + $0x7a0] sm:$0xf]  ;;  %v7842_v63 = vld [vmem:[#allocation5 + $0x7ac] sm:$0xf0]  ;;  %v5951_v4 = vor.u32 %v7810_v61, %v5950_v60  ;;  %1810 = vmatpush.bf16.msrb.mxu0 %v5695_v0 }
  0x54   :  { %v5678_v1 = vld [vmem:[#allocation5 + $0x480] sm:$0xf]  ;;  %v179_v2 = vld [vmem:[#allocation2] sm:$0xff]  ;;  %v6079_v7 = vor.u32 %v7842_v63, %v6078_v62  ;;  %1823 = vmatpush.bf16.msrb.mxu1 %v5823_v3 }
  0x55   :  { %v7742_v5 = vld [vmem:[#allocation5 + $0x48c] sm:$0xf0]  ;;  %v5806_v6 = vld [vmem:[#allocation5 + $0x580] sm:$0xf]  ;;  %183 = vst [vmem:[#allocation1] ss:$4 sm:$0xff] %v179_v2  ;;  %1836 = vmatpush.bf16.msrb.mxu2 %v5951_v4 }
  0x56   :  { %v7774_v8 = vld [vmem:[#allocation5 + $0x58c] sm:$0xf0]  ;;  %v5934_v9 = vld [vmem:[#allocation5 + $0x680] sm:$0xf]  ;;  %v5679_v13 = vor.u32 %v7742_v5, %v5678_v1  ;;  %1849 = vmatpush.bf16.msrb.mxu3 %v6079_v7  ;;  %v5216_v7 = vld [vmem:[#allocation5 + $0xf0] sm:$0xf0] }
  0x57   :  { %v7806_v10 = vld [vmem:[#allocation5 + $0x68c] sm:$0xf0]  ;;  %v6062_v11 = vld [vmem:[#allocation5 + $0x780] sm:$0xf]  ;;  %v5807_v15 = vor.u32 %v7774_v8, %v5806_v6  ;;  %v7624_v6 = vld [vmem:[#allocation5 + $0xe4] sm:$0xf] }
  0x58   :  { %v7838_v12 = vld [vmem:[#allocation5 + $0x78c] sm:$0xf0]  ;;  %v5662_v14 = vld [vmem:[#allocation5 + $0x460] sm:$0xf]  ;;  %v5935_v16 = vor.u32 %v7806_v10, %v5934_v9  ;;  %1811 = vmatpush.bf16.msrb.mxu0 %v5679_v13  ;;  %v7656_v8 = vld [vmem:[#allocation5 + $0x1e4] sm:$0xf] }
  0x59   :  { %v7738_v17 = vld [vmem:[#allocation5 + $0x46c] sm:$0xf0]  ;;  %v5790_v18 = vld [vmem:[#allocation5 + $0x560] sm:$0xf]  ;;  %v6063_v20 = vor.u32 %v7838_v12, %v6062_v11  ;;  %1824 = vmatpush.bf16.msrb.mxu1 %v5807_v15  ;;  %v5344_v9 = vld [vmem:[#allocation5 + $0x1f0] sm:$0xf0] }
  0x5a   :  { %v7770_v19 = vld [vmem:[#allocation5 + $0x56c] sm:$0xf0]  ;;  %v5918_v21 = vld [vmem:[#allocation5 + $0x660] sm:$0xf]  ;;  %v5663_v27 = vor.u32 %v7738_v17, %v5662_v14  ;;  %1837 = vmatpush.bf16.msrb.mxu2 %v5935_v16  ;;  %v7688_v10 = vld [vmem:[#allocation5 + $0x2e4] sm:$0xf] }
  0x5b   :  { %v7802_v22 = vld [vmem:[#allocation5 + $0x66c] sm:$0xf0]  ;;  %v6046_v23 = vld [vmem:[#allocation5 + $0x760] sm:$0xf]  ;;  %v5791_v28 = vor.u32 %v7770_v19, %v5790_v18  ;;  %1850 = vmatpush.bf16.msrb.mxu3 %v6063_v20  ;;  %v5472_v12 = vld [vmem:[#allocation5 + $0x2f0] sm:$0xf0] }
  0x5c   :  { %v7834_v24 = vld [vmem:[#allocation5 + $0x76c] sm:$0xf0]  ;;  %v5646_v25 = vld [vmem:[#allocation5 + $0x440] sm:$0xf]  ;;  %v5919_v32 = vor.u32 %v7802_v22, %v5918_v21  ;;  %1812 = vmatpush.bf16.msrb.mxu0 %v5663_v27  ;;  %v7720_v13 = vld [vmem:[#allocation5 + $0x3e4] sm:$0xf]  ;;  %v5219_v21 = vor.u32 %v7624_v6, %v5216_v7 }
  0x5d   :  { %v7734_v26 = vld [vmem:[#allocation5 + $0x44c] sm:$0xf0]  ;;  %v5774_v29 = vld [vmem:[#allocation5 + $0x540] sm:$0xf]  ;;  %v6047_v37 = vor.u32 %v7834_v24, %v6046_v23  ;;  %1825 = vmatpush.bf16.msrb.mxu1 %v5791_v28  ;;  %v5600_v14 = vld [vmem:[#allocation5 + $0x3f0] sm:$0xf0]  ;;  %v5347_v24 = vor.u32 %v7656_v8, %v5344_v9 }
  0x5e   :  { %v188_v30 = vld.sshfl [vmem:[#allocation1 + $0x10] sm:$0xff pattern:$0x73625140]  ;;  %v186_v31 = vld.sshfl [vmem:[#allocation1] sm:$0xff pattern:$0x73625140]  ;;  %v5647_v45 = vor.u32 %v7734_v26, %v5646_v25  ;;  %1838 = vmatpush.bf16.msrb.mxu2 %v5919_v32  ;;  %v5475_v25 = vor.u32 %v7688_v10, %v5472_v12  ;;  %v5603_v28 = vor.u32 %v7720_v13, %v5600_v14 }
  0x5f   :  { %v8618_v33 = vpack.c.bf16 %v188_v30, %v188_v30  ;;  %v8620_v34 = vpack.c.bf16 %v186_v31, %v186_v31  ;;  %v189_v35 = vld.sshfl [vmem:[#allocation1 + $0x18] sm:$0xff pattern:$0x73625140]  ;;  %v187_v36 = vld.sshfl [vmem:[#allocation1 + $0x8] sm:$0xff pattern:$0x73625140]  ;;  %1851 = vmatpush.bf16.msrb.mxu3 %v6047_v37 }
  0x60   :  { %v7766_v38 = vld [vmem:[#allocation5 + $0x54c] sm:$0xf0]  ;;  %v5902_v39 = vld [vmem:[#allocation5 + $0x640] sm:$0xf]  ;;  %v8622_v41 = vpack.c.bf16 %v189_v35, %v189_v35  ;;  %v8624_v42 = vpack.c.bf16 %v187_v36, %v187_v36  ;;  %1813 = vmatpush.bf16.msrb.mxu0 %v5647_v45  ;;  %v7620_v17 = vld [vmem:[#allocation5 + $0xc4] sm:$0xf] }
  0x61   :  { %v7798_v40 = vld [vmem:[#allocation5 + $0x64c] sm:$0xf0]  ;;  %v6030_v43 = vld [vmem:[#allocation5 + $0x740] sm:$0xf]  ;;  %1790 = vmatmul.bf16.vlgmr.msra.gmra.mxu2 %v8618_v33  ;;  %1764 = vmatmul.bf16.vlgmr.msra.gmra.mxu0 %v8620_v34  ;;  %v5775_v48 = vor.u32 %v7766_v38, %v5774_v29  ;;  %v5200_v18 = vld [vmem:[#allocation5 + $0xd0] sm:$0xf0] }
  0x62   :  { %v7830_v44 = vld [vmem:[#allocation5 + $0x74c] sm:$0xf0]  ;;  %1803 = vmatmul.bf16.vlgmr.msra.gmra.mxu3 %v8622_v41  ;;  %v5630_v46 = vld [vmem:[#allocation5 + $0x420] sm:$0xf]  ;;  %v5903_v49 = vor.u32 %v7798_v40, %v5902_v39  ;;  %1777 = vmatmul.bf16.vlgmr.msra.gmra.mxu1 %v8624_v42  ;;  %v7652_v26 = vld [vmem:[#allocation5 + $0x1c4] sm:$0xf]  ;;  %v5203_v39 = vor.u32 %v7620_v17, %v5200_v18 }
  0x63   :  { %v7730_v47 = vld [vmem:[#allocation5 + $0x42c] sm:$0xf0]  ;;  %v5758_v50 = vld [vmem:[#allocation5 + $0x520] sm:$0xf]  ;;  %v6031_v53 = vor.u32 %v7830_v44, %v6030_v43  ;;  %1826 = vmatpush.bf16.msrb.mxu1 %v5775_v48  ;;  %v5328_v29 = vld [vmem:[#allocation5 + $0x1d0] sm:$0xf0] }
  0x64   :  { %v7762_v51 = vld [vmem:[#allocation5 + $0x52c] sm:$0xf0]  ;;  %v5886_v54 = vld [vmem:[#allocation5 + $0x620] sm:$0xf]  ;;  %v5631_v59 = vor.u32 %v7730_v47, %v5630_v46  ;;  %1839 = vmatpush.bf16.msrb.mxu2 %v5903_v49  ;;  %v7684_v30 = vld [vmem:[#allocation5 + $0x2c4] sm:$0xf]  ;;  %v5331_v43 = vor.u32 %v7652_v26, %v5328_v29 }
  0x65   :  { %v7794_v55 = vld [vmem:[#allocation5 + $0x62c] sm:$0xf0]  ;;  %v6014_v56 = vld [vmem:[#allocation5 + $0x720] sm:$0xf]  ;;  %v5759_v63 = vor.u32 %v7762_v51, %v5758_v50  ;;  %1852 = vmatpush.bf16.msrb.mxu3 %v6031_v53  ;;  %v5456_v31 = vld [vmem:[#allocation5 + $0x2d0] sm:$0xf0] }
  0x66   :  { %v7826_v57 = vld [vmem:[#allocation5 + $0x72c] sm:$0xf0]  ;;  %v5614_v58 = vld [vmem:[#allocation5 + $0x400] sm:$0xf]  ;;  %v5887_v0 = vor.u32 %v7794_v55, %v5886_v54  ;;  %1814 = vmatpush.bf16.msrb.mxu0 %v5631_v59  ;;  %v7716_v35 = vld [vmem:[#allocation5 + $0x3c4] sm:$0xf]  ;;  %v5459_v44 = vor.u32 %v7684_v30, %v5456_v31 }
  0x67   :  { %v7726_v60 = vld [vmem:[#allocation5 + $0x40c] sm:$0xf0]  ;;  %v5742_v61 = vld [vmem:[#allocation5 + $0x500] sm:$0xf]  ;;  %v6015_v4 = vor.u32 %v7826_v57, %v6014_v56  ;;  %1827 = vmatpush.bf16.msrb.mxu1 %v5759_v63  ;;  %v5584_v36 = vld [vmem:[#allocation5 + $0x3d0] sm:$0xf0] }
  0x68   :  { %v7758_v62 = vld [vmem:[#allocation5 + $0x50c] sm:$0xf0]  ;;  %v5870_v1 = vld [vmem:[#allocation5 + $0x600] sm:$0xf]  ;;  %v5615_v11 = vor.u32 %v7726_v60, %v5614_v58  ;;  %1840 = vmatpush.bf16.msrb.mxu2 %v5887_v0  ;;  %v7616_v45 = vld [vmem:[#allocation5 + $0xa4] sm:$0xf]  ;;  %v5587_v48 = vor.u32 %v7716_v35, %v5584_v36 }
  0x69   :  { %v7790_v2 = vld [vmem:[#allocation5 + $0x60c] sm:$0xf0]  ;;  %v5998_v3 = vld [vmem:[#allocation5 + $0x700] sm:$0xf]  ;;  %v5743_v15 = vor.u32 %v7758_v62, %v5742_v61  ;;  %1853 = vmatpush.bf16.msrb.mxu3 %v6015_v4  ;;  %v5184_v46 = vld [vmem:[#allocation5 + $0xb0] sm:$0xf0] }
  0x6a   :  { %v7822_v5 = vld [vmem:[#allocation5 + $0x70c] sm:$0xf0]  ;;  %v5871_v16 = vor.u32 %v7790_v2, %v5870_v1  ;;  %v192_v19 = vld.sshfl [vmem:[#allocation1 + $0x30] sm:$0xff pattern:$0x73625140]  ;;  %1815 = vmatpush.bf16.msrb.mxu0 %v5615_v11  ;;  %v5187_v54 = vor.u32 %v7616_v45, %v5184_v46 }
  0x6b   :  { %v5999_v20 = vor.u32 %v7822_v5, %v5998_v3  ;;  %v190_v22 = vld.sshfl [vmem:[#allocation1 + $0x20] sm:$0xff pattern:$0x73625140]  ;;  %v193_v23 = vld.sshfl [vmem:[#allocation1 + $0x38] sm:$0xff pattern:$0x73625140]  ;;  %v8630_v32 = vpack.c.bf16 %v192_v19, %v192_v19  ;;  %1828 = vmatpush.bf16.msrb.mxu1 %v5743_v15 }
  0x6c   :  { %v191_v27 = vld.sshfl [vmem:[#allocation1 + $0x28] sm:$0xff pattern:$0x73625140]  ;;  %1841 = vmatpush.bf16.msrb.mxu2 %v5871_v16  ;;  %v8632_v37 = vpack.c.bf16 %v190_v22, %v190_v22  ;;  %v8634_v38 = vpack.c.bf16 %v193_v23, %v193_v23  ;;  %v7648_v47 = vld [vmem:[#allocation5 + $0x1a4] sm:$0xf] }
  0x6d   :  { %1854 = vmatpush.bf16.msrb.mxu3 %v5999_v20  ;;  %v8636_v40 = vpack.c.bf16 %v191_v27, %v191_v27  ;;  %v5312_v49 = vld [vmem:[#allocation5 + $0x1b0] sm:$0xf0]  ;;  %v7680_v50 = vld [vmem:[#allocation5 + $0x2a4] sm:$0xf] }
  0x6e   :  { %1860 = vmatpush.bf16.msra.mxu0 %v5219_v21  ;;  %v5440_v51 = vld [vmem:[#allocation5 + $0x2b0] sm:$0xf0]  ;;  %v5315_v55 = vor.u32 %v7648_v47, %v5312_v49  ;;  %v7612_v57 = vld [vmem:[#allocation5 + $0x84] sm:$0xf] }
  0x6f   :  { %1873 = vmatpush.bf16.msra.mxu1 %v5347_v24  ;;  %v5568_v53 = vld [vmem:[#allocation5 + $0x3b0] sm:$0xf0]  ;;  %v5443_v56 = vor.u32 %v7680_v50, %v5440_v51  ;;  %v7644_v59 = vld [vmem:[#allocation5 + $0x184] sm:$0xf] }
  0x70   :  { %1886 = vmatpush.bf16.msra.mxu2 %v5475_v25  ;;  %v5168_v58 = vld [vmem:[#allocation5 + $0x90] sm:$0xf0]  ;;  %v5571_v60 = vor.u32 %v7712_v52, %v5568_v53  ;;  %v7676_v62 = vld [vmem:[#allocation5 + $0x284] sm:$0xf] }
  0x71   :  { %1899 = vmatpush.bf16.msra.mxu3 %v5603_v28  ;;  %1842 = vmatmul.bf16.vlgmr.msrb.gmra.mxu2 %v8630_v32  ;;  %v5296_v61 = vld [vmem:[#allocation5 + $0x190] sm:$0xf0]  ;;  %v7708_v0 = vld [vmem:[#allocation5 + $0x384] sm:$0xf]  ;;  %v5171_v2 = vor.u32 %v7612_v57, %v5168_v58 }
  0x72   :  { %1816 = vmatmul.bf16.vlgmr.msrb.gmra.mxu0 %v8632_v37  ;;  %1855 = vmatmul.bf16.vlgmr.msrb.gmra.mxu3 %v8634_v38  ;;  %v5424_v63 = vld [vmem:[#allocation5 + $0x290] sm:$0xf0]  ;;  %v5299_v3 = vor.u32 %v7644_v59, %v5296_v61  ;;  %v7608_v5 = vld [vmem:[#allocation5 + $0x64] sm:$0xf] }
  0x73   :  { %1861 = vmatpush.bf16.msra.mxu0 %v5203_v39  ;;  %1829 = vmatmul.bf16.vlgmr.msrb.gmra.mxu1 %v8636_v40  ;;  %v5552_v1 = vld [vmem:[#allocation5 + $0x390] sm:$0xf0]  ;;  %v5427_v4 = vor.u32 %v7676_v62, %v5424_v63  ;;  %v7640_v7 = vld [vmem:[#allocation5 + $0x164] sm:$0xf] }
  0x74   :  { %1874 = vmatpush.bf16.msra.mxu1 %v5331_v43  ;;  %1887 = vmatpush.bf16.msra.mxu2 %v5459_v44  ;;  %v5152_v6 = vld [vmem:[#allocation5 + $0x70] sm:$0xf0]  ;;  %v5555_v8 = vor.u32 %v7708_v0, %v5552_v1  ;;  %v7672_v10 = vld [vmem:[#allocation5 + $0x264] sm:$0xf] }
  0x75   :  { %1900 = vmatpush.bf16.msra.mxu3 %v5587_v48  ;;  %v5280_v9 = vld [vmem:[#allocation5 + $0x170] sm:$0xf0]  ;;  %v7704_v12 = vld [vmem:[#allocation5 + $0x364] sm:$0xf]  ;;  %v5155_v14 = vor.u32 %v7608_v5, %v5152_v6 }
  0x76   :  { %v5408_v11 = vld [vmem:[#allocation5 + $0x270] sm:$0xf0]  ;;  %v5283_v15 = vor.u32 %v7640_v7, %v5280_v9  ;;  %v7604_v17 = vld [vmem:[#allocation5 + $0x44] sm:$0xf] }
  0x77   :  { %1862 = vmatpush.bf16.msra.mxu0 %v5187_v54  ;;  %v5536_v13 = vld [vmem:[#allocation5 + $0x370] sm:$0xf0]  ;;  %v5411_v16 = vor.u32 %v7672_v10, %v5408_v11  ;;  %v7636_v19 = vld [vmem:[#allocation5 + $0x144] sm:$0xf] }
  0x78   :  { %1875 = vmatpush.bf16.msra.mxu1 %v5315_v55  ;;  %1888 = vmatpush.bf16.msra.mxu2 %v5443_v56  ;;  %v5136_v18 = vld [vmem:[#allocation5 + $0x50] sm:$0xf0]  ;;  %v5539_v20 = vor.u32 %v7704_v12, %v5536_v13  ;;  %v7668_v22 = vld [vmem:[#allocation5 + $0x244] sm:$0xf] }
  0x79   :  { %1901 = vmatpush.bf16.msra.mxu3 %v5571_v60  ;;  %v5264_v21 = vld [vmem:[#allocation5 + $0x150] sm:$0xf0]  ;;  %v7700_v24 = vld [vmem:[#allocation5 + $0x344] sm:$0xf]  ;;  %v5139_v26 = vor.u32 %v7604_v17, %v5136_v18 }
  0x7a   :  { %v5392_v23 = vld [vmem:[#allocation5 + $0x250] sm:$0xf0]  ;;  %v5267_v27 = vor.u32 %v7636_v19, %v5264_v21  ;;  %v7600_v29 = vld [vmem:[#allocation5 + $0x24] sm:$0xf] }
  0x7b   :  { %1863 = vmatpush.bf16.msra.mxu0 %v5171_v2  ;;  %v5520_v25 = vld [vmem:[#allocation5 + $0x350] sm:$0xf0]  ;;  %v5395_v28 = vor.u32 %v7668_v22, %v5392_v23  ;;  %v7632_v31 = vld [vmem:[#allocation5 + $0x124] sm:$0xf] }
  0x7c   :  { %1876 = vmatpush.bf16.msra.mxu1 %v5299_v3  ;;  %1889 = vmatpush.bf16.msra.mxu2 %v5427_v4  ;;  %v5120_v30 = vld [vmem:[#allocation5 + $0x30] sm:$0xf0]  ;;  %v5523_v35 = vor.u32 %v7700_v24, %v5520_v25  ;;  %v7664_v39 = vld [vmem:[#allocation5 + $0x224] sm:$0xf] }
  0x7d   :  { %1902 = vmatpush.bf16.msra.mxu3 %v5555_v8  ;;  %v5248_v36 = vld [vmem:[#allocation5 + $0x130] sm:$0xf0]  ;;  %v7696_v44 = vld [vmem:[#allocation5 + $0x324] sm:$0xf]  ;;  %v5123_v46 = vor.u32 %v7600_v29, %v5120_v30 }
  0x7e   :  { %v5376_v43 = vld [vmem:[#allocation5 + $0x230] sm:$0xf0]  ;;  %v7596_v47 = vld [vmem:[#allocation5 + $0x4] sm:$0xf]  ;;  %v5251_v49 = vor.u32 %v7632_v31, %v5248_v36 }
  0x7f   :  { %1864 = vmatpush.bf16.msra.mxu0 %v5155_v14  ;;  %v5504_v45 = vld [vmem:[#allocation5 + $0x330] sm:$0xf0]  ;;  %v5379_v50 = vor.u32 %v7664_v39, %v5376_v43  ;;  %v7628_v51 = vld [vmem:[#allocation5 + $0x104] sm:$0xf] }
  0x80   :  { %1877 = vmatpush.bf16.msra.mxu1 %v5283_v15  ;;  %1890 = vmatpush.bf16.msra.mxu2 %v5411_v16  ;;  %v5104_v48 = vld [vmem:[#allocation5 + $0x10] sm:$0xf0]  ;;  %v7660_v53 = vld [vmem:[#allocation5 + $0x204] sm:$0xf]  ;;  %v5507_v54 = vor.u32 %v7696_v44, %v5504_v45 }
  0x81   :  { %1903 = vmatpush.bf16.msra.mxu3 %v5539_v20  ;;  %v5232_v52 = vld [vmem:[#allocation5 + $0x110] sm:$0xf0]  ;;  %v7692_v56 = vld [vmem:[#allocation5 + $0x304] sm:$0xf]  ;;  %v5107_v61 = vor.u32 %v7596_v47, %v5104_v48 }
  0x82   :  { %v5360_v55 = vld [vmem:[#allocation5 + $0x210] sm:$0xf0]  ;;  %v7752_v58 = vld [vmem:[#allocation5 + $0x4e4] sm:$0xf]  ;;  %v5235_v1 = vor.u32 %v7628_v51, %v5232_v52 }
  0x83   :  { %1865 = vmatpush.bf16.msra.mxu0 %v5139_v26  ;;  %v5488_v57 = vld [vmem:[#allocation5 + $0x310] sm:$0xf0]  ;;  %v7784_v60 = vld [vmem:[#allocation5 + $0x5e4] sm:$0xf]  ;;  %v5363_v2 = vor.u32 %v7660_v53, %v5360_v55 }
  0x84   :  { %1878 = vmatpush.bf16.msra.mxu1 %v5267_v27  ;;  %1891 = vmatpush.bf16.msra.mxu2 %v5395_v28  ;;  %v5728_v59 = vld [vmem:[#allocation5 + $0x4f0] sm:$0xf0]  ;;  %v7816_v63 = vld [vmem:[#allocation5 + $0x6e4] sm:$0xf]  ;;  %v5491_v5 = vor.u32 %v7692_v56, %v5488_v57 }
  0x85   :  { %1904 = vmatpush.bf16.msra.mxu3 %v5523_v35  ;;  %v5856_v62 = vld [vmem:[#allocation5 + $0x5f0] sm:$0xf0]  ;;  %v7848_v3 = vld [vmem:[#allocation5 + $0x7e4] sm:$0xf]  ;;  %v5731_v6 = vor.u32 %v7752_v58, %v5728_v59 }
  0x86   :  { %v5984_v0 = vld [vmem:[#allocation5 + $0x6f0] sm:$0xf0]  ;;  %v5859_v7 = vor.u32 %v7784_v60, %v5856_v62  ;;  %v7748_v9 = vld [vmem:[#allocation5 + $0x4c4] sm:$0xf] }
  0x87   :  { %1866 = vmatpush.bf16.msra.mxu0 %v5123_v46  ;;  %v6112_v4 = vld [vmem:[#allocation5 + $0x7f0] sm:$0xf0]  ;;  %v5987_v8 = vor.u32 %v7816_v63, %v5984_v0  ;;  %v7780_v11 = vld [vmem:[#allocation5 + $0x5c4] sm:$0xf] }
  0x88   :  { %1879 = vmatpush.bf16.msra.mxu1 %v5251_v49  ;;  %1892 = vmatpush.bf16.msra.mxu2 %v5379_v50  ;;  %v5712_v10 = vld [vmem:[#allocation5 + $0x4d0] sm:$0xf0]  ;;  %v6115_v12 = vor.u32 %v7848_v3, %v6112_v4  ;;  %v7812_v14 = vld [vmem:[#allocation5 + $0x6c4] sm:$0xf] }
  0x89   :  { %1905 = vmatpush.bf16.msra.mxu3 %v5507_v54  ;;  %v5840_v13 = vld [vmem:[#allocation5 + $0x5d0] sm:$0xf0]  ;;  %v7844_v16 = vld [vmem:[#allocation5 + $0x7c4] sm:$0xf]  ;;  %v5715_v18 = vor.u32 %v7748_v9, %v5712_v10 }
  0x8a   :  { %v5968_v15 = vld [vmem:[#allocation5 + $0x6d0] sm:$0xf0]  ;;  %v5843_v19 = vor.u32 %v7780_v11, %v5840_v13  ;;  %v7744_v21 = vld [vmem:[#allocation5 + $0x4a4] sm:$0xf] }
  0x8b   :  { %1867 = vmatpush.bf16.msra.mxu0 %v5107_v61  ;;  %v6096_v17 = vld [vmem:[#allocation5 + $0x7d0] sm:$0xf0]  ;;  %v5971_v20 = vor.u32 %v7812_v14, %v5968_v15  ;;  %v7776_v23 = vld [vmem:[#allocation5 + $0x5a4] sm:$0xf] }
  0x8c   :  { %1880 = vmatpush.bf16.msra.mxu1 %v5235_v1  ;;  %1893 = vmatpush.bf16.msra.mxu2 %v5363_v2  ;;  %v5696_v22 = vld [vmem:[#allocation5 + $0x4b0] sm:$0xf0]  ;;  %v6099_v24 = vor.u32 %v7844_v16, %v6096_v17  ;;  %v7808_v26 = vld [vmem:[#allocation5 + $0x6a4] sm:$0xf] }
  0x8d   :  { %1906 = vmatpush.bf16.msra.mxu3 %v5491_v5  ;;  %v5824_v25 = vld [vmem:[#allocation5 + $0x5b0] sm:$0xf0]  ;;  %v7840_v28 = vld [vmem:[#allocation5 + $0x7a4] sm:$0xf]  ;;  %v5699_v30 = vor.u32 %v7744_v21, %v5696_v22 }
  0x8e   :  { %v5952_v27 = vld [vmem:[#allocation5 + $0x6b0] sm:$0xf0]  ;;  %1868 = vmatmul.bf16.vlgmr.msra.gmra.mxu0 %v8620_v34  ;;  %v5827_v31 = vor.u32 %v7776_v23, %v5824_v25  ;;  %v7740_v36 = vld [vmem:[#allocation5 + $0x484] sm:$0xf] }
  0x8f   :  { %1912 = vmatpush.bf16.msrb.mxu0 %v5731_v6  ;;  %1894 = vmatmul.bf16.vlgmr.msra.gmra.mxu2 %v8618_v33  ;;  %v6080_v29 = vld [vmem:[#allocation5 + $0x7b0] sm:$0xf0]  ;;  %v5955_v35 = vor.u32 %v7808_v26, %v5952_v27  ;;  %v7772_v43 = vld [vmem:[#allocation5 + $0x584] sm:$0xf] }
  0x90   :  { %1925 = vmatpush.bf16.msrb.mxu1 %v5859_v7  ;;  %1938 = vmatpush.bf16.msrb.mxu2 %v5987_v8  ;;  %v5680_v39 = vld [vmem:[#allocation5 + $0x490] sm:$0xf0]  ;;  %v6083_v44 = vor.u32 %v7840_v28, %v6080_v29  ;;  %v7804_v46 = vld [vmem:[#allocation5 + $0x684] sm:$0xf] }
  0x91   :  { %1951 = vmatpush.bf16.msrb.mxu3 %v6115_v12  ;;  %1881 = vmatmul.bf16.vlgmr.msra.gmra.mxu1 %v8624_v42  ;;  %v5808_v45 = vld [vmem:[#allocation5 + $0x590] sm:$0xf0]  ;;  %v7836_v48 = vld [vmem:[#allocation5 + $0x784] sm:$0xf]  ;;  %v5683_v50 = vor.u32 %v7740_v36, %v5680_v39  ;;  %v5222_v39 = vld [vmem:[#allocation5 + $0xe8] sm:$0xf] }
  0x92   :  { %1907 = vmatmul.bf16.vlgmr.msra.gmra.mxu3 %v8622_v41  ;;  %v5936_v47 = vld [vmem:[#allocation5 + $0x690] sm:$0xf0]  ;;  %v5811_v51 = vor.u32 %v7772_v43, %v5808_v45  ;;  %v7736_v53 = vld [vmem:[#allocation5 + $0x464] sm:$0xf]  ;;  %v7627_v43 = vld [vmem:[#allocation5 + $0xf4] sm:$0xf0] }
  0x93   :  { %1913 = vmatpush.bf16.msrb.mxu0 %v5715_v18  ;;  %v6064_v49 = vld [vmem:[#allocation5 + $0x790] sm:$0xf0]  ;;  %v5939_v52 = vor.u32 %v7804_v46, %v5936_v47  ;;  %v7768_v55 = vld [vmem:[#allocation5 + $0x564] sm:$0xf]  ;;  %v7659_v46 = vld [vmem:[#allocation5 + $0x1f4] sm:$0xf0] }
  0x94   :  { %1926 = vmatpush.bf16.msrb.mxu1 %v5843_v19  ;;  %1939 = vmatpush.bf16.msrb.mxu2 %v5971_v20  ;;  %v5664_v54 = vld [vmem:[#allocation5 + $0x470] sm:$0xf0]  ;;  %v6067_v56 = vor.u32 %v7836_v48, %v6064_v49  ;;  %v7800_v58 = vld [vmem:[#allocation5 + $0x664] sm:$0xf]  ;;  %v5478_v47 = vld [vmem:[#allocation5 + $0x2e8] sm:$0xf] }
  0x95   :  { %1952 = vmatpush.bf16.msrb.mxu3 %v6099_v24  ;;  %v5792_v57 = vld [vmem:[#allocation5 + $0x570] sm:$0xf0]  ;;  %v7832_v60 = vld [vmem:[#allocation5 + $0x764] sm:$0xf]  ;;  %v5667_v62 = vor.u32 %v7736_v53, %v5664_v54  ;;  %v7691_v48 = vld [vmem:[#allocation5 + $0x2f4] sm:$0xf0]  ;;  %v5223_v54 = vor.u32 %v7627_v43, %v5222_v39 }
  0x96   :  { %v5920_v59 = vld [vmem:[#allocation5 + $0x670] sm:$0xf0]  ;;  %v5795_v63 = vor.u32 %v7768_v55, %v5792_v57  ;;  %v7732_v1 = vld [vmem:[#allocation5 + $0x444] sm:$0xf]  ;;  %v5206_v57 = vld [vmem:[#allocation5 + $0xc8] sm:$0xf] }
  0x97   :  { %1914 = vmatpush.bf16.msrb.mxu0 %v5699_v30  ;;  %v6048_v61 = vld [vmem:[#allocation5 + $0x770] sm:$0xf0]  ;;  %v5923_v0 = vor.u32 %v7800_v58, %v5920_v59  ;;  %v7764_v3 = vld [vmem:[#allocation5 + $0x544] sm:$0xf]  ;;  %v7623_v58 = vld [vmem:[#allocation5 + $0xd4] sm:$0xf0] }
  0x98   :  { %1927 = vmatpush.bf16.msrb.mxu1 %v5827_v31  ;;  %1940 = vmatpush.bf16.msrb.mxu2 %v5955_v35  ;;  %v5648_v2 = vld [vmem:[#allocation5 + $0x450] sm:$0xf0]  ;;  %v6051_v4 = vor.u32 %v7832_v60, %v6048_v61  ;;  %v7796_v6 = vld [vmem:[#allocation5 + $0x644] sm:$0xf]  ;;  %v5334_v59 = vld [vmem:[#allocation5 + $0x1c8] sm:$0xf] }
  0x99   :  { %1953 = vmatpush.bf16.msrb.mxu3 %v6083_v44  ;;  %v5776_v5 = vld [vmem:[#allocation5 + $0x550] sm:$0xf0]  ;;  %v7828_v8 = vld [vmem:[#allocation5 + $0x744] sm:$0xf]  ;;  %v5651_v10 = vor.u32 %v7732_v1, %v5648_v2  ;;  %v5350_v44 = vld [vmem:[#allocation5 + $0x1e8] sm:$0xf]  ;;  %v5207_v2 = vor.u32 %v7623_v58, %v5206_v57 }
  0x9a   :  { %v5904_v7 = vld [vmem:[#allocation5 + $0x650] sm:$0xf0]  ;;  %v5779_v11 = vor.u32 %v7764_v3, %v5776_v5  ;;  %v7728_v13 = vld [vmem:[#allocation5 + $0x424] sm:$0xf]  ;;  %v5351_v55 = vor.u32 %v7659_v46, %v5350_v44  ;;  %v7655_v61 = vld [vmem:[#allocation5 + $0x1d4] sm:$0xf0] }
  0x9b   :  { %1915 = vmatpush.bf16.msrb.mxu0 %v5683_v50  ;;  %v6032_v9 = vld [vmem:[#allocation5 + $0x750] sm:$0xf0]  ;;  %v5907_v12 = vor.u32 %v7796_v6, %v5904_v7  ;;  %v7760_v15 = vld [vmem:[#allocation5 + $0x524] sm:$0xf]  ;;  %v7719_v1 = vld [vmem:[#allocation5 + $0x3d4] sm:$0xf0]  ;;  %v5335_v3 = vor.u32 %v7655_v61, %v5334_v59 }
  0x9c   :  { %1928 = vmatpush.bf16.msrb.mxu1 %v5811_v51  ;;  %1941 = vmatpush.bf16.msrb.mxu2 %v5939_v52  ;;  %v5632_v14 = vld [vmem:[#allocation5 + $0x430] sm:$0xf0]  ;;  %v6035_v16 = vor.u32 %v7828_v8, %v6032_v9  ;;  %v7792_v18 = vld [vmem:[#allocation5 + $0x624] sm:$0xf]  ;;  %v5606_v51 = vld [vmem:[#allocation5 + $0x3e8] sm:$0xf] }
  0x9d   :  { %1954 = vmatpush.bf16.msrb.mxu3 %v6067_v56  ;;  %v5760_v17 = vld [vmem:[#allocation5 + $0x530] sm:$0xf0]  ;;  %v7824_v20 = vld [vmem:[#allocation5 + $0x724] sm:$0xf]  ;;  %v5635_v22 = vor.u32 %v7728_v13, %v5632_v14  ;;  %v7723_v52 = vld [vmem:[#allocation5 + $0x3f4] sm:$0xf0]  ;;  %v5479_v56 = vor.u32 %v7691_v48, %v5478_v47 }
  0x9e   :  { %v5888_v19 = vld [vmem:[#allocation5 + $0x630] sm:$0xf0]  ;;  %v7724_v23 = vld [vmem:[#allocation5 + $0x404] sm:$0xf]  ;;  %v5763_v25 = vor.u32 %v7760_v15, %v5760_v17  ;;  %v5607_v60 = vor.u32 %v7723_v52, %v5606_v51  ;;  %v5190_v5 = vld [vmem:[#allocation5 + $0xa8] sm:$0xf] }
  0x9f   :  { %1916 = vmatpush.bf16.msrb.mxu0 %v5667_v62  ;;  %v6016_v21 = vld [vmem:[#allocation5 + $0x730] sm:$0xf0]  ;;  %v5891_v26 = vor.u32 %v7792_v18, %v5888_v19  ;;  %v7756_v27 = vld [vmem:[#allocation5 + $0x504] sm:$0xf]  ;;  %v5462_v62 = vld [vmem:[#allocation5 + $0x2c8] sm:$0xf] }
  0xa0   :  { %1929 = vmatpush.bf16.msrb.mxu1 %v5795_v63  ;;  %1942 = vmatpush.bf16.msrb.mxu2 %v5923_v0  ;;  %v5616_v24 = vld [vmem:[#allocation5 + $0x410] sm:$0xf0]  ;;  %v7788_v29 = vld [vmem:[#allocation5 + $0x604] sm:$0xf]  ;;  %v6019_v30 = vor.u32 %v7824_v20, %v6016_v21  ;;  %v7687_v63 = vld [vmem:[#allocation5 + $0x2d4] sm:$0xf0] }
  0xa1   :  { %1955 = vmatpush.bf16.msrb.mxu3 %v6051_v4  ;;  %v5744_v28 = vld [vmem:[#allocation5 + $0x510] sm:$0xf0]  ;;  %v7820_v35 = vld [vmem:[#allocation5 + $0x704] sm:$0xf]  ;;  %v5619_v45 = vor.u32 %v7724_v23, %v5616_v24  ;;  %v5590_v0 = vld [vmem:[#allocation5 + $0x3c8] sm:$0xf]  ;;  %v5463_v4 = vor.u32 %v7687_v63, %v5462_v62 }
  0xa2   :  { %v5872_v31 = vld [vmem:[#allocation5 + $0x610] sm:$0xf0]  ;;  %v5747_v49 = vor.u32 %v7756_v27, %v5744_v28  ;;  %v7619_v6 = vld [vmem:[#allocation5 + $0xb4] sm:$0xf0]  ;;  %v5318_v7 = vld [vmem:[#allocation5 + $0x1a8] sm:$0xf]  ;;  %v5591_v8 = vor.u32 %v7719_v1, %v5590_v0 }
  0xa3   :  { %1917 = vmatpush.bf16.msrb.mxu0 %v5651_v10  ;;  %v6000_v36 = vld [vmem:[#allocation5 + $0x710] sm:$0xf0]  ;;  %v5875_v50 = vor.u32 %v7788_v29, %v5872_v31  ;;  %v7651_v9 = vld [vmem:[#allocation5 + $0x1b4] sm:$0xf0]  ;;  %v5446_v10 = vld [vmem:[#allocation5 + $0x2a8] sm:$0xf]  ;;  %v5191_v14 = vor.u32 %v7619_v6, %v5190_v5 }
  0xa4   :  { %1930 = vmatpush.bf16.msrb.mxu1 %v5779_v11  ;;  %1943 = vmatpush.bf16.msrb.mxu2 %v5907_v12  ;;  %v6003_v53 = vor.u32 %v7820_v35, %v6000_v36  ;;  %v7683_v11 = vld [vmem:[#allocation5 + $0x2b4] sm:$0xf0]  ;;  %v5574_v12 = vld [vmem:[#allocation5 + $0x3a8] sm:$0xf]  ;;  %v5319_v15 = vor.u32 %v7651_v9, %v5318_v7 }
  0xa5   :  { %1956 = vmatpush.bf16.msrb.mxu3 %v6035_v16  ;;  %v7715_v13 = vld [vmem:[#allocation5 + $0x3b4] sm:$0xf0]  ;;  %v5447_v16 = vor.u32 %v7683_v11, %v5446_v10  ;;  %v5174_v17 = vld [vmem:[#allocation5 + $0x88] sm:$0xf] }
  0xa6   :  { %v7615_v18 = vld [vmem:[#allocation5 + $0x94] sm:$0xf0]  ;;  %v5302_v19 = vld [vmem:[#allocation5 + $0x188] sm:$0xf]  ;;  %v5575_v20 = vor.u32 %v7715_v13, %v5574_v12 }
  0xa7   :  { %1918 = vmatpush.bf16.msrb.mxu0 %v5635_v22  ;;  %v7647_v21 = vld [vmem:[#allocation5 + $0x194] sm:$0xf0]  ;;  %v5430_v22 = vld [vmem:[#allocation5 + $0x288] sm:$0xf] }
  0xa8   :  { %1931 = vmatpush.bf16.msrb.mxu1 %v5763_v25  ;;  %1944 = vmatpush.bf16.msrb.mxu2 %v5891_v26  ;;  %v7679_v23 = vld [vmem:[#allocation5 + $0x294] sm:$0xf0]  ;;  %v5558_v24 = vld [vmem:[#allocation5 + $0x388] sm:$0xf]  ;;  %v5175_v26 = vor.u32 %v7615_v18, %v5174_v17  ;;  %v5303_v27 = vor.u32 %v7647_v21, %v5302_v19 }
  0xa9   :  { %1957 = vmatpush.bf16.msrb.mxu3 %v6019_v30  ;;  %v7711_v25 = vld [vmem:[#allocation5 + $0x394] sm:$0xf0]  ;;  %v5431_v28 = vor.u32 %v7679_v23, %v5430_v22  ;;  %v5158_v29 = vld [vmem:[#allocation5 + $0x68] sm:$0xf] }
  0xaa   :  { %v7611_v30 = vld [vmem:[#allocation5 + $0x74] sm:$0xf0]  ;;  %v5286_v31 = vld [vmem:[#allocation5 + $0x168] sm:$0xf]  ;;  %v5559_v35 = vor.u32 %v7711_v25, %v5558_v24 }
  0xab   :  { %1919 = vmatpush.bf16.msrb.mxu0 %v5619_v45  ;;  %v7643_v36 = vld [vmem:[#allocation5 + $0x174] sm:$0xf0]  ;;  %v5414_v39 = vld [vmem:[#allocation5 + $0x268] sm:$0xf]  ;;  %v5159_v46 = vor.u32 %v7611_v30, %v5158_v29 }
  0xac   :  { %1932 = vmatpush.bf16.msrb.mxu1 %v5747_v49  ;;  %1945 = vmatpush.bf16.msrb.mxu2 %v5875_v50  ;;  %v7675_v43 = vld [vmem:[#allocation5 + $0x274] sm:$0xf0]  ;;  %v5542_v44 = vld [vmem:[#allocation5 + $0x368] sm:$0xf]  ;;  %v5287_v47 = vor.u32 %v7643_v36, %v5286_v31 }
  0xad   :  { %1958 = vmatpush.bf16.msrb.mxu3 %v6003_v53  ;;  %v7707_v45 = vld [vmem:[#allocation5 + $0x374] sm:$0xf0]  ;;  %v5415_v48 = vor.u32 %v7675_v43, %v5414_v39  ;;  %v5142_v49 = vld [vmem:[#allocation5 + $0x48] sm:$0xf] }
  0xae   :  { %1920 = vmatmul.bf16.vlgmr.msrb.gmra.mxu0 %v8632_v37  ;;  %v7607_v50 = vld [vmem:[#allocation5 + $0x54] sm:$0xf0]  ;;  %v5270_v51 = vld [vmem:[#allocation5 + $0x148] sm:$0xf]  ;;  %v5543_v52 = vor.u32 %v7707_v45, %v5542_v44 }
  0xaf   :  { %1964 = vmatpush.bf16.msra.mxu0 %v5223_v54  ;;  %1946 = vmatmul.bf16.vlgmr.msrb.gmra.mxu2 %v8630_v32  ;;  %v7639_v53 = vld [vmem:[#allocation5 + $0x154] sm:$0xf0]  ;;  %v5398_v54 = vld [vmem:[#allocation5 + $0x248] sm:$0xf]  ;;  %v5143_v58 = vor.u32 %v7607_v50, %v5142_v49 }
  0xb0   :  { %1977 = vmatpush.bf16.msra.mxu1 %v5351_v55  ;;  %1990 = vmatpush.bf16.msra.mxu2 %v5479_v56  ;;  %v7671_v55 = vld [vmem:[#allocation5 + $0x254] sm:$0xf0]  ;;  %v5526_v56 = vld [vmem:[#allocation5 + $0x348] sm:$0xf]  ;;  %v5271_v59 = vor.u32 %v7639_v53, %v5270_v51 }
  0xb1   :  { %2003 = vmatpush.bf16.msra.mxu3 %v5607_v60  ;;  %1933 = vmatmul.bf16.vlgmr.msrb.gmra.mxu1 %v8636_v40  ;;  %v7703_v57 = vld [vmem:[#allocation5 + $0x354] sm:$0xf0]  ;;  %v5399_v60 = vor.u32 %v7671_v55, %v5398_v54  ;;  %v5126_v61 = vld [vmem:[#allocation5 + $0x28] sm:$0xf] }
  0xb2   :  { %1959 = vmatmul.bf16.vlgmr.msrb.gmra.mxu3 %v8634_v38  ;;  %v7603_v62 = vld [vmem:[#allocation5 + $0x34] sm:$0xf0]  ;;  %v5254_v63 = vld [vmem:[#allocation5 + $0x128] sm:$0xf]  ;;  %v5527_v0 = vor.u32 %v7703_v57, %v5526_v56 }
  0xb3   :  { %1965 = vmatpush.bf16.msra.mxu0 %v5207_v2  ;;  %v7635_v1 = vld [vmem:[#allocation5 + $0x134] sm:$0xf0]  ;;  %v5382_v2 = vld [vmem:[#allocation5 + $0x228] sm:$0xf]  ;;  %v5127_v6 = vor.u32 %v7603_v62, %v5126_v61 }
  0xb4   :  { %1978 = vmatpush.bf16.msra.mxu1 %v5335_v3  ;;  %1991 = vmatpush.bf16.msra.mxu2 %v5463_v4  ;;  %v7667_v3 = vld [vmem:[#allocation5 + $0x234] sm:$0xf0]  ;;  %v5510_v4 = vld [vmem:[#allocation5 + $0x328] sm:$0xf]  ;;  %v5255_v9 = vor.u32 %v7635_v1, %v5254_v63 }
  0xb5   :  { %2004 = vmatpush.bf16.msra.mxu3 %v5591_v8  ;;  %v7699_v5 = vld [vmem:[#allocation5 + $0x334] sm:$0xf0]  ;;  %v5110_v7 = vld [vmem:[#allocation5 + $0x8] sm:$0xf]  ;;  %v5383_v10 = vor.u32 %v7667_v3, %v5382_v2 }
  0xb6   :  { %v7599_v8 = vld [vmem:[#allocation5 + $0x14] sm:$0xf0]  ;;  %v5238_v11 = vld [vmem:[#allocation5 + $0x108] sm:$0xf] }
  0xb7   :  { %1966 = vmatpush.bf16.msra.mxu0 %v5191_v14  ;;  %v7631_v12 = vld [vmem:[#allocation5 + $0x114] sm:$0xf0]  ;;  %v5366_v13 = vld [vmem:[#allocation5 + $0x208] sm:$0xf]  ;;  %v5511_v14 = vor.u32 %v7699_v5, %v5510_v4  ;;  %v5111_v21 = vor.u32 %v7599_v8, %v5110_v7 }
  0xb8   :  { %1979 = vmatpush.bf16.msra.mxu1 %v5319_v15  ;;  %1992 = vmatpush.bf16.msra.mxu2 %v5447_v16  ;;  %v7663_v15 = vld [vmem:[#allocation5 + $0x214] sm:$0xf0]  ;;  %v5494_v16 = vld [vmem:[#allocation5 + $0x308] sm:$0xf]  ;;  %v5239_v25 = vor.u32 %v7631_v12, %v5238_v11 }
  0xb9   :  { %2005 = vmatpush.bf16.msra.mxu3 %v5575_v20  ;;  %v7695_v17 = vld [vmem:[#allocation5 + $0x314] sm:$0xf0]  ;;  %v5734_v18 = vld [vmem:[#allocation5 + $0x4e8] sm:$0xf] }
  0xba   :  { %v7755_v19 = vld [vmem:[#allocation5 + $0x4f4] sm:$0xf0]  ;;  %v5862_v20 = vld [vmem:[#allocation5 + $0x5e8] sm:$0xf]  ;;  %v5495_v29 = vor.u32 %v7695_v17, %v5494_v16 }
  0xbb   :  { %1967 = vmatpush.bf16.msra.mxu0 %v5175_v26  ;;  %v7787_v22 = vld [vmem:[#allocation5 + $0x5f4] sm:$0xf0]  ;;  %v5990_v23 = vld [vmem:[#allocation5 + $0x6e8] sm:$0xf]  ;;  %v5367_v26 = vor.u32 %v7663_v15, %v5366_v13  ;;  %v5735_v30 = vor.u32 %v7755_v19, %v5734_v18 }
  0xbc   :  { %1980 = vmatpush.bf16.msra.mxu1 %v5303_v27  ;;  %1993 = vmatpush.bf16.msra.mxu2 %v5431_v28  ;;  %v7819_v24 = vld [vmem:[#allocation5 + $0x6f4] sm:$0xf0]  ;;  %v6118_v27 = vld [vmem:[#allocation5 + $0x7e8] sm:$0xf]  ;;  %v5863_v31 = vor.u32 %v7787_v22, %v5862_v20 }
  0xbd   :  { %2006 = vmatpush.bf16.msra.mxu3 %v5559_v35  ;;  %v7851_v28 = vld [vmem:[#allocation5 + $0x7f4] sm:$0xf0]  ;;  %v5991_v35 = vor.u32 %v7819_v24, %v5990_v23  ;;  %v5718_v36 = vld [vmem:[#allocation5 + $0x4c8] sm:$0xf] }
  0xbe   :  { %v7751_v39 = vld [vmem:[#allocation5 + $0x4d4] sm:$0xf0]  ;;  %v5846_v43 = vld [vmem:[#allocation5 + $0x5c8] sm:$0xf]  ;;  %v6119_v44 = vor.u32 %v7851_v28, %v6118_v27 }
  0xbf   :  { %1968 = vmatpush.bf16.msra.mxu0 %v5159_v46  ;;  %v7783_v45 = vld [vmem:[#allocation5 + $0x5d4] sm:$0xf0]  ;;  %v5974_v46 = vld [vmem:[#allocation5 + $0x6c8] sm:$0xf]  ;;  %v5719_v50 = vor.u32 %v7751_v39, %v5718_v36 }
  0xc0   :  { %1981 = vmatpush.bf16.msra.mxu1 %v5287_v47  ;;  %1994 = vmatpush.bf16.msra.mxu2 %v5415_v48  ;;  %v7815_v47 = vld [vmem:[#allocation5 + $0x6d4] sm:$0xf0]  ;;  %v6102_v48 = vld [vmem:[#allocation5 + $0x7c8] sm:$0xf]  ;;  %v5847_v51 = vor.u32 %v7783_v45, %v5846_v43 }
  0xc1   :  { %2007 = vmatpush.bf16.msra.mxu3 %v5543_v52  ;;  %v7847_v49 = vld [vmem:[#allocation5 + $0x7d4] sm:$0xf0]  ;;  %v5975_v52 = vor.u32 %v7815_v47, %v5974_v46  ;;  %v5702_v53 = vld [vmem:[#allocation5 + $0x4a8] sm:$0xf] }
  0xc2   :  { %v7747_v54 = vld [vmem:[#allocation5 + $0x4b4] sm:$0xf0]  ;;  %v5830_v55 = vld [vmem:[#allocation5 + $0x5a8] sm:$0xf]  ;;  %v6103_v56 = vor.u32 %v7847_v49, %v6102_v48 }
  0xc3   :  { %1969 = vmatpush.bf16.msra.mxu0 %v5143_v58  ;;  %v7779_v57 = vld [vmem:[#allocation5 + $0x5b4] sm:$0xf0]  ;;  %v5958_v58 = vld [vmem:[#allocation5 + $0x6a8] sm:$0xf]  ;;  %v5703_v62 = vor.u32 %v7747_v54, %v5702_v53 }
  0xc4   :  { %1982 = vmatpush.bf16.msra.mxu1 %v5271_v59  ;;  %1995 = vmatpush.bf16.msra.mxu2 %v5399_v60  ;;  %v7811_v59 = vld [vmem:[#allocation5 + $0x6b4] sm:$0xf0]  ;;  %v6086_v60 = vld [vmem:[#allocation5 + $0x7a8] sm:$0xf]  ;;  %v5831_v63 = vor.u32 %v7779_v57, %v5830_v55 }
  0xc5   :  { %2008 = vmatpush.bf16.msra.mxu3 %v5527_v0  ;;  %v7843_v61 = vld [vmem:[#allocation5 + $0x7b4] sm:$0xf0]  ;;  %v5959_v0 = vor.u32 %v7811_v59, %v5958_v58  ;;  %v5686_v1 = vld [vmem:[#allocation5 + $0x488] sm:$0xf] }
  0xc6   :  { %v7743_v2 = vld [vmem:[#allocation5 + $0x494] sm:$0xf0]  ;;  %v5814_v3 = vld [vmem:[#allocation5 + $0x588] sm:$0xf]  ;;  %v6087_v4 = vor.u32 %v7843_v61, %v6086_v60 }
  0xc7   :  { %1970 = vmatpush.bf16.msra.mxu0 %v5127_v6  ;;  %v7775_v5 = vld [vmem:[#allocation5 + $0x594] sm:$0xf0]  ;;  %v5942_v6 = vld [vmem:[#allocation5 + $0x688] sm:$0xf] }
  0xc8   :  { %1983 = vmatpush.bf16.msra.mxu1 %v5255_v9  ;;  %1996 = vmatpush.bf16.msra.mxu2 %v5383_v10  ;;  %v7807_v7 = vld [vmem:[#allocation5 + $0x694] sm:$0xf0]  ;;  %v6070_v8 = vld [vmem:[#allocation5 + $0x788] sm:$0xf]  ;;  %v5687_v10 = vor.u32 %v7743_v2, %v5686_v1  ;;  %v5815_v11 = vor.u32 %v7775_v5, %v5814_v3 }
  0xc9   :  { %2009 = vmatpush.bf16.msra.mxu3 %v5511_v14  ;;  %v7839_v9 = vld [vmem:[#allocation5 + $0x794] sm:$0xf0]  ;;  %v5943_v12 = vor.u32 %v7807_v7, %v5942_v6  ;;  %v5670_v13 = vld [vmem:[#allocation5 + $0x468] sm:$0xf]  ;;  %v7625_v6 = vld [vmem:[#allocation5 + $0xec] sm:$0xf] }
  0xca   :  { %v7739_v14 = vld [vmem:[#allocation5 + $0x474] sm:$0xf0]  ;;  %v5798_v15 = vld [vmem:[#allocation5 + $0x568] sm:$0xf]  ;;  %v6071_v16 = vor.u32 %v7839_v9, %v6070_v8  ;;  %v5224_v7 = vld [vmem:[#allocation5 + $0xf8] sm:$0xf0] }
  0xcb   :  { %1971 = vmatpush.bf16.msra.mxu0 %v5111_v21  ;;  %v7771_v17 = vld [vmem:[#allocation5 + $0x574] sm:$0xf0]  ;;  %v5926_v18 = vld [vmem:[#allocation5 + $0x668] sm:$0xf]  ;;  %v5671_v22 = vor.u32 %v7739_v14, %v5670_v13  ;;  %v7657_v8 = vld [vmem:[#allocation5 + $0x1ec] sm:$0xf] }
  0xcc   :  { %1984 = vmatpush.bf16.msra.mxu1 %v5239_v25  ;;  %1997 = vmatpush.bf16.msra.mxu2 %v5367_v26  ;;  %v7803_v19 = vld [vmem:[#allocation5 + $0x674] sm:$0xf0]  ;;  %v6054_v20 = vld [vmem:[#allocation5 + $0x768] sm:$0xf]  ;;  %v5799_v24 = vor.u32 %v7771_v17, %v5798_v15  ;;  %v5480_v13 = vld [vmem:[#allocation5 + $0x2f8] sm:$0xf0] }
  0xcd   :  { %2010 = vmatpush.bf16.msra.mxu3 %v5495_v29  ;;  %v7835_v21 = vld [vmem:[#allocation5 + $0x774] sm:$0xf0]  ;;  %v5654_v23 = vld [vmem:[#allocation5 + $0x448] sm:$0xf]  ;;  %v5927_v25 = vor.u32 %v7803_v19, %v5926_v18  ;;  %v7721_v17 = vld [vmem:[#allocation5 + $0x3ec] sm:$0xf] }
  0xce   :  { %1972 = vmatmul.bf16.vlgmr.msra.gmra.mxu0 %v8620_v34  ;;  %v7735_v26 = vld [vmem:[#allocation5 + $0x454] sm:$0xf0]  ;;  %v5782_v27 = vld [vmem:[#allocation5 + $0x548] sm:$0xf]  ;;  %v6055_v29 = vor.u32 %v7835_v21, %v6054_v20  ;;  %v5608_v18 = vld [vmem:[#allocation5 + $0x3f8] sm:$0xf0]  ;;  %v5227_v20 = vor.u32 %v7625_v6, %v5224_v7 }
  0xcf   :  { %2016 = vmatpush.bf16.msrb.mxu0 %v5735_v30  ;;  %1998 = vmatmul.bf16.vlgmr.msra.gmra.mxu2 %v8618_v33  ;;  %v7767_v28 = vld [vmem:[#allocation5 + $0x554] sm:$0xf0]  ;;  %v5910_v30 = vld [vmem:[#allocation5 + $0x648] sm:$0xf]  ;;  %v5655_v43 = vor.u32 %v7735_v26, %v5654_v23  ;;  %v7653_v26 = vld [vmem:[#allocation5 + $0x1cc] sm:$0xf] }
  0xd0   :  { %2029 = vmatpush.bf16.msrb.mxu1 %v5863_v31  ;;  %2042 = vmatpush.bf16.msrb.mxu2 %v5991_v35  ;;  %v7799_v31 = vld [vmem:[#allocation5 + $0x654] sm:$0xf0]  ;;  %v8657_v35 = vld [vmem:[%s8861_s7] sm:$0xf]  ;;  %v5783_v45 = vor.u32 %v7767_v28, %v5782_v27  ;;  %v5432_v6 = vld [vmem:[#allocation5 + $0x298] sm:$0xf0] }
  0xd1   :  { %2055 = vmatpush.bf16.msrb.mxu3 %v6119_v44  ;;  %1985 = vmatmul.bf16.vlgmr.msra.gmra.mxu1 %v8624_v42  ;;  %v6038_v36 = vld [vmem:[#allocation5 + $0x748] sm:$0xf]  ;;  %v7831_v39 = vld [vmem:[#allocation5 + $0x754] sm:$0xf0]  ;;  %v5911_v46 = vor.u32 %v7799_v31, %v5910_v30  ;;  %v468_v49 = vperm.slane %v8657_v35, 0 }
  0xd2   :  { %2011 = vmatmul.bf16.vlgmr.msra.gmra.mxu3 %v8622_v41  ;;  %v5638_v44 = vld [vmem:[#allocation5 + $0x428] sm:$0xf]  ;;  %v7731_v47 = vld [vmem:[#allocation5 + $0x434] sm:$0xf0]  ;;  %v5336_v30 = vld [vmem:[#allocation5 + $0x1d8] sm:$0xf0] }
  0xd3   :  { %2017 = vmatpush.bf16.msrb.mxu0 %v5719_v50  ;;  %v5766_v48 = vld [vmem:[#allocation5 + $0x528] sm:$0xf]  ;;  %v6039_v50 = vor.u32 %v7831_v39, %v6038_v36  ;;  %v7795_v53 = vld [vmem:[#allocation5 + $0x634] sm:$0xf0]  ;;  %v7685_v31 = vld [vmem:[#allocation5 + $0x2cc] sm:$0xf] }
  0xd4   :  { %2030 = vmatpush.bf16.msrb.mxu1 %v5847_v51  ;;  %2043 = vmatpush.bf16.msrb.mxu2 %v5975_v52  ;;  %v7763_v51 = vld [vmem:[#allocation5 + $0x534] sm:$0xf0]  ;;  %v5894_v52 = vld [vmem:[#allocation5 + $0x628] sm:$0xf]  ;;  %v5464_v36 = vld [vmem:[#allocation5 + $0x2d8] sm:$0xf0] }
  0xd5   :  { %2056 = vmatpush.bf16.msrb.mxu3 %v6103_v56  ;;  %v6022_v54 = vld [vmem:[#allocation5 + $0x728] sm:$0xf]  ;;  %v7827_v55 = vld [vmem:[#allocation5 + $0x734] sm:$0xf0]  ;;  %v5639_v56 = vor.u32 %v7731_v47, %v5638_v44  ;;  %v5767_v60 = vor.u32 %v7763_v51, %v5766_v48  ;;  %v5895_v61 = vor.u32 %v7795_v53, %v5894_v52  ;;  %v5592_v44 = vld [vmem:[#allocation5 + $0x3d8] sm:$0xf0]  ;;  %v5339_v47 = vor.u32 %v7653_v26, %v5336_v30 }
  0xd6   :  { %v5622_v57 = vld [vmem:[#allocation5 + $0x408] sm:$0xf]  ;;  %v7727_v58 = vld [vmem:[#allocation5 + $0x414] sm:$0xf0]  ;;  %v6023_v2 = vor.u32 %v7827_v55, %v6022_v54  ;;  %v5467_v48 = vor.u32 %v7685_v31, %v5464_v36  ;;  %v7649_v51 = vld [vmem:[#allocation5 + $0x1ac] sm:$0xf] }
  0xd7   :  { %2018 = vmatpush.bf16.msrb.mxu0 %v5703_v62  ;;  %v5750_v62 = vld [vmem:[#allocation5 + $0x508] sm:$0xf]  ;;  %v7791_v3 = vld [vmem:[#allocation5 + $0x614] sm:$0xf0]  ;;  %v5320_v54 = vld [vmem:[#allocation5 + $0x1b8] sm:$0xf0] }
  0xd8   :  { %2031 = vmatpush.bf16.msrb.mxu1 %v5831_v63  ;;  %2044 = vmatpush.bf16.msrb.mxu2 %v5959_v0  ;;  %v7759_v63 = vld [vmem:[#allocation5 + $0x514] sm:$0xf0]  ;;  %v5878_v0 = vld [vmem:[#allocation5 + $0x608] sm:$0xf]  ;;  %v7681_v55 = vld [vmem:[#allocation5 + $0x2ac] sm:$0xf] }
  0xd9   :  { %2057 = vmatpush.bf16.msrb.mxu3 %v6087_v4  ;;  %v6006_v4 = vld [vmem:[#allocation5 + $0x708] sm:$0xf]  ;;  %v7823_v5 = vld [vmem:[#allocation5 + $0x714] sm:$0xf0]  ;;  %v5751_v15 = vor.u32 %v7759_v63, %v5750_v62  ;;  %v7613_v63 = vld [vmem:[#allocation5 + $0x8c] sm:$0xf] }
  0xda   :  { %v6007_v19 = vor.u32 %v7823_v5, %v6006_v4  ;;  %v5304_v4 = vld [vmem:[#allocation5 + $0x198] sm:$0xf0]  ;;  %v7677_v5 = vld [vmem:[#allocation5 + $0x28c] sm:$0xf] }
  0xdb   :  { %2019 = vmatpush.bf16.msrb.mxu0 %v5687_v10  ;;  %v5623_v10 = vor.u32 %v7727_v58, %v5622_v57  ;;  %v7713_v57 = vld [vmem:[#allocation5 + $0x3ac] sm:$0xf]  ;;  %v5576_v58 = vld [vmem:[#allocation5 + $0x3b8] sm:$0xf0] }
  0xdc   :  { %2032 = vmatpush.bf16.msrb.mxu1 %v5815_v11  ;;  %2045 = vmatpush.bf16.msrb.mxu2 %v5943_v12  ;;  %v5352_v11 = vld [vmem:[#allocation5 + $0x1f8] sm:$0xf0]  ;;  %v7689_v12 = vld [vmem:[#allocation5 + $0x2ec] sm:$0xf] }
  0xdd   :  { %2058 = vmatpush.bf16.msrb.mxu3 %v6071_v16  ;;  %v5879_v16 = vor.u32 %v7791_v3, %v5878_v0  ;;  %v5483_v23 = vor.u32 %v7689_v12, %v5480_v13  ;;  %v5176_v0 = vld [vmem:[#allocation5 + $0x98] sm:$0xf0]  ;;  %v5579_v3 = vor.u32 %v7713_v57, %v5576_v58  ;;  %v7709_v7 = vld [vmem:[#allocation5 + $0x38c] sm:$0xf]  ;;  %v5435_v12 = vor.u32 %v7677_v5, %v5432_v6 }
  0xde   :  { %v1765_v59 = vpop.f32.mrf.mxu0  ;;  %v7609_v13 = vld [vmem:[#allocation5 + $0x6c] sm:$0xf]  ;;  %v5240_v6 = vld [vmem:[#allocation5 + $0x118] sm:$0xf0] }
  0xdf   :  { %2020 = vmatpush.bf16.msrb.mxu0 %v5671_v22  ;;  %v1766_v1 = vadd.f32 %v1765_v59, %v468_v49  ;;  %v1778_v9 = vpop.f32.mrf.mxu1  ;;  %v5355_v22 = vor.u32 %v7657_v8, %v5352_v11  ;;  %v7617_v49 = vld [vmem:[#allocation5 + $0xac] sm:$0xf]  ;;  %v5560_v8 = vld [vmem:[#allocation5 + $0x398] sm:$0xf0] }
  0xe0   :  { %2033 = vmatpush.bf16.msrb.mxu1 %v5799_v24  ;;  %2046 = vmatpush.bf16.msrb.mxu2 %v5927_v25  ;;  %v7621_v24 = vld [vmem:[#allocation5 + $0xcc] sm:$0xf]  ;;  %v5208_v25 = vld [vmem:[#allocation5 + $0xd8] sm:$0xf0] }
  0xe1   :  { %2059 = vmatpush.bf16.msrb.mxu3 %v6055_v29  ;;  %v1779_v14 = vadd.f32 %v1778_v9, %v1766_v1  ;;  %v5611_v29 = vor.u32 %v7721_v17, %v5608_v18  ;;  %v7645_v1 = vld [vmem:[#allocation5 + $0x18c] sm:$0xf]  ;;  %v5179_v9 = vor.u32 %v7613_v63, %v5176_v0  ;;  %v5563_v18 = vor.u32 %v7709_v7, %v5560_v8  ;;  %v5512_v63 = vld [vmem:[#allocation5 + $0x338] sm:$0xf0] }
  0xe2   :  { %v5307_v11 = vor.u32 %v7645_v1, %v5304_v4  ;;  %v7637_v30 = vld [vmem:[#allocation5 + $0x14c] sm:$0xf] }
  0xe3   :  { %2021 = vmatpush.bf16.msrb.mxu0 %v5655_v43  ;;  %v7717_v43 = vld [vmem:[#allocation5 + $0x3cc] sm:$0xf] }
  0xe4   :  { %2034 = vmatpush.bf16.msrb.mxu1 %v5783_v45  ;;  %2047 = vmatpush.bf16.msrb.mxu2 %v5911_v46  ;;  %v1791_v21 = vpop.f32.mrf.mxu2  ;;  %v5211_v46 = vor.u32 %v7621_v24, %v5208_v25  ;;  %v5595_v53 = vor.u32 %v7717_v43, %v5592_v44  ;;  %v7669_v43 = vld [vmem:[#allocation5 + $0x24c] sm:$0xf]  ;;  %v5400_v44 = vld [vmem:[#allocation5 + $0x258] sm:$0xf0] }
  0xe5   :  { %2060 = vmatpush.bf16.msrb.mxu3 %v6039_v50  ;;  %v1792_v27 = vadd.f32 %v1791_v21, %v1779_v14  ;;  %v1804_v28 = vpop.f32.mrf.mxu3  ;;  %v5192_v50 = vld [vmem:[#allocation5 + $0xb8] sm:$0xf0]  ;;  %v7597_v1 = vld [vmem:[#allocation5 + $0xc] sm:$0xf] }
  0xe6   :  { %v1767_v39 = vpop.f32.mrf.mxu0  ;;  %v5195_v59 = vor.u32 %v7617_v49, %v5192_v50  ;;  %v5160_v14 = vld [vmem:[#allocation5 + $0x78] sm:$0xf0]  ;;  %v7629_v5 = vld [vmem:[#allocation5 + $0x10c] sm:$0xf] }
  0xe7   :  { %2022 = vmatpush.bf16.msrb.mxu0 %v5639_v56  ;;  %v1805_v45 = vadd.f32 %v1804_v28, %v1792_v27  ;;  %v1780_v52 = vpop.f32.mrf.mxu1  ;;  %v5448_v56 = vld [vmem:[#allocation5 + $0x2b8] sm:$0xf0]  ;;  %v5163_v25 = vor.u32 %v7609_v13, %v5160_v14  ;;  %v7605_v28 = vld [vmem:[#allocation5 + $0x4c] sm:$0xf] }
  0xe8   :  { %2035 = vmatpush.bf16.msrb.mxu1 %v5767_v60  ;;  %2048 = vmatpush.bf16.msrb.mxu2 %v5895_v61  ;;  %v5323_v61 = vor.u32 %v7649_v51, %v5320_v54  ;;  %v5451_v62 = vor.u32 %v7681_v55, %v5448_v56  ;;  %v5416_v21 = vld [vmem:[#allocation5 + $0x278] sm:$0xf0]  ;;  %v7601_v54 = vld [vmem:[#allocation5 + $0x2c] sm:$0xf] }
  0xe9   :  { %2061 = vmatpush.bf16.msrb.mxu3 %v6023_v2  ;;  %v5272_v39 = vld [vmem:[#allocation5 + $0x158] sm:$0xf0]  ;;  %v7633_v56 = vld [vmem:[#allocation5 + $0x12c] sm:$0xf] }
  0xea   :  { %v5275_v52 = vor.u32 %v7637_v30, %v5272_v39  ;;  %v5128_v55 = vld [vmem:[#allocation5 + $0x38] sm:$0xf0]  ;;  %v7661_v7 = vld [vmem:[#allocation5 + $0x20c] sm:$0xf] }
  0xeb   :  { %2023 = vmatpush.bf16.msrb.mxu0 %v5623_v10  ;;  %v5131_v0 = vor.u32 %v7601_v54, %v5128_v55  ;;  %v7753_v14 = vld [vmem:[#allocation5 + $0x4ec] sm:$0xf]  ;;  %v5720_v30 = vld [vmem:[#allocation5 + $0x4d8] sm:$0xf0] }
  0xec   :  { %2036 = vmatpush.bf16.msrb.mxu1 %v5751_v15  ;;  %2049 = vmatpush.bf16.msrb.mxu2 %v5879_v16  ;;  %v1793_v60 = vpop.f32.mrf.mxu2  ;;  %v7641_v15 = vld [vmem:[#allocation5 + $0x16c] sm:$0xf]  ;;  %v5848_v39 = vld [vmem:[#allocation5 + $0x5d8] sm:$0xf0] }
  0xed   :  { %2062 = vmatpush.bf16.msrb.mxu3 %v6007_v19  ;;  %v1806_v2 = vpop.f32.mrf.mxu3  ;;  %v5288_v19 = vld [vmem:[#allocation5 + $0x178] sm:$0xf0]  ;;  %v7665_v60 = vld [vmem:[#allocation5 + $0x22c] sm:$0xf] }
  0xee   :  { %2024 = vmatmul.bf16.vlgmr.msrb.gmra.mxu0 %v8632_v37  ;;  %v5291_v26 = vor.u32 %v7641_v15, %v5288_v19  ;;  %v5112_v2 = vld [vmem:[#allocation5 + $0x18] sm:$0xf0]  ;;  %v7817_v19 = vld [vmem:[#allocation5 + $0x6ec] sm:$0xf] }
  0xef   :  { %2068 = vmatpush.bf16.msra.mxu0 %v5227_v20  ;;  %2050 = vmatmul.bf16.vlgmr.msrb.gmra.mxu2 %v8630_v32  ;;  %v1817_v10 = vpop.f32.mrf.mxu0  ;;  %v7673_v20 = vld [vmem:[#allocation5 + $0x26c] sm:$0xf]  ;;  %v5736_v15 = vld [vmem:[#allocation5 + $0x4f8] sm:$0xf0] }
  0xf0   :  { %2081 = vmatpush.bf16.msra.mxu1 %v5355_v22  ;;  %2094 = vmatpush.bf16.msra.mxu2 %v5483_v23  ;;  %v1818_v16 = vadd.f32 %v1817_v10, %v1805_v45  ;;  %v1830_v17 = vpop.f32.mrf.mxu1  ;;  %v7705_v22 = vld [vmem:[#allocation5 + $0x36c] sm:$0xf]  ;;  %v5544_v23 = vld [vmem:[#allocation5 + $0x378] sm:$0xf0]  ;;  %v5419_v27 = vor.u32 %v7673_v20, %v5416_v21  ;;  %v5243_v21 = vor.u32 %v7629_v5, %v5240_v6 }
  0xf1   :  { %2107 = vmatpush.bf16.msra.mxu3 %v5611_v29  ;;  %2037 = vmatmul.bf16.vlgmr.msrb.gmra.mxu1 %v8636_v40  ;;  %v5144_v29 = vld [vmem:[#allocation5 + $0x58] sm:$0xf0]  ;;  %v5547_v36 = vor.u32 %v7705_v22, %v5544_v23  ;;  %v7849_v23 = vld [vmem:[#allocation5 + $0x7ec] sm:$0xf] }
  0xf2   :  { %2063 = vmatmul.bf16.vlgmr.msrb.gmra.mxu3 %v8634_v38  ;;  %v1831_v24 = vadd.f32 %v1830_v17, %v1818_v16  ;;  %v5147_v49 = vor.u32 %v7605_v28, %v5144_v29  ;;  %v5368_v10 = vld [vmem:[#allocation5 + $0x218] sm:$0xf0]  ;;  %v7785_v16 = vld [vmem:[#allocation5 + $0x5ec] sm:$0xf]  ;;  %v5115_v17 = vor.u32 %v7597_v1, %v5112_v2 }
  0xf3   :  { %2069 = vmatpush.bf16.msra.mxu0 %v5211_v46  ;;  %v5992_v20 = vld [vmem:[#allocation5 + $0x6f8] sm:$0xf0]  ;;  %v5371_v22 = vor.u32 %v7661_v7, %v5368_v10  ;;  %v7749_v29 = vld [vmem:[#allocation5 + $0x4cc] sm:$0xf] }
  0xf4   :  { %2082 = vmatpush.bf16.msra.mxu1 %v5339_v47  ;;  %2095 = vmatpush.bf16.msra.mxu2 %v5467_v48  ;;  %v1843_v31 = vpop.f32.mrf.mxu2  ;;  %v7701_v47 = vld [vmem:[#allocation5 + $0x34c] sm:$0xf]  ;;  %v5528_v48 = vld [vmem:[#allocation5 + $0x358] sm:$0xf0]  ;;  %v5995_v28 = vor.u32 %v7817_v19, %v5992_v20 }
  0xf5   :  { %2108 = vmatpush.bf16.msra.mxu3 %v5595_v53  ;;  %v1844_v45 = vadd.f32 %v1843_v31, %v1831_v24  ;;  %v1856_v46 = vpop.f32.mrf.mxu3  ;;  %v5403_v53 = vor.u32 %v7669_v43, %v5400_v44  ;;  %v5531_v58 = vor.u32 %v7701_v47, %v5528_v48  ;;  %v6120_v24 = vld [vmem:[#allocation5 + $0x7f8] sm:$0xf0]  ;;  %v7781_v31 = vld [vmem:[#allocation5 + $0x5cc] sm:$0xf]  ;;  %v5723_v47 = vor.u32 %v7749_v29, %v5720_v30 }
  0xf6   :  { %v7813_v43 = vld [vmem:[#allocation5 + $0x6cc] sm:$0xf]  ;;  %v5976_v44 = vld [vmem:[#allocation5 + $0x6d8] sm:$0xf0]  ;;  %v5851_v48 = vor.u32 %v7781_v31, %v5848_v39 }
  0xf7   :  { %2070 = vmatpush.bf16.msra.mxu0 %v5195_v59  ;;  %v8664_v50 = vadd.f32 %v1856_v46, %v1844_v45  ;;  %v1819_v51 = vpop.f32.mrf.mxu0  ;;  %v5256_v59 = vld [vmem:[#allocation5 + $0x138] sm:$0xf0]  ;;  %v7845_v45 = vld [vmem:[#allocation5 + $0x7cc] sm:$0xf] }
  0xf8   :  { %2083 = vmatpush.bf16.msra.mxu1 %v5323_v61  ;;  %2096 = vmatpush.bf16.msra.mxu2 %v5451_v62  ;;  %v1832_v57 = vpop.f32.mrf.mxu1  ;;  %v5384_v61 = vld [vmem:[#allocation5 + $0x238] sm:$0xf0]  ;;  %v7697_v62 = vld [vmem:[#allocation5 + $0x32c] sm:$0xf] }
  0xf9   :  { %2109 = vmatpush.bf16.msra.mxu3 %v5579_v3  ;;  %v5259_v3 = vor.u32 %v7633_v56, %v5256_v59  ;;  %v5387_v4 = vor.u32 %v7665_v60, %v5384_v61  ;;  %v6104_v46 = vld [vmem:[#allocation5 + $0x7d8] sm:$0xf0]  ;;  %v7745_v51 = vld [vmem:[#allocation5 + $0x4ac] sm:$0xf] }
  0xfa   :  { %v6107_v54 = vor.u32 %v7845_v45, %v6104_v46  ;;  %v5832_v55 = vld [vmem:[#allocation5 + $0x5b8] sm:$0xf0]  ;;  %v7809_v56 = vld [vmem:[#allocation5 + $0x6ac] sm:$0xf] }
  0xfb   :  { %2071 = vmatpush.bf16.msra.mxu0 %v5179_v9  ;;  %v5515_v9 = vor.u32 %v7697_v62, %v5512_v63  ;;  %v5960_v57 = vld [vmem:[#allocation5 + $0x6b8] sm:$0xf0]  ;;  %v7741_v63 = vld [vmem:[#allocation5 + $0x48c] sm:$0xf] }
  0xfc   :  { %2084 = vmatpush.bf16.msra.mxu1 %v5307_v11  ;;  %2097 = vmatpush.bf16.msra.mxu2 %v5435_v12  ;;  %v1845_v8 = vpop.f32.mrf.mxu2  ;;  %v7693_v11 = vld [vmem:[#allocation5 + $0x30c] sm:$0xf]  ;;  %v5496_v12 = vld [vmem:[#allocation5 + $0x318] sm:$0xf0]  ;;  %v5963_v62 = vor.u32 %v7809_v56, %v5960_v57  ;;  %v469_v56 = vperm.slane %v8657_v35, 1 }
  0xfd   :  { %2110 = vmatpush.bf16.msra.mxu3 %v5563_v18  ;;  %v1858_v13 = vpop.f32.mrf.mxu3  ;;  %v5864_v18 = vld [vmem:[#allocation5 + $0x5f8] sm:$0xf0]  ;;  %v7837_v5 = vld [vmem:[#allocation5 + $0x78c] sm:$0xf]  ;;  %v7882_v35 = vld [vmem:[#allocation7 + $0xec] sm:$0xf0] }
  0xfe   :  { %v6088_v59 = vld [vmem:[#allocation5 + $0x7b8] sm:$0xf0]  ;;  %v7737_v8 = vld [vmem:[#allocation5 + $0x46c] sm:$0xf] }
  0xff   :  { %2072 = vmatpush.bf16.msra.mxu0 %v5163_v25  ;;  %v5499_v25 = vor.u32 %v7693_v11, %v5496_v12  ;;  %v5816_v2 = vld [vmem:[#allocation5 + $0x598] sm:$0xf0]  ;;  %v7769_v10 = vld [vmem:[#allocation5 + $0x56c] sm:$0xf] }
 0x100   :  { %2085 = vmatpush.bf16.msra.mxu1 %v5291_v26  ;;  %2098 = vmatpush.bf16.msra.mxu2 %v5419_v27  ;;  %v5739_v26 = vor.u32 %v7753_v14, %v5736_v15  ;;  %v5867_v27 = vor.u32 %v7785_v16, %v5864_v18  ;;  %v5800_v13 = vld [vmem:[#allocation5 + $0x578] sm:$0xf0]  ;;  %v7801_v14 = vld [vmem:[#allocation5 + $0x66c] sm:$0xf] }
 0x101   :  { %2111 = vmatpush.bf16.msra.mxu3 %v5547_v36  ;;  %v6123_v36 = vor.u32 %v7849_v23, %v6120_v24  ;;  %v5928_v15 = vld [vmem:[#allocation5 + $0x678] sm:$0xf0]  ;;  %v7833_v16 = vld [vmem:[#allocation5 + $0x76c] sm:$0xf]  ;;  %v5803_v19 = vor.u32 %v7769_v10, %v5800_v13 }
 0x102   :  { %v5931_v20 = vor.u32 %v7801_v14, %v5928_v15  ;;  %v7765_v23 = vld [vmem:[#allocation5 + $0x54c] sm:$0xf]  ;;  %v6040_v31 = vld [vmem:[#allocation5 + $0x758] sm:$0xf0]  ;;  %v6494_v14 = vld [vmem:[#allocation7 + $0x2e0] sm:$0xf] }
 0x103   :  { %2073 = vmatpush.bf16.msra.mxu0 %v5147_v49  ;;  %v5979_v49 = vor.u32 %v7813_v43, %v5976_v44  ;;  %v7829_v30 = vld [vmem:[#allocation5 + $0x74c] sm:$0xf]  ;;  %v5640_v46 = vld [vmem:[#allocation5 + $0x438] sm:$0xf0]  ;;  %v7946_v15 = vld [vmem:[#allocation7 + $0x2ec] sm:$0xf0] }
 0x104   :  { %2086 = vmatpush.bf16.msra.mxu1 %v5275_v52  ;;  %2099 = vmatpush.bf16.msra.mxu2 %v5403_v53  ;;  %v5704_v52 = vld [vmem:[#allocation5 + $0x4b8] sm:$0xf0]  ;;  %v7777_v53 = vld [vmem:[#allocation5 + $0x5ac] sm:$0xf] }
 0x105   :  { %2112 = vmatpush.bf16.msra.mxu3 %v5531_v58  ;;  %v7841_v58 = vld [vmem:[#allocation5 + $0x7ac] sm:$0xf]  ;;  %v5707_v60 = vor.u32 %v7745_v51, %v5704_v52  ;;  %v5835_v61 = vor.u32 %v7777_v53, %v5832_v55  ;;  %v5768_v51 = vld [vmem:[#allocation5 + $0x538] sm:$0xf0] }
 0x106   :  { %v6091_v1 = vor.u32 %v7841_v58, %v6088_v59  ;;  %v7729_v45 = vld [vmem:[#allocation5 + $0x42c] sm:$0xf]  ;;  %v5896_v53 = vld [vmem:[#allocation5 + $0x638] sm:$0xf0] }
 0x107   :  { %2074 = vmatpush.bf16.msra.mxu0 %v5131_v0  ;;  %v5688_v0 = vld [vmem:[#allocation5 + $0x498] sm:$0xf0]  ;;  %v7793_v52 = vld [vmem:[#allocation5 + $0x62c] sm:$0xf]  ;;  %v5643_v57 = vor.u32 %v7729_v45, %v5640_v46  ;;  %v6190_v45 = vld [vmem:[#allocation7 + $0x80] sm:$0xf] }
 0x108   :  { %2087 = vmatpush.bf16.msra.mxu1 %v5259_v3  ;;  %2100 = vmatpush.bf16.msra.mxu2 %v5387_v4  ;;  %v7805_v3 = vld [vmem:[#allocation5 + $0x68c] sm:$0xf]  ;;  %v5944_v4 = vld [vmem:[#allocation5 + $0x698] sm:$0xf0]  ;;  %v7870_v46 = vld [vmem:[#allocation7 + $0x8c] sm:$0xf0] }
 0x109   :  { %2113 = vmatpush.bf16.msra.mxu3 %v5515_v9  ;;  %v5947_v7 = vor.u32 %v7805_v3, %v5944_v4  ;;  %v5672_v9 = vld [vmem:[#allocation5 + $0x478] sm:$0xf0]  ;;  %v7725_v58 = vld [vmem:[#allocation5 + $0x40c] sm:$0xf] }
 0x10a   :  { %v5675_v18 = vor.u32 %v7737_v8, %v5672_v9  ;;  %v6024_v55 = vld [vmem:[#allocation5 + $0x738] sm:$0xf0]  ;;  %v7821_v3 = vld [vmem:[#allocation5 + $0x70c] sm:$0xf]  ;;  %v7914_v8 = vld [vmem:[#allocation7 + $0x1ec] sm:$0xf0] }
 0x10b   :  { %2075 = vmatpush.bf16.msra.mxu0 %v5115_v17  ;;  %v8670_v6 = vpop.f32.mrf.mxu0  ;;  %v6056_v17 = vld [vmem:[#allocation5 + $0x778] sm:$0xf0] }
 0x10c   :  { %2088 = vmatpush.bf16.msra.mxu1 %v5243_v21  ;;  %2101 = vmatpush.bf16.msra.mxu2 %v5371_v22  ;;  %v7733_v21 = vld [vmem:[#allocation5 + $0x44c] sm:$0xf]  ;;  %v5656_v22 = vld [vmem:[#allocation5 + $0x458] sm:$0xf0] }
 0x10d   :  { %2114 = vmatpush.bf16.msra.mxu3 %v5499_v25  ;;  %v6059_v25 = vor.u32 %v7833_v16, %v6056_v17 }
 0x10e   :  { %2076 = vmatmul.bf16.vlgmr.msra.gmra.mxu0 %v8620_v34  ;;  %v6072_v34 = vld [vmem:[#allocation5 + $0x798] sm:$0xf0]  ;;  %v8672_v11 = vpop.f32.mrf.mxu1 }
 0x10f   :  { %2120 = vmatpush.bf16.msrb.mxu0 %v5739_v26  ;;  %2102 = vmatmul.bf16.vlgmr.msra.gmra.mxu2 %v8618_v33  ;;  %v7773_v33 = vld [vmem:[#allocation5 + $0x58c] sm:$0xf]  ;;  %v6075_v12 = vor.u32 %v7837_v5, %v6072_v34  ;;  %v5784_v26 = vld [vmem:[#allocation5 + $0x558] sm:$0xf0]  ;;  %v6238_v34 = vld [vmem:[#allocation7 + $0xe0] sm:$0xf] }
 0x110   :  { %2133 = vmatpush.bf16.msrb.mxu1 %v5867_v27  ;;  %2146 = vmatpush.bf16.msrb.mxu2 %v5995_v28  ;;  %v7797_v27 = vld [vmem:[#allocation5 + $0x64c] sm:$0xf]  ;;  %v5912_v28 = vld [vmem:[#allocation5 + $0x658] sm:$0xf0]  ;;  %v5787_v43 = vor.u32 %v7765_v23, %v5784_v26  ;;  %v6239_v13 = vor.u32 %v7882_v35, %v6238_v34  ;;  %v6478_v23 = vld [vmem:[#allocation7 + $0x2c0] sm:$0xf] }
 0x111   :  { %2159 = vmatpush.bf16.msrb.mxu3 %v6123_v36  ;;  %2089 = vmatmul.bf16.vlgmr.msra.gmra.mxu1 %v8624_v42  ;;  %v5819_v42 = vor.u32 %v7773_v33, %v5816_v2  ;;  %v5659_v36 = vor.u32 %v7733_v21, %v5656_v22  ;;  %v5915_v44 = vor.u32 %v7797_v27, %v5912_v28  ;;  %v5880_v2 = vld [vmem:[#allocation5 + $0x618] sm:$0xf0]  ;;  %v7874_v28 = vld [vmem:[#allocation7 + $0xac] sm:$0xf0] }
 0x112   :  { %2115 = vmatmul.bf16.vlgmr.msra.gmra.mxu3 %v8622_v41  ;;  %v5691_v41 = vor.u32 %v7741_v63, %v5688_v0  ;;  %v8674_v24 = vpop.f32.mrf.mxu2  ;;  %v5752_v63 = vld [vmem:[#allocation5 + $0x518] sm:$0xf0]  ;;  %v6495_v21 = vor.u32 %v7946_v15, %v6494_v14  ;;  %v7890_v14 = vld [vmem:[#allocation7 + $0x12c] sm:$0xf0] }
 0x113   :  { %2121 = vmatpush.bf16.msrb.mxu0 %v5723_v47  ;;  %v1871_v39 = vpop.f32.mrf.mxu0  ;;  %v7761_v47 = vld [vmem:[#allocation5 + $0x52c] sm:$0xf]  ;;  %v6008_v5 = vld [vmem:[#allocation5 + $0x718] sm:$0xf0] }
 0x114   :  { %2134 = vmatpush.bf16.msrb.mxu1 %v5851_v48  ;;  %2147 = vmatpush.bf16.msrb.mxu2 %v5979_v49  ;;  %v6043_v49 = vor.u32 %v7829_v30, %v6040_v31  ;;  %v5771_v59 = vor.u32 %v7761_v47, %v5768_v51  ;;  %v6334_v30 = vld [vmem:[#allocation7 + $0x1a0] sm:$0xf]  ;;  %v7906_v31 = vld [vmem:[#allocation7 + $0x1ac] sm:$0xf0] }
 0x115   :  { %2160 = vmatpush.bf16.msrb.mxu3 %v6107_v54  ;;  %v8676_v29 = vpop.f32.mrf.mxu3  ;;  %v7825_v54 = vld [vmem:[#allocation5 + $0x72c] sm:$0xf]  ;;  %v6318_v47 = vld [vmem:[#allocation7 + $0x180] sm:$0xf]  ;;  %v7934_v51 = vld [vmem:[#allocation7 + $0x28c] sm:$0xf0] }
 0x116   :  { %v1884_v48 = vpop.f32.mrf.mxu1  ;;  %v6027_v33 = vor.u32 %v7825_v54, %v6024_v55  ;;  %v7866_v54 = vld [vmem:[#allocation7 + $0x6c] sm:$0xf0] }
 0x117   :  { %2122 = vmatpush.bf16.msrb.mxu0 %v5707_v60  ;;  %v5899_v60 = vor.u32 %v7793_v52, %v5896_v53  ;;  %v6191_v48 = vor.u32 %v7870_v46, %v6190_v45  ;;  %v6174_v53 = vld [vmem:[#allocation7 + $0x60] sm:$0xf]  ;;  %v7944_v46 = vld [vmem:[#allocation7 + $0x2e4] sm:$0xf] }
 0x118   :  { %2135 = vmatpush.bf16.msrb.mxu1 %v5835_v61  ;;  %2148 = vmatpush.bf16.msrb.mxu2 %v5963_v62  ;;  %v5624_v61 = vld [vmem:[#allocation5 + $0x418] sm:$0xf0]  ;;  %v7757_v62 = vld [vmem:[#allocation5 + $0x50c] sm:$0xf] }
 0x119   :  { %2161 = vmatpush.bf16.msrb.mxu3 %v6091_v1  ;;  %v7789_v1 = vld [vmem:[#allocation5 + $0x60c] sm:$0xf]  ;;  %v5755_v9 = vor.u32 %v7757_v62, %v5752_v63  ;;  %v7930_v62 = vld [vmem:[#allocation7 + $0x26c] sm:$0xf0] }
 0x11a   :  { %v1897_v0 = vpop.f32.mrf.mxu2  ;;  %v5883_v10 = vor.u32 %v7789_v1, %v5880_v2  ;;  %v6286_v2 = vld [vmem:[#allocation7 + $0x140] sm:$0xf] }
 0x11b   :  { %2123 = vmatpush.bf16.msrb.mxu0 %v5691_v41  ;;  %v1870_v41 = vadd.f32 %v8670_v6, %v469_v56  ;;  %v6350_v6 = vld [vmem:[#allocation7 + $0x1c0] sm:$0xf] }
 0x11c   :  { %2136 = vmatpush.bf16.msrb.mxu1 %v5819_v42  ;;  %2149 = vmatpush.bf16.msrb.mxu2 %v5947_v7  ;;  %v5627_v42 = vor.u32 %v7725_v58, %v5624_v61  ;;  %v6366_v7 = vld [vmem:[#allocation7 + $0x1e0] sm:$0xf] }
 0x11d   :  { %2162 = vmatpush.bf16.msrb.mxu3 %v6075_v12  ;;  %v1910_v4 = vpop.f32.mrf.mxu3  ;;  %v6011_v12 = vor.u32 %v7821_v3, %v6008_v5  ;;  %v6367_v16 = vor.u32 %v7914_v8, %v6366_v7  ;;  %v1883_v17 = vadd.f32 %v8672_v11, %v1870_v41  ;;  %v6206_v11 = vld [vmem:[#allocation7 + $0xa0] sm:$0xf]  ;;  %v7894_v3 = vld [vmem:[#allocation7 + $0x14c] sm:$0xf0] }
 0x11e   :  { %v6207_v39 = vor.u32 %v7874_v28, %v6206_v11  ;;  %v6430_v61 = vld [vmem:[#allocation7 + $0x260] sm:$0xf]  ;;  %v7926_v7 = vld [vmem:[#allocation7 + $0x24c] sm:$0xf0]  ;;  %v6287_v8 = vor.u32 %v7894_v3, %v6286_v2  ;;  %v7912_v28 = vld [vmem:[#allocation7 + $0x1e4] sm:$0xf] }
 0x11f   :  { %2124 = vmatpush.bf16.msrb.mxu0 %v5675_v18  ;;  %v6222_v18 = vld [vmem:[#allocation7 + $0xc0] sm:$0xf]  ;;  %v1896_v27 = vadd.f32 %v8674_v24, %v1883_v17  ;;  %v6335_v24 = vor.u32 %v7906_v31, %v6334_v30  ;;  %v6431_v5 = vor.u32 %v7930_v62, %v6430_v61  ;;  %v6368_v30 = vld [vmem:[#allocation7 + $0x1f0] sm:$0xf0]  ;;  %v7900_v3 = vld [vmem:[#allocation7 + $0x184] sm:$0xf] }
 0x120   :  { %2137 = vmatpush.bf16.msrb.mxu1 %v5803_v19  ;;  %2150 = vmatpush.bf16.msrb.mxu2 %v5931_v20  ;;  %v7878_v19 = vld [vmem:[#allocation7 + $0xcc] sm:$0xf0]  ;;  %v6158_v0 = vld [vmem:[#allocation7 + $0x40] sm:$0xf]  ;;  %v6192_v2 = vld [vmem:[#allocation7 + $0x90] sm:$0xf0] }
 0x121   :  { %2163 = vmatpush.bf16.msrb.mxu3 %v6059_v25  ;;  %v7910_v20 = vld [vmem:[#allocation7 + $0x1cc] sm:$0xf0]  ;;  %v6223_v22 = vor.u32 %v7878_v19, %v6222_v18  ;;  %v6398_v18 = vld [vmem:[#allocation7 + $0x220] sm:$0xf] }
 0x122   :  { %v7942_v25 = vld [vmem:[#allocation7 + $0x2cc] sm:$0xf0]  ;;  %v6351_v26 = vor.u32 %v7910_v20, %v6350_v6  ;;  %v6126_v20 = vld [vmem:[#allocation7] sm:$0xf] }
 0x123   :  { %2125 = vmatpush.bf16.msrb.mxu0 %v5659_v36  ;;  %v6479_v36 = vor.u32 %v7942_v25, %v6478_v23  ;;  %v7922_v19 = vld [vmem:[#allocation7 + $0x22c] sm:$0xf0] }
 0x124   :  { %2138 = vmatpush.bf16.msrb.mxu1 %v5787_v43  ;;  %2151 = vmatpush.bf16.msrb.mxu2 %v5915_v44  ;;  %v6462_v43 = vld [vmem:[#allocation7 + $0x2a0] sm:$0xf]  ;;  %v7938_v44 = vld [vmem:[#allocation7 + $0x2ac] sm:$0xf0]  ;;  %v6399_v31 = vor.u32 %v7922_v19, %v6398_v18  ;;  %v7860_v19 = vld [vmem:[#allocation7 + $0x44] sm:$0xf] }
 0x125   :  { %2164 = vmatpush.bf16.msrb.mxu3 %v6043_v49  ;;  %v7886_v25 = vld [vmem:[#allocation7 + $0x10c] sm:$0xf0] }
 0x127   :  { %2126 = vmatpush.bf16.msrb.mxu0 %v5643_v57  ;;  %v6302_v57 = vld [vmem:[#allocation7 + $0x160] sm:$0xf] }
 0x128   :  { %2139 = vmatpush.bf16.msrb.mxu1 %v5771_v59  ;;  %2152 = vmatpush.bf16.msrb.mxu2 %v5899_v60  ;;  %v6175_v59 = vor.u32 %v7866_v54, %v6174_v53 }
 0x129   :  { %2165 = vmatpush.bf16.msrb.mxu3 %v6027_v33  ;;  %v7862_v33 = vld [vmem:[#allocation7 + $0x4c] sm:$0xf0] }
 0x12a   :  { %v6159_v34 = vor.u32 %v7862_v33, %v6158_v0  ;;  %v6464_v0 = vld [vmem:[#allocation7 + $0x2b0] sm:$0xf0] }
 0x12b   :  { %2127 = vmatpush.bf16.msrb.mxu0 %v5627_v42  ;;  %v1921_v49 = vpop.f32.mrf.mxu0  ;;  %v6414_v42 = vld [vmem:[#allocation7 + $0x240] sm:$0xf] }
 0x12c   :  { %2140 = vmatpush.bf16.msrb.mxu1 %v5755_v9  ;;  %2153 = vmatpush.bf16.msrb.mxu2 %v5883_v10  ;;  %v6142_v9 = vld [vmem:[#allocation7 + $0x20] sm:$0xf]  ;;  %v7858_v10 = vld [vmem:[#allocation7 + $0x2c] sm:$0xf0]  ;;  %v6415_v15 = vor.u32 %v7926_v7, %v6414_v42  ;;  %v7864_v7 = vld [vmem:[#allocation7 + $0x64] sm:$0xf] }
 0x12d   :  { %2166 = vmatpush.bf16.msrb.mxu3 %v6011_v12  ;;  %v6143_v17 = vor.u32 %v7858_v10, %v6142_v9  ;;  %v7896_v10 = vld [vmem:[#allocation7 + $0x164] sm:$0xf] }
 0x12e   :  { %2128 = vmatmul.bf16.vlgmr.msrb.gmra.mxu0 %v8632_v37  ;;  %v1909_v37 = vadd.f32 %v8676_v29, %v1896_v27  ;;  %v1934_v56 = vpop.f32.mrf.mxu1  ;;  %v7898_v29 = vld [vmem:[#allocation7 + $0x16c] sm:$0xf0]  ;;  %v6240_v27 = vld [vmem:[#allocation7 + $0xf0] sm:$0xf0] }
 0x12f   :  { %2958 = vmatpush.bf16.msra.mxu0 %v6239_v13  ;;  %2141 = vmatmul.bf16.vlgmr.msrb.gmra.mxu1 %v8636_v40  ;;  %v7902_v40 = vld [vmem:[#allocation7 + $0x18c] sm:$0xf0]  ;;  %v6303_v63 = vor.u32 %v7898_v29, %v6302_v57  ;;  %v6270_v13 = vld [vmem:[#allocation7 + $0x120] sm:$0xf]  ;;  %v7872_v29 = vld [vmem:[#allocation7 + $0xa4] sm:$0xf] }
 0x130   :  { %2971 = vmatpush.bf16.msra.mxu1 %v6367_v16  ;;  %2154 = vmatmul.bf16.vlgmr.msrb.gmra.mxu2 %v8630_v32  ;;  %v6463_v32 = vor.u32 %v7938_v44, %v6462_v43  ;;  %v6319_v52 = vor.u32 %v7902_v40, %v6318_v47  ;;  %v1922_v55 = vadd.f32 %v1921_v49, %v1909_v37  ;;  %v6382_v43 = vld [vmem:[#allocation7 + $0x200] sm:$0xf]  ;;  %v7918_v44 = vld [vmem:[#allocation7 + $0x20c] sm:$0xf0]  ;;  %v2172_v37 = vmax.f32 %v8664_v50, 0.0 }
 0x131   :  { %2167 = vmatmul.bf16.vlgmr.msrb.gmra.mxu3 %v8634_v38  ;;  %2984 = vmatpush.bf16.msra.mxu2 %v6495_v21  ;;  %v6446_v38 = vld [vmem:[#allocation7 + $0x280] sm:$0xf]  ;;  %v6271_v6 = vor.u32 %v7890_v14, %v6270_v13  ;;  %v7854_v21 = vld [vmem:[#allocation7 + $0xc] sm:$0xf0]  ;;  %v6496_v47 = vld [vmem:[#allocation7 + $0x2f0] sm:$0xf0]  ;;  %v6371_v40 = vor.u32 %v7912_v28, %v6368_v30 }
 0x132   :  { %v6447_v58 = vor.u32 %v7934_v51, %v6446_v38  ;;  %v1935_v60 = vadd.f32 %v1934_v56, %v1922_v55  ;;  %v1947_v1 = vpop.f32.mrf.mxu2  ;;  %v7908_v49 = vld [vmem:[#allocation7 + $0x1c4] sm:$0xf]  ;;  %v6352_v38 = vld [vmem:[#allocation7 + $0x1d0] sm:$0xf0]  ;;  %v6383_v51 = vor.u32 %v7918_v44, %v6382_v43  ;;  %v6499_v53 = vor.u32 %v7944_v46, %v6496_v47 }
 0x133   :  { %2959 = vmatpush.bf16.msra.mxu0 %v6223_v22  ;;  %v1923_v41 = vpop.f32.mrf.mxu0  ;;  %v6254_v22 = vld [vmem:[#allocation7 + $0x100] sm:$0xf]  ;;  %v8690_v54 = vpack.c.bf16 %v2172_v37, %v2172_v37  ;;  %v7940_v55 = vld [vmem:[#allocation7 + $0x2c4] sm:$0xf]  ;;  %v6480_v56 = vld [vmem:[#allocation7 + $0x2d0] sm:$0xf0]  ;;  %v6355_v57 = vor.u32 %v7908_v49, %v6352_v38 }
 0x134   :  { %2972 = vmatpush.bf16.msra.mxu1 %v6351_v26  ;;  %v1948_v35 = vadd.f32 %v1947_v1, %v1935_v60  ;;  %v7880_v26 = vld [vmem:[#allocation7 + $0xe4] sm:$0xf]  ;;  %v6336_v60 = vld [vmem:[#allocation7 + $0x1b0] sm:$0xf0]  ;;  %v6483_v61 = vor.u32 %v7940_v55, %v6480_v56  ;;  %v8703_v37 = vld [vmem:[%s8861_s7] sm:$0xf] }
 0x135   :  { %2985 = vmatpush.bf16.msra.mxu2 %v6479_v36  ;;  %v1960_v4 = vpop.f32.mrf.mxu3  ;;  %v6243_v45 = vor.u32 %v7880_v26, %v6240_v27  ;;  %v7868_v1 = vld [vmem:[#allocation7 + $0x84] sm:$0xf]  ;;  %v6448_v41 = vld [vmem:[#allocation7 + $0x290] sm:$0xf0]  ;;  %v6246_v55 = vld [vmem:[#allocation7 + $0xe8] sm:$0xf] }
 0x136   :  { %v1936_v12 = vpop.f32.mrf.mxu1  ;;  %v1961_v16 = vadd.f32 %v1960_v4, %v1948_v35  ;;  %v6320_v4 = vld [vmem:[#allocation7 + $0x190] sm:$0xf0]  ;;  %v7932_v35 = vld [vmem:[#allocation7 + $0x284] sm:$0xf]  ;;  %v7883_v56 = vld [vmem:[#allocation7 + $0xf4] sm:$0xf0] }
 0x137   :  { %2960 = vmatpush.bf16.msra.mxu0 %v6207_v39  ;;  %v6127_v39 = vor.u32 %v7854_v21, %v6126_v20  ;;  %v6323_v42 = vor.u32 %v7900_v3, %v6320_v4  ;;  %v6304_v12 = vld [vmem:[#allocation7 + $0x170] sm:$0xf0]  ;;  %v6451_v14 = vor.u32 %v7932_v35, %v6448_v41  ;;  %v7892_v20 = vld [vmem:[#allocation7 + $0x144] sm:$0xf]  ;;  %v6606_v3 = vld [vmem:[#allocation7 + $0x3c0] sm:$0xf] }
 0x138   :  { %2973 = vmatpush.bf16.msra.mxu1 %v6335_v24  ;;  %v2173_v36 = vmax.f32 %v1961_v16, 0.0  ;;  %v6255_v24 = vor.u32 %v7886_v25, %v6254_v22  ;;  %v7928_v16 = vld [vmem:[#allocation7 + $0x264] sm:$0xf]  ;;  %v6307_v18 = vor.u32 %v7896_v10, %v6304_v12  ;;  %v6288_v21 = vld [vmem:[#allocation7 + $0x150] sm:$0xf0] }
 0x139   :  { %2986 = vmatpush.bf16.msra.mxu2 %v6463_v32  ;;  %v7876_v32 = vld [vmem:[#allocation7 + $0xc4] sm:$0xf]  ;;  %v6291_v28 = vor.u32 %v7892_v20, %v6288_v21  ;;  %v6272_v43 = vld [vmem:[#allocation7 + $0x130] sm:$0xf0]  ;;  %v7974_v4 = vld [vmem:[#allocation7 + $0x3cc] sm:$0xf0] }
 0x13a   :  { %v1949_v23 = vpop.f32.mrf.mxu2  ;;  %v7924_v27 = vld [vmem:[#allocation7 + $0x244] sm:$0xf]  ;;  %v7879_v35 = vld [vmem:[#allocation7 + $0xd4] sm:$0xf0]  ;;  %v6607_v41 = vor.u32 %v7974_v4, %v6606_v3  ;;  %v6590_v12 = vld [vmem:[#allocation7 + $0x3a0] sm:$0xf] }
 0x13b   :  { %2961 = vmatpush.bf16.msra.mxu0 %v6191_v48  ;;  %v6224_v48 = vld [vmem:[#allocation7 + $0xd0] sm:$0xf0]  ;;  %v7856_v30 = vld [vmem:[#allocation7 + $0x24] sm:$0xf]  ;;  %v6574_v21 = vld [vmem:[#allocation7 + $0x380] sm:$0xf] }
 0x13c   :  { %2974 = vmatpush.bf16.msra.mxu1 %v6319_v52  ;;  %v8688_v52 = vpack.c.bf16 %v2173_v36, %v2173_v36  ;;  %v6227_v50 = vor.u32 %v7876_v32, %v6224_v48  ;;  %v7920_v32 = vld [vmem:[#allocation7 + $0x224] sm:$0xf]  ;;  %v6400_v48 = vld [vmem:[#allocation7 + $0x230] sm:$0xf0]  ;;  %v6278_v3 = vld [vmem:[#allocation7 + $0x128] sm:$0xf] }
 0x13d   :  { %2987 = vmatpush.bf16.msra.mxu2 %v6447_v58  ;;  %v1962_v11 = vpop.f32.mrf.mxu3  ;;  %v6208_v58 = vld [vmem:[#allocation7 + $0xb0] sm:$0xf0]  ;;  %v7884_v38 = vld [vmem:[#allocation7 + $0x104] sm:$0xf] }
 0x13e   :  { %v6211_v62 = vor.u32 %v7872_v29, %v6208_v58  ;;  %v6416_v11 = vld [vmem:[#allocation7 + $0x250] sm:$0xf0]  ;;  %v6374_v58 = vld [vmem:[#allocation7 + $0x1e8] sm:$0xf] }
 0x13f   :  { %2962 = vmatpush.bf16.msra.mxu0 %v6175_v59  ;;  %v7904_v59 = vld [vmem:[#allocation7 + $0x1a4] sm:$0xf]  ;;  %v6419_v46 = vor.u32 %v7924_v27, %v6416_v11  ;;  %v6198_v27 = vld [vmem:[#allocation7 + $0x88] sm:$0xf]  ;;  %v7871_v11 = vld [vmem:[#allocation7 + $0x94] sm:$0xf0] }
 0x140   :  { %2975 = vmatpush.bf16.msra.mxu1 %v6303_v63  ;;  %v7936_v63 = vld [vmem:[#allocation7 + $0x2a4] sm:$0xf]  ;;  %v6339_v33 = vor.u32 %v7904_v59, %v6336_v60  ;;  %v7915_v59 = vld [vmem:[#allocation7 + $0x1f4] sm:$0xf0] }
 0x141   :  { %2988 = vmatpush.bf16.msra.mxu2 %v6431_v5  ;;  %v6467_v5 = vor.u32 %v7936_v63, %v6464_v0  ;;  %v7916_v0 = vld [vmem:[#allocation7 + $0x204] sm:$0xf] }
 0x143   :  { %2963 = vmatpush.bf16.msra.mxu0 %v6159_v34  ;;  %v6195_v34 = vor.u32 %v7868_v1, %v6192_v2  ;;  %v6247_v2 = vor.u32 %v7883_v56, %v6246_v55  ;;  %v6166_v55 = vld [vmem:[#allocation7 + $0x48] sm:$0xf]  ;;  %v7863_v56 = vld [vmem:[#allocation7 + $0x54] sm:$0xf0] }
 0x144   :  { %2976 = vmatpush.bf16.msra.mxu1 %v6287_v8  ;;  %v6176_v8 = vld [vmem:[#allocation7 + $0x70] sm:$0xf0] }
 0x145   :  { %2989 = vmatpush.bf16.msra.mxu2 %v6415_v15  ;;  %v6179_v15 = vor.u32 %v7864_v7, %v6176_v8  ;;  %v7911_v7 = vld [vmem:[#allocation7 + $0x1d4] sm:$0xf0] }
 0x147   :  { %2964 = vmatpush.bf16.msra.mxu0 %v6143_v17  ;;  %v6432_v17 = vld [vmem:[#allocation7 + $0x270] sm:$0xf0] }
 0x148   :  { %2977 = vmatpush.bf16.msra.mxu1 %v6271_v6  ;;  %v6160_v6 = vld [vmem:[#allocation7 + $0x50] sm:$0xf0]  ;;  %v6435_v25 = vor.u32 %v7928_v16, %v6432_v17  ;;  %v6214_v16 = vld [vmem:[#allocation7 + $0xa8] sm:$0xf]  ;;  %v7875_v17 = vld [vmem:[#allocation7 + $0xb4] sm:$0xf0] }
 0x149   :  { %2990 = vmatpush.bf16.msra.mxu2 %v6399_v31  ;;  %v6163_v26 = vor.u32 %v7860_v19, %v6160_v6  ;;  %v6144_v31 = vld [vmem:[#allocation7 + $0x30] sm:$0xf0]  ;;  %v6342_v19 = vld [vmem:[#allocation7 + $0x1a8] sm:$0xf]  ;;  %v7907_v6 = vld [vmem:[#allocation7 + $0x1b4] sm:$0xf0] }
 0x14a   :  { %v6147_v47 = vor.u32 %v7856_v30, %v6144_v31  ;;  %v6326_v30 = vld [vmem:[#allocation7 + $0x188] sm:$0xf]  ;;  %v7903_v31 = vld [vmem:[#allocation7 + $0x194] sm:$0xf0] }
 0x14b   :  { %2965 = vmatpush.bf16.msra.mxu0 %v6127_v39  ;;  %v1973_v9 = vpop.f32.mrf.mxu0  ;;  %v7888_v39 = vld [vmem:[#allocation7 + $0x124] sm:$0xf] }
 0x14c   :  { %2978 = vmatpush.bf16.msra.mxu1 %v6255_v24  ;;  %v470_v24 = vperm.slane %v8703_v37, 2  ;;  %v6275_v49 = vor.u32 %v7888_v39, %v6272_v43  ;;  %v6199_v39 = vor.u32 %v7871_v11, %v6198_v27  ;;  %v7962_v43 = vld [vmem:[#allocation7 + $0x36c] sm:$0xf0]  ;;  %v6624_v27 = vld [vmem:[#allocation7 + $0x3f0] sm:$0xf0] }
 0x14d   :  { %2991 = vmatpush.bf16.msra.mxu2 %v6383_v51  ;;  %v6622_v51 = vld [vmem:[#allocation7 + $0x3e0] sm:$0xf]  ;;  %v6376_v11 = vld [vmem:[#allocation7 + $0x1f8] sm:$0xf0] }
 0x14e   :  { %2966 = vmatmul.bf16.vlgmr.msra.gmra.mxu0 %v8690_v54  ;;  %v8694_v13 = vpop.f32.mrf.mxu1 }
 0x14f   :  { %3010 = vmatpush.bf16.msrb.mxu0 %v6243_v45  ;;  %2979 = vmatmul.bf16.vlgmr.msra.gmra.mxu1 %v8688_v52  ;;  %v7852_v45 = vld [vmem:[#allocation7 + $0x4] sm:$0xf] }
 0x150   :  { %3023 = vmatpush.bf16.msrb.mxu1 %v6371_v40  ;;  %v6128_v40 = vld [vmem:[#allocation7 + $0x10] sm:$0xf0] }
 0x151   :  { %3036 = vmatpush.bf16.msrb.mxu2 %v6499_v53  ;;  %v7978_v53 = vld [vmem:[#allocation7 + $0x3ec] sm:$0xf0]  ;;  %v6131_v63 = vor.u32 %v7852_v45, %v6128_v40  ;;  %v7867_v45 = vld [vmem:[#allocation7 + $0x74] sm:$0xf0]  ;;  %v6310_v40 = vld [vmem:[#allocation7 + $0x168] sm:$0xf] }
 0x152   :  { %v8696_v22 = vpop.f32.mrf.mxu2  ;;  %v6623_v29 = vor.u32 %v7978_v53, %v6622_v51  ;;  %v6542_v51 = vld [vmem:[#allocation7 + $0x340] sm:$0xf] }
 0x153   :  { %3011 = vmatpush.bf16.msrb.mxu0 %v6227_v50  ;;  %v1975_v36 = vpop.f32.mrf.mxu0  ;;  %v6256_v50 = vld [vmem:[#allocation7 + $0x110] sm:$0xf0] }
 0x154   :  { %3024 = vmatpush.bf16.msrb.mxu1 %v6355_v57  ;;  %2997 = vmatpush.bf16.msra.mxu3 %v6623_v29  ;;  %v6259_v1 = vor.u32 %v7884_v38, %v6256_v50  ;;  %v6294_v29 = vld [vmem:[#allocation7 + $0x148] sm:$0xf] }
 0x155   :  { %3037 = vmatpush.bf16.msrb.mxu2 %v6483_v61  ;;  %v8698_v23 = vpop.f32.mrf.mxu3  ;;  %v6403_v61 = vor.u32 %v7920_v32, %v6400_v48  ;;  %v7899_v32 = vld [vmem:[#allocation7 + $0x174] sm:$0xf0] }
 0x156   :  { %v1988_v44 = vpop.f32.mrf.mxu1  ;;  %v6311_v50 = vor.u32 %v7899_v32, %v6310_v40  ;;  %v7877_v40 = vld [vmem:[#allocation7 + $0xcc] sm:$0xf]  ;;  %v6232_v32 = vld [vmem:[#allocation7 + $0xd8] sm:$0xf0] }
 0x157   :  { %3012 = vmatpush.bf16.msrb.mxu0 %v6211_v62  ;;  %v1974_v62 = vadd.f32 %v1973_v9, %v470_v24  ;;  %v6327_v44 = vor.u32 %v7903_v31, %v6326_v30  ;;  %v6182_v24 = vld [vmem:[#allocation7 + $0x68] sm:$0xf]  ;;  %v7943_v30 = vld [vmem:[#allocation7 + $0x2d4] sm:$0xf0] }
 0x158   :  { %3025 = vmatpush.bf16.msrb.mxu1 %v6339_v33  ;;  %v6384_v33 = vld [vmem:[#allocation7 + $0x210] sm:$0xf0]  ;;  %2998 = vmatpush.bf16.msra.mxu3 %v6607_v41  ;;  %v6183_v38 = vor.u32 %v7867_v45, %v6182_v24  ;;  %v7947_v41 = vld [vmem:[#allocation7 + $0x2f4] sm:$0xf0]  ;;  %v7972_v24 = vld [vmem:[#allocation7 + $0x3c4] sm:$0xf] }
 0x159   :  { %3038 = vmatpush.bf16.msrb.mxu2 %v6467_v5  ;;  %v6375_v5 = vor.u32 %v7915_v59, %v6374_v58  ;;  %v6387_v8 = vor.u32 %v7916_v0, %v6384_v33  ;;  %v1987_v10 = vadd.f32 %v8694_v13, %v1974_v62  ;;  %v6215_v13 = vor.u32 %v7875_v17, %v6214_v16  ;;  %v7895_v58 = vld [vmem:[#allocation7 + $0x154] sm:$0xf0]  ;;  %v7954_v0 = vld [vmem:[#allocation7 + $0x32c] sm:$0xf0]  ;;  %v6608_v45 = vld [vmem:[#allocation7 + $0x3d0] sm:$0xf0] }
 0x15a   :  { %v2001_v57 = vpop.f32.mrf.mxu2  ;;  %v6167_v62 = vor.u32 %v7863_v56, %v6166_v55  ;;  %v6295_v33 = vor.u32 %v7895_v58, %v6294_v29  ;;  %v7950_v16 = vld [vmem:[#allocation7 + $0x30c] sm:$0xf0]  ;;  %v6592_v55 = vld [vmem:[#allocation7 + $0x3b0] sm:$0xf0]  ;;  %v7873_v29 = vld [vmem:[#allocation7 + $0xac] sm:$0xf] }
 0x15b   :  { %3013 = vmatpush.bf16.msrb.mxu0 %v6195_v34  ;;  %v6230_v34 = vld [vmem:[#allocation7 + $0xc8] sm:$0xf]  ;;  %v2000_v20 = vadd.f32 %v8696_v22, %v1987_v10  ;;  %v6558_v22 = vld [vmem:[#allocation7 + $0x360] sm:$0xf]  ;;  %v6216_v58 = vld [vmem:[#allocation7 + $0xb8] sm:$0xf0] }
 0x15c   :  { %3026 = vmatpush.bf16.msrb.mxu1 %v6323_v42  ;;  %v6358_v42 = vld [vmem:[#allocation7 + $0x1c8] sm:$0xf]  ;;  %v6231_v9 = vor.u32 %v7879_v35, %v6230_v34  ;;  %v7891_v34 = vld [vmem:[#allocation7 + $0x134] sm:$0xf0] }
 0x15d   :  { %3039 = vmatpush.bf16.msrb.mxu2 %v6451_v14  ;;  %v2014_v60 = vpop.f32.mrf.mxu3  ;;  %v7970_v14 = vld [vmem:[#allocation7 + $0x3ac] sm:$0xf0]  ;;  %v2013_v36 = vadd.f32 %v8698_v23, %v2000_v20  ;;  %v6502_v35 = vld [vmem:[#allocation7 + $0x2e8] sm:$0xf]  ;;  %v6279_v17 = vor.u32 %v7891_v34, %v6278_v3  ;;  %v7901_v34 = vld [vmem:[#allocation7 + $0x18c] sm:$0xf] }
 0x15e   :  { %v7958_v23 = vld [vmem:[#allocation7 + $0x34c] sm:$0xf0] }
 0x15f   :  { %3014 = vmatpush.bf16.msrb.mxu0 %v6179_v15  ;;  %v6359_v15 = vor.u32 %v7911_v7, %v6358_v42  ;;  %v6543_v57 = vor.u32 %v7958_v23, %v6542_v51  ;;  %v6134_v7 = vld [vmem:[#allocation7 + $0x8] sm:$0xf]  ;;  %v7939_v51 = vld [vmem:[#allocation7 + $0x2b4] sm:$0xf0]  ;;  %v6611_v23 = vor.u32 %v7972_v24, %v6608_v45 }
 0x160   :  { %3027 = vmatpush.bf16.msrb.mxu1 %v6307_v18  ;;  %v6591_v18 = vor.u32 %v7970_v14, %v6590_v12  ;;  %v6262_v14 = vld [vmem:[#allocation7 + $0x108] sm:$0xf] }
 0x161   :  { %3040 = vmatpush.bf16.msrb.mxu2 %v6435_v25  ;;  %v7966_v25 = vld [vmem:[#allocation7 + $0x38c] sm:$0xf0] }
 0x162   :  { %2999 = vmatpush.bf16.msra.mxu3 %v6591_v18  ;;  %v6503_v18 = vor.u32 %v7947_v41, %v6502_v35  ;;  %v6328_v35 = vld [vmem:[#allocation7 + $0x198] sm:$0xf0]  ;;  %v6438_v41 = vld [vmem:[#allocation7 + $0x268] sm:$0xf] }
 0x163   :  { %3015 = vmatpush.bf16.msrb.mxu0 %v6163_v26  ;;  %v6343_v26 = vor.u32 %v7907_v6, %v6342_v19  ;;  %v7887_v19 = vld [vmem:[#allocation7 + $0x114] sm:$0xf0]  ;;  %v7881_v6 = vld [vmem:[#allocation7 + $0xec] sm:$0xf] }
 0x164   :  { %3028 = vmatpush.bf16.msrb.mxu1 %v6291_v28  ;;  %v6575_v28 = vor.u32 %v7966_v25, %v6574_v21  ;;  %v6248_v25 = vld [vmem:[#allocation7 + $0xf8] sm:$0xf0] }
 0x165   :  { %3041 = vmatpush.bf16.msrb.mxu2 %v6419_v46  ;;  %v6559_v46 = vor.u32 %v7962_v43, %v6558_v22  ;;  %v6263_v43 = vor.u32 %v7887_v19, %v6262_v14  ;;  %v6422_v19 = vld [vmem:[#allocation7 + $0x248] sm:$0xf] }
 0x166   :  { %3000 = vmatpush.bf16.msra.mxu3 %v6575_v28  ;;  %v6486_v28 = vld [vmem:[#allocation7 + $0x2c8] sm:$0xf] }
 0x167   :  { %3016 = vmatpush.bf16.msrb.mxu0 %v6147_v47 }
 0x168   :  { %3029 = vmatpush.bf16.msrb.mxu1 %v6275_v49 }
 0x169   :  { %3042 = vmatpush.bf16.msrb.mxu2 %v6403_v61 }
 0x16a   :  { %3001 = vmatpush.bf16.msra.mxu3 %v6559_v46 }
 0x16b   :  { %3017 = vmatpush.bf16.msrb.mxu0 %v6131_v63  ;;  %v2025_v47 = vpop.f32.mrf.mxu0  ;;  %v6526_v63 = vld [vmem:[#allocation7 + $0x320] sm:$0xf] }
 0x16c   :  { %3030 = vmatpush.bf16.msrb.mxu1 %v6259_v1  ;;  %v2026_v48 = vadd.f32 %v2025_v47, %v2013_v36  ;;  %v6150_v1 = vld [vmem:[#allocation7 + $0x28] sm:$0xf]  ;;  %v6527_v4 = vor.u32 %v7954_v0, %v6526_v63  ;;  %v6487_v47 = vor.u32 %v7943_v30, %v6486_v28  ;;  %v7964_v0 = vld [vmem:[#allocation7 + $0x384] sm:$0xf] }
 0x16d   :  { %3043 = vmatpush.bf16.msrb.mxu2 %v6387_v8  ;;  %v7855_v8 = vld [vmem:[#allocation7 + $0x14] sm:$0xf0] }
 0x16e   :  { %3018 = vmatmul.bf16.vlgmr.msrb.gmra.mxu0 %v8690_v54  ;;  %v2038_v49 = vpop.f32.mrf.mxu1  ;;  %3002 = vmatpush.bf16.msra.mxu3 %v6543_v57 }
 0x16f   :  { %3062 = vmatpush.bf16.msra.mxu0 %v6247_v2  ;;  %3031 = vmatmul.bf16.vlgmr.msrb.gmra.mxu1 %v8688_v52  ;;  %v2039_v53 = vadd.f32 %v2038_v49, %v2026_v48  ;;  %v7859_v2 = vld [vmem:[#allocation7 + $0x34] sm:$0xf0]  ;;  %v7909_v48 = vld [vmem:[#allocation7 + $0x1cc] sm:$0xf]  ;;  %v6360_v49 = vld [vmem:[#allocation7 + $0x1d8] sm:$0xf0] }
 0x170   :  { %3075 = vmatpush.bf16.msra.mxu1 %v6375_v5  ;;  %v6151_v12 = vor.u32 %v7859_v2, %v6150_v1  ;;  %v6363_v56 = vor.u32 %v7909_v48, %v6360_v49  ;;  %v6219_v1 = vor.u32 %v7873_v29, %v6216_v58  ;;  %v7945_v29 = vld [vmem:[#allocation7 + $0x2ec] sm:$0xf]  ;;  %v6504_v58 = vld [vmem:[#allocation7 + $0x2f8] sm:$0xf0] }
 0x172   :  { %v2051_v59 = vpop.f32.mrf.mxu2  ;;  %3003 = vmatpush.bf16.msra.mxu3 %v6527_v4  ;;  %v7869_v4 = vld [vmem:[#allocation7 + $0x8c] sm:$0xf] }
 0x173   :  { %3063 = vmatpush.bf16.msra.mxu0 %v6231_v9  ;;  %v2052_v60 = vadd.f32 %v2051_v59, %v2039_v53  ;;  %v2027_v42 = vpop.f32.mrf.mxu0  ;;  %v6235_v53 = vor.u32 %v7877_v40, %v6232_v32  ;;  %v7905_v59 = vld [vmem:[#allocation7 + $0x1ac] sm:$0xf]  ;;  %v6528_v40 = vld [vmem:[#allocation7 + $0x330] sm:$0xf0] }
 0x174   :  { %3076 = vmatpush.bf16.msra.mxu1 %v6359_v15  ;;  %v6510_v15 = vld [vmem:[#allocation7 + $0x300] sm:$0xf]  ;;  %v7931_v42 = vld [vmem:[#allocation7 + $0x274] sm:$0xf0] }
 0x175   :  { %v2064_v61 = vpop.f32.mrf.mxu3  ;;  %v6511_v20 = vor.u32 %v7950_v16, %v6510_v15  ;;  %v6439_v14 = vor.u32 %v7931_v42, %v6438_v41  ;;  %v7865_v15 = vld [vmem:[#allocation7 + $0x6c] sm:$0xf]  ;;  %v6184_v16 = vld [vmem:[#allocation7 + $0x78] sm:$0xf0] }
 0x176   :  { %v2065_v5 = vadd.f32 %v2064_v61, %v2052_v60  ;;  %v2040_v10 = vpop.f32.mrf.mxu1  ;;  %v6344_v60 = vld [vmem:[#allocation7 + $0x1b8] sm:$0xf0]  ;;  %v6454_v61 = vld [vmem:[#allocation7 + $0x288] sm:$0xf] }
 0x177   :  { %3064 = vmatpush.bf16.msra.mxu0 %v6215_v13  ;;  %v7976_v13 = vld [vmem:[#allocation7 + $0x3e4] sm:$0xf]  ;;  %3004 = vmatpush.bf16.msra.mxu3 %v6511_v20  ;;  %v6347_v2 = vor.u32 %v7905_v59, %v6344_v60  ;;  %v6488_v41 = vld [vmem:[#allocation7 + $0x2d8] sm:$0xf0] }
 0x178   :  { %3077 = vmatpush.bf16.msra.mxu1 %v6343_v26  ;;  %v2174_v9 = vmax.f32 %v2065_v5, 0.0  ;;  %v7913_v26 = vld [vmem:[#allocation7 + $0x1ec] sm:$0xf]  ;;  %v6627_v36 = vor.u32 %v7976_v13, %v6624_v27  ;;  %v6200_v5 = vld [vmem:[#allocation7 + $0x98] sm:$0xf0] }
 0x179   :  { %v6379_v46 = vor.u32 %v7913_v26, %v6376_v11  ;;  %v7960_v10 = vld [vmem:[#allocation7 + $0x364] sm:$0xf]  ;;  %v6544_v11 = vld [vmem:[#allocation7 + $0x350] sm:$0xf0] }
 0x17a   :  { %v8711_v21 = vpack.c.bf16 %v2174_v9, %v2174_v9  ;;  %v2053_v31 = vpop.f32.mrf.mxu2  ;;  %v6560_v9 = vld [vmem:[#allocation7 + $0x370] sm:$0xf0]  ;;  %v7956_v27 = vld [vmem:[#allocation7 + $0x344] sm:$0xf] }
 0x17b   :  { %3065 = vmatpush.bf16.msra.mxu0 %v6199_v39  ;;  %v6135_v39 = vor.u32 %v7855_v8, %v6134_v7  ;;  %3049 = vmatpush.bf16.msrb.mxu3 %v6627_v36  ;;  %v6203_v8 = vor.u32 %v7869_v4, %v6200_v5  ;;  %v6563_v20 = vor.u32 %v7960_v10, %v6560_v9  ;;  %v7861_v31 = vld [vmem:[#allocation7 + $0x4c] sm:$0xf]  ;;  %v6168_v36 = vld [vmem:[#allocation7 + $0x58] sm:$0xf0] }
 0x17c   :  { %3078 = vmatpush.bf16.msra.mxu1 %v6327_v44  ;;  %2992 = vmatmul.bf16.vlgmr.msra.gmra.mxu2 %v8711_v21  ;;  %v6251_v44 = vor.u32 %v7881_v6, %v6248_v25  ;;  %v7927_v6 = vld [vmem:[#allocation7 + $0x254] sm:$0xf0]  ;;  %v6187_v25 = vor.u32 %v7865_v15, %v6184_v16  ;;  %v6547_v24 = vor.u32 %v7956_v27, %v6544_v11  ;;  %v6264_v4 = vld [vmem:[#allocation7 + $0x118] sm:$0xf0] }
 0x17d   :  { %v2066_v22 = vpop.f32.mrf.mxu3  ;;  %3088 = vmatpush.bf16.msra.mxu2 %v6503_v18  ;;  %v6312_v18 = vld [vmem:[#allocation7 + $0x178] sm:$0xf0]  ;;  %v6423_v30 = vor.u32 %v7927_v6, %v6422_v19  ;;  %v6171_v45 = vor.u32 %v7861_v31, %v6168_v36  ;;  %v7921_v36 = vld [vmem:[#allocation7 + $0x22c] sm:$0xf] }
 0x17e   :  { %v6296_v22 = vld [vmem:[#allocation7 + $0x158] sm:$0xf0] }
 0x17f   :  { %3066 = vmatpush.bf16.msra.mxu0 %v6183_v38  ;;  %v6470_v38 = vld [vmem:[#allocation7 + $0x2a8] sm:$0xf]  ;;  %3050 = vmatpush.bf16.msrb.mxu3 %v6611_v23  ;;  %v7889_v23 = vld [vmem:[#allocation7 + $0x12c] sm:$0xf]  ;;  %v6472_v15 = vld [vmem:[#allocation7 + $0x2b8] sm:$0xf0] }
 0x180   :  { %3079 = vmatpush.bf16.msra.mxu1 %v6311_v50  ;;  %v7968_v50 = vld [vmem:[#allocation7 + $0x3a4] sm:$0xf]  ;;  %v6471_v57 = vor.u32 %v7939_v51, %v6470_v38  ;;  %v7857_v38 = vld [vmem:[#allocation7 + $0x2c] sm:$0xf]  ;;  %v6152_v51 = vld [vmem:[#allocation7 + $0x38] sm:$0xf0] }
 0x181   :  { %3089 = vmatpush.bf16.msra.mxu2 %v6487_v47  ;;  %v6595_v63 = vor.u32 %v7968_v50, %v6592_v55  ;;  %v7952_v47 = vld [vmem:[#allocation7 + $0x324] sm:$0xf]  ;;  %v6390_v50 = vld [vmem:[#allocation7 + $0x208] sm:$0xf]  ;;  %v7919_v55 = vld [vmem:[#allocation7 + $0x214] sm:$0xf0]  ;;  %v6155_v59 = vor.u32 %v7857_v38, %v6152_v51 }
 0x183   :  { %3067 = vmatpush.bf16.msra.mxu0 %v6167_v62  ;;  %v7935_v62 = vld [vmem:[#allocation7 + $0x294] sm:$0xf0]  ;;  %3051 = vmatpush.bf16.msrb.mxu3 %v6595_v63 }
 0x184   :  { %3080 = vmatpush.bf16.msra.mxu1 %v6295_v33  ;;  %v6576_v33 = vld [vmem:[#allocation7 + $0x390] sm:$0xf0]  ;;  %v6455_v3 = vor.u32 %v7935_v62, %v6454_v61  ;;  %v7948_v61 = vld [vmem:[#allocation7 + $0x304] sm:$0xf] }
 0x185   :  { %3090 = vmatpush.bf16.msra.mxu2 %v6471_v57  ;;  %v6579_v7 = vor.u32 %v7964_v0, %v6576_v33  ;;  %v6512_v62 = vld [vmem:[#allocation7 + $0x310] sm:$0xf0]  ;;  %v6391_v0 = vor.u32 %v7919_v55, %v6390_v50  ;;  %v7853_v33 = vld [vmem:[#allocation7 + $0xc] sm:$0xf]  ;;  %v6614_v50 = vld [vmem:[#allocation7 + $0x3c8] sm:$0xf] }
 0x186   :  { %v6515_v5 = vor.u32 %v7948_v61, %v6512_v62  ;;  %v7975_v55 = vld [vmem:[#allocation7 + $0x3d4] sm:$0xf0]  ;;  %v6582_v61 = vld [vmem:[#allocation7 + $0x388] sm:$0xf] }
 0x187   :  { %3068 = vmatpush.bf16.msra.mxu0 %v6151_v12  ;;  %v6331_v12 = vor.u32 %v7901_v34, %v6328_v35  ;;  %3052 = vmatpush.bf16.msrb.mxu3 %v6579_v7  ;;  %v471_v34 = vperm.slane %v8703_v37, 3  ;;  %v7941_v35 = vld [vmem:[#allocation7 + $0x2cc] sm:$0xf]  ;;  %v7967_v62 = vld [vmem:[#allocation7 + $0x394] sm:$0xf0] }
 0x188   :  { %3081 = vmatpush.bf16.msra.mxu1 %v6279_v17  ;;  %v7897_v17 = vld [vmem:[#allocation7 + $0x16c] sm:$0xf]  ;;  %v6491_v9 = vor.u32 %v7941_v35, %v6488_v41 }
 0x189   :  { %3091 = vmatpush.bf16.msra.mxu2 %v6455_v3  ;;  %v6315_v28 = vor.u32 %v7897_v17, %v6312_v18  ;;  %v7885_v3 = vld [vmem:[#allocation7 + $0x10c] sm:$0xf]  ;;  %v6456_v18 = vld [vmem:[#allocation7 + $0x298] sm:$0xf0] }
 0x18a   :  { %v7933_v17 = vld [vmem:[#allocation7 + $0x28c] sm:$0xf] }
 0x18b   :  { %3069 = vmatpush.bf16.msra.mxu0 %v6135_v39  ;;  %v8717_v13 = vpop.f32.mrf.mxu0  ;;  %v7893_v39 = vld [vmem:[#allocation7 + $0x14c] sm:$0xf]  ;;  %3053 = vmatpush.bf16.msrb.mxu3 %v6563_v20  ;;  %v6459_v19 = vor.u32 %v7933_v17, %v6456_v18 }
 0x18c   :  { %3082 = vmatpush.bf16.msra.mxu1 %v6263_v43  ;;  %3044 = vmatmul.bf16.vlgmr.msrb.gmra.mxu2 %v8711_v21  ;;  %v6406_v43 = vld [vmem:[#allocation7 + $0x228] sm:$0xf]  ;;  %v6299_v32 = vor.u32 %v7893_v39, %v6296_v22  ;;  %v7929_v20 = vld [vmem:[#allocation7 + $0x26c] sm:$0xf]  ;;  %v6408_v39 = vld [vmem:[#allocation7 + $0x238] sm:$0xf0] }
 0x18d   :  { %3092 = vmatpush.bf16.msra.mxu2 %v6439_v14  ;;  %v7937_v14 = vld [vmem:[#allocation7 + $0x2ac] sm:$0xf] }
 0x18e   :  { %3070 = vmatmul.bf16.vlgmr.msra.gmra.mxu0 %v8690_v54  ;;  %v8719_v26 = vpop.f32.mrf.mxu1  ;;  %v6475_v37 = vor.u32 %v7937_v14, %v6472_v15  ;;  %v7951_v14 = vld [vmem:[#allocation7 + $0x314] sm:$0xf0] }
 0x18f   :  { %3114 = vmatpush.bf16.msrb.mxu0 %v6251_v44  ;;  %3083 = vmatmul.bf16.vlgmr.msra.gmra.mxu1 %v8688_v52  ;;  %v7923_v44 = vld [vmem:[#allocation7 + $0x234] sm:$0xf0] }
 0x190   :  { %3127 = vmatpush.bf16.msrb.mxu1 %v6379_v46  ;;  %v6407_v48 = vor.u32 %v7923_v44, %v6406_v43  ;;  %3054 = vmatpush.bf16.msrb.mxu3 %v6547_v24  ;;  %v6411_v43 = vor.u32 %v7921_v36, %v6408_v39 }
 0x191   :  { %3093 = vmatpush.bf16.msra.mxu2 %v6423_v30  ;;  %v6424_v30 = vld [vmem:[#allocation7 + $0x258] sm:$0xf0] }
 0x192   :  { %v8721_v46 = vpop.f32.mrf.mxu2 }
 0x193   :  { %3115 = vmatpush.bf16.msrb.mxu0 %v6235_v53  ;;  %v6280_v53 = vld [vmem:[#allocation7 + $0x138] sm:$0xf0]  ;;  %v2079_v57 = vpop.f32.mrf.mxu0 }
 0x194   :  { %3128 = vmatpush.bf16.msrb.mxu1 %v6363_v56  ;;  %v6531_v56 = vor.u32 %v7952_v47, %v6528_v40  ;;  %v6283_v63 = vor.u32 %v7889_v23, %v6280_v53  ;;  %v6392_v47 = vld [vmem:[#allocation7 + $0x218] sm:$0xf0] }
 0x195   :  { %v2116_v49 = vpop.f32.mrf.mxu3  ;;  %3094 = vmatpush.bf16.msra.mxu2 %v6407_v48  ;;  %v6630_v48 = vld [vmem:[#allocation7 + $0x3e8] sm:$0xf] }
 0x196   :  { %v2092_v60 = vpop.f32.mrf.mxu1  ;;  %3055 = vmatpush.bf16.msrb.mxu3 %v6531_v56 }
 0x197   :  { %3116 = vmatpush.bf16.msrb.mxu0 %v6219_v1  ;;  %v6136_v1 = vld [vmem:[#allocation7 + $0x18] sm:$0xf0] }
 0x198   :  { %3129 = vmatpush.bf16.msrb.mxu1 %v6347_v2  ;;  %v6507_v2 = vor.u32 %v7945_v29, %v6504_v58  ;;  %v6139_v42 = vor.u32 %v7853_v33, %v6136_v1  ;;  %v6615_v29 = vor.u32 %v7975_v55, %v6614_v50  ;;  %v6598_v58 = vld [vmem:[#allocation7 + $0x3a8] sm:$0xf]  ;;  %v7963_v1 = vld [vmem:[#allocation7 + $0x374] sm:$0xf0]  ;;  %v6718_v50 = vld [vmem:[#allocation8 + $0xa0] sm:$0xf] }
 0x199   :  { %3095 = vmatpush.bf16.msra.mxu2 %v6391_v0  ;;  %v6583_v0 = vor.u32 %v7967_v62, %v6582_v61  ;;  %v6566_v33 = vld [vmem:[#allocation7 + $0x368] sm:$0xf]  ;;  %v8002_v55 = vld [vmem:[#allocation8 + $0xac] sm:$0xf0]  ;;  %v6702_v61 = vld [vmem:[#allocation8 + $0x80] sm:$0xf] }
 0x19a   :  { %v2105_v7 = vpop.f32.mrf.mxu2  ;;  %3056 = vmatpush.bf16.msrb.mxu3 %v6515_v5  ;;  %v6550_v5 = vld [vmem:[#allocation7 + $0x348] sm:$0xf]  ;;  %v7998_v62 = vld [vmem:[#allocation8 + $0x8c] sm:$0xf0] }
 0x19b   :  { %3117 = vmatpush.bf16.msrb.mxu0 %v6203_v8  ;;  %v6267_v8 = vor.u32 %v7885_v3, %v6264_v4  ;;  %v6567_v3 = vor.u32 %v7963_v1, %v6566_v33  ;;  %v6534_v7 = vld [vmem:[#allocation7 + $0x328] sm:$0xf]  ;;  %v6878_v33 = vld [vmem:[#allocation8 + $0x1e0] sm:$0xf]  ;;  %v8042_v1 = vld [vmem:[#allocation8 + $0x1ec] sm:$0xf0] }
 0x19c   :  { %3130 = vmatpush.bf16.msrb.mxu1 %v6331_v12  ;;  %v2078_v12 = vadd.f32 %v8717_v13, %v471_v34  ;;  %3096 = vmatmul.bf16.vlgmr.msra.gmra.mxu2 %v8711_v21  ;;  %v6440_v13 = vld [vmem:[#allocation7 + $0x278] sm:$0xf0]  ;;  %v7959_v34 = vld [vmem:[#allocation7 + $0x354] sm:$0xf0] }
 0x19d   :  { %v2118_v10 = vpop.f32.mrf.mxu3  ;;  %3140 = vmatpush.bf16.msrb.mxu2 %v6507_v2 }
 0x19e   :  { %v2091_v16 = vadd.f32 %v8719_v26, %v2078_v12  ;;  %v6518_v12 = vld [vmem:[#allocation7 + $0x308] sm:$0xf] }
 0x19f   :  { %3118 = vmatpush.bf16.msrb.mxu0 %v6187_v25  ;;  %v6443_v25 = vor.u32 %v7929_v20, %v6440_v13  ;;  %v6519_v17 = vor.u32 %v7951_v14, %v6518_v12  ;;  %v7969_v13 = vld [vmem:[#allocation7 + $0x3ac] sm:$0xf]  ;;  %v7986_v12 = vld [vmem:[#allocation8 + $0x2c] sm:$0xf0]  ;;  %v6846_v14 = vld [vmem:[#allocation8 + $0x1a0] sm:$0xf] }
 0x1a0   :  { %3131 = vmatpush.bf16.msrb.mxu1 %v6315_v28  ;;  %v2104_v6 = vadd.f32 %v8721_v46, %v2091_v16  ;;  %v7925_v28 = vld [vmem:[#allocation7 + $0x24c] sm:$0xf]  ;;  %v6632_v16 = vld [vmem:[#allocation7 + $0x3f8] sm:$0xf0] }
 0x1a1   :  { %3141 = vmatpush.bf16.msrb.mxu2 %v6491_v9  ;;  %v7917_v46 = vld [vmem:[#allocation7 + $0x20c] sm:$0xf] }
 0x1a2   :  { %v2117_v27 = vadd.f32 %v2116_v49, %v2104_v6  ;;  %v7979_v49 = vld [vmem:[#allocation7 + $0x3f4] sm:$0xf0]  ;;  %v6395_v38 = vor.u32 %v7917_v46, %v6392_v47  ;;  %v6616_v6 = vld [vmem:[#allocation7 + $0x3d8] sm:$0xf0]  ;;  %v6750_v46 = vld [vmem:[#allocation8 + $0xe0] sm:$0xf] }
 0x1a3   :  { %3119 = vmatpush.bf16.msrb.mxu0 %v6171_v45  ;;  %v6631_v23 = vor.u32 %v7979_v49, %v6630_v48  ;;  %v8010_v47 = vld [vmem:[#allocation8 + $0xec] sm:$0xf0]  ;;  %v6734_v49 = vld [vmem:[#allocation8 + $0xc0] sm:$0xf] }
 0x1a4   :  { %3132 = vmatpush.bf16.msrb.mxu1 %v6299_v32  ;;  %v6751_v48 = vor.u32 %v8010_v47, %v6750_v46 }
 0x1a5   :  { %3142 = vmatpush.bf16.msrb.mxu2 %v6475_v37  ;;  %v7977_v37 = vld [vmem:[#allocation7 + $0x3ec] sm:$0xf] }
 0x1a6   :  { %v6635_v18 = vor.u32 %v7977_v37, %v6632_v16 }
 0x1a7   :  { %3120 = vmatpush.bf16.msrb.mxu0 %v6155_v59  ;;  %v7971_v59 = vld [vmem:[#allocation7 + $0x3b4] sm:$0xf0] }
 0x1a8   :  { %3133 = vmatpush.bf16.msrb.mxu1 %v6283_v63  ;;  %v6599_v60 = vor.u32 %v7971_v59, %v6598_v58  ;;  %v8734_v63 = vld [vmem:[#allocation14] sm:$0xf]  ;;  %v6719_v59 = vor.u32 %v8002_v55, %v6718_v50  ;;  %v6720_v50 = vld [vmem:[#allocation8 + $0xb0] sm:$0xf0] }
 0x1a9   :  { %3143 = vmatpush.bf16.msrb.mxu2 %v6459_v19  ;;  %v2310_v2 = vperm.slane %v8734_v63, 0  ;;  %v7973_v19 = vld [vmem:[#allocation7 + $0x3cc] sm:$0xf] }
 0x1aa   :  { %v6619_v20 = vor.u32 %v7973_v19, %v6616_v6  ;;  %v6638_v6 = vld [vmem:[#allocation8] sm:$0xf] }
 0x1ab   :  { %3121 = vmatpush.bf16.msrb.mxu0 %v6139_v42  ;;  %v2129_v11 = vpop.f32.mrf.mxu0  ;;  %v6551_v42 = vor.u32 %v7959_v34, %v6550_v5  ;;  %v6670_v34 = vld [vmem:[#allocation8 + $0x40] sm:$0xf] }
 0x1ac   :  { %3134 = vmatpush.bf16.msrb.mxu1 %v6267_v8  ;;  %v2142_v31 = vpop.f32.mrf.mxu1  ;;  %v2130_v26 = vadd.f32 %v2129_v11, %v2117_v27  ;;  %v7955_v8 = vld [vmem:[#allocation7 + $0x334] sm:$0xf0]  ;;  %v7965_v11 = vld [vmem:[#allocation7 + $0x38c] sm:$0xf] }
 0x1ad   :  { %3144 = vmatpush.bf16.msrb.mxu2 %v6443_v25  ;;  %v6535_v10 = vor.u32 %v7955_v8, %v6534_v7  ;;  %v6600_v25 = vld [vmem:[#allocation7 + $0x3b8] sm:$0xf0] }
 0x1ae   :  { %3122 = vmatmul.bf16.vlgmr.msrb.gmra.mxu0 %v8690_v54  ;;  %v6427_v54 = vor.u32 %v7925_v28, %v6424_v30  ;;  %v2143_v22 = vadd.f32 %v2142_v31, %v2130_v26  ;;  %v6603_v27 = vor.u32 %v7969_v13, %v6600_v25  ;;  %v6584_v28 = vld [vmem:[#allocation7 + $0x398] sm:$0xf0]  ;;  %v7961_v31 = vld [vmem:[#allocation7 + $0x36c] sm:$0xf]  ;;  %v6830_v13 = vld [vmem:[#allocation8 + $0x180] sm:$0xf] }
 0x1af   :  { %3135 = vmatmul.bf16.vlgmr.msrb.gmra.mxu1 %v8688_v52  ;;  %v6587_v30 = vor.u32 %v7965_v11, %v6584_v28  ;;  %v6568_v26 = vld [vmem:[#allocation7 + $0x378] sm:$0xf0]  ;;  %3952 = vmatpush.bf16.msra.mxu0 %v6751_v48  ;;  %v8022_v48 = vld [vmem:[#allocation8 + $0x14c] sm:$0xf0] }
 0x1b0   :  { %v6571_v36 = vor.u32 %v7961_v31, %v6568_v26  ;;  %v6752_v31 = vld [vmem:[#allocation8 + $0xf0] sm:$0xf0] }
 0x1b1   :  { %3145 = vmatpush.bf16.msrb.mxu2 %v6427_v54  ;;  %v2311_v54 = vperm.slane %v8734_v63, 1 }
 0x1b3   :  { %v2155_v52 = vpop.f32.mrf.mxu2  ;;  %v2131_v45 = vpop.f32.mrf.mxu0 }
 0x1b4   :  { %v2156_v44 = vadd.f32 %v2155_v52, %v2143_v22  ;;  %v2168_v24 = vpop.f32.mrf.mxu3  ;;  %v2144_v40 = vpop.f32.mrf.mxu1  ;;  %v7957_v22 = vld [vmem:[#allocation7 + $0x34c] sm:$0xf]  ;;  %v6552_v52 = vld [vmem:[#allocation7 + $0x358] sm:$0xf0] }
 0x1b5   :  { %3146 = vmatpush.bf16.msrb.mxu2 %v6411_v43  ;;  %v6555_v45 = vor.u32 %v7957_v22, %v6552_v52  ;;  %v7953_v40 = vld [vmem:[#allocation7 + $0x32c] sm:$0xf] }
 0x1b6   :  { %v2169_v32 = vadd.f32 %v2168_v24, %v2156_v44 }
 0x1b8   :  { %v2175_v51 = vmax.f32 %v2169_v32, 0.0  ;;  %v6536_v32 = vld [vmem:[#allocation7 + $0x338] sm:$0xf0] }
 0x1b9   :  { %3147 = vmatpush.bf16.msrb.mxu2 %v6395_v38  ;;  %v8006_v38 = vld [vmem:[#allocation8 + $0xcc] sm:$0xf0] }
 0x1ba   :  { %v8730_v53 = vpack.c.bf16 %v2175_v51, %v2175_v51  ;;  %v6539_v51 = vor.u32 %v7953_v40, %v6536_v32  ;;  %v6798_v32 = vld [vmem:[#allocation8 + $0x140] sm:$0xf] }
 0x1bb   :  { %v2157_v56 = vpop.f32.mrf.mxu2  ;;  %v6799_v55 = vor.u32 %v8022_v48, %v6798_v32  ;;  %v8028_v32 = vld [vmem:[#allocation8 + $0x184] sm:$0xf] }
 0x1bc   :  { %v2170_v57 = vpop.f32.mrf.mxu3  ;;  %3005 = vmatmul.bf16.vlgmr.msra.gmra.mxu3 %v8730_v53  ;;  %3148 = vmatmul.bf16.vlgmr.msrb.gmra.mxu2 %v8711_v21 }
 0x1bd   :  { %3101 = vmatpush.bf16.msra.mxu3 %v6631_v23  ;;  %v6735_v23 = vor.u32 %v8006_v38, %v6734_v49  ;;  %v7949_v57 = vld [vmem:[#allocation7 + $0x30c] sm:$0xf]  ;;  %v6990_v49 = vld [vmem:[#allocation8 + $0x2c0] sm:$0xf] }
 0x1bf   :  { %3953 = vmatpush.bf16.msra.mxu0 %v6735_v23  ;;  %v8000_v23 = vld [vmem:[#allocation8 + $0xa4] sm:$0xf] }
 0x1c1   :  { %3102 = vmatpush.bf16.msra.mxu3 %v6615_v29  ;;  %v6520_v29 = vld [vmem:[#allocation7 + $0x318] sm:$0xf0] }
 0x1c3   :  { %3954 = vmatpush.bf16.msra.mxu0 %v6719_v59  ;;  %v6974_v59 = vld [vmem:[#allocation8 + $0x2a0] sm:$0xf] }
 0x1c5   :  { %3103 = vmatpush.bf16.msra.mxu3 %v6599_v60  ;;  %v6523_v60 = vor.u32 %v7949_v57, %v6520_v29  ;;  %v6782_v57 = vld [vmem:[#allocation8 + $0x120] sm:$0xf]  ;;  %v6723_v29 = vor.u32 %v8000_v23, %v6720_v50 }
 0x1c6   :  { %v6894_v50 = vld [vmem:[#allocation8 + $0x200] sm:$0xf] }
 0x1c9   :  { %3104 = vmatpush.bf16.msra.mxu3 %v6583_v0  ;;  %v6703_v0 = vor.u32 %v7998_v62, %v6702_v61  ;;  %v7996_v61 = vld [vmem:[#allocation8 + $0x84] sm:$0xf]  ;;  %v6704_v62 = vld [vmem:[#allocation8 + $0x90] sm:$0xf0] }
 0x1cb   :  { %v2967_v4 = vpop.f32.mrf.mxu0  ;;  %3955 = vmatpush.bf16.msra.mxu0 %v6703_v0 }
 0x1cc   :  { %v2968_v21 = vadd.f32 %v2967_v4, %v2310_v2  ;;  %v2980_v35 = vpop.f32.mrf.mxu1  ;;  %3057 = vmatmul.bf16.vlgmr.msrb.gmra.mxu3 %v8730_v53  ;;  %v6686_v2 = vld [vmem:[#allocation8 + $0x60] sm:$0xf]  ;;  %v6879_v4 = vor.u32 %v8042_v1, %v6878_v33 }
 0x1cd   :  { %3105 = vmatpush.bf16.msra.mxu3 %v6567_v3  ;;  %v7994_v3 = vld [vmem:[#allocation8 + $0x6c] sm:$0xf0]  ;;  %v6766_v1 = vld [vmem:[#allocation8 + $0x100] sm:$0xf] }
 0x1ce   :  { %v8738_v41 = vadd.f32 %v2980_v35, %v2968_v21  ;;  %3965 = vmatpush.bf16.msra.mxu1 %v6879_v4  ;;  %v6687_v5 = vor.u32 %v7994_v3, %v6686_v2  ;;  %v7990_v21 = vld [vmem:[#allocation8 + $0x4c] sm:$0xf0]  ;;  %v6862_v35 = vld [vmem:[#allocation8 + $0x1c0] sm:$0xf]  ;;  %v6707_v4 = vor.u32 %v7996_v61, %v6704_v62  ;;  %v8072_v62 = vld [vmem:[#allocation8 + $0x2e4] sm:$0xf] }
 0x1cf   :  { %v6671_v7 = vor.u32 %v7990_v21, %v6670_v34  ;;  %v8014_v2 = vld [vmem:[#allocation8 + $0x10c] sm:$0xf0]  ;;  %v7992_v21 = vld [vmem:[#allocation8 + $0x64] sm:$0xf] }
 0x1d0   :  { %3956 = vmatpush.bf16.msra.mxu0 %v6687_v5  ;;  %v6958_v5 = vld [vmem:[#allocation8 + $0x280] sm:$0xf]  ;;  %v8062_v34 = vld [vmem:[#allocation8 + $0x28c] sm:$0xf0] }
 0x1d1   :  { %3106 = vmatpush.bf16.msra.mxu3 %v6551_v42  ;;  %v8038_v42 = vld [vmem:[#allocation8 + $0x1cc] sm:$0xf0] }
 0x1d2   :  { %v6863_v8 = vor.u32 %v8038_v42, %v6862_v35  ;;  %v6688_v35 = vld [vmem:[#allocation8 + $0x70] sm:$0xf0]  ;;  %v8040_v42 = vld [vmem:[#allocation8 + $0x1e4] sm:$0xf] }
 0x1d3   :  { %v2969_v9 = vpop.f32.mrf.mxu0 }
 0x1d4   :  { %v2982_v15 = vpop.f32.mrf.mxu1  ;;  %3966 = vmatpush.bf16.msra.mxu1 %v6863_v8  ;;  %3957 = vmatpush.bf16.msra.mxu0 %v6671_v7  ;;  %v6654_v9 = vld [vmem:[#allocation8 + $0x20] sm:$0xf]  ;;  %v6880_v7 = vld [vmem:[#allocation8 + $0x1f0] sm:$0xf0]  ;;  %v6767_v8 = vor.u32 %v8014_v2, %v6766_v1 }
 0x1d5   :  { %3107 = vmatpush.bf16.msra.mxu3 %v6535_v10  ;;  %v2312_v10 = vperm.slane %v8734_v63, 2  ;;  %v6655_v37 = vor.u32 %v7986_v12, %v6654_v9  ;;  %v6691_v9 = vor.u32 %v7992_v21, %v6688_v35  ;;  %v6883_v12 = vor.u32 %v8040_v42, %v6880_v7  ;;  %v8020_v21 = vld [vmem:[#allocation8 + $0x144] sm:$0xf]  ;;  %v6800_v35 = vld [vmem:[#allocation8 + $0x150] sm:$0xf0] }
 0x1d6   :  { %v8068_v42 = vld [vmem:[#allocation8 + $0x2c4] sm:$0xf] }
 0x1d8   :  { %3958 = vmatpush.bf16.msra.mxu0 %v6655_v37  ;;  %v8058_v37 = vld [vmem:[#allocation8 + $0x26c] sm:$0xf0] }
 0x1d9   :  { %3108 = vmatpush.bf16.msra.mxu3 %v6519_v17 }
 0x1dc   :  { %3109 = vmatmul.bf16.vlgmr.msra.gmra.mxu3 %v8730_v53 }
 0x1dd   :  { %3153 = vmatpush.bf16.msrb.mxu3 %v6635_v18 }
 0x1e1   :  { %3154 = vmatpush.bf16.msrb.mxu3 %v6619_v20  ;;  %v7982_v20 = vld [vmem:[#allocation8 + $0xc] sm:$0xf0] }
 0x1e2   :  { %v6639_v25 = vor.u32 %v7982_v20, %v6638_v6 }
 0x1e4   :  { %3959 = vmatpush.bf16.msra.mxu0 %v6639_v25  ;;  %v2313_v25 = vperm.slane %v8734_v63, 3 }
 0x1e5   :  { %3155 = vmatpush.bf16.msrb.mxu3 %v6603_v27  ;;  %v8030_v27 = vld [vmem:[#allocation8 + $0x18c] sm:$0xf0] }
 0x1e6   :  { %v6831_v28 = vor.u32 %v8030_v27, %v6830_v13  ;;  %v6926_v27 = vld [vmem:[#allocation8 + $0x240] sm:$0xf] }
 0x1e9   :  { %3156 = vmatpush.bf16.msrb.mxu3 %v6587_v30  ;;  %v8008_v30 = vld [vmem:[#allocation8 + $0xe4] sm:$0xf] }
 0x1ea   :  { %v6755_v26 = vor.u32 %v8008_v30, %v6752_v31  ;;  %v7984_v31 = vld [vmem:[#allocation8 + $0x24] sm:$0xf] }
 0x1eb   :  { %v3019_v39 = vpop.f32.mrf.mxu0 }
 0x1ec   :  { %v3020_v43 = vadd.f32 %v3019_v39, %v2311_v54  ;;  %v3032_v44 = vpop.f32.mrf.mxu1  ;;  %4004 = vmatpush.bf16.msrb.mxu0 %v6755_v26  ;;  %v6814_v54 = vld [vmem:[#allocation8 + $0x160] sm:$0xf]  ;;  %v6656_v26 = vld [vmem:[#allocation8 + $0x30] sm:$0xf0] }
 0x1ed   :  { %3157 = vmatpush.bf16.msrb.mxu3 %v6571_v36  ;;  %v8026_v36 = vld [vmem:[#allocation8 + $0x16c] sm:$0xf0]  ;;  %v7006_v39 = vld [vmem:[#allocation8 + $0x2e0] sm:$0xf] }
 0x1ee   :  { %v8742_v24 = vadd.f32 %v3032_v44, %v3020_v43  ;;  %v6815_v52 = vor.u32 %v8026_v36, %v6814_v54  ;;  %v8074_v43 = vld [vmem:[#allocation8 + $0x2ec] sm:$0xf0]  ;;  %v8004_v44 = vld [vmem:[#allocation8 + $0xc4] sm:$0xf]  ;;  %v6659_v36 = vor.u32 %v7984_v31, %v6656_v26  ;;  %v6960_v26 = vld [vmem:[#allocation8 + $0x290] sm:$0xf0] }
 0x1ef   :  { %v7007_v47 = vor.u32 %v8074_v43, %v7006_v39  ;;  %v8032_v54 = vld [vmem:[#allocation8 + $0x1a4] sm:$0xf]  ;;  %v6848_v39 = vld [vmem:[#allocation8 + $0x1b0] sm:$0xf0] }
 0x1f1   :  { %3158 = vmatpush.bf16.msrb.mxu3 %v6555_v45  ;;  %v6736_v45 = vld [vmem:[#allocation8 + $0xd0] sm:$0xf0]  ;;  %3978 = vmatpush.bf16.msra.mxu2 %v7007_v47  ;;  %v7980_v47 = vld [vmem:[#allocation8 + $0x4] sm:$0xf] }
 0x1f2   :  { %v6739_v40 = vor.u32 %v8004_v44, %v6736_v45  ;;  %v6910_v45 = vld [vmem:[#allocation8 + $0x220] sm:$0xf] }
 0x1f3   :  { %v3021_v56 = vpop.f32.mrf.mxu0 }
 0x1f4   :  { %v3034_v58 = vpop.f32.mrf.mxu1  ;;  %4005 = vmatpush.bf16.msrb.mxu0 %v6739_v40  ;;  %v6640_v40 = vld [vmem:[#allocation8 + $0x10] sm:$0xf0] }
 0x1f5   :  { %3159 = vmatpush.bf16.msrb.mxu3 %v6539_v51  ;;  %v8070_v51 = vld [vmem:[#allocation8 + $0x2cc] sm:$0xf0] }
 0x1f6   :  { %v6991_v56 = vor.u32 %v8070_v51, %v6990_v49  ;;  %v8018_v58 = vld [vmem:[#allocation8 + $0x12c] sm:$0xf0]  ;;  %v6832_v51 = vld [vmem:[#allocation8 + $0x190] sm:$0xf0] }
 0x1f7   :  { %v6783_v0 = vor.u32 %v8018_v58, %v6782_v57  ;;  %v6835_v23 = vor.u32 %v8028_v32, %v6832_v51  ;;  %v8024_v58 = vld [vmem:[#allocation8 + $0x164] sm:$0xf]  ;;  %v7038_v51 = vld [vmem:[#allocation8 + $0x320] sm:$0xf] }
 0x1f8   :  { %3979 = vmatpush.bf16.msra.mxu2 %v6991_v56  ;;  %4006 = vmatpush.bf16.msrb.mxu0 %v6723_v29  ;;  %v7134_v56 = vld [vmem:[#allocation8 + $0x3e0] sm:$0xf]  ;;  %v8106_v29 = vld [vmem:[#allocation8 + $0x3ec] sm:$0xf0] }
 0x1f9   :  { %3160 = vmatpush.bf16.msrb.mxu3 %v6523_v60  ;;  %v8066_v60 = vld [vmem:[#allocation8 + $0x2ac] sm:$0xf0] }
 0x1fa   :  { %v6975_v33 = vor.u32 %v8066_v60, %v6974_v59  ;;  %v6816_v59 = vld [vmem:[#allocation8 + $0x170] sm:$0xf0]  ;;  %v7135_v60 = vor.u32 %v8106_v29, %v7134_v56  ;;  %v8048_v56 = vld [vmem:[#allocation8 + $0x224] sm:$0xf] }
 0x1fb   :  { %v6819_v61 = vor.u32 %v8024_v58, %v6816_v59  ;;  %v6758_v58 = vld [vmem:[#allocation8 + $0xe8] sm:$0xf]  ;;  %v8011_v59 = vld [vmem:[#allocation8 + $0xf4] sm:$0xf0] }
 0x1fc   :  { %3161 = vmatmul.bf16.vlgmr.msrb.gmra.mxu3 %v8730_v53  ;;  %v8034_v53 = vld [vmem:[#allocation8 + $0x1ac] sm:$0xf0]  ;;  %3980 = vmatpush.bf16.msra.mxu2 %v6975_v33 }
 0x1fd   :  { %v6847_v17 = vor.u32 %v8034_v53, %v6846_v14  ;;  %4007 = vmatpush.bf16.msrb.mxu0 %v6707_v4  ;;  %v6942_v14 = vld [vmem:[#allocation8 + $0x260] sm:$0xf]  ;;  %v7988_v53 = vld [vmem:[#allocation8 + $0x44] sm:$0xf]  ;;  %3991 = vmatpush.bf16.msra.mxu3 %v7135_v60 }
 0x1fe   :  { %v7118_v4 = vld [vmem:[#allocation8 + $0x3c0] sm:$0xf] }
 0x1ff   :  { %v8746_v15 = vpop.f32.mrf.mxu2  ;;  %3967 = vmatpush.bf16.msra.mxu1 %v6847_v17  ;;  %v8036_v17 = vld [vmem:[#allocation8 + $0x1c4] sm:$0xf] }
 0x201   :  { %4008 = vmatpush.bf16.msrb.mxu0 %v6691_v9 }
 0x203   :  { %3968 = vmatpush.bf16.msra.mxu1 %v6831_v28  ;;  %v8054_v28 = vld [vmem:[#allocation8 + $0x24c] sm:$0xf0] }
 0x204   :  { %v6927_v30 = vor.u32 %v8054_v28, %v6926_v27  ;;  %v8012_v27 = vld [vmem:[#allocation8 + $0x104] sm:$0xf]  ;;  %v6768_v28 = vld [vmem:[#allocation8 + $0x110] sm:$0xf0] }
 0x205   :  { %v6771_v31 = vor.u32 %v8012_v27, %v6768_v28 }
 0x207   :  { %v2995_v22 = vpop.f32.mrf.mxu2  ;;  %3969 = vmatpush.bf16.msra.mxu1 %v6815_v52  ;;  %v6851_v52 = vor.u32 %v8032_v54, %v6848_v39  ;;  %v8090_v39 = vld [vmem:[#allocation8 + $0x36c] sm:$0xf0] }
 0x20b   :  { %v3071_v16 = vpop.f32.mrf.mxu0  ;;  %3970 = vmatpush.bf16.msra.mxu1 %v6799_v55  ;;  %v8046_v55 = vld [vmem:[#allocation8 + $0x20c] sm:$0xf0] }
 0x20c   :  { %v3072_v18 = vadd.f32 %v3071_v16, %v2312_v10  ;;  %v3084_v19 = vpop.f32.mrf.mxu1  ;;  %v6959_v10 = vor.u32 %v8062_v34, %v6958_v5  ;;  %v6672_v16 = vld [vmem:[#allocation8 + $0x50] sm:$0xf0]  ;;  %v6895_v57 = vor.u32 %v8046_v55, %v6894_v50  ;;  %v8102_v5 = vld [vmem:[#allocation8 + $0x3cc] sm:$0xf0] }
 0x20d   :  { %v6675_v20 = vor.u32 %v7988_v53, %v6672_v16  ;;  %v7119_v34 = vor.u32 %v8102_v5, %v7118_v4  ;;  %v8016_v53 = vld [vmem:[#allocation8 + $0x124] sm:$0xf]  ;;  %v6784_v16 = vld [vmem:[#allocation8 + $0x130] sm:$0xf0] }
 0x20e   :  { %v8748_v11 = vadd.f32 %v3084_v19, %v3072_v18  ;;  %v6864_v18 = vld [vmem:[#allocation8 + $0x1d0] sm:$0xf0]  ;;  %3981 = vmatpush.bf16.msra.mxu2 %v6959_v10  ;;  %v6943_v19 = vor.u32 %v8058_v37, %v6942_v14  ;;  %v8098_v14 = vld [vmem:[#allocation8 + $0x3ac] sm:$0xf0]  ;;  %v8104_v4 = vld [vmem:[#allocation8 + $0x3e4] sm:$0xf] }
 0x20f   :  { %v8750_v3 = vpop.f32.mrf.mxu2  ;;  %3971 = vmatpush.bf16.msra.mxu1 %v6783_v0  ;;  %v6867_v13 = vor.u32 %v8036_v17, %v6864_v18  ;;  %4009 = vmatpush.bf16.msrb.mxu0 %v6675_v20  ;;  %v7008_v0 = vld [vmem:[#allocation8 + $0x2f0] sm:$0xf0]  ;;  %v8064_v17 = vld [vmem:[#allocation8 + $0x2a4] sm:$0xf]  ;;  %v6787_v18 = vor.u32 %v8016_v53, %v6784_v16  ;;  %v7086_v20 = vld [vmem:[#allocation8 + $0x380] sm:$0xf] }
 0x210   :  { %v7011_v1 = vor.u32 %v8072_v62, %v7008_v0  ;;  %v6992_v10 = vld [vmem:[#allocation8 + $0x2d0] sm:$0xf0]  ;;  %3992 = vmatpush.bf16.msra.mxu3 %v7119_v34  ;;  %v7022_v0 = vld [vmem:[#allocation8 + $0x300] sm:$0xf]  ;;  %v6742_v34 = vld [vmem:[#allocation8 + $0xc8] sm:$0xf] }
 0x211   :  { %v6995_v9 = vor.u32 %v8068_v42, %v6992_v10  ;;  %v7136_v42 = vld [vmem:[#allocation8 + $0x3f0] sm:$0xf0] }
 0x212   :  { %3982 = vmatpush.bf16.msra.mxu2 %v6943_v19  ;;  %v6976_v19 = vld [vmem:[#allocation8 + $0x2b0] sm:$0xf0] }
 0x213   :  { %v3073_v46 = vpop.f32.mrf.mxu0  ;;  %3972 = vmatpush.bf16.msra.mxu1 %v6767_v8  ;;  %4010 = vmatpush.bf16.msrb.mxu0 %v6659_v36  ;;  %v6803_v8 = vor.u32 %v8020_v21, %v6800_v35  ;;  %v7070_v36 = vld [vmem:[#allocation8 + $0x360] sm:$0xf]  ;;  %v8007_v21 = vld [vmem:[#allocation8 + $0xd4] sm:$0xf0] }
 0x214   :  { %v3086_v38 = vpop.f32.mrf.mxu1  ;;  %v8050_v46 = vld [vmem:[#allocation8 + $0x22c] sm:$0xf0]  ;;  %v6743_v10 = vor.u32 %v8007_v21, %v6742_v34  ;;  %v8009_v34 = vld [vmem:[#allocation8 + $0xec] sm:$0xf]  ;;  %v6760_v21 = vld [vmem:[#allocation8 + $0xf8] sm:$0xf0] }
 0x215   :  { %v6911_v63 = vor.u32 %v8050_v46, %v6910_v45  ;;  %v6643_v38 = vor.u32 %v7980_v47, %v6640_v40  ;;  %v7054_v45 = vld [vmem:[#allocation8 + $0x340] sm:$0xf]  ;;  %v8086_v46 = vld [vmem:[#allocation8 + $0x34c] sm:$0xf0]  ;;  %v8052_v47 = vld [vmem:[#allocation8 + $0x244] sm:$0xf] }
 0x216   :  { %3983 = vmatpush.bf16.msra.mxu2 %v6927_v30  ;;  %v8060_v30 = vld [vmem:[#allocation8 + $0x284] sm:$0xf]  ;;  %v6928_v40 = vld [vmem:[#allocation8 + $0x250] sm:$0xf0] }
 0x217   :  { %v3047_v6 = vpop.f32.mrf.mxu2  ;;  %4017 = vmatpush.bf16.msrb.mxu1 %v6883_v12  ;;  %4011 = vmatpush.bf16.msrb.mxu0 %v6643_v38  ;;  %v7102_v12 = vld [vmem:[#allocation8 + $0x3a0] sm:$0xf]  ;;  %v6963_v54 = vor.u32 %v8060_v30, %v6960_v26  ;;  %v6931_v32 = vor.u32 %v8052_v47, %v6928_v40  ;;  %v2994_v38 = vadd.f32 %v8746_v15, %v8738_v41  ;;  %v8044_v15 = vld [vmem:[#allocation8 + $0x204] sm:$0xf]  ;;  %v6694_v30 = vld [vmem:[#allocation8 + $0x68] sm:$0xf] }
 0x218   :  { %v7103_v37 = vor.u32 %v8098_v14, %v7102_v12  ;;  %v6979_v6 = vor.u32 %v8064_v17, %v6976_v19  ;;  %v8003_v12 = vld [vmem:[#allocation8 + $0xb4] sm:$0xf0]  ;;  %v8100_v14 = vld [vmem:[#allocation8 + $0x3c4] sm:$0xf]  ;;  %v6886_v26 = vld [vmem:[#allocation8 + $0x1e8] sm:$0xf] }
 0x219   :  { %v7999_v19 = vld [vmem:[#allocation8 + $0x94] sm:$0xf0]  ;;  %v6870_v47 = vld [vmem:[#allocation8 + $0x1c8] sm:$0xf]  ;;  %v8088_v40 = vld [vmem:[#allocation8 + $0x364] sm:$0xf] }
 0x21a   :  { %3984 = vmatpush.bf16.msra.mxu2 %v6911_v63  ;;  %3993 = vmatpush.bf16.msra.mxu3 %v7103_v37  ;;  %v7055_v63 = vor.u32 %v8086_v46, %v7054_v45  ;;  %v7120_v37 = vld [vmem:[#allocation8 + $0x3d0] sm:$0xf0]  ;;  %v6678_v46 = vld [vmem:[#allocation8 + $0x48] sm:$0xf] }
 0x21b   :  { %4018 = vmatpush.bf16.msrb.mxu1 %v6867_v13  ;;  %v8094_v13 = vld [vmem:[#allocation8 + $0x38c] sm:$0xf0]  ;;  %v7123_v16 = vor.u32 %v8100_v14, %v7120_v37  ;;  %v6763_v37 = vor.u32 %v8009_v34, %v6760_v21 }
 0x21e   :  { %3985 = vmatpush.bf16.msra.mxu2 %v6895_v57  ;;  %v6912_v57 = vld [vmem:[#allocation8 + $0x230] sm:$0xf0] }
 0x21f   :  { %4019 = vmatpush.bf16.msrb.mxu1 %v6851_v52  ;;  %v8755_v49 = vpop.f32.mrf.mxu2  ;;  %v8056_v52 = vld [vmem:[#allocation8 + $0x264] sm:$0xf]  ;;  %v6915_v60 = vor.u32 %v8048_v56, %v6912_v57  ;;  %v7987_v56 = vld [vmem:[#allocation8 + $0x34] sm:$0xf0]  ;;  %v6854_v57 = vld [vmem:[#allocation8 + $0x1a8] sm:$0xf] }
 0x222   :  { %4030 = vmatpush.bf16.msrb.mxu2 %v7011_v1  ;;  %v6759_v1 = vor.u32 %v8011_v59, %v6758_v58  ;;  %v8084_v58 = vld [vmem:[#allocation8 + $0x344] sm:$0xf]  ;;  %v7056_v59 = vld [vmem:[#allocation8 + $0x350] sm:$0xf0] }
 0x223   :  { %4020 = vmatpush.bf16.msrb.mxu1 %v6835_v23  ;;  %v8082_v23 = vld [vmem:[#allocation8 + $0x32c] sm:$0xf0] }
 0x224   :  { %v7039_v55 = vor.u32 %v8082_v23, %v7038_v51 }
 0x226   :  { %4031 = vmatpush.bf16.msrb.mxu2 %v6995_v9  ;;  %v6726_v9 = vld [vmem:[#allocation8 + $0xa8] sm:$0xf] }
 0x227   :  { %4021 = vmatpush.bf16.msrb.mxu1 %v6819_v61  ;;  %v3099_v7 = vpop.f32.mrf.mxu2  ;;  %v6727_v17 = vor.u32 %v8003_v12, %v6726_v9  ;;  %v6822_v9 = vld [vmem:[#allocation8 + $0x168] sm:$0xf]  ;;  %v8027_v12 = vld [vmem:[#allocation8 + $0x174] sm:$0xf0] }
 0x228   :  { %v7139_v7 = vor.u32 %v8104_v4, %v7136_v42  ;;  %v7040_v4 = vld [vmem:[#allocation8 + $0x330] sm:$0xf0]  ;;  %v3098_v42 = vadd.f32 %v8755_v49, %v8748_v11  ;;  %v6823_v11 = vor.u32 %v8027_v12, %v6822_v9  ;;  %v8033_v9 = vld [vmem:[#allocation8 + $0x1ac] sm:$0xf]  ;;  %v6856_v12 = vld [vmem:[#allocation8 + $0x1b8] sm:$0xf0] }
 0x22a   :  { %4032 = vmatpush.bf16.msrb.mxu2 %v6979_v6  ;;  %v8096_v6 = vld [vmem:[#allocation8 + $0x3a4] sm:$0xf] }
 0x22b   :  { %v3123_v22 = vpop.f32.mrf.mxu0  ;;  %4022 = vmatpush.bf16.msrb.mxu1 %v6803_v8 }
 0x22c   :  { %v3124_v43 = vadd.f32 %v3123_v22, %v2313_v25  ;;  %v3136_v44 = vpop.f32.mrf.mxu1  ;;  %v7087_v25 = vor.u32 %v8094_v13, %v7086_v20  ;;  %v7071_v22 = vor.u32 %v8090_v39, %v7070_v36  ;;  %v7104_v20 = vld [vmem:[#allocation8 + $0x3b0] sm:$0xf0]  ;;  %v8043_v36 = vld [vmem:[#allocation8 + $0x1f4] sm:$0xf0]  ;;  %v8092_v39 = vld [vmem:[#allocation8 + $0x384] sm:$0xf] }
 0x22d   :  { %v7107_v13 = vor.u32 %v8096_v6, %v7104_v20  ;;  %v6887_v45 = vor.u32 %v8043_v36, %v6886_v26  ;;  %v6744_v6 = vld [vmem:[#allocation8 + $0xd8] sm:$0xf0]  ;;  %v8071_v26 = vld [vmem:[#allocation8 + $0x2d4] sm:$0xf0] }
 0x22e   :  { %v8753_v48 = vadd.f32 %v3136_v44, %v3124_v43  ;;  %3994 = vmatpush.bf16.msra.mxu3 %v7087_v25  ;;  %4033 = vmatpush.bf16.msrb.mxu2 %v6963_v54  ;;  %v6944_v43 = vld [vmem:[#allocation8 + $0x270] sm:$0xf0]  ;;  %v3046_v25 = vadd.f32 %v8750_v3, %v8742_v24  ;;  %v8039_v3 = vld [vmem:[#allocation8 + $0x1d4] sm:$0xf0]  ;;  %v6728_v36 = vld [vmem:[#allocation8 + $0xb8] sm:$0xf0] }
 0x22f   :  { %4023 = vmatpush.bf16.msrb.mxu1 %v6787_v18  ;;  %v6947_v44 = vor.u32 %v8056_v52, %v6944_v43  ;;  %v6710_v18 = vld [vmem:[#allocation8 + $0x88] sm:$0xf] }
 0x230   :  { %v6711_v28 = vor.u32 %v7999_v19, %v6710_v18  ;;  %v8075_v18 = vld [vmem:[#allocation8 + $0x2f4] sm:$0xf0]  ;;  %v8005_v19 = vld [vmem:[#allocation8 + $0xcc] sm:$0xf] }
 0x232   :  { %3995 = vmatpush.bf16.msra.mxu3 %v7071_v22  ;;  %4034 = vmatpush.bf16.msrb.mxu2 %v6947_v44  ;;  %v7088_v22 = vld [vmem:[#allocation8 + $0x390] sm:$0xf0] }
 0x233   :  { %v3125_v33 = vpop.f32.mrf.mxu0  ;;  %4024 = vmatpush.bf16.msrb.mxu1 %v6771_v31  ;;  %v7995_v31 = vld [vmem:[#allocation8 + $0x74] sm:$0xf0]  ;;  %v7091_v52 = vor.u32 %v8092_v39, %v7088_v22 }
 0x234   :  { %v3138_v2 = vpop.f32.mrf.mxu1  ;;  %v8078_v33 = vld [vmem:[#allocation8 + $0x30c] sm:$0xf0]  ;;  %v6695_v44 = vor.u32 %v7995_v31, %v6694_v30  ;;  %v8023_v30 = vld [vmem:[#allocation8 + $0x154] sm:$0xf0]  ;;  %v6998_v31 = vld [vmem:[#allocation8 + $0x2c8] sm:$0xf] }
 0x235   :  { %v7023_v41 = vor.u32 %v8078_v33, %v7022_v0  ;;  %v6896_v2 = vld [vmem:[#allocation8 + $0x210] sm:$0xf0]  ;;  %v6646_v33 = vld [vmem:[#allocation8 + $0x8] sm:$0xf] }
 0x236   :  { %3996 = vmatpush.bf16.msra.mxu3 %v7055_v63  ;;  %4035 = vmatpush.bf16.msrb.mxu2 %v6931_v32  ;;  %v6899_v35 = vor.u32 %v8044_v15, %v6896_v2  ;;  %v7991_v63 = vld [vmem:[#allocation8 + $0x54] sm:$0xf0]  ;;  %v7072_v32 = vld [vmem:[#allocation8 + $0x370] sm:$0xf0]  ;;  %v8080_v2 = vld [vmem:[#allocation8 + $0x324] sm:$0xf] }
 0x237   :  { %v6679_v23 = vor.u32 %v7991_v63, %v6678_v46  ;;  %v8031_v15 = vld [vmem:[#allocation8 + $0x194] sm:$0xf0]  ;;  %v6982_v46 = vld [vmem:[#allocation8 + $0x2a8] sm:$0xf] }
 0x238   :  { %v8067_v63 = vld [vmem:[#allocation8 + $0x2b4] sm:$0xf0] }
 0x23a   :  { %3997 = vmatpush.bf16.msra.mxu3 %v7039_v55  ;;  %4036 = vmatpush.bf16.msrb.mxu2 %v6915_v60  ;;  %v6662_v55 = vld [vmem:[#allocation8 + $0x28] sm:$0xf]  ;;  %v7059_v60 = vor.u32 %v8084_v58, %v7056_v59  ;;  %v6888_v58 = vld [vmem:[#allocation8 + $0x1f8] sm:$0xf0] }
 0x23e   :  { %3998 = vmatpush.bf16.msra.mxu3 %v7023_v41  ;;  %4037 = vmatpush.bf16.msrb.mxu2 %v6899_v35  ;;  %v6838_v41 = vld [vmem:[#allocation8 + $0x188] sm:$0xf]  ;;  %v7043_v35 = vor.u32 %v8080_v2, %v7040_v4  ;;  %v8037_v2 = vld [vmem:[#allocation8 + $0x1cc] sm:$0xf]  ;;  %v6872_v4 = vld [vmem:[#allocation8 + $0x1d8] sm:$0xf0] }
 0x23f   :  { %v3006_v50 = vpop.f32.mrf.mxu3  ;;  %v8759_v61 = vpop.f32.mrf.mxu2 }
 0x240   :  { %v3007_v29 = vadd.f32 %v3006_v50, %v2994_v38  ;;  %v7075_v38 = vor.u32 %v8088_v40, %v7072_v32  ;;  %v6871_v50 = vor.u32 %v8039_v3, %v6870_v47  ;;  %v7997_v47 = vld [vmem:[#allocation8 + $0x8c] sm:$0xf]  ;;  %v6712_v3 = vld [vmem:[#allocation8 + $0x98] sm:$0xf0]  ;;  %v6983_v32 = vor.u32 %v8067_v63, %v6982_v46 }
 0x242   :  { %v3166_v62 = vmax.f32 %v3007_v29, 0.0  ;;  %4043 = vmatpush.bf16.msrb.mxu3 %v7139_v7  ;;  %v8035_v29 = vld [vmem:[#allocation8 + $0x1b4] sm:$0xf0] }
 0x243   :  { %v6855_v0 = vor.u32 %v8035_v29, %v6854_v57  ;;  %v6696_v57 = vld [vmem:[#allocation8 + $0x78] sm:$0xf0]  ;;  %v8041_v29 = vld [vmem:[#allocation8 + $0x1ec] sm:$0xf] }
 0x244   :  { %v8761_v5 = vpack.c.bf16 %v3166_v62, %v3166_v62  ;;  %v6663_v62 = vor.u32 %v7987_v56, %v6662_v55  ;;  %v8063_v55 = vld [vmem:[#allocation8 + $0x294] sm:$0xf0]  ;;  %v7993_v56 = vld [vmem:[#allocation8 + $0x6c] sm:$0xf] }
 0x246   :  { %3960 = vmatmul.bf16.vlgmr.msra.gmra.mxu0 %v8761_v5  ;;  %4044 = vmatpush.bf16.msrb.mxu3 %v7123_v16  ;;  %v8076_v16 = vld [vmem:[#allocation8 + $0x304] sm:$0xf] }
 0x247   :  { %4056 = vmatpush.bf16.msra.mxu0 %v6759_v1  ;;  %v3008_v8 = vpop.f32.mrf.mxu3  ;;  %v3151_v53 = vpop.f32.mrf.mxu2  ;;  %v7983_v1 = vld [vmem:[#allocation8 + $0x14] sm:$0xf0] }
 0x248   :  { %v6647_v8 = vor.u32 %v7983_v1, %v6646_v33  ;;  %v7014_v53 = vld [vmem:[#allocation8 + $0x2e8] sm:$0xf]  ;;  %v6891_v33 = vor.u32 %v8041_v29, %v6888_v58  ;;  %v8059_v1 = vld [vmem:[#allocation8 + $0x274] sm:$0xf0]  ;;  %v8017_v58 = vld [vmem:[#allocation8 + $0x12c] sm:$0xf] }
 0x249   :  { %v8099_v29 = vld [vmem:[#allocation8 + $0x3b4] sm:$0xf0] }
 0x24a   :  { %4045 = vmatpush.bf16.msrb.mxu3 %v7107_v13 }
 0x24b   :  { %4057 = vmatpush.bf16.msra.mxu0 %v6743_v10  ;;  %v6839_v10 = vor.u32 %v8031_v15, %v6838_v41  ;;  %v7989_v41 = vld [vmem:[#allocation8 + $0x4c] sm:$0xf]  ;;  %v6680_v15 = vld [vmem:[#allocation8 + $0x58] sm:$0xf0] }
 0x24c   :  { %v6683_v21 = vor.u32 %v7989_v41, %v6680_v15  ;;  %v8095_v41 = vld [vmem:[#allocation8 + $0x394] sm:$0xf0]  ;;  %v8013_v15 = vld [vmem:[#allocation8 + $0x10c] sm:$0xf] }
 0x24e   :  { %4046 = vmatpush.bf16.msrb.mxu3 %v7091_v52  ;;  %v6999_v52 = vor.u32 %v8071_v26, %v6998_v31 }
 0x24f   :  { %4058 = vmatpush.bf16.msra.mxu0 %v6727_v17  ;;  %v3058_v27 = vpop.f32.mrf.mxu3  ;;  %v7024_v17 = vld [vmem:[#allocation8 + $0x310] sm:$0xf0] }
 0x250   :  { %v3059_v54 = vadd.f32 %v3058_v27, %v3046_v25  ;;  %v7027_v20 = vor.u32 %v8076_v16, %v7024_v17  ;;  %v7015_v25 = vor.u32 %v8075_v18, %v7014_v53  ;;  %v6747_v27 = vor.u32 %v8005_v19, %v6744_v6  ;;  %v6918_v53 = vld [vmem:[#allocation8 + $0x228] sm:$0xf]  ;;  %v8051_v17 = vld [vmem:[#allocation8 + $0x234] sm:$0xf0]  ;;  %v7981_v18 = vld [vmem:[#allocation8 + $0xc] sm:$0xf] }
 0x251   :  { %v6859_v16 = vor.u32 %v8033_v9, %v6856_v12  ;;  %v6648_v19 = vld [vmem:[#allocation8 + $0x18] sm:$0xf0]  ;;  %v8029_v6 = vld [vmem:[#allocation8 + $0x18c] sm:$0xf] }
 0x252   :  { %v3167_v43 = vmax.f32 %v3059_v54, 0.0  ;;  %4047 = vmatpush.bf16.msrb.mxu3 %v7075_v38  ;;  %v8001_v54 = vld [vmem:[#allocation8 + $0xac] sm:$0xf]  ;;  %v6715_v38 = vor.u32 %v7997_v47, %v6712_v3  ;;  %v7126_v47 = vld [vmem:[#allocation8 + $0x3c8] sm:$0xf] }
 0x253   :  { %4059 = vmatpush.bf16.msra.mxu0 %v6711_v28  ;;  %v6806_v28 = vld [vmem:[#allocation8 + $0x148] sm:$0xf]  ;;  %v8103_v3 = vld [vmem:[#allocation8 + $0x3d4] sm:$0xf0]  ;;  %v6952_v9 = vld [vmem:[#allocation8 + $0x278] sm:$0xf0] }
 0x254   :  { %v8766_v24 = vpack.c.bf16 %v3167_v43, %v3167_v43  ;;  %v6807_v22 = vor.u32 %v8023_v30, %v6806_v28  ;;  %v6731_v43 = vor.u32 %v8001_v54, %v6728_v36  ;;  %v6902_v28 = vld [vmem:[#allocation8 + $0x208] sm:$0xf]  ;;  %v8047_v30 = vld [vmem:[#allocation8 + $0x214] sm:$0xf0] }
 0x255   :  { %v7142_v54 = vld [vmem:[#allocation8 + $0x3e8] sm:$0xf]  ;;  %v8107_v36 = vld [vmem:[#allocation8 + $0x3f4] sm:$0xf0] }
 0x256   :  { %3973 = vmatmul.bf16.vlgmr.msra.gmra.mxu1 %v8766_v24  ;;  %4012 = vmatmul.bf16.vlgmr.msrb.gmra.mxu0 %v8761_v5 }
 0x257   :  { %4060 = vmatpush.bf16.msra.mxu0 %v6695_v44  ;;  %4069 = vmatpush.bf16.msra.mxu1 %v6887_v45  ;;  %v3060_v51 = vpop.f32.mrf.mxu3  ;;  %v6790_v44 = vld [vmem:[#allocation8 + $0x128] sm:$0xf]  ;;  %v8019_v45 = vld [vmem:[#allocation8 + $0x134] sm:$0xf0] }
 0x258   :  { %4048 = vmatpush.bf16.msrb.mxu3 %v7059_v60  ;;  %v6791_v40 = vor.u32 %v8019_v45, %v6790_v44  ;;  %v6774_v51 = vld [vmem:[#allocation8 + $0x108] sm:$0xf] }
 0x25b   :  { %4061 = vmatpush.bf16.msra.mxu0 %v6679_v23  ;;  %4070 = vmatpush.bf16.msra.mxu1 %v6871_v50  ;;  %v8015_v23 = vld [vmem:[#allocation8 + $0x114] sm:$0xf0]  ;;  %v6966_v50 = vld [vmem:[#allocation8 + $0x288] sm:$0xf] }
 0x25c   :  { %4049 = vmatpush.bf16.msrb.mxu3 %v7043_v35  ;;  %v6775_v59 = vor.u32 %v8015_v23, %v6774_v51  ;;  %v6967_v60 = vor.u32 %v8063_v55, %v6966_v50  ;;  %v6934_v35 = vld [vmem:[#allocation8 + $0x248] sm:$0xf]  ;;  %v7000_v51 = vld [vmem:[#allocation8 + $0x2d8] sm:$0xf0]  ;;  %v7127_v50 = vor.u32 %v8103_v3, %v7126_v47 }
 0x25d   :  { %v7096_v47 = vld [vmem:[#allocation8 + $0x398] sm:$0xf0] }
 0x25f   :  { %4062 = vmatpush.bf16.msra.mxu0 %v6663_v62  ;;  %4071 = vmatpush.bf16.msra.mxu1 %v6855_v0  ;;  %v3110_v7 = vpop.f32.mrf.mxu3  ;;  %v6699_v62 = vor.u32 %v7993_v56, %v6696_v57  ;;  %v6950_v0 = vld [vmem:[#allocation8 + $0x268] sm:$0xf] }
 0x260   :  { %v3111_v14 = vadd.f32 %v3110_v7, %v3098_v42  ;;  %4050 = vmatpush.bf16.msrb.mxu3 %v7027_v20  ;;  %v6951_v34 = vor.u32 %v8059_v1, %v6950_v0  ;;  %v6875_v42 = vor.u32 %v8037_v2, %v6872_v4  ;;  %v8055_v7 = vld [vmem:[#allocation8 + $0x254] sm:$0xf0]  ;;  %v6840_v20 = vld [vmem:[#allocation8 + $0x198] sm:$0xf0]  ;;  %v7110_v57 = vld [vmem:[#allocation8 + $0x3a8] sm:$0xf] }
 0x261   :  { %v6843_v26 = vor.u32 %v8029_v6, %v6840_v20  ;;  %v7111_v0 = vor.u32 %v8099_v29, %v7110_v57  ;;  %v7094_v1 = vld [vmem:[#allocation8 + $0x388] sm:$0xf]  ;;  %v6776_v2 = vld [vmem:[#allocation8 + $0x118] sm:$0xf0]  ;;  %v8061_v4 = vld [vmem:[#allocation8 + $0x28c] sm:$0xf] }
 0x262   :  { %v3168_v13 = vmax.f32 %v3111_v14, 0.0  ;;  %v6935_v14 = vor.u32 %v8055_v7, %v6934_v35  ;;  %v6779_v35 = vor.u32 %v8013_v15, %v6776_v2  ;;  %v7078_v7 = vld [vmem:[#allocation8 + $0x368] sm:$0xf]  ;;  %v8083_v20 = vld [vmem:[#allocation8 + $0x334] sm:$0xf0] }
 0x263   :  { %4063 = vmatpush.bf16.msra.mxu0 %v6647_v8  ;;  %4072 = vmatpush.bf16.msra.mxu1 %v6839_v10  ;;  %v7985_v8 = vld [vmem:[#allocation8 + $0x2c] sm:$0xf]  ;;  %v6664_v10 = vld [vmem:[#allocation8 + $0x38] sm:$0xf0]  ;;  %v7046_v6 = vld [vmem:[#allocation8 + $0x328] sm:$0xf] }
 0x264   :  { %v8772_v49 = vpack.c.bf16 %v3168_v13, %v3168_v13  ;;  %v3150_v13 = vadd.f32 %v8759_v61, %v8753_v48  ;;  %v6903_v48 = vor.u32 %v8047_v30, %v6902_v28  ;;  %v7143_v61 = vor.u32 %v8107_v36, %v7142_v54  ;;  %v7030_v28 = vld [vmem:[#allocation8 + $0x308] sm:$0xf]  ;;  %v8079_v30 = vld [vmem:[#allocation8 + $0x314] sm:$0xf0]  ;;  %v8105_v54 = vld [vmem:[#allocation8 + $0x3ec] sm:$0xf] }
 0x265   :  { %v7144_v36 = vld [vmem:[#allocation8 + $0x3f8] sm:$0xf0]  ;;  %v8077_v29 = vld [vmem:[#allocation8 + $0x30c] sm:$0xf]  ;;  %v8119_v15 = vld [vmem:[#allocation10 + $0x54] sm:$0xf0] }
 0x266   :  { %3986 = vmatmul.bf16.vlgmr.msra.gmra.mxu2 %v8772_v49  ;;  %4025 = vmatmul.bf16.vlgmr.msrb.gmra.mxu1 %v8766_v24 }
 0x267   :  { %4108 = vmatpush.bf16.msrb.mxu0 %v6763_v37  ;;  %4073 = vmatpush.bf16.msra.mxu1 %v6823_v11  ;;  %v3112_v39 = vpop.f32.mrf.mxu3  ;;  %v6667_v37 = vor.u32 %v7985_v8, %v6664_v10  ;;  %v8091_v8 = vld [vmem:[#allocation8 + $0x374] sm:$0xf0]  ;;  %v8057_v10 = vld [vmem:[#allocation8 + $0x26c] sm:$0xf] }
 0x268   :  { %4064 = vmatmul.bf16.vlgmr.msra.gmra.mxu0 %v8761_v5  ;;  %4082 = vmatpush.bf16.msra.mxu2 %v7015_v25  ;;  %v6919_v25 = vor.u32 %v8051_v17, %v6918_v53  ;;  %v8025_v39 = vld [vmem:[#allocation8 + $0x16c] sm:$0xf]  ;;  %v7079_v12 = vor.u32 %v8091_v8, %v7078_v7  ;;  %v8087_v53 = vld [vmem:[#allocation8 + $0x354] sm:$0xf0]  ;;  %v6936_v17 = vld [vmem:[#allocation8 + $0x258] sm:$0xf0] }
 0x269   :  { %v8115_v7 = vld [vmem:[#allocation10 + $0x34] sm:$0xf0]  ;;  %v7270_v8 = vld [vmem:[#allocation10 + $0xf0] sm:$0xf] }
 0x26b   :  { %4109 = vmatpush.bf16.msrb.mxu0 %v6747_v27  ;;  %4074 = vmatpush.bf16.msra.mxu1 %v6807_v22  ;;  %v6651_v27 = vor.u32 %v7981_v18, %v6648_v19  ;;  %v6824_v22 = vld [vmem:[#allocation8 + $0x178] sm:$0xf0] }
 0x26c   :  { %4083 = vmatpush.bf16.msra.mxu2 %v6999_v52  ;;  %v8073_v52 = vld [vmem:[#allocation8 + $0x2ec] sm:$0xf]  ;;  %v6827_v46 = vor.u32 %v8025_v39, %v6824_v22  ;;  %v7031_v39 = vor.u32 %v8079_v30, %v7030_v28  ;;  %v7147_v22 = vor.u32 %v8105_v54, %v7144_v36  ;;  %v7246_v54 = vld [vmem:[#allocation10 + $0xc0] sm:$0xf] }
 0x26f   :  { %4110 = vmatpush.bf16.msrb.mxu0 %v6731_v43  ;;  %4075 = vmatpush.bf16.msra.mxu1 %v6791_v40  ;;  %v7016_v43 = vld [vmem:[#allocation8 + $0x2f8] sm:$0xf0]  ;;  %v8021_v40 = vld [vmem:[#allocation8 + $0x14c] sm:$0xf] }
 0x270   :  { %4084 = vmatpush.bf16.msra.mxu2 %v6983_v32  ;;  %v7019_v63 = vor.u32 %v8073_v52, %v7016_v43  ;;  %v6808_v32 = vld [vmem:[#allocation8 + $0x158] sm:$0xf0]  ;;  %v8101_v52 = vld [vmem:[#allocation8 + $0x3cc] sm:$0xf] }
 0x271   :  { %v6811_v55 = vor.u32 %v8021_v40, %v6808_v32  ;;  %v7128_v43 = vld [vmem:[#allocation8 + $0x3d8] sm:$0xf0]  ;;  %v8089_v40 = vld [vmem:[#allocation8 + $0x36c] sm:$0xf] }
 0x272   :  { %v7080_v32 = vld [vmem:[#allocation8 + $0x378] sm:$0xf0] }
 0x273   :  { %4111 = vmatpush.bf16.msrb.mxu0 %v6715_v38  ;;  %4076 = vmatpush.bf16.msra.mxu1 %v6775_v59  ;;  %v8069_v38 = vld [vmem:[#allocation8 + $0x2cc] sm:$0xf]  ;;  %v6792_v59 = vld [vmem:[#allocation8 + $0x138] sm:$0xf0] }
 0x274   :  { %4085 = vmatpush.bf16.msra.mxu2 %v6967_v60  ;;  %v7003_v56 = vor.u32 %v8069_v38, %v7000_v51  ;;  %v8065_v60 = vld [vmem:[#allocation8 + $0x2ac] sm:$0xf]  ;;  %v7083_v38 = vor.u32 %v8089_v40, %v7080_v32 }
 0x275   :  { %v8085_v51 = vld [vmem:[#allocation8 + $0x34c] sm:$0xf] }
 0x276   :  { %4038 = vmatmul.bf16.vlgmr.msrb.gmra.mxu2 %v8772_v49  ;;  %4077 = vmatmul.bf16.vlgmr.msra.gmra.mxu1 %v8766_v24 }
 0x277   :  { %4112 = vmatpush.bf16.msrb.mxu0 %v6699_v62  ;;  %4121 = vmatpush.bf16.msrb.mxu1 %v6891_v33  ;;  %v6984_v62 = vld [vmem:[#allocation8 + $0x2b8] sm:$0xf0] }
 0x278   :  { %4086 = vmatpush.bf16.msra.mxu2 %v6951_v34  ;;  %v6987_v33 = vor.u32 %v8065_v60, %v6984_v62  ;;  %v6968_v34 = vld [vmem:[#allocation8 + $0x298] sm:$0xf0]  ;;  %v8123_v60 = vld [vmem:[#allocation10 + $0x74] sm:$0xf0] }
 0x27b   :  { %4113 = vmatpush.bf16.msrb.mxu0 %v6683_v21  ;;  %4122 = vmatpush.bf16.msrb.mxu1 %v6875_v42  ;;  %v7095_v21 = vor.u32 %v8095_v41, %v7094_v1  ;;  %v6971_v42 = vor.u32 %v8061_v4, %v6968_v34  ;;  %v7190_v41 = vld [vmem:[#allocation10 + $0x50] sm:$0xf]  ;;  %v7182_v34 = vld [vmem:[#allocation10 + $0x40] sm:$0xf] }
 0x27c   :  { %4087 = vmatpush.bf16.msra.mxu2 %v6935_v14  ;;  %v6955_v14 = vor.u32 %v8057_v10, %v6952_v9  ;;  %v7191_v2 = vor.u32 %v8119_v15, %v7190_v41  ;;  %v8139_v10 = vld [vmem:[#allocation10 + $0xf4] sm:$0xf0]  ;;  %v8116_v41 = vld [vmem:[#allocation10 + $0x44] sm:$0xf]  ;;  %v7184_v15 = vld [vmem:[#allocation10 + $0x48] sm:$0xf0] }
 0x27d   :  { %v7271_v9 = vor.u32 %v8139_v10, %v7270_v8 }
 0x27f   :  { %v3162_v11 = vpop.f32.mrf.mxu3  ;;  %4114 = vmatpush.bf16.msrb.mxu0 %v6667_v37  ;;  %4123 = vmatpush.bf16.msrb.mxu1 %v6859_v16  ;;  %v7062_v37 = vld [vmem:[#allocation8 + $0x348] sm:$0xf]  ;;  %v8053_v16 = vld [vmem:[#allocation8 + $0x24c] sm:$0xf] }
 0x280   :  { %v3163_v31 = vadd.f32 %v3162_v11, %v3150_v13  ;;  %4088 = vmatpush.bf16.msra.mxu2 %v6919_v25  ;;  %v7063_v18 = vor.u32 %v8087_v53, %v7062_v37  ;;  %v6939_v19 = vor.u32 %v8053_v16, %v6936_v17  ;;  %v8049_v13 = vld [vmem:[#allocation8 + $0x22c] sm:$0xf]  ;;  %v6920_v11 = vld [vmem:[#allocation8 + $0x238] sm:$0xf0]  ;;  %v7047_v25 = vor.u32 %v8083_v20, %v7046_v6  ;;  %v7166_v37 = vld [vmem:[#allocation10 + $0x20] sm:$0xf] }
 0x281   :  { %v8113_v53 = vld [vmem:[#allocation10 + $0x24] sm:$0xf0]  ;;  %v7262_v16 = vld [vmem:[#allocation10 + $0xe0] sm:$0xf]  ;;  %v8111_v6 = vld [vmem:[#allocation10 + $0x14] sm:$0xf0] }
 0x282   :  { %v3169_v44 = vmax.f32 %v3163_v31, 0.0  ;;  %v8045_v31 = vld [vmem:[#allocation8 + $0x20c] sm:$0xf]  ;;  %v7167_v17 = vor.u32 %v8113_v53, %v7166_v37  ;;  %v7176_v37 = vld [vmem:[#allocation10 + $0x38] sm:$0xf0] }
 0x283   :  { %4115 = vmatpush.bf16.msrb.mxu0 %v6651_v27  ;;  %4124 = vmatpush.bf16.msrb.mxu1 %v6843_v26  ;;  %v6923_v27 = vor.u32 %v8049_v13, %v6920_v11  ;;  %v6904_v26 = vld [vmem:[#allocation8 + $0x218] sm:$0xf0]  ;;  %v7254_v13 = vld [vmem:[#allocation10 + $0xd0] sm:$0xf]  ;;  %v8135_v11 = vld [vmem:[#allocation10 + $0xd4] sm:$0xf0] }
 0x284   :  { %v8781_v45 = vpack.c.bf16 %v3169_v44, %v3169_v44  ;;  %4089 = vmatpush.bf16.msra.mxu2 %v6903_v48  ;;  %v7131_v44 = vor.u32 %v8101_v52, %v7128_v43  ;;  %v8097_v48 = vld [vmem:[#allocation8 + $0x3ac] sm:$0xf] }
 0x286   :  { %3999 = vmatmul.bf16.vlgmr.msra.gmra.mxu3 %v8781_v45  ;;  %4116 = vmatmul.bf16.vlgmr.msrb.gmra.mxu0 %v8761_v5  ;;  %v6795_v5 = vor.u32 %v8017_v58, %v6792_v59  ;;  %v7206_v59 = vld [vmem:[#allocation10 + $0x70] sm:$0xf] }
 0x287   :  { %4095 = vmatpush.bf16.msra.mxu3 %v7143_v61  ;;  %v3164_v23 = vpop.f32.mrf.mxu3  ;;  %4125 = vmatpush.bf16.msrb.mxu1 %v6827_v46  ;;  %v7112_v61 = vld [vmem:[#allocation8 + $0x3b8] sm:$0xf0]  ;;  %v7207_v62 = vor.u32 %v8123_v60, %v7206_v59  ;;  %v7222_v60 = vld [vmem:[#allocation10 + $0x90] sm:$0xf] }
 0x288   :  { %4134 = vmatpush.bf16.msrb.mxu2 %v7019_v63  ;;  %v7115_v46 = vor.u32 %v8097_v48, %v7112_v61  ;;  %v8093_v63 = vld [vmem:[#allocation8 + $0x38c] sm:$0xf]  ;;  %v7064_v23 = vld [vmem:[#allocation8 + $0x358] sm:$0xf0]  ;;  %v8131_v48 = vld [vmem:[#allocation10 + $0xb4] sm:$0xf0] }
 0x289   :  { %4090 = vmatmul.bf16.vlgmr.msra.gmra.mxu2 %v8772_v49  ;;  %v7099_v3 = vor.u32 %v8093_v63, %v7096_v47  ;;  %4558 = vmatpush.bf16.msra.mxu0 %v7207_v62  ;;  %v7334_v61 = vld [vmem:[#allocation10 + $0x170] sm:$0xf]  ;;  %v8155_v63 = vld [vmem:[#allocation10 + $0x174] sm:$0xf0]  ;;  %v8120_v47 = vld [vmem:[#allocation10 + $0x64] sm:$0xf] }
 0x28a   :  { %v7335_v40 = vor.u32 %v8155_v63, %v7334_v61  ;;  %v8127_v62 = vld [vmem:[#allocation10 + $0x94] sm:$0xf0] }
 0x28b   :  { %4096 = vmatpush.bf16.msra.mxu3 %v7127_v50  ;;  %4126 = vmatpush.bf16.msrb.mxu1 %v6811_v55  ;;  %v7067_v50 = vor.u32 %v8085_v51, %v7064_v23  ;;  %v8081_v55 = vld [vmem:[#allocation8 + $0x32c] sm:$0xf]  ;;  %v8129_v51 = vld [vmem:[#allocation10 + $0xa4] sm:$0xf0]  ;;  %v7326_v23 = vld [vmem:[#allocation10 + $0x160] sm:$0xf] }
 0x28c   :  { %4135 = vmatpush.bf16.msrb.mxu2 %v7003_v56  ;;  %v7048_v56 = vld [vmem:[#allocation8 + $0x338] sm:$0xf0]  ;;  %v8143_v63 = vld [vmem:[#allocation10 + $0x114] sm:$0xf0] }
 0x28d   :  { %v7051_v57 = vor.u32 %v8081_v55, %v7048_v56 }
 0x28f   :  { %4097 = vmatpush.bf16.msra.mxu3 %v7111_v0  ;;  %4127 = vmatpush.bf16.msrb.mxu1 %v6795_v5  ;;  %v7198_v5 = vld [vmem:[#allocation10 + $0x60] sm:$0xf] }
 0x290   :  { %4136 = vmatpush.bf16.msrb.mxu2 %v6987_v33  ;;  %v8121_v33 = vld [vmem:[#allocation10 + $0x64] sm:$0xf0] }
 0x291   :  { %v7199_v1 = vor.u32 %v8121_v33, %v7198_v5  ;;  %v7318_v5 = vld [vmem:[#allocation10 + $0x150] sm:$0xf]  ;;  %v7223_v33 = vor.u32 %v8127_v62, %v7222_v60  ;;  %v8171_v62 = vld [vmem:[#allocation10 + $0x1f4] sm:$0xf0] }
 0x293   :  { %4098 = vmatpush.bf16.msra.mxu3 %v7095_v21  ;;  %4128 = vmatpush.bf16.msrb.mxu1 %v6779_v35  ;;  %v8117_v21 = vld [vmem:[#allocation10 + $0x44] sm:$0xf0] }
 0x294   :  { %4137 = vmatpush.bf16.msrb.mxu2 %v6971_v42  ;;  %4559 = vmatpush.bf16.msra.mxu0 %v7199_v1  ;;  %v7183_v35 = vor.u32 %v8117_v21, %v7182_v34  ;;  %v7174_v42 = vld [vmem:[#allocation10 + $0x30] sm:$0xf]  ;;  %v8151_v1 = vld [vmem:[#allocation10 + $0x154] sm:$0xf0]  ;;  %v7187_v34 = vor.u32 %v8116_v41, %v7184_v15 }
 0x296   :  { %4051 = vmatmul.bf16.vlgmr.msrb.gmra.mxu3 %v8781_v45  ;;  %4129 = vmatmul.bf16.vlgmr.msrb.gmra.mxu1 %v8766_v24  ;;  %v6907_v24 = vor.u32 %v8045_v31, %v6904_v26  ;;  %v7150_v31 = vld [vmem:[#allocation10] sm:$0xf]  ;;  %v8109_v26 = vld [vmem:[#allocation10 + $0x4] sm:$0xf0] }
 0x297   :  { %4099 = vmatpush.bf16.msra.mxu3 %v7079_v12  ;;  %4571 = vmatpush.bf16.msra.mxu1 %v7271_v9  ;;  %v7151_v36 = vor.u32 %v8109_v26, %v7150_v31  ;;  %v8114_v9 = vld [vmem:[#allocation10 + $0x34] sm:$0xf]  ;;  %v7264_v31 = vld [vmem:[#allocation10 + $0xe8] sm:$0xf0] }
 0x298   :  { %4138 = vmatpush.bf16.msrb.mxu2 %v6955_v14  ;;  %4560 = vmatpush.bf16.msra.mxu0 %v7191_v2 }
 0x29b   :  { %4100 = vmatpush.bf16.msra.mxu3 %v7063_v18  ;;  %v8137_v18 = vld [vmem:[#allocation10 + $0xe4] sm:$0xf0] }
 0x29c   :  { %4139 = vmatpush.bf16.msrb.mxu2 %v6939_v19  ;;  %4561 = vmatpush.bf16.msra.mxu0 %v7183_v35  ;;  %v7158_v19 = vld [vmem:[#allocation10 + $0x10] sm:$0xf]  ;;  %v7263_v20 = vor.u32 %v8137_v18, %v7262_v16  ;;  %v7214_v35 = vld [vmem:[#allocation10 + $0x80] sm:$0xf]  ;;  %v7179_v16 = vor.u32 %v8114_v9, %v7176_v37  ;;  %v7272_v18 = vld [vmem:[#allocation10 + $0xf8] sm:$0xf0] }
 0x29d   :  { %v7328_v9 = vld [vmem:[#allocation10 + $0x168] sm:$0xf0] }
 0x29e   :  { %4572 = vmatpush.bf16.msra.mxu1 %v7263_v20  ;;  %v8147_v20 = vld [vmem:[#allocation10 + $0x134] sm:$0xf0] }
 0x29f   :  { %4101 = vmatpush.bf16.msra.mxu3 %v7047_v25  ;;  %v7159_v25 = vor.u32 %v8111_v6, %v7158_v19  ;;  %v7302_v6 = vld [vmem:[#allocation10 + $0x130] sm:$0xf] }
 0x2a0   :  { %4140 = vmatpush.bf16.msrb.mxu2 %v6923_v27  ;;  %v7255_v27 = vor.u32 %v8135_v11, %v7254_v13  ;;  %v7303_v13 = vor.u32 %v8147_v20, %v7302_v6  ;;  %v8112_v11 = vld [vmem:[#allocation10 + $0x24] sm:$0xf] }
 0x2a2   :  { %4573 = vmatpush.bf16.msra.mxu1 %v7255_v27  ;;  %v8136_v27 = vld [vmem:[#allocation10 + $0xe4] sm:$0xf] }
 0x2a3   :  { %4102 = vmatpush.bf16.msra.mxu3 %v7031_v39  ;;  %v8133_v39 = vld [vmem:[#allocation10 + $0xc4] sm:$0xf0]  ;;  %v7267_v26 = vor.u32 %v8136_v27, %v7264_v31  ;;  %v8150_v27 = vld [vmem:[#allocation10 + $0x154] sm:$0xf]  ;;  %v7320_v31 = vld [vmem:[#allocation10 + $0x158] sm:$0xf0] }
 0x2a4   :  { %4141 = vmatpush.bf16.msrb.mxu2 %v6907_v24  ;;  %v8122_v24 = vld [vmem:[#allocation10 + $0x74] sm:$0xf]  ;;  %v7247_v52 = vor.u32 %v8133_v39, %v7246_v54  ;;  %v7294_v54 = vld [vmem:[#allocation10 + $0x120] sm:$0xf] }
 0x2a6   :  { %4103 = vmatmul.bf16.vlgmr.msra.gmra.mxu3 %v8781_v45  ;;  %4574 = vmatpush.bf16.msra.mxu1 %v7247_v52  ;;  %v7160_v52 = vld [vmem:[#allocation10 + $0x18] sm:$0xf0] }
 0x2a7   :  { %4147 = vmatpush.bf16.msrb.mxu3 %v7147_v22  ;;  %4142 = vmatmul.bf16.vlgmr.msrb.gmra.mxu2 %v8772_v49  ;;  %v7032_v49 = vld [vmem:[#allocation8 + $0x318] sm:$0xf0] }
 0x2a8   :  { %v7035_v58 = vor.u32 %v8077_v29, %v7032_v49  ;;  %v7208_v22 = vld [vmem:[#allocation10 + $0x78] sm:$0xf0]  ;;  %4584 = vmatpush.bf16.msra.mxu2 %v7335_v40  ;;  %v8118_v49 = vld [vmem:[#allocation10 + $0x54] sm:$0xf]  ;;  %v7152_v40 = vld [vmem:[#allocation10 + $0x8] sm:$0xf0] }
 0x2a9   :  { %v7211_v43 = vor.u32 %v8122_v24, %v7208_v22  ;;  %v8110_v22 = vld [vmem:[#allocation10 + $0x14] sm:$0xf] }
 0x2ab   :  { %4148 = vmatpush.bf16.msrb.mxu3 %v7131_v44  ;;  %v7238_v44 = vld [vmem:[#allocation10 + $0xb0] sm:$0xf] }
 0x2af   :  { %4149 = vmatpush.bf16.msrb.mxu3 %v7115_v46  ;;  %v7239_v46 = vor.u32 %v8131_v48, %v7238_v44  ;;  %v7163_v44 = vor.u32 %v8110_v22, %v7160_v52  ;;  %v7256_v48 = vld [vmem:[#allocation10 + $0xd8] sm:$0xf0]  ;;  %v8124_v52 = vld [vmem:[#allocation10 + $0x84] sm:$0xf] }
 0x2b1   :  { %4575 = vmatpush.bf16.msra.mxu1 %v7239_v46  ;;  %v7286_v46 = vld [vmem:[#allocation10 + $0x110] sm:$0xf] }
 0x2b3   :  { %4150 = vmatpush.bf16.msrb.mxu3 %v7099_v3  ;;  %v7200_v3 = vld [vmem:[#allocation10 + $0x68] sm:$0xf0] }
 0x2b4   :  { %v7203_v32 = vor.u32 %v8120_v47, %v7200_v3  ;;  %v7287_v47 = vor.u32 %v8143_v63, %v7286_v46  ;;  %v8108_v3 = vld [vmem:[#allocation10 + $0x4] sm:$0xf]  ;;  %v7312_v46 = vld [vmem:[#allocation10 + $0x148] sm:$0xf0] }
 0x2b7   :  { %4151 = vmatpush.bf16.msrb.mxu3 %v7083_v38  ;;  %v7230_v38 = vld [vmem:[#allocation10 + $0xa0] sm:$0xf] }
 0x2b8   :  { %v7231_v56 = vor.u32 %v8129_v51, %v7230_v38  ;;  %v7155_v51 = vor.u32 %v8108_v3, %v7152_v40  ;;  %v7366_v3 = vld [vmem:[#allocation10 + $0x1b0] sm:$0xf]  ;;  %v8163_v40 = vld [vmem:[#allocation10 + $0x1b4] sm:$0xf0] }
 0x2ba   :  { %4576 = vmatpush.bf16.msra.mxu1 %v7231_v56 }
 0x2bb   :  { %4152 = vmatpush.bf16.msrb.mxu3 %v7067_v50  ;;  %v8153_v50 = vld [vmem:[#allocation10 + $0x164] sm:$0xf0] }
 0x2be   :  { %4577 = vmatpush.bf16.msra.mxu1 %v7223_v33  ;;  %v7240_v33 = vld [vmem:[#allocation10 + $0xb8] sm:$0xf0] }
 0x2bf   :  { %4153 = vmatpush.bf16.msrb.mxu3 %v7051_v57  ;;  %v7327_v57 = vor.u32 %v8153_v50, %v7326_v23  ;;  %v7248_v23 = vld [vmem:[#allocation10 + $0xc8] sm:$0xf0]  ;;  %v8810_v50 = vld [vmem:[%s8863_s9] sm:$0xf] }
 0x2c1   :  { %4585 = vmatpush.bf16.msra.mxu2 %v7327_v57 }
 0x2c3   :  { %4154 = vmatpush.bf16.msrb.mxu3 %v7035_v58  ;;  %v8791_v0 = vpop.f32.mrf.mxu0  ;;  %v7192_v58 = vld [vmem:[#allocation10 + $0x58] sm:$0xf0] }
 0x2c4   :  { %v7195_v59 = vor.u32 %v8118_v49, %v7192_v58  ;;  %v7278_v49 = vld [vmem:[#allocation10 + $0x100] sm:$0xf]  ;;  %v8141_v58 = vld [vmem:[#allocation10 + $0x104] sm:$0xf0] }
 0x2c5   :  { %v7279_v60 = vor.u32 %v8141_v58, %v7278_v49  ;;  %v7358_v58 = vld [vmem:[#allocation10 + $0x1a0] sm:$0xf] }
 0x2c6   :  { %4155 = vmatmul.bf16.vlgmr.msrb.gmra.mxu3 %v8781_v45  ;;  %v7175_v45 = vor.u32 %v8115_v7, %v7174_v42  ;;  %v8125_v42 = vld [vmem:[#allocation10 + $0x84] sm:$0xf0]  ;;  %v7310_v7 = vld [vmem:[#allocation10 + $0x140] sm:$0xf] }
 0x2c7   :  { %v7215_v10 = vor.u32 %v8125_v42, %v7214_v35  ;;  %v7390_v35 = vld [vmem:[#allocation10 + $0x1e0] sm:$0xf]  ;;  %v8169_v42 = vld [vmem:[#allocation10 + $0x1e4] sm:$0xf0] }
 0x2c8   :  { %4562 = vmatpush.bf16.msra.mxu0 %v7175_v45  ;;  %v8149_v45 = vld [vmem:[#allocation10 + $0x144] sm:$0xf0] }
 0x2c9   :  { %v7311_v53 = vor.u32 %v8149_v45, %v7310_v7  ;;  %4578 = vmatpush.bf16.msra.mxu1 %v7215_v10  ;;  %v8128_v7 = vld [vmem:[#allocation10 + $0xa4] sm:$0xf]  ;;  %v7232_v10 = vld [vmem:[#allocation10 + $0xa8] sm:$0xf0] }
 0x2ca   :  { %v8152_v45 = vld [vmem:[#allocation10 + $0x164] sm:$0xf] }
 0x2cb   :  { %v3963_v4 = vpop.f32.mrf.mxu0 }
 0x2cc   :  { %4563 = vmatpush.bf16.msra.mxu0 %v7167_v17  ;;  %v7319_v4 = vor.u32 %v8151_v1, %v7318_v5  ;;  %v8138_v17 = vld [vmem:[#allocation10 + $0xf4] sm:$0xf]  ;;  %v3304_v1 = vperm.slane %v8810_v50, 0 }
 0x2cd   :  { %v7275_v19 = vor.u32 %v8138_v17, %v7272_v18  ;;  %v8130_v5 = vld [vmem:[#allocation10 + $0xb4] sm:$0xf]  ;;  %v7382_v17 = vld [vmem:[#allocation10 + $0x1d0] sm:$0xf]  ;;  %v8167_v18 = vld [vmem:[#allocation10 + $0x1d4] sm:$0xf0] }
 0x2ce   :  { %4586 = vmatpush.bf16.msra.mxu2 %v7319_v4  ;;  %v7243_v15 = vor.u32 %v8130_v5, %v7240_v33  ;;  %v8154_v4 = vld [vmem:[#allocation10 + $0x174] sm:$0xf]  ;;  %v7296_v5 = vld [vmem:[#allocation10 + $0x128] sm:$0xf0]  ;;  %v7350_v33 = vld [vmem:[#allocation10 + $0x190] sm:$0xf] }
 0x2cf   :  { %4623 = vmatpush.bf16.msrb.mxu1 %v7275_v19  ;;  %v3962_v19 = vadd.f32 %v8791_v0, %v3304_v1  ;;  %v8165_v0 = vld [vmem:[#allocation10 + $0x1c4] sm:$0xf0]  ;;  %v8159_v1 = vld [vmem:[#allocation10 + $0x194] sm:$0xf0] }
 0x2d0   :  { %4564 = vmatpush.bf16.msra.mxu0 %v7159_v25  ;;  %v7168_v25 = vld [vmem:[#allocation10 + $0x28] sm:$0xf0] }
 0x2d2   :  { %4587 = vmatpush.bf16.msra.mxu2 %v7311_v53  ;;  %v7235_v53 = vor.u32 %v8128_v7, %v7232_v10  ;;  %v7351_v7 = vor.u32 %v8159_v1, %v7350_v33  ;;  %v7342_v10 = vld [vmem:[#allocation10 + $0x180] sm:$0xf] }
 0x2d3   :  { %v8793_v12 = vpop.f32.mrf.mxu1  ;;  %v8795_v14 = vpop.f32.mrf.mxu0  ;;  %4624 = vmatpush.bf16.msrb.mxu1 %v7267_v26 }
 0x2d4   :  { %4565 = vmatpush.bf16.msra.mxu0 %v7151_v36  ;;  %v8145_v36 = vld [vmem:[#allocation10 + $0x124] sm:$0xf0]  ;;  %v3975_v20 = vadd.f32 %v8793_v12, %v3962_v19 }
 0x2d5   :  { %v7295_v24 = vor.u32 %v8145_v36, %v7294_v54  ;;  %v7323_v54 = vor.u32 %v8150_v27, %v7320_v31  ;;  %v8168_v27 = vld [vmem:[#allocation10 + $0x1e4] sm:$0xf] }
 0x2d6   :  { %4588 = vmatpush.bf16.msra.mxu2 %v7303_v13  ;;  %v7383_v13 = vor.u32 %v8167_v18, %v7382_v17  ;;  %v8170_v17 = vld [vmem:[#allocation10 + $0x1f4] sm:$0xf] }
 0x2d8   :  { %4610 = vmatpush.bf16.msrb.mxu0 %v7211_v43  ;;  %v8134_v43 = vld [vmem:[#allocation10 + $0xd4] sm:$0xf] }
 0x2d9   :  { %v7259_v61 = vor.u32 %v8134_v43, %v7256_v48  ;;  %v7216_v43 = vld [vmem:[#allocation10 + $0x88] sm:$0xf0] }
 0x2da   :  { %4589 = vmatpush.bf16.msra.mxu2 %v7295_v24  ;;  %v7374_v24 = vld [vmem:[#allocation10 + $0x1c0] sm:$0xf] }
 0x2db   :  { %v3976_v28 = vpop.f32.mrf.mxu1  ;;  %v4015_v30 = vpop.f32.mrf.mxu0  ;;  %4625 = vmatpush.bf16.msrb.mxu1 %v7259_v61  ;;  %v7375_v12 = vor.u32 %v8165_v0, %v7374_v24  ;;  %v7219_v61 = vor.u32 %v8124_v52, %v7216_v43 }
 0x2dc   :  { %4611 = vmatpush.bf16.msrb.mxu0 %v7203_v32  ;;  %v7171_v30 = vor.u32 %v8112_v11, %v7168_v25  ;;  %v8132_v32 = vld [vmem:[#allocation10 + $0xc4] sm:$0xf]  ;;  %v8126_v11 = vld [vmem:[#allocation10 + $0x94] sm:$0xf]  ;;  %v7224_v25 = vld [vmem:[#allocation10 + $0x98] sm:$0xf0] }
 0x2dd   :  { %v7251_v56 = vor.u32 %v8132_v32, %v7248_v23  ;;  %v7367_v32 = vor.u32 %v8163_v40, %v7366_v3  ;;  %v7304_v23 = vld [vmem:[#allocation10 + $0x138] sm:$0xf0] }
 0x2de   :  { %4590 = vmatpush.bf16.msra.mxu2 %v7287_v47 }
 0x2df   :  { %4626 = vmatpush.bf16.msrb.mxu1 %v7251_v56  ;;  %v3305_v56 = vperm.slane %v8810_v50, 1 }
 0x2e0   :  { %4612 = vmatpush.bf16.msrb.mxu0 %v7195_v59  ;;  %v7398_v59 = vld [vmem:[#allocation10 + $0x1f0] sm:$0xf] }
 0x2e1   :  { %v7399_v41 = vor.u32 %v8171_v62, %v7398_v59  ;;  %v8161_v59 = vld [vmem:[#allocation10 + $0x1a4] sm:$0xf0] }
 0x2e2   :  { %4591 = vmatpush.bf16.msra.mxu2 %v7279_v60  ;;  %v8144_v60 = vld [vmem:[#allocation10 + $0x124] sm:$0xf]  ;;  %v7359_v62 = vor.u32 %v8161_v59, %v7358_v58  ;;  %v7344_v58 = vld [vmem:[#allocation10 + $0x188] sm:$0xf0] }
 0x2e3   :  { %v8797_v55 = vpop.f32.mrf.mxu1  ;;  %4597 = vmatpush.bf16.msra.mxu3 %v7399_v41  ;;  %4627 = vmatpush.bf16.msrb.mxu1 %v7243_v15  ;;  %v4014_v41 = vadd.f32 %v8795_v14, %v3305_v56  ;;  %v7400_v14 = vld [vmem:[#allocation10 + $0x1f8] sm:$0xf0] }
 0x2e4   :  { %4613 = vmatpush.bf16.msrb.mxu0 %v7187_v34  ;;  %v7336_v34 = vld [vmem:[#allocation10 + $0x178] sm:$0xf0] }
 0x2e5   :  { %v8799_v29 = vpop.f32.mrf.mxu0 }
 0x2e7   :  { %4628 = vmatpush.bf16.msrb.mxu1 %v7235_v53 }
 0x2e8   :  { %4614 = vmatpush.bf16.msrb.mxu0 %v7179_v16  ;;  %v7331_v16 = vor.u32 %v8152_v45, %v7328_v9  ;;  %v8157_v45 = vld [vmem:[#allocation10 + $0x184] sm:$0xf0]  ;;  %v8140_v9 = vld [vmem:[#allocation10 + $0x104] sm:$0xf] }
 0x2e9   :  { %v8801_v2 = vpop.f32.mrf.mxu2 }
 0x2eb   :  { %v4028_v21 = vpop.f32.mrf.mxu1 }
 0x2ec   :  { %4615 = vmatpush.bf16.msrb.mxu0 %v7171_v30  ;;  %v7339_v21 = vor.u32 %v8154_v4, %v7336_v34  ;;  %v7227_v30 = vor.u32 %v8126_v11, %v7224_v25  ;;  %v7299_v4 = vor.u32 %v8144_v60, %v7296_v5  ;;  %v8142_v34 = vld [vmem:[#allocation10 + $0x114] sm:$0xf]  ;;  %v3307_v60 = vperm.slane %v8810_v50, 3 }
 0x2ed   :  { %v4067_v8 = vpop.f32.mrf.mxu0 }
 0x2ee   :  { %v7391_v8 = vor.u32 %v8169_v42, %v7390_v35  ;;  %4636 = vmatpush.bf16.msrb.mxu2 %v7339_v21  ;;  %4629 = vmatpush.bf16.msrb.mxu1 %v7227_v30  ;;  %v7288_v21 = vld [vmem:[#allocation10 + $0x118] sm:$0xf0]  ;;  %v4027_v42 = vadd.f32 %v8797_v55, %v4014_v41 }
 0x2f0   :  { %4616 = vmatpush.bf16.msrb.mxu0 %v7163_v44  ;;  %4598 = vmatpush.bf16.msra.mxu3 %v7391_v8  ;;  %v8148_v44 = vld [vmem:[#allocation10 + $0x144] sm:$0xf]  ;;  %v7291_v8 = vor.u32 %v8142_v34, %v7288_v21 }
 0x2f1   :  { %v3989_v28 = vpop.f32.mrf.mxu2 }
 0x2f2   :  { %4637 = vmatpush.bf16.msrb.mxu2 %v7331_v16  ;;  %v3988_v28 = vadd.f32 %v8801_v2, %v3975_v20  ;;  %v7315_v2 = vor.u32 %v8148_v44, %v7312_v46  ;;  %4630 = vmatpush.bf16.msrb.mxu1 %v7219_v61  ;;  %v7280_v16 = vld [vmem:[#allocation10 + $0x108] sm:$0xf0]  ;;  %v8162_v46 = vld [vmem:[#allocation10 + $0x1b4] sm:$0xf] }
 0x2f3   :  { %v8803_v39 = vpop.f32.mrf.mxu1  ;;  %v7283_v20 = vor.u32 %v8140_v9, %v7280_v16 }
 0x2f4   :  { %4617 = vmatpush.bf16.msrb.mxu0 %v7155_v51  ;;  %4599 = vmatpush.bf16.msra.mxu3 %v7383_v13  ;;  %v8146_v51 = vld [vmem:[#allocation10 + $0x134] sm:$0xf]  ;;  %v7403_v13 = vor.u32 %v8170_v17, %v7400_v14  ;;  %v7456_v17 = vld [vmem:[#allocation11 + $0x68] sm:$0xf0] }
 0x2f6   :  { %4638 = vmatpush.bf16.msrb.mxu2 %v7323_v54  ;;  %v7384_v54 = vld [vmem:[#allocation10 + $0x1d8] sm:$0xf0] }
 0x2f8   :  { %4600 = vmatpush.bf16.msra.mxu3 %v7375_v12  ;;  %v7376_v12 = vld [vmem:[#allocation10 + $0x1c8] sm:$0xf0] }
 0x2f9   :  { %v8805_v38 = vpop.f32.mrf.mxu2 }
 0x2fa   :  { %4639 = vmatpush.bf16.msrb.mxu2 %v7315_v2  ;;  %v4040_v53 = vadd.f32 %v8805_v38, %v4027_v42  ;;  %v3306_v38 = vperm.slane %v8810_v50, 2  ;;  %v7368_v2 = vld [vmem:[#allocation10 + $0x1b8] sm:$0xf0] }
 0x2fb   :  { %v4080_v57 = vpop.f32.mrf.mxu1  ;;  %v7371_v3 = vor.u32 %v8162_v46, %v7368_v2  ;;  %v8202_v46 = vld [vmem:[#allocation11 + $0xf4] sm:$0xf]  ;;  %v7528_v2 = vld [vmem:[#allocation11 + $0xf8] sm:$0xf0] }
 0x2fc   :  { %v7307_v57 = vor.u32 %v8146_v51, %v7304_v23  ;;  %4601 = vmatpush.bf16.msra.mxu3 %v7367_v32  ;;  %v8160_v32 = vld [vmem:[#allocation10 + $0x1a4] sm:$0xf]  ;;  %v7352_v23 = vld [vmem:[#allocation10 + $0x198] sm:$0xf0] }
 0x2fe   :  { %4640 = vmatpush.bf16.msrb.mxu2 %v7307_v57 }
 0x300   :  { %4602 = vmatpush.bf16.msra.mxu3 %v7359_v62 }
 0x301   :  { %v4041_v6 = vpop.f32.mrf.mxu2 }
 0x302   :  { %4641 = vmatpush.bf16.msrb.mxu2 %v7299_v4  ;;  %v7343_v6 = vor.u32 %v8157_v45, %v7342_v10  ;;  %v8186_v10 = vld [vmem:[#allocation11 + $0x74] sm:$0xf]  ;;  %v7464_v45 = vld [vmem:[#allocation11 + $0x78] sm:$0xf0] }
 0x303   :  { %v8813_v37 = vpop.f32.mrf.mxu0  ;;  %v7467_v9 = vor.u32 %v8186_v10, %v7464_v45  ;;  %v7406_v10 = vld [vmem:[#allocation11] sm:$0xf] }
 0x304   :  { %4603 = vmatpush.bf16.msra.mxu3 %v7351_v7  ;;  %v4118_v62 = vadd.f32 %v8813_v37, %v3307_v60  ;;  %v7462_v7 = vld [vmem:[#allocation11 + $0x70] sm:$0xf]  ;;  %v7454_v37 = vld [vmem:[#allocation11 + $0x60] sm:$0xf] }
 0x305   :  { %v7414_v60 = vld [vmem:[#allocation11 + $0x10] sm:$0xf]  ;;  %v7502_v45 = vld [vmem:[#allocation11 + $0xc0] sm:$0xf] }
 0x306   :  { %4642 = vmatpush.bf16.msrb.mxu2 %v7291_v8  ;;  %v8187_v8 = vld [vmem:[#allocation11 + $0x74] sm:$0xf0] }
 0x307   :  { %v7463_v50 = vor.u32 %v8187_v8, %v7462_v7  ;;  %v7512_v7 = vld [vmem:[#allocation11 + $0xd8] sm:$0xf0] }
 0x308   :  { %4604 = vmatpush.bf16.msra.mxu3 %v7343_v6  ;;  %v8182_v6 = vld [vmem:[#allocation11 + $0x54] sm:$0xf] }
 0x309   :  { %v4000_v26 = vpop.f32.mrf.mxu3 }
 0x30a   :  { %v4001_v36 = vadd.f32 %v4000_v26, %v3988_v28  ;;  %4643 = vmatpush.bf16.msrb.mxu2 %v7283_v20  ;;  %v7392_v28 = vld [vmem:[#allocation10 + $0x1e8] sm:$0xf0]  ;;  %v8166_v26 = vld [vmem:[#allocation10 + $0x1d4] sm:$0xf] }
 0x30b   :  { %v4119_v22 = vpop.f32.mrf.mxu0  ;;  %v7395_v30 = vor.u32 %v8168_v27, %v7392_v28  ;;  %v7387_v24 = vor.u32 %v8166_v26, %v7384_v54  ;;  %v7438_v27 = vld [vmem:[#allocation11 + $0x40] sm:$0xf]  ;;  %v8181_v28 = vld [vmem:[#allocation11 + $0x44] sm:$0xf0]  ;;  %v7430_v54 = vld [vmem:[#allocation11 + $0x30] sm:$0xf] }
 0x30c   :  { %v4160_v48 = vmax.f32 %v4001_v36, 0.0  ;;  %v8818_v63 = vpop.f32.mrf.mxu2  ;;  %4649 = vmatpush.bf16.msrb.mxu3 %v7403_v13  ;;  %v4066_v36 = vadd.f32 %v8799_v29, %v3306_v38  ;;  %v8164_v22 = vld [vmem:[#allocation10 + $0x1c4] sm:$0xf]  ;;  %v7360_v29 = vld [vmem:[#allocation10 + $0x1a8] sm:$0xf0] }
 0x30d   :  { %v7379_v43 = vor.u32 %v8164_v22, %v7376_v12  ;;  %v7363_v51 = vor.u32 %v8160_v32, %v7360_v29  ;;  %v7448_v13 = vld [vmem:[#allocation11 + $0x58] sm:$0xf0]  ;;  %v8180_v38 = vld [vmem:[#allocation11 + $0x44] sm:$0xf]  ;;  %v7518_v32 = vld [vmem:[#allocation11 + $0xe0] sm:$0xf] }
 0x30e   :  { %v4164_v47 = vpack.c.bf16 %v4160_v48, %v4160_v48  ;;  %v4079_v0 = vadd.f32 %v8803_v39, %v4066_v36  ;;  %v8158_v39 = vld [vmem:[#allocation10 + $0x194] sm:$0xf]  ;;  %v8179_v36 = vld [vmem:[#allocation11 + $0x34] sm:$0xf0] }
 0x30f   :  { %v7355_v57 = vor.u32 %v8158_v39, %v7352_v23  ;;  %v7431_v12 = vor.u32 %v8179_v36, %v7430_v54  ;;  %v8176_v39 = vld [vmem:[#allocation11 + $0x24] sm:$0xf]  ;;  %v7424_v23 = vld [vmem:[#allocation11 + $0x28] sm:$0xf0] }
 0x310   :  { %4566 = vmatmul.bf16.vlgmr.msra.gmra.mxu0 %v4164_v47  ;;  %4650 = vmatpush.bf16.msrb.mxu3 %v7395_v30  ;;  %v4092_v52 = vadd.f32 %v8818_v63, %v4079_v0  ;;  %v7439_v30 = vor.u32 %v8181_v28, %v7438_v27  ;;  %v8194_v27 = vld [vmem:[#allocation11 + $0xb4] sm:$0xf]  ;;  %v8192_v54 = vld [vmem:[#allocation11 + $0xa4] sm:$0xf] }
 0x311   :  { %v4002_v49 = vpop.f32.mrf.mxu3  ;;  %4864 = vmatpush.bf16.msra.mxu0 %v7463_v50  ;;  %v8173_v50 = vld [vmem:[#allocation11 + $0x4] sm:$0xf0] }
 0x312   :  { %v8156_v49 = vld [vmem:[#allocation10 + $0x184] sm:$0xf] }
 0x313   :  { %v8822_v15 = vpop.f32.mrf.mxu1  ;;  %v7347_v59 = vor.u32 %v8156_v49, %v7344_v58  ;;  %v7520_v49 = vld [vmem:[#allocation11 + $0xe8] sm:$0xf0] }
 0x314   :  { %v4093_v35 = vpop.f32.mrf.mxu2  ;;  %4651 = vmatpush.bf16.msrb.mxu3 %v7387_v24  ;;  %v4131_v5 = vadd.f32 %v8822_v15, %v4118_v62  ;;  %v8185_v15 = vld [vmem:[#allocation11 + $0x64] sm:$0xf0]  ;;  %v7526_v24 = vld [vmem:[#allocation11 + $0xf0] sm:$0xf]  ;;  %v8175_v62 = vld [vmem:[#allocation11 + $0x14] sm:$0xf0] }
 0x315   :  { %v7455_v16 = vor.u32 %v8185_v15, %v7454_v37  ;;  %v8197_v37 = vld [vmem:[#allocation11 + $0xc4] sm:$0xf0]  ;;  %v8172_v15 = vld [vmem:[#allocation11 + $0x4] sm:$0xf] }
 0x317   :  { %4865 = vmatpush.bf16.msra.mxu0 %v7455_v16 }
 0x318   :  { %4652 = vmatpush.bf16.msrb.mxu3 %v7379_v43  ;;  %v8178_v43 = vld [vmem:[#allocation11 + $0x34] sm:$0xf] }
 0x319   :  { %v4052_v18 = vpop.f32.mrf.mxu3 }
 0x31a   :  { %v4053_v19 = vadd.f32 %v4052_v18, %v4040_v53  ;;  %v8184_v53 = vld [vmem:[#allocation11 + $0x64] sm:$0xf]  ;;  %v7446_v18 = vld [vmem:[#allocation11 + $0x50] sm:$0xf] }
 0x31b   :  { %v4132_v11 = vpop.f32.mrf.mxu1  ;;  %v7459_v14 = vor.u32 %v8184_v53, %v7456_v17  ;;  %v7408_v53 = vld [vmem:[#allocation11 + $0x8] sm:$0xf0]  ;;  %v7503_v17 = vor.u32 %v8197_v37, %v7502_v45  ;;  %v8218_v45 = vld [vmem:[#allocation13 + $0x70] sm:$0xff] }
 0x31c   :  { %v4161_v55 = vmax.f32 %v4053_v19, 0.0  ;;  %4653 = vmatpush.bf16.msrb.mxu3 %v7371_v3  ;;  %v8183_v19 = vld [vmem:[#allocation11 + $0x54] sm:$0xf0]  ;;  %v7422_v3 = vld [vmem:[#allocation11 + $0x20] sm:$0xf]  ;;  %v8217_v37 = vld [vmem:[#allocation13 + $0x68] sm:$0xff] }
 0x31d   :  { %v7447_v20 = vor.u32 %v8183_v19, %v7446_v18  ;;  %v8196_v18 = vld [vmem:[#allocation11 + $0xc4] sm:$0xf]  ;;  %v7504_v19 = vld [vmem:[#allocation11 + $0xc8] sm:$0xf0] }
 0x31e   :  { %v4165_v25 = vpack.c.bf16 %v4161_v55, %v4161_v55 }
 0x31f   :  { %4866 = vmatpush.bf16.msra.mxu0 %v7447_v20 }
 0x320   :  { %4579 = vmatmul.bf16.vlgmr.msra.gmra.mxu1 %v4165_v25  ;;  %4618 = vmatmul.bf16.vlgmr.msrb.gmra.mxu0 %v4164_v47 }
 0x321   :  { %v4054_v31 = vpop.f32.mrf.mxu3  ;;  %4654 = vmatpush.bf16.msrb.mxu3 %v7363_v51  ;;  %v8201_v51 = vld [vmem:[#allocation11 + $0xe4] sm:$0xf0] }
 0x322   :  { %v7440_v31 = vld [vmem:[#allocation11 + $0x48] sm:$0xf0] }
 0x323   :  { %v7443_v26 = vor.u32 %v8180_v38, %v7440_v31  ;;  %4867 = vmatpush.bf16.msra.mxu0 %v7439_v30  ;;  %v7496_v38 = vld [vmem:[#allocation11 + $0xb8] sm:$0xf0]  ;;  %v7486_v31 = vld [vmem:[#allocation11 + $0xa0] sm:$0xf] }
 0x324   :  { %v7499_v30 = vor.u32 %v8194_v27, %v7496_v38 }
 0x325   :  { %4655 = vmatpush.bf16.msrb.mxu3 %v7355_v57  ;;  %v8200_v57 = vld [vmem:[#allocation11 + $0xe4] sm:$0xf] }
 0x326   :  { %v7523_v58 = vor.u32 %v8200_v57, %v7520_v49 }
 0x327   :  { %4868 = vmatpush.bf16.msra.mxu0 %v7431_v12  ;;  %v7478_v12 = vld [vmem:[#allocation11 + $0x90] sm:$0xf] }
 0x329   :  { %v4104_v44 = vpop.f32.mrf.mxu3  ;;  %4656 = vmatpush.bf16.msrb.mxu3 %v7347_v59 }
 0x32a   :  { %v4105_v48 = vadd.f32 %v4104_v44, %v4092_v52  ;;  %v4143_v61 = vpop.f32.mrf.mxu2  ;;  %v8203_v52 = vld [vmem:[#allocation11 + $0xf4] sm:$0xf0]  ;;  %v7432_v44 = vld [vmem:[#allocation11 + $0x38] sm:$0xf0] }
 0x32b   :  { %v4144_v33 = vadd.f32 %v4143_v61, %v4131_v5  ;;  %v7435_v61 = vor.u32 %v8178_v43, %v7432_v44  ;;  %v7510_v5 = vld [vmem:[#allocation11 + $0xd0] sm:$0xf]  ;;  %v8190_v43 = vld [vmem:[#allocation11 + $0x94] sm:$0xf] }
 0x32c   :  { %v4162_v47 = vmax.f32 %v4105_v48, 0.0  ;;  %v7527_v48 = vor.u32 %v8203_v52, %v7526_v24  ;;  %v7488_v24 = vld [vmem:[#allocation11 + $0xa8] sm:$0xf0]  ;;  %v8191_v52 = vld [vmem:[#allocation11 + $0x94] sm:$0xf0] }
 0x32d   :  { %v7479_v44 = vor.u32 %v8191_v52, %v7478_v12 }
 0x32e   :  { %v4166_v40 = vpack.c.bf16 %v4162_v47, %v4162_v47  ;;  %v7531_v47 = vor.u32 %v8202_v46, %v7528_v2  ;;  %4877 = vmatpush.bf16.msra.mxu1 %v7527_v48  ;;  %v7480_v48 = vld [vmem:[#allocation11 + $0x98] sm:$0xf0]  ;;  %v7470_v46 = vld [vmem:[#allocation11 + $0x80] sm:$0xf]  ;;  %v8189_v2 = vld [vmem:[#allocation11 + $0x84] sm:$0xf0] }
 0x330   :  { %4592 = vmatmul.bf16.vlgmr.msra.gmra.mxu2 %v4166_v40  ;;  %4631 = vmatmul.bf16.vlgmr.msrb.gmra.mxu1 %v4165_v25  ;;  %v7451_v25 = vor.u32 %v8182_v6, %v7448_v13  ;;  %v7507_v6 = vor.u32 %v8196_v18, %v7504_v19  ;;  %v7494_v13 = vld [vmem:[#allocation11 + $0xb0] sm:$0xf]  ;;  %v8213_v18 = vld [vmem:[#allocation13 + $0x48] sm:$0xff]  ;;  %v8212_v19 = vld [vmem:[#allocation13 + $0x40] sm:$0xff] }
 0x331   :  { %v4106_v56 = vpop.f32.mrf.mxu3  ;;  %4890 = vmatpush.bf16.msra.mxu2 %v7467_v9  ;;  %v7407_v9 = vor.u32 %v8173_v50, %v7406_v10  ;;  %v8209_v50 = vld [vmem:[#allocation13 + $0x28] sm:$0xff] }
 0x332   :  { %v4145_v63 = vpop.f32.mrf.mxu2  ;;  %v7519_v56 = vor.u32 %v8201_v51, %v7518_v32  ;;  %v4232_v51 = vld [vmem:[#allocation16] sm:$0x3] }
 0x333   :  { %v7427_v63 = vor.u32 %v8176_v39, %v7424_v23  ;;  %v4234_v39 = vperm.slane %v4232_v51, 0  ;;  %v8211_v23 = vld [vmem:[#allocation13 + $0x38] sm:$0xff] }
 0x334   :  { %4878 = vmatpush.bf16.msra.mxu1 %v7519_v56  ;;  %v8219_v56 = vld [vmem:[#allocation13 + $0x78] sm:$0xff] }
 0x335   :  { %4891 = vmatpush.bf16.msra.mxu2 %v7459_v14  ;;  %v7411_v14 = vor.u32 %v8172_v15, %v7408_v53  ;;  %v8207_v15 = vld [vmem:[#allocation13 + $0x18] sm:$0xff] }
 0x336   :  { %v8215_v53 = vld [vmem:[#allocation13 + $0x58] sm:$0xff] }
 0x339   :  { %4892 = vmatpush.bf16.msra.mxu2 %v7451_v25  ;;  %v8195_v25 = vld [vmem:[#allocation11 + $0xb4] sm:$0xf0] }
 0x33a   :  { %v7495_v28 = vor.u32 %v8195_v25, %v7494_v13  ;;  %v4698_v13 = vld [vmem:[%s8865_s11] sm:$0x3] }
 0x33b   :  { %v4700_v27 = vperm.slane %v4698_v13, 0 }
 0x33d   :  { %4893 = vmatpush.bf16.msra.mxu2 %v7443_v26  ;;  %v8193_v26 = vld [vmem:[#allocation11 + $0xa4] sm:$0xf0] }
 0x33e   :  { %v7487_v36 = vor.u32 %v8193_v26, %v7486_v31  ;;  %v4701_v31 = vperm.slane %v4698_v13, 1 }
 0x340   :  { %4644 = vmatmul.bf16.vlgmr.msrb.gmra.mxu2 %v4166_v40  ;;  %v8177_v40 = vld [vmem:[#allocation11 + $0x24] sm:$0xf0] }
 0x341   :  { %4894 = vmatpush.bf16.msra.mxu2 %v7435_v61  ;;  %v7423_v29 = vor.u32 %v8177_v40, %v7422_v3  ;;  %v7483_v61 = vor.u32 %v8190_v43, %v7480_v48  ;;  %v7471_v3 = vor.u32 %v8189_v2, %v7470_v46  ;;  %v7472_v40 = vld [vmem:[#allocation11 + $0x88] sm:$0xf0] }
 0x343   :  { %4869 = vmatpush.bf16.msra.mxu0 %v7423_v29 }
 0x345   :  { %4895 = vmatpush.bf16.msra.mxu2 %v7427_v63  ;;  %v8210_v63 = vld [vmem:[#allocation13 + $0x30] sm:$0xff] }
 0x349   :  { %v4156_v1 = vpop.f32.mrf.mxu3 }
 0x34a   :  { %v4157_v41 = vadd.f32 %v4156_v1, %v4144_v33  ;;  %v7415_v33 = vor.u32 %v8175_v62, %v7414_v60  ;;  %v8199_v1 = vld [vmem:[#allocation11 + $0xd4] sm:$0xf0] }
 0x34c   :  { %v4163_v4 = vmax.f32 %v4157_v41, 0.0  ;;  %v8174_v41 = vld [vmem:[#allocation11 + $0x14] sm:$0xf]  ;;  %4870 = vmatpush.bf16.msra.mxu0 %v7415_v33 }
 0x34e   :  { %v4167_v34 = vpack.c.bf16 %v4163_v4, %v4163_v4  ;;  %v7416_v4 = vld [vmem:[#allocation11 + $0x18] sm:$0xf0] }
 0x350   :  { %4605 = vmatmul.bf16.vlgmr.msra.gmra.mxu3 %v4167_v34  ;;  %4871 = vmatpush.bf16.msra.mxu0 %v7407_v9  ;;  %v8208_v9 = vld [vmem:[#allocation13 + $0x20] sm:$0xff] }
 0x351   :  { %v4158_v21 = vpop.f32.mrf.mxu3  ;;  %4903 = vmatpush.bf16.msra.mxu3 %v7531_v47  ;;  %v8188_v47 = vld [vmem:[#allocation11 + $0x84] sm:$0xf] }
 0x352   :  { %v7419_v21 = vor.u32 %v8174_v41, %v7416_v4  ;;  %v7475_v29 = vor.u32 %v8188_v47, %v7472_v40  ;;  %v4235_v41 = vperm.slane %v4232_v51, 1 }
 0x354   :  { %4896 = vmatpush.bf16.msra.mxu2 %v7419_v21  ;;  %5052 = vmatpush.bf16.msrb.mxu0 %v8211_v23 }
 0x355   :  { %4904 = vmatpush.bf16.msra.mxu3 %v7523_v58 }
 0x358   :  { %4897 = vmatpush.bf16.msra.mxu2 %v7411_v14  ;;  %5053 = vmatpush.bf16.msrb.mxu0 %v8210_v63  ;;  %v8204_v14 = vld [vmem:[#allocation13] sm:$0xff] }
 0x35c   :  { %5054 = vmatpush.bf16.msrb.mxu0 %v8209_v50 }
 0x360   :  { %4657 = vmatmul.bf16.vlgmr.msrb.gmra.mxu3 %v4167_v34  ;;  %v7511_v34 = vor.u32 %v8199_v1, %v7510_v5  ;;  %5055 = vmatpush.bf16.msrb.mxu0 %v8208_v9 }
 0x362   :  { %4879 = vmatpush.bf16.msra.mxu1 %v7511_v34 }
 0x364   :  { %5056 = vmatpush.bf16.msrb.mxu0 %v8207_v15 }
 0x366   :  { %4880 = vmatpush.bf16.msra.mxu1 %v7503_v17  ;;  %v8214_v17 = vld [vmem:[#allocation13 + $0x50] sm:$0xff] }
 0x36a   :  { %4881 = vmatpush.bf16.msra.mxu1 %v7495_v28 }
 0x36e   :  { %4882 = vmatpush.bf16.msra.mxu1 %v7487_v36 }
 0x372   :  { %4883 = vmatpush.bf16.msra.mxu1 %v7479_v44 }
 0x376   :  { %4884 = vmatpush.bf16.msra.mxu1 %v7471_v3 }
 0x37a   :  { %5065 = vmatpush.bf16.msrb.mxu1 %v8219_v56 }
 0x37e   :  { %5066 = vmatpush.bf16.msrb.mxu1 %v8218_v45 }
 0x382   :  { %5067 = vmatpush.bf16.msrb.mxu1 %v8217_v37 }
 0x38d   :  { %v8833_v35 = vpop.f32.mrf.mxu0 }
 0x38e   :  { %v4568_v57 = vadd.f32 %v8833_v35, %v4234_v39 }
 0x395   :  { %v4569_v42 = vpop.f32.mrf.mxu0 }
 0x396   :  { %v8198_v42 = vld [vmem:[#allocation11 + $0xd4] sm:$0xf] }
 0x397   :  { %v7515_v8 = vor.u32 %v8198_v42, %v7512_v7 }
 0x399   :  { %4905 = vmatpush.bf16.msra.mxu3 %v7515_v8 }
 0x39d   :  { %v8835_v55 = vpop.f32.mrf.mxu1  ;;  %v8837_v11 = vpop.f32.mrf.mxu0  ;;  %4906 = vmatpush.bf16.msra.mxu3 %v7507_v6 }
 0x39e   :  { %v4581_v58 = vadd.f32 %v8835_v55, %v4568_v57  ;;  %v4620_v34 = vadd.f32 %v8837_v11, %v4235_v41  ;;  %v8216_v11 = vld [vmem:[#allocation13 + $0x60] sm:$0xff] }
 0x39f   :  { %5068 = vmatpush.bf16.msrb.mxu1 %v8216_v11 }
 0x3a1   :  { %4907 = vmatpush.bf16.msra.mxu3 %v7499_v30 }
 0x3a3   :  { %5069 = vmatpush.bf16.msrb.mxu1 %v8215_v53 }
 0x3a5   :  { %v4582_v0 = vpop.f32.mrf.mxu1  ;;  %v4621_v22 = vpop.f32.mrf.mxu0 }
 0x3a6   :  { %v7491_v0 = vor.u32 %v8192_v54, %v7488_v24 }
 0x3a7   :  { %5070 = vmatpush.bf16.msrb.mxu1 %v8214_v17 }
 0x3a8   :  { %4908 = vmatpush.bf16.msra.mxu3 %v7491_v0 }
 0x3ab   :  { %5071 = vmatpush.bf16.msrb.mxu1 %v8213_v18 }
 0x3ac   :  { %4909 = vmatpush.bf16.msra.mxu3 %v7483_v61  ;;  %v8236_v61 = vld [vmem:[%s8866_s12] ss:$0 sm:$0xff] }
 0x3ad   :  { %v8839_v59 = vpop.f32.mrf.mxu1 }
 0x3ae   :  { %v4633_v21 = vadd.f32 %v8839_v59, %v4620_v34  ;;  %v8206_v59 = vld [vmem:[#allocation13 + $0x10] sm:$0xff] }
 0x3af   :  { %5057 = vmatpush.bf16.msrb.mxu0 %v8206_v59  ;;  %5072 = vmatpush.bf16.msrb.mxu1 %v8212_v19 }
 0x3b0   :  { %4910 = vmatpush.bf16.msra.mxu3 %v7475_v29 }
 0x3b3   :  { %v4593_v16 = vpop.f32.mrf.mxu2 }
 0x3b4   :  { %v4594_v60 = vadd.f32 %v4593_v16, %v4581_v58  ;;  %v8205_v16 = vld [vmem:[#allocation13 + $0x8] sm:$0xff] }
 0x3b5   :  { %v4634_v20 = vpop.f32.mrf.mxu1  ;;  %5058 = vmatpush.bf16.msrb.mxu0 %v8205_v16 }
 0x3b9   :  { %5059 = vmatpush.bf16.msrb.mxu0 %v8204_v14 }
 0x3bb   :  { %v4595_v22 = vpop.f32.mrf.mxu2 }
 0x3c3   :  { %v4645_v32 = vpop.f32.mrf.mxu2 }
 0x3c4   :  { %v4646_v42 = vadd.f32 %v4645_v32, %v4633_v21 }
 0x3cb   :  { %v4647_v49 = vpop.f32.mrf.mxu2 }
 0x3d3   :  { %v4606_v62 = vpop.f32.mrf.mxu3 }
 0x3d4   :  { %v4607_v5 = vadd.f32 %v4606_v62, %v4594_v60 }
 0x3d6   :  { %v4662_v33 = vmax.f32 %v4607_v5, 0.0 }
 0x3d8   :  { %v4664_v1 = vpack.c.bf16 %v4662_v33, %v4662_v33 }
 0x3da   :  { %4872 = vmatmul.bf16.vlgmr.msra.gmra.mxu0 %v4664_v1  ;;  %4898 = vmatmul.bf16.vlgmr.msra.gmra.mxu2 %v4664_v1 }
 0x3db   :  { %v4608_v4 = vpop.f32.mrf.mxu3 }
 0x3e3   :  { %v4658_v7 = vpop.f32.mrf.mxu3 }
 0x3e4   :  { %v4659_v35 = vadd.f32 %v4658_v7, %v4646_v42 }
 0x3e6   :  { %v4663_v8 = vmax.f32 %v4659_v35, 0.0 }
 0x3e8   :  { %v4665_v10 = vpack.c.bf16 %v4663_v8, %v4663_v8 }
 0x3ea   :  { %4885 = vmatmul.bf16.vlgmr.msra.gmra.mxu1 %v4665_v10  ;;  %4911 = vmatmul.bf16.vlgmr.msra.gmra.mxu3 %v4665_v10 }
 0x3eb   :  { %v4660_v55 = vpop.f32.mrf.mxu3 }
 0x457   :  { %v4873_v6 = vpop.f32.mrf.mxu0 }
 0x458   :  { %v4874_v38 = vadd.f32 %v4873_v6, %v4700_v27 }
 0x45d   :  { %v4899_v20 = vpop.f32.mrf.mxu2 }
 0x45e   :  { %v4900_v36 = vadd.f32 %v4899_v20, %v4701_v31 }
 0x45f   :  { %v4875_v25 = vpop.f32.mrf.mxu0 }
 0x465   :  { %v4901_v28 = vpop.f32.mrf.mxu2 }
 0x467   :  { %v4886_v30 = vpop.f32.mrf.mxu1 }
 0x468   :  { %v4887_v26 = vadd.f32 %v4886_v30, %v4874_v38 }
 0x46a   :  { %v4916_v54 = vmax.f32 %v4887_v26, 0.0 }
 0x46c   :  { %v4918_v24 = vpack.c.bf16 %v4916_v54, %v4916_v54 }
 0x46d   :  { %v4912_v0 = vpop.f32.mrf.mxu3 }
 0x46e   :  { %v4913_v22 = vadd.f32 %v4912_v0, %v4900_v36  ;;  %5060 = vmatmul.bf16.vlgmr.msrb.gmra.mxu0 %v4918_v24 }
 0x46f   :  { %v4888_v12 = vpop.f32.mrf.mxu1 }
 0x470   :  { %v4917_v52 = vmax.f32 %v4913_v22, 0.0 }
 0x472   :  { %v4919_v43 = vpack.c.bf16 %v4917_v52, %v4917_v52 }
 0x474   :  { %5073 = vmatmul.bf16.vlgmr.msrb.gmra.mxu1 %v4919_v43 }
 0x475   :  { %v4914_v44 = vpop.f32.mrf.mxu3 }
 0x4eb   :  { %v5061_v48 = vpop.f32.mrf.mxu0 }
 0x4ec   :  { %v5062_v46 = vadd.f32 %v8236_v61, %v5061_v48 }
 0x4f1   :  { %v5074_v2 = vpop.f32.mrf.mxu1 }
 0x4f2   :  { %v5075_v47 = vadd.f32 %v5074_v2, %v5062_v46 }
 0x4f3   :  { %v5063_v3 = vpop.f32.mrf.mxu0 }
 0x4f4   :  { %5078 = vst [vmem:[#allocation17] sm:$0x3] %v5075_v47 }
 0x4f5   :  { %5089 = dma.vmem_to_hbm [thread:$0]  %s5085_s21, 32, %s5087_s23, [#allocation4]  }
 0x4f9   :  { %v5076_v40 = vpop.f32.mrf.mxu1 }
 0x4fa   :  { %8488 = dma.done.wait [#allocation4], 32  }
 0x4fb   :  { %8489 = vsyncadd [#allocation4], 4294967264 }
 0x4fc   :  { %5094 = vsyncpa [#allocation3], 1 }
 0x4fd   :  { %5095 = vsyncpa [#allocation6], 1 }
 0x4fe   :  { %5096 = vsyncpa [#allocation9], 1 }
 0x4ff   :  { %5097 = vsyncpa [#allocation12], 1 }
 0x500   :  { %5098 = vsyncpa [#allocation15], 1 }
 0x501   :  { %5099 = vsyncpa [#allocation4], 1 }

// kernel: tpu_custom_call.1
= control target key start
LH: loop header
LB: loop body
LE: loop exit
PB: predicated region body
PF: predicated region fallthrough
CT: control target
= control target key end

     0   :  { %18 = vsyncpa [#allocation3], 0  ;;  %s8854_s0 = inlined_call_operand.hbm [shape: f32[2,1024], index: 0, kind: input, shape index: {}]   ;;  %s8855_s1 = inlined_call_operand.hbm [shape: bf16[1024,512], index: 1, kind: input, shape index: {}]   ;;  %s8856_s2 = inlined_call_operand.hbm [shape: bf16[512,512], index: 2, kind: input, shape index: {}]   ;;  %s8857_s3 = inlined_call_operand.hbm [shape: bf16[512,512], index: 3, kind: input, shape index: {}]   ;;  %s8858_s4 = inlined_call_operand.hbm [shape: bf16[512,256], index: 4, kind: input, shape index: {}]   ;;  %s8859_s5 = inlined_call_operand.hbm [shape: bf16[256,256], index: 5, kind: input, shape index: {}]   ;;  %s8860_s6 = inlined_call_operand.hbm [shape: bf16[256,128], index: 6, kind: input, shape index: {}]   ;;  %s8861_s7 = inlined_call_operand.vmem [shape: f32[1,512], index: 7, kind: input, shape index: {}]   ;;  %s8862_s8 = inlined_call_operand.hbm [shape: f32[1,512], index: 8, kind: input, shape index: {}]   ;;  %s8863_s9 = inlined_call_operand.vmem [shape: f32[1,512], index: 9, kind: input, shape index: {}]   ;;  %s8864_s10 = inlined_call_operand.hbm [shape: f32[1,256], index: 10, kind: input, shape index: {}]   ;;  %s8865_s11 = inlined_call_operand.vmem [shape: f32[1,256], index: 11, kind: input, shape index: {}]   ;;  %s8866_s12 = inlined_call_operand.vmem [shape: f32[1,128], index: 12, kind: input, shape index: {}]   ;;  %s8867_s13 = inlined_call_operand.hbm [shape: f32[2,128], index: 13, kind: output, shape index: {}]  }
   0x1   :  { %19 = vsyncpa [#allocation6], 0 }
   0x2   :  { %20 = vsyncpa [#allocation9], 0 }
   0x3   :  { %21 = vsyncpa [#allocation12], 0 }
   0x4   :  { %22 = vsyncpa [#allocation15], 0  ;;  %s39_s27 = sshll.u32 %s8855_s1, 4  ;;  %s40_s27 = int_to_ptr.hbm [resolvable:$true] %s39_s27 }
   0x5   :  { %23 = vsyncpa [#allocation4], 0  ;;  %s8490_s28 = smov [#allocation5]   ;;  %s65_s15 = sshll.u32 %s8857_s3, 4  ;;  %s66_s15 = int_to_ptr.hbm [resolvable:$true] %s65_s15 }
   0x6   :  { %s41_s29 = sshll.u32 %s8490_s28, 4  ;;  %s8491_s16 = smov 256   ;;  %s42_s29 = int_to_ptr.vmem [resolvable:$true] %s41_s29 }
   0x7   :  { %s8492_s17 = smov 16   ;;  %s8493_s18 = smov [#allocation8]  }
   0x8   :  { %47 = dma.hbm_to_vmem [thread:$0]  %s40_s27, 32768, %s42_s29, [#allocation6], %s8491_s16, %s8491_s16, %s8492_s17  }
   0x9   :  { %s67_s19 = sshll.u32 %s8493_s18, 4  ;;  %s91_s21 = sshll.u32 %s8859_s5, 4  ;;  %s68_s19 = int_to_ptr.vmem [resolvable:$true] %s67_s19  ;;  %s92_s21 = int_to_ptr.hbm [resolvable:$true] %s91_s21 }
   0xa   :  { %73 = dma.hbm_to_vmem [thread:$0]  %s66_s15, 16384, %s68_s19, [#allocation9], %s8491_s16, %s8491_s16, %s8492_s17  }
   0xb   :  { %s8494_s3 = smov [#allocation11]   ;;  %s120_s25 = sshll.u32 %s8862_s8, 4  ;;  %s121_s25 = int_to_ptr.hbm [resolvable:$true] %s120_s25 }
   0xc   :  { %s93_s22 = sshll.u32 %s8494_s3, 4  ;;  %s8495_s26 = smov 128   ;;  %s94_s22 = int_to_ptr.vmem [resolvable:$true] %s93_s22 }
   0xd   :  { %s8496_s27 = smov 8   ;;  %s8497_s28 = smov [#allocation14]  }
   0xe   :  { %99 = dma.hbm_to_vmem [thread:$0]  %s92_s21, 4096, %s94_s22, [#allocation12], %s8495_s26, %s8495_s26, %s8496_s27  }
   0xf   :  { %s122_s29 = sshll.u32 %s8497_s28, 4  ;;  %s29_s5 = sshll.u32 %s8854_s0, 4  ;;  %s123_s29 = int_to_ptr.vmem [resolvable:$true] %s122_s29  ;;  %s30_s5 = int_to_ptr.hbm [resolvable:$true] %s29_s5 }
  0x10   :  { %125 = dma.hbm_to_vmem [thread:$0]  %s121_s25, 64, %s123_s29, [#allocation15]  }
  0x11   :  { %s52_s8 = sshll.u32 %s8856_s2, 4  ;;  %s8498_s19 = smov [#allocation2]   ;;  %s53_s8 = int_to_ptr.hbm [resolvable:$true] %s52_s8 }
  0x12   :  { %s31_s1 = sshll.u32 %s8498_s19, 4  ;;  %s8499_s20 = smov [#allocation7]   ;;  %s32_s1 = int_to_ptr.vmem [resolvable:$true] %s31_s1 }
  0x13   :  { %34 = dma.hbm_to_vmem [thread:$0]  %s30_s5, 256, %s32_s1, [#allocation3]  }
  0x14   :  { %s54_s21 = sshll.u32 %s8499_s20, 4  ;;  %s78_s23 = sshll.u32 %s8858_s4, 4  ;;  %s55_s21 = int_to_ptr.vmem [resolvable:$true] %s54_s21  ;;  %s79_s23 = int_to_ptr.hbm [resolvable:$true] %s78_s23 }
  0x15   :  { %60 = dma.hbm_to_vmem [thread:$0]  %s53_s8, 16384, %s55_s21, [#allocation6], %s8491_s16, %s8491_s16, %s8492_s17  }
  0x16   :  { %s104_s2 = sshll.u32 %s8860_s6, 4  ;;  %s8500_s25 = smov [#allocation10]   ;;  %s105_s2 = int_to_ptr.hbm [resolvable:$true] %s104_s2 }
  0x17   :  { %s80_s28 = sshll.u32 %s8500_s25, 4  ;;  %s8501_s29 = smov [#allocation13]   ;;  %s81_s28 = int_to_ptr.vmem [resolvable:$true] %s80_s28 }
  0x18   :  { %86 = dma.hbm_to_vmem [thread:$0]  %s79_s23, 8192, %s81_s28, [#allocation9], %s8495_s26, %s8495_s26, %s8496_s27  }
  0x19   :  { %s106_s4 = sshll.u32 %s8501_s29, 4  ;;  %s8502_s30 = smov 64   ;;  %s107_s4 = int_to_ptr.vmem [resolvable:$true] %s106_s4 }
  0x1a   :  { %s8503_s14 = smov 4   ;;  %s133_s17 = sshll.u32 %s8864_s10, 4  ;;  %s134_s17 = int_to_ptr.hbm [resolvable:$true] %s133_s17 }
  0x1b   :  { %112 = dma.hbm_to_vmem [thread:$0]  %s105_s2, 2048, %s107_s4, [#allocation12], %s8502_s30, %s8502_s30, %s8503_s14  }
  0x1c   :  { %s8504_s6 = smov [#allocation16]  }
  0x1d   :  { %s135_s15 = sshll.u32 %s8504_s6, 4  ;;  %s136_s15 = int_to_ptr.vmem [resolvable:$true] %s135_s15 }
  0x1e   :  { %138 = dma.hbm_to_vmem [thread:$0]  %s134_s17, 32, %s136_s15, [#allocation15]  }
  0x1f   :  { %8478 = dma.done.wait [#allocation3], 256  }
  0x20   :  { %8479 = vsyncadd [#allocation3], 4294967040 }
  0x21   :  { %8480 = dma.done.wait [#allocation6], 49152  }
  0x22   :  { %8481 = vsyncadd [#allocation6], 4294918144 }
  0x23   :  { %8482 = dma.done.wait [#allocation9], 24576  }
  0x24   :  { %8483 = vsyncadd [#allocation9], 4294942720 }
  0x25   :  { %8484 = dma.done.wait [#allocation12], 6144  }
  0x26   :  { %8485 = vsyncadd [#allocation12], 4294961152 }
  0x27   :  { %8486 = dma.done.wait [#allocation15], 96  }
  0x28   :  { %8487 = vsyncadd [#allocation15], 4294967200  ;;  %v5214_v0 = vld [vmem:[#allocation5 + $0xe0] sm:$0xf]  ;;  %v7626_v1 = vld [vmem:[#allocation5 + $0xec] sm:$0xf0] }
  0x29   :  { %v5342_v2 = vld [vmem:[#allocation5 + $0x1e0] sm:$0xf]  ;;  %v5215_v3 = vor.u32 %v7626_v1, %v5214_v0  ;;  %v7658_v4 = vld [vmem:[#allocation5 + $0x1ec] sm:$0xf0]  ;;  %s8505_s20 = smov [#allocation17]   ;;  %s5086_s23 = sshll.u32 %s8867_s13, 4  ;;  %s5087_s23 = int_to_ptr.hbm [resolvable:$true] %s5086_s23 }
  0x2a   :  { %v5470_v5 = vld [vmem:[#allocation5 + $0x2e0] sm:$0xf]  ;;  %v7690_v6 = vld [vmem:[#allocation5 + $0x2ec] sm:$0xf0]  ;;  %v5343_v7 = vor.u32 %v7658_v4, %v5342_v2  ;;  %s5084_s21 = sshll.u32 %s8505_s20, 4  ;;  %s5085_s21 = int_to_ptr.vmem [resolvable:$true] %s5084_s21 }
  0x2b   :  { %v5471_v8 = vor.u32 %v7690_v6, %v5470_v5  ;;  %v5598_v9 = vld [vmem:[#allocation5 + $0x3e0] sm:$0xf]  ;;  %v7722_v10 = vld [vmem:[#allocation5 + $0x3ec] sm:$0xf0]  ;;  %1756 = vmatpush.bf16.msra.mxu0 %v5215_v3 }
  0x2c   :  { %v5198_v11 = vld [vmem:[#allocation5 + $0xc0] sm:$0xf]  ;;  %v5599_v12 = vor.u32 %v7722_v10, %v5598_v9  ;;  %v7622_v13 = vld [vmem:[#allocation5 + $0xcc] sm:$0xf0]  ;;  %1769 = vmatpush.bf16.msra.mxu1 %v5343_v7 }
  0x2d   :  { %v5326_v14 = vld [vmem:[#allocation5 + $0x1c0] sm:$0xf]  ;;  %v7654_v15 = vld [vmem:[#allocation5 + $0x1cc] sm:$0xf0]  ;;  %1782 = vmatpush.bf16.msra.mxu2 %v5471_v8  ;;  %v5199_v16 = vor.u32 %v7622_v13, %v5198_v11 }
  0x2e   :  { %v5327_v17 = vor.u32 %v7654_v15, %v5326_v14  ;;  %v5454_v18 = vld [vmem:[#allocation5 + $0x2c0] sm:$0xf]  ;;  %v7686_v19 = vld [vmem:[#allocation5 + $0x2cc] sm:$0xf0]  ;;  %1795 = vmatpush.bf16.msra.mxu3 %v5599_v12 }
  0x2f   :  { %v5582_v20 = vld [vmem:[#allocation5 + $0x3c0] sm:$0xf]  ;;  %v5455_v21 = vor.u32 %v7686_v19, %v5454_v18  ;;  %v7718_v22 = vld [vmem:[#allocation5 + $0x3cc] sm:$0xf0]  ;;  %1757 = vmatpush.bf16.msra.mxu0 %v5199_v16 }
  0x30   :  { %v5182_v23 = vld [vmem:[#allocation5 + $0xa0] sm:$0xf]  ;;  %v7618_v24 = vld [vmem:[#allocation5 + $0xac] sm:$0xf0]  ;;  %v5583_v25 = vor.u32 %v7718_v22, %v5582_v20  ;;  %1770 = vmatpush.bf16.msra.mxu1 %v5327_v17 }
  0x31   :  { %v5310_v26 = vld [vmem:[#allocation5 + $0x1a0] sm:$0xf]  ;;  %v7650_v27 = vld [vmem:[#allocation5 + $0x1ac] sm:$0xf0]  ;;  %v5183_v29 = vor.u32 %v7618_v24, %v5182_v23  ;;  %1783 = vmatpush.bf16.msra.mxu2 %v5455_v21 }
  0x32   :  { %v5438_v28 = vld [vmem:[#allocation5 + $0x2a0] sm:$0xf]  ;;  %v7682_v30 = vld [vmem:[#allocation5 + $0x2ac] sm:$0xf0]  ;;  %v5311_v33 = vor.u32 %v7650_v27, %v5310_v26  ;;  %1796 = vmatpush.bf16.msra.mxu3 %v5583_v25 }
  0x33   :  { %v5566_v31 = vld [vmem:[#allocation5 + $0x3a0] sm:$0xf]  ;;  %v7714_v32 = vld [vmem:[#allocation5 + $0x3ac] sm:$0xf0]  ;;  %v5439_v34 = vor.u32 %v7682_v30, %v5438_v28  ;;  %1758 = vmatpush.bf16.msra.mxu0 %v5183_v29 }
  0x34   :  { %v5166_v35 = vld [vmem:[#allocation5 + $0x80] sm:$0xf]  ;;  %v7614_v36 = vld [vmem:[#allocation5 + $0x8c] sm:$0xf0]  ;;  %v5567_v38 = vor.u32 %v7714_v32, %v5566_v31  ;;  %1771 = vmatpush.bf16.msra.mxu1 %v5311_v33 }
  0x35   :  { %v5294_v37 = vld [vmem:[#allocation5 + $0x180] sm:$0xf]  ;;  %v7646_v39 = vld [vmem:[#allocation5 + $0x18c] sm:$0xf0]  ;;  %v5167_v44 = vor.u32 %v7614_v36, %v5166_v35  ;;  %1784 = vmatpush.bf16.msra.mxu2 %v5439_v34 }
  0x36   :  { %v5422_v40 = vld [vmem:[#allocation5 + $0x280] sm:$0xf]  ;;  %v7678_v41 = vld [vmem:[#allocation5 + $0x28c] sm:$0xf0]  ;;  %v5295_v45 = vor.u32 %v7646_v39, %v5294_v37  ;;  %1797 = vmatpush.bf16.msra.mxu3 %v5567_v38 }
  0x37   :  { %v5550_v42 = vld [vmem:[#allocation5 + $0x380] sm:$0xf]  ;;  %v7710_v43 = vld [vmem:[#allocation5 + $0x38c] sm:$0xf0]  ;;  %v5423_v46 = vor.u32 %v7678_v41, %v5422_v40  ;;  %1759 = vmatpush.bf16.msra.mxu0 %v5167_v44 }
  0x38   :  { %v5150_v47 = vld [vmem:[#allocation5 + $0x60] sm:$0xf]  ;;  %v7610_v48 = vld [vmem:[#allocation5 + $0x6c] sm:$0xf0]  ;;  %v5551_v50 = vor.u32 %v7710_v43, %v5550_v42  ;;  %1772 = vmatpush.bf16.msra.mxu1 %v5295_v45 }
  0x39   :  { %v5278_v49 = vld [vmem:[#allocation5 + $0x160] sm:$0xf]  ;;  %v7642_v51 = vld [vmem:[#allocation5 + $0x16c] sm:$0xf0]  ;;  %v5151_v56 = vor.u32 %v7610_v48, %v5150_v47  ;;  %1785 = vmatpush.bf16.msra.mxu2 %v5423_v46 }
  0x3a   :  { %v5406_v52 = vld [vmem:[#allocation5 + $0x260] sm:$0xf]  ;;  %v7674_v53 = vld [vmem:[#allocation5 + $0x26c] sm:$0xf0]  ;;  %v5279_v57 = vor.u32 %v7642_v51, %v5278_v49  ;;  %1798 = vmatpush.bf16.msra.mxu3 %v5551_v50 }
  0x3b   :  { %v5534_v54 = vld [vmem:[#allocation5 + $0x360] sm:$0xf]  ;;  %v7706_v55 = vld [vmem:[#allocation5 + $0x36c] sm:$0xf0]  ;;  %v5407_v58 = vor.u32 %v7674_v53, %v5406_v52  ;;  %1760 = vmatpush.bf16.msra.mxu0 %v5151_v56 }
  0x3c   :  { %v5134_v59 = vld [vmem:[#allocation5 + $0x40] sm:$0xf]  ;;  %v7606_v60 = vld [vmem:[#allocation5 + $0x4c] sm:$0xf0]  ;;  %v5535_v62 = vor.u32 %v7706_v55, %v5534_v54  ;;  %1773 = vmatpush.bf16.msra.mxu1 %v5279_v57 }
  0x3d   :  { %v5262_v61 = vld [vmem:[#allocation5 + $0x140] sm:$0xf]  ;;  %v7638_v63 = vld [vmem:[#allocation5 + $0x14c] sm:$0xf0]  ;;  %v5135_v4 = vor.u32 %v7606_v60, %v5134_v59  ;;  %1786 = vmatpush.bf16.msra.mxu2 %v5407_v58 }
  0x3e   :  { %v5390_v0 = vld [vmem:[#allocation5 + $0x240] sm:$0xf]  ;;  %v7670_v1 = vld [vmem:[#allocation5 + $0x24c] sm:$0xf0]  ;;  %v5263_v5 = vor.u32 %v7638_v63, %v5262_v61  ;;  %1799 = vmatpush.bf16.msra.mxu3 %v5535_v62 }
  0x3f   :  { %v5518_v2 = vld [vmem:[#allocation5 + $0x340] sm:$0xf]  ;;  %v7702_v3 = vld [vmem:[#allocation5 + $0x34c] sm:$0xf0]  ;;  %v5391_v6 = vor.u32 %v7670_v1, %v5390_v0  ;;  %1761 = vmatpush.bf16.msra.mxu0 %v5135_v4 }
  0x40   :  { %v5118_v7 = vld [vmem:[#allocation5 + $0x20] sm:$0xf]  ;;  %v7602_v8 = vld [vmem:[#allocation5 + $0x2c] sm:$0xf0]  ;;  %v5519_v10 = vor.u32 %v7702_v3, %v5518_v2  ;;  %1774 = vmatpush.bf16.msra.mxu1 %v5263_v5 }
  0x41   :  { %v5246_v9 = vld [vmem:[#allocation5 + $0x120] sm:$0xf]  ;;  %v7634_v11 = vld [vmem:[#allocation5 + $0x12c] sm:$0xf0]  ;;  %v5119_v16 = vor.u32 %v7602_v8, %v5118_v7  ;;  %1787 = vmatpush.bf16.msra.mxu2 %v5391_v6 }
  0x42   :  { %v5374_v12 = vld [vmem:[#allocation5 + $0x220] sm:$0xf]  ;;  %v7666_v13 = vld [vmem:[#allocation5 + $0x22c] sm:$0xf0]  ;;  %v5247_v19 = vor.u32 %v7634_v11, %v5246_v9  ;;  %1800 = vmatpush.bf16.msra.mxu3 %v5519_v10 }
  0x43   :  { %v5502_v14 = vld [vmem:[#allocation5 + $0x320] sm:$0xf]  ;;  %v7698_v15 = vld [vmem:[#allocation5 + $0x32c] sm:$0xf0]  ;;  %v5375_v20 = vor.u32 %v7666_v13, %v5374_v12  ;;  %1762 = vmatpush.bf16.msra.mxu0 %v5119_v16 }
  0x44   :  { %v5102_v17 = vld [vmem:[#allocation5] sm:$0xf]  ;;  %v7598_v18 = vld [vmem:[#allocation5 + $0xc] sm:$0xf0]  ;;  %v5503_v24 = vor.u32 %v7698_v15, %v5502_v14  ;;  %1775 = vmatpush.bf16.msra.mxu1 %v5247_v19 }
  0x45   :  { %v5230_v21 = vld [vmem:[#allocation5 + $0x100] sm:$0xf]  ;;  %v7630_v22 = vld [vmem:[#allocation5 + $0x10c] sm:$0xf0]  ;;  %v5103_v31 = vor.u32 %v7598_v18, %v5102_v17  ;;  %1788 = vmatpush.bf16.msra.mxu2 %v5375_v20 }
  0x46   :  { %v5358_v23 = vld [vmem:[#allocation5 + $0x200] sm:$0xf]  ;;  %v7662_v25 = vld [vmem:[#allocation5 + $0x20c] sm:$0xf0]  ;;  %v5231_v35 = vor.u32 %v7630_v22, %v5230_v21  ;;  %1801 = vmatpush.bf16.msra.mxu3 %v5503_v24 }
  0x47   :  { %v5486_v26 = vld [vmem:[#allocation5 + $0x300] sm:$0xf]  ;;  %v7694_v27 = vld [vmem:[#allocation5 + $0x30c] sm:$0xf0]  ;;  %v5359_v36 = vor.u32 %v7662_v25, %v5358_v23  ;;  %1763 = vmatpush.bf16.msra.mxu0 %v5103_v31 }
  0x48   :  { %v5726_v28 = vld [vmem:[#allocation5 + $0x4e0] sm:$0xf]  ;;  %v7754_v29 = vld [vmem:[#allocation5 + $0x4ec] sm:$0xf0]  ;;  %v5487_v39 = vor.u32 %v7694_v27, %v5486_v26  ;;  %1776 = vmatpush.bf16.msra.mxu1 %v5231_v35 }
  0x49   :  { %v5854_v30 = vld [vmem:[#allocation5 + $0x5e0] sm:$0xf]  ;;  %v7786_v32 = vld [vmem:[#allocation5 + $0x5ec] sm:$0xf0]  ;;  %v5727_v40 = vor.u32 %v7754_v29, %v5726_v28  ;;  %1789 = vmatpush.bf16.msra.mxu2 %v5359_v36 }
  0x4a   :  { %v5982_v33 = vld [vmem:[#allocation5 + $0x6e0] sm:$0xf]  ;;  %v7818_v34 = vld [vmem:[#allocation5 + $0x6ec] sm:$0xf0]  ;;  %v5855_v41 = vor.u32 %v7786_v32, %v5854_v30  ;;  %1802 = vmatpush.bf16.msra.mxu3 %v5487_v39 }
  0x4b   :  { %v6110_v37 = vld [vmem:[#allocation5 + $0x7e0] sm:$0xf]  ;;  %v7850_v38 = vld [vmem:[#allocation5 + $0x7ec] sm:$0xf0]  ;;  %v5983_v42 = vor.u32 %v7818_v34, %v5982_v33  ;;  %1808 = vmatpush.bf16.msrb.mxu0 %v5727_v40 }
  0x4c   :  { %v5710_v43 = vld [vmem:[#allocation5 + $0x4c0] sm:$0xf]  ;;  %v7750_v44 = vld [vmem:[#allocation5 + $0x4cc] sm:$0xf0]  ;;  %v6111_v46 = vor.u32 %v7850_v38, %v6110_v37  ;;  %1821 = vmatpush.bf16.msrb.mxu1 %v5855_v41 }
  0x4d   :  { %v5838_v45 = vld [vmem:[#allocation5 + $0x5c0] sm:$0xf]  ;;  %v7782_v47 = vld [vmem:[#allocation5 + $0x5cc] sm:$0xf0]  ;;  %v5711_v52 = vor.u32 %v7750_v44, %v5710_v43  ;;  %1834 = vmatpush.bf16.msrb.mxu2 %v5983_v42 }
  0x4e   :  { %v5966_v48 = vld [vmem:[#allocation5 + $0x6c0] sm:$0xf]  ;;  %v7814_v49 = vld [vmem:[#allocation5 + $0x6cc] sm:$0xf0]  ;;  %v5839_v53 = vor.u32 %v7782_v47, %v5838_v45  ;;  %1847 = vmatpush.bf16.msrb.mxu3 %v6111_v46 }
  0x4f   :  { %v6094_v50 = vld [vmem:[#allocation5 + $0x7c0] sm:$0xf]  ;;  %v7846_v51 = vld [vmem:[#allocation5 + $0x7cc] sm:$0xf0]  ;;  %v5967_v54 = vor.u32 %v7814_v49, %v5966_v48  ;;  %1809 = vmatpush.bf16.msrb.mxu0 %v5711_v52  ;;  %v180_v52 = vld [vmem:[#allocation2 + $0x8] sm:$0xff] }
  0x50   :  { %v5694_v55 = vld [vmem:[#allocation5 + $0x4a0] sm:$0xf]  ;;  %v7746_v56 = vld [vmem:[#allocation5 + $0x4ac] sm:$0xf0]  ;;  %v6095_v58 = vor.u32 %v7846_v51, %v6094_v50  ;;  %1822 = vmatpush.bf16.msrb.mxu1 %v5839_v53  ;;  %185 = vst [vmem:[#allocation1 + $0x20] ss:$4 sm:$0xff] %v180_v52 }
  0x51   :  { %v5822_v57 = vld [vmem:[#allocation5 + $0x5a0] sm:$0xf]  ;;  %v7778_v59 = vld [vmem:[#allocation5 + $0x5ac] sm:$0xf0]  ;;  %v5695_v0 = vor.u32 %v7746_v56, %v5694_v55  ;;  %1835 = vmatpush.bf16.msrb.mxu2 %v5967_v54  ;;  %v7712_v52 = vld [vmem:[#allocation5 + $0x3a4] sm:$0xf] }
  0x52   :  { %v5950_v60 = vld [vmem:[#allocation5 + $0x6a0] sm:$0xf]  ;;  %v7810_v61 = vld [vmem:[#allocation5 + $0x6ac] sm:$0xf0]  ;;  %v5823_v3 = vor.u32 %v7778_v59, %v5822_v57  ;;  %1848 = vmatpush.bf16.msrb.mxu3 %v6095_v58 }
  0x53   :  { %v6078_v62 = vld [vmem:[#allocation5 + $0x7a0] sm:$0xf]  ;;  %v7842_v63 = vld [vmem:[#allocation5 + $0x7ac] sm:$0xf0]  ;;  %v5951_v4 = vor.u32 %v7810_v61, %v5950_v60  ;;  %1810 = vmatpush.bf16.msrb.mxu0 %v5695_v0 }
  0x54   :  { %v5678_v1 = vld [vmem:[#allocation5 + $0x480] sm:$0xf]  ;;  %v179_v2 = vld [vmem:[#allocation2] sm:$0xff]  ;;  %v6079_v7 = vor.u32 %v7842_v63, %v6078_v62  ;;  %1823 = vmatpush.bf16.msrb.mxu1 %v5823_v3 }
  0x55   :  { %v7742_v5 = vld [vmem:[#allocation5 + $0x48c] sm:$0xf0]  ;;  %v5806_v6 = vld [vmem:[#allocation5 + $0x580] sm:$0xf]  ;;  %183 = vst [vmem:[#allocation1] ss:$4 sm:$0xff] %v179_v2  ;;  %1836 = vmatpush.bf16.msrb.mxu2 %v5951_v4 }
  0x56   :  { %v7774_v8 = vld [vmem:[#allocation5 + $0x58c] sm:$0xf0]  ;;  %v5934_v9 = vld [vmem:[#allocation5 + $0x680] sm:$0xf]  ;;  %v5679_v13 = vor.u32 %v7742_v5, %v5678_v1  ;;  %1849 = vmatpush.bf16.msrb.mxu3 %v6079_v7  ;;  %v5216_v7 = vld [vmem:[#allocation5 + $0xf0] sm:$0xf0] }
  0x57   :  { %v7806_v10 = vld [vmem:[#allocation5 + $0x68c] sm:$0xf0]  ;;  %v6062_v11 = vld [vmem:[#allocation5 + $0x780] sm:$0xf]  ;;  %v5807_v15 = vor.u32 %v7774_v8, %v5806_v6  ;;  %v7624_v6 = vld [vmem:[#allocation5 + $0xe4] sm:$0xf] }
  0x58   :  { %v7838_v12 = vld [vmem:[#allocation5 + $0x78c] sm:$0xf0]  ;;  %v5662_v14 = vld [vmem:[#allocation5 + $0x460] sm:$0xf]  ;;  %v5935_v16 = vor.u32 %v7806_v10, %v5934_v9  ;;  %1811 = vmatpush.bf16.msrb.mxu0 %v5679_v13  ;;  %v7656_v8 = vld [vmem:[#allocation5 + $0x1e4] sm:$0xf] }
  0x59   :  { %v7738_v17 = vld [vmem:[#allocation5 + $0x46c] sm:$0xf0]  ;;  %v5790_v18 = vld [vmem:[#allocation5 + $0x560] sm:$0xf]  ;;  %v6063_v20 = vor.u32 %v7838_v12, %v6062_v11  ;;  %1824 = vmatpush.bf16.msrb.mxu1 %v5807_v15  ;;  %v5344_v9 = vld [vmem:[#allocation5 + $0x1f0] sm:$0xf0] }
  0x5a   :  { %v7770_v19 = vld [vmem:[#allocation5 + $0x56c] sm:$0xf0]  ;;  %v5918_v21 = vld [vmem:[#allocation5 + $0x660] sm:$0xf]  ;;  %v5663_v27 = vor.u32 %v7738_v17, %v5662_v14  ;;  %1837 = vmatpush.bf16.msrb.mxu2 %v5935_v16  ;;  %v7688_v10 = vld [vmem:[#allocation5 + $0x2e4] sm:$0xf] }
  0x5b   :  { %v7802_v22 = vld [vmem:[#allocation5 + $0x66c] sm:$0xf0]  ;;  %v6046_v23 = vld [vmem:[#allocation5 + $0x760] sm:$0xf]  ;;  %v5791_v28 = vor.u32 %v7770_v19, %v5790_v18  ;;  %1850 = vmatpush.bf16.msrb.mxu3 %v6063_v20  ;;  %v5472_v12 = vld [vmem:[#allocation5 + $0x2f0] sm:$0xf0] }
  0x5c   :  { %v7834_v24 = vld [vmem:[#allocation5 + $0x76c] sm:$0xf0]  ;;  %v5646_v25 = vld [vmem:[#allocation5 + $0x440] sm:$0xf]  ;;  %v5919_v32 = vor.u32 %v7802_v22, %v5918_v21  ;;  %1812 = vmatpush.bf16.msrb.mxu0 %v5663_v27  ;;  %v7720_v13 = vld [vmem:[#allocation5 + $0x3e4] sm:$0xf]  ;;  %v5219_v21 = vor.u32 %v7624_v6, %v5216_v7 }
  0x5d   :  { %v7734_v26 = vld [vmem:[#allocation5 + $0x44c] sm:$0xf0]  ;;  %v5774_v29 = vld [vmem:[#allocation5 + $0x540] sm:$0xf]  ;;  %v6047_v37 = vor.u32 %v7834_v24, %v6046_v23  ;;  %1825 = vmatpush.bf16.msrb.mxu1 %v5791_v28  ;;  %v5600_v14 = vld [vmem:[#allocation5 + $0x3f0] sm:$0xf0]  ;;  %v5347_v24 = vor.u32 %v7656_v8, %v5344_v9 }
  0x5e   :  { %v188_v30 = vld.sshfl [vmem:[#allocation1 + $0x10] sm:$0xff pattern:$0x73625140]  ;;  %v186_v31 = vld.sshfl [vmem:[#allocation1] sm:$0xff pattern:$0x73625140]  ;;  %v5647_v45 = vor.u32 %v7734_v26, %v5646_v25  ;;  %1838 = vmatpush.bf16.msrb.mxu2 %v5919_v32  ;;  %v5475_v25 = vor.u32 %v7688_v10, %v5472_v12  ;;  %v5603_v28 = vor.u32 %v7720_v13, %v5600_v14 }
  0x5f   :  { %v8618_v33 = vpack.c.bf16 %v188_v30, %v188_v30  ;;  %v8620_v34 = vpack.c.bf16 %v186_v31, %v186_v31  ;;  %v189_v35 = vld.sshfl [vmem:[#allocation1 + $0x18] sm:$0xff pattern:$0x73625140]  ;;  %v187_v36 = vld.sshfl [vmem:[#allocation1 + $0x8] sm:$0xff pattern:$0x73625140]  ;;  %1851 = vmatpush.bf16.msrb.mxu3 %v6047_v37 }
  0x60   :  { %v7766_v38 = vld [vmem:[#allocation5 + $0x54c] sm:$0xf0]  ;;  %v5902_v39 = vld [vmem:[#allocation5 + $0x640] sm:$0xf]  ;;  %v8622_v41 = vpack.c.bf16 %v189_v35, %v189_v35  ;;  %v8624_v42 = vpack.c.bf16 %v187_v36, %v187_v36  ;;  %1813 = vmatpush.bf16.msrb.mxu0 %v5647_v45  ;;  %v7620_v17 = vld [vmem:[#allocation5 + $0xc4] sm:$0xf] }
  0x61   :  { %v7798_v40 = vld [vmem:[#allocation5 + $0x64c] sm:$0xf0]  ;;  %v6030_v43 = vld [vmem:[#allocation5 + $0x740] sm:$0xf]  ;;  %1790 = vmatmul.bf16.vlgmr.msra.gmra.mxu2 %v8618_v33  ;;  %1764 = vmatmul.bf16.vlgmr.msra.gmra.mxu0 %v8620_v34  ;;  %v5775_v48 = vor.u32 %v7766_v38, %v5774_v29  ;;  %v5200_v18 = vld [vmem:[#allocation5 + $0xd0] sm:$0xf0] }
  0x62   :  { %v7830_v44 = vld [vmem:[#allocation5 + $0x74c] sm:$0xf0]  ;;  %1803 = vmatmul.bf16.vlgmr.msra.gmra.mxu3 %v8622_v41  ;;  %v5630_v46 = vld [vmem:[#allocation5 + $0x420] sm:$0xf]  ;;  %v5903_v49 = vor.u32 %v7798_v40, %v5902_v39  ;;  %1777 = vmatmul.bf16.vlgmr.msra.gmra.mxu1 %v8624_v42  ;;  %v7652_v26 = vld [vmem:[#allocation5 + $0x1c4] sm:$0xf]  ;;  %v5203_v39 = vor.u32 %v7620_v17, %v5200_v18 }
  0x63   :  { %v7730_v47 = vld [vmem:[#allocation5 + $0x42c] sm:$0xf0]  ;;  %v5758_v50 = vld [vmem:[#allocation5 + $0x520] sm:$0xf]  ;;  %v6031_v53 = vor.u32 %v7830_v44, %v6030_v43  ;;  %1826 = vmatpush.bf16.msrb.mxu1 %v5775_v48  ;;  %v5328_v29 = vld [vmem:[#allocation5 + $0x1d0] sm:$0xf0] }
  0x64   :  { %v7762_v51 = vld [vmem:[#allocation5 + $0x52c] sm:$0xf0]  ;;  %v5886_v54 = vld [vmem:[#allocation5 + $0x620] sm:$0xf]  ;;  %v5631_v59 = vor.u32 %v7730_v47, %v5630_v46  ;;  %1839 = vmatpush.bf16.msrb.mxu2 %v5903_v49  ;;  %v7684_v30 = vld [vmem:[#allocation5 + $0x2c4] sm:$0xf]  ;;  %v5331_v43 = vor.u32 %v7652_v26, %v5328_v29 }
  0x65   :  { %v7794_v55 = vld [vmem:[#allocation5 + $0x62c] sm:$0xf0]  ;;  %v6014_v56 = vld [vmem:[#allocation5 + $0x720] sm:$0xf]  ;;  %v5759_v63 = vor.u32 %v7762_v51, %v5758_v50  ;;  %1852 = vmatpush.bf16.msrb.mxu3 %v6031_v53  ;;  %v5456_v31 = vld [vmem:[#allocation5 + $0x2d0] sm:$0xf0] }
  0x66   :  { %v7826_v57 = vld [vmem:[#allocation5 + $0x72c] sm:$0xf0]  ;;  %v5614_v58 = vld [vmem:[#allocation5 + $0x400] sm:$0xf]  ;;  %v5887_v0 = vor.u32 %v7794_v55, %v5886_v54  ;;  %1814 = vmatpush.bf16.msrb.mxu0 %v5631_v59  ;;  %v7716_v35 = vld [vmem:[#allocation5 + $0x3c4] sm:$0xf]  ;;  %v5459_v44 = vor.u32 %v7684_v30, %v5456_v31 }
  0x67   :  { %v7726_v60 = vld [vmem:[#allocation5 + $0x40c] sm:$0xf0]  ;;  %v5742_v61 = vld [vmem:[#allocation5 + $0x500] sm:$0xf]  ;;  %v6015_v4 = vor.u32 %v7826_v57, %v6014_v56  ;;  %1827 = vmatpush.bf16.msrb.mxu1 %v5759_v63  ;;  %v5584_v36 = vld [vmem:[#allocation5 + $0x3d0] sm:$0xf0] }
  0x68   :  { %v7758_v62 = vld [vmem:[#allocation5 + $0x50c] sm:$0xf0]  ;;  %v5870_v1 = vld [vmem:[#allocation5 + $0x600] sm:$0xf]  ;;  %v5615_v11 = vor.u32 %v7726_v60, %v5614_v58  ;;  %1840 = vmatpush.bf16.msrb.mxu2 %v5887_v0  ;;  %v7616_v45 = vld [vmem:[#allocation5 + $0xa4] sm:$0xf]  ;;  %v5587_v48 = vor.u32 %v7716_v35, %v5584_v36 }
  0x69   :  { %v7790_v2 = vld [vmem:[#allocation5 + $0x60c] sm:$0xf0]  ;;  %v5998_v3 = vld [vmem:[#allocation5 + $0x700] sm:$0xf]  ;;  %v5743_v15 = vor.u32 %v7758_v62, %v5742_v61  ;;  %1853 = vmatpush.bf16.msrb.mxu3 %v6015_v4  ;;  %v5184_v46 = vld [vmem:[#allocation5 + $0xb0] sm:$0xf0] }
  0x6a   :  { %v7822_v5 = vld [vmem:[#allocation5 + $0x70c] sm:$0xf0]  ;;  %v5871_v16 = vor.u32 %v7790_v2, %v5870_v1  ;;  %v192_v19 = vld.sshfl [vmem:[#allocation1 + $0x30] sm:$0xff pattern:$0x73625140]  ;;  %1815 = vmatpush.bf16.msrb.mxu0 %v5615_v11  ;;  %v5187_v54 = vor.u32 %v7616_v45, %v5184_v46 }
  0x6b   :  { %v5999_v20 = vor.u32 %v7822_v5, %v5998_v3  ;;  %v190_v22 = vld.sshfl [vmem:[#allocation1 + $0x20] sm:$0xff pattern:$0x73625140]  ;;  %v193_v23 = vld.sshfl [vmem:[#allocation1 + $0x38] sm:$0xff pattern:$0x73625140]  ;;  %v8630_v32 = vpack.c.bf16 %v192_v19, %v192_v19  ;;  %1828 = vmatpush.bf16.msrb.mxu1 %v5743_v15 }
  0x6c   :  { %v191_v27 = vld.sshfl [vmem:[#allocation1 + $0x28] sm:$0xff pattern:$0x73625140]  ;;  %1841 = vmatpush.bf16.msrb.mxu2 %v5871_v16  ;;  %v8632_v37 = vpack.c.bf16 %v190_v22, %v190_v22  ;;  %v8634_v38 = vpack.c.bf16 %v193_v23, %v193_v23  ;;  %v7648_v47 = vld [vmem:[#allocation5 + $0x1a4] sm:$0xf] }
  0x6d   :  { %1854 = vmatpush.bf16.msrb.mxu3 %v5999_v20  ;;  %v8636_v40 = vpack.c.bf16 %v191_v27, %v191_v27  ;;  %v5312_v49 = vld [vmem:[#allocation5 + $0x1b0] sm:$0xf0]  ;;  %v7680_v50 = vld [vmem:[#allocation5 + $0x2a4] sm:$0xf] }
  0x6e   :  { %1860 = vmatpush.bf16.msra.mxu0 %v5219_v21  ;;  %v5440_v51 = vld [vmem:[#allocation5 + $0x2b0] sm:$0xf0]  ;;  %v5315_v55 = vor.u32 %v7648_v47, %v5312_v49  ;;  %v7612_v57 = vld [vmem:[#allocation5 + $0x84] sm:$0xf] }
  0x6f   :  { %1873 = vmatpush.bf16.msra.mxu1 %v5347_v24  ;;  %v5568_v53 = vld [vmem:[#allocation5 + $0x3b0] sm:$0xf0]  ;;  %v5443_v56 = vor.u32 %v7680_v50, %v5440_v51  ;;  %v7644_v59 = vld [vmem:[#allocation5 + $0x184] sm:$0xf] }
  0x70   :  { %1886 = vmatpush.bf16.msra.mxu2 %v5475_v25  ;;  %v5168_v58 = vld [vmem:[#allocation5 + $0x90] sm:$0xf0]  ;;  %v5571_v60 = vor.u32 %v7712_v52, %v5568_v53  ;;  %v7676_v62 = vld [vmem:[#allocation5 + $0x284] sm:$0xf] }
  0x71   :  { %1899 = vmatpush.bf16.msra.mxu3 %v5603_v28  ;;  %1842 = vmatmul.bf16.vlgmr.msrb.gmra.mxu2 %v8630_v32  ;;  %v5296_v61 = vld [vmem:[#allocation5 + $0x190] sm:$0xf0]  ;;  %v7708_v0 = vld [vmem:[#allocation5 + $0x384] sm:$0xf]  ;;  %v5171_v2 = vor.u32 %v7612_v57, %v5168_v58 }
  0x72   :  { %1816 = vmatmul.bf16.vlgmr.msrb.gmra.mxu0 %v8632_v37  ;;  %1855 = vmatmul.bf16.vlgmr.msrb.gmra.mxu3 %v8634_v38  ;;  %v5424_v63 = vld [vmem:[#allocation5 + $0x290] sm:$0xf0]  ;;  %v5299_v3 = vor.u32 %v7644_v59, %v5296_v61  ;;  %v7608_v5 = vld [vmem:[#allocation5 + $0x64] sm:$0xf] }
  0x73   :  { %1861 = vmatpush.bf16.msra.mxu0 %v5203_v39  ;;  %1829 = vmatmul.bf16.vlgmr.msrb.gmra.mxu1 %v8636_v40  ;;  %v5552_v1 = vld [vmem:[#allocation5 + $0x390] sm:$0xf0]  ;;  %v5427_v4 = vor.u32 %v7676_v62, %v5424_v63  ;;  %v7640_v7 = vld [vmem:[#allocation5 + $0x164] sm:$0xf] }
  0x74   :  { %1874 = vmatpush.bf16.msra.mxu1 %v5331_v43  ;;  %1887 = vmatpush.bf16.msra.mxu2 %v5459_v44  ;;  %v5152_v6 = vld [vmem:[#allocation5 + $0x70] sm:$0xf0]  ;;  %v5555_v8 = vor.u32 %v7708_v0, %v5552_v1  ;;  %v7672_v10 = vld [vmem:[#allocation5 + $0x264] sm:$0xf] }
  0x75   :  { %1900 = vmatpush.bf16.msra.mxu3 %v5587_v48  ;;  %v5280_v9 = vld [vmem:[#allocation5 + $0x170] sm:$0xf0]  ;;  %v7704_v12 = vld [vmem:[#allocation5 + $0x364] sm:$0xf]  ;;  %v5155_v14 = vor.u32 %v7608_v5, %v5152_v6 }
  0x76   :  { %v5408_v11 = vld [vmem:[#allocation5 + $0x270] sm:$0xf0]  ;;  %v5283_v15 = vor.u32 %v7640_v7, %v5280_v9  ;;  %v7604_v17 = vld [vmem:[#allocation5 + $0x44] sm:$0xf] }
  0x77   :  { %1862 = vmatpush.bf16.msra.mxu0 %v5187_v54  ;;  %v5536_v13 = vld [vmem:[#allocation5 + $0x370] sm:$0xf0]  ;;  %v5411_v16 = vor.u32 %v7672_v10, %v5408_v11  ;;  %v7636_v19 = vld [vmem:[#allocation5 + $0x144] sm:$0xf] }
  0x78   :  { %1875 = vmatpush.bf16.msra.mxu1 %v5315_v55  ;;  %1888 = vmatpush.bf16.msra.mxu2 %v5443_v56  ;;  %v5136_v18 = vld [vmem:[#allocation5 + $0x50] sm:$0xf0]  ;;  %v5539_v20 = vor.u32 %v7704_v12, %v5536_v13  ;;  %v7668_v22 = vld [vmem:[#allocation5 + $0x244] sm:$0xf] }
  0x79   :  { %1901 = vmatpush.bf16.msra.mxu3 %v5571_v60  ;;  %v5264_v21 = vld [vmem:[#allocation5 + $0x150] sm:$0xf0]  ;;  %v7700_v24 = vld [vmem:[#allocation5 + $0x344] sm:$0xf]  ;;  %v5139_v26 = vor.u32 %v7604_v17, %v5136_v18 }
  0x7a   :  { %v5392_v23 = vld [vmem:[#allocation5 + $0x250] sm:$0xf0]  ;;  %v5267_v27 = vor.u32 %v7636_v19, %v5264_v21  ;;  %v7600_v29 = vld [vmem:[#allocation5 + $0x24] sm:$0xf] }
  0x7b   :  { %1863 = vmatpush.bf16.msra.mxu0 %v5171_v2  ;;  %v5520_v25 = vld [vmem:[#allocation5 + $0x350] sm:$0xf0]  ;;  %v5395_v28 = vor.u32 %v7668_v22, %v5392_v23  ;;  %v7632_v31 = vld [vmem:[#allocation5 + $0x124] sm:$0xf] }
  0x7c   :  { %1876 = vmatpush.bf16.msra.mxu1 %v5299_v3  ;;  %1889 = vmatpush.bf16.msra.mxu2 %v5427_v4  ;;  %v5120_v30 = vld [vmem:[#allocation5 + $0x30] sm:$0xf0]  ;;  %v5523_v35 = vor.u32 %v7700_v24, %v5520_v25  ;;  %v7664_v39 = vld [vmem:[#allocation5 + $0x224] sm:$0xf] }
  0x7d   :  { %1902 = vmatpush.bf16.msra.mxu3 %v5555_v8  ;;  %v5248_v36 = vld [vmem:[#allocation5 + $0x130] sm:$0xf0]  ;;  %v7696_v44 = vld [vmem:[#allocation5 + $0x324] sm:$0xf]  ;;  %v5123_v46 = vor.u32 %v7600_v29, %v5120_v30 }
  0x7e   :  { %v5376_v43 = vld [vmem:[#allocation5 + $0x230] sm:$0xf0]  ;;  %v7596_v47 = vld [vmem:[#allocation5 + $0x4] sm:$0xf]  ;;  %v5251_v49 = vor.u32 %v7632_v31, %v5248_v36 }
  0x7f   :  { %1864 = vmatpush.bf16.msra.mxu0 %v5155_v14  ;;  %v5504_v45 = vld [vmem:[#allocation5 + $0x330] sm:$0xf0]  ;;  %v5379_v50 = vor.u32 %v7664_v39, %v5376_v43  ;;  %v7628_v51 = vld [vmem:[#allocation5 + $0x104] sm:$0xf] }
  0x80   :  { %1877 = vmatpush.bf16.msra.mxu1 %v5283_v15  ;;  %1890 = vmatpush.bf16.msra.mxu2 %v5411_v16  ;;  %v5104_v48 = vld [vmem:[#allocation5 + $0x10] sm:$0xf0]  ;;  %v7660_v53 = vld [vmem:[#allocation5 + $0x204] sm:$0xf]  ;;  %v5507_v54 = vor.u32 %v7696_v44, %v5504_v45 }
  0x81   :  { %1903 = vmatpush.bf16.msra.mxu3 %v5539_v20  ;;  %v5232_v52 = vld [vmem:[#allocation5 + $0x110] sm:$0xf0]  ;;  %v7692_v56 = vld [vmem:[#allocation5 + $0x304] sm:$0xf]  ;;  %v5107_v61 = vor.u32 %v7596_v47, %v5104_v48 }
  0x82   :  { %v5360_v55 = vld [vmem:[#allocation5 + $0x210] sm:$0xf0]  ;;  %v7752_v58 = vld [vmem:[#allocation5 + $0x4e4] sm:$0xf]  ;;  %v5235_v1 = vor.u32 %v7628_v51, %v5232_v52 }
  0x83   :  { %1865 = vmatpush.bf16.msra.mxu0 %v5139_v26  ;;  %v5488_v57 = vld [vmem:[#allocation5 + $0x310] sm:$0xf0]  ;;  %v7784_v60 = vld [vmem:[#allocation5 + $0x5e4] sm:$0xf]  ;;  %v5363_v2 = vor.u32 %v7660_v53, %v5360_v55 }
  0x84   :  { %1878 = vmatpush.bf16.msra.mxu1 %v5267_v27  ;;  %1891 = vmatpush.bf16.msra.mxu2 %v5395_v28  ;;  %v5728_v59 = vld [vmem:[#allocation5 + $0x4f0] sm:$0xf0]  ;;  %v7816_v63 = vld [vmem:[#allocation5 + $0x6e4] sm:$0xf]  ;;  %v5491_v5 = vor.u32 %v7692_v56, %v5488_v57 }
  0x85   :  { %1904 = vmatpush.bf16.msra.mxu3 %v5523_v35  ;;  %v5856_v62 = vld [vmem:[#allocation5 + $0x5f0] sm:$0xf0]  ;;  %v7848_v3 = vld [vmem:[#allocation5 + $0x7e4] sm:$0xf]  ;;  %v5731_v6 = vor.u32 %v7752_v58, %v5728_v59 }
  0x86   :  { %v5984_v0 = vld [vmem:[#allocation5 + $0x6f0] sm:$0xf0]  ;;  %v5859_v7 = vor.u32 %v7784_v60, %v5856_v62  ;;  %v7748_v9 = vld [vmem:[#allocation5 + $0x4c4] sm:$0xf] }
  0x87   :  { %1866 = vmatpush.bf16.msra.mxu0 %v5123_v46  ;;  %v6112_v4 = vld [vmem:[#allocation5 + $0x7f0] sm:$0xf0]  ;;  %v5987_v8 = vor.u32 %v7816_v63, %v5984_v0  ;;  %v7780_v11 = vld [vmem:[#allocation5 + $0x5c4] sm:$0xf] }
  0x88   :  { %1879 = vmatpush.bf16.msra.mxu1 %v5251_v49  ;;  %1892 = vmatpush.bf16.msra.mxu2 %v5379_v50  ;;  %v5712_v10 = vld [vmem:[#allocation5 + $0x4d0] sm:$0xf0]  ;;  %v6115_v12 = vor.u32 %v7848_v3, %v6112_v4  ;;  %v7812_v14 = vld [vmem:[#allocation5 + $0x6c4] sm:$0xf] }
  0x89   :  { %1905 = vmatpush.bf16.msra.mxu3 %v5507_v54  ;;  %v5840_v13 = vld [vmem:[#allocation5 + $0x5d0] sm:$0xf0]  ;;  %v7844_v16 = vld [vmem:[#allocation5 + $0x7c4] sm:$0xf]  ;;  %v5715_v18 = vor.u32 %v7748_v9, %v5712_v10 }
  0x8a   :  { %v5968_v15 = vld [vmem:[#allocation5 + $0x6d0] sm:$0xf0]  ;;  %v5843_v19 = vor.u32 %v7780_v11, %v5840_v13  ;;  %v7744_v21 = vld [vmem:[#allocation5 + $0x4a4] sm:$0xf] }
  0x8b   :  { %1867 = vmatpush.bf16.msra.mxu0 %v5107_v61  ;;  %v6096_v17 = vld [vmem:[#allocation5 + $0x7d0] sm:$0xf0]  ;;  %v5971_v20 = vor.u32 %v7812_v14, %v5968_v15  ;;  %v7776_v23 = vld [vmem:[#allocation5 + $0x5a4] sm:$0xf] }
  0x8c   :  { %1880 = vmatpush.bf16.msra.mxu1 %v5235_v1  ;;  %1893 = vmatpush.bf16.msra.mxu2 %v5363_v2  ;;  %v5696_v22 = vld [vmem:[#allocation5 + $0x4b0] sm:$0xf0]  ;;  %v6099_v24 = vor.u32 %v7844_v16, %v6096_v17  ;;  %v7808_v26 = vld [vmem:[#allocation5 + $0x6a4] sm:$0xf] }
  0x8d   :  { %1906 = vmatpush.bf16.msra.mxu3 %v5491_v5  ;;  %v5824_v25 = vld [vmem:[#allocation5 + $0x5b0] sm:$0xf0]  ;;  %v7840_v28 = vld [vmem:[#allocation5 + $0x7a4] sm:$0xf]  ;;  %v5699_v30 = vor.u32 %v7744_v21, %v5696_v22 }
  0x8e   :  { %v5952_v27 = vld [vmem:[#allocation5 + $0x6b0] sm:$0xf0]  ;;  %1868 = vmatmul.bf16.vlgmr.msra.gmra.mxu0 %v8620_v34  ;;  %v5827_v31 = vor.u32 %v7776_v23, %v5824_v25  ;;  %v7740_v36 = vld [vmem:[#allocation5 + $0x484] sm:$0xf] }
  0x8f   :  { %1912 = vmatpush.bf16.msrb.mxu0 %v5731_v6  ;;  %1894 = vmatmul.bf16.vlgmr.msra.gmra.mxu2 %v8618_v33  ;;  %v6080_v29 = vld [vmem:[#allocation5 + $0x7b0] sm:$0xf0]  ;;  %v5955_v35 = vor.u32 %v7808_v26, %v5952_v27  ;;  %v7772_v43 = vld [vmem:[#allocation5 + $0x584] sm:$0xf] }
  0x90   :  { %1925 = vmatpush.bf16.msrb.mxu1 %v5859_v7  ;;  %1938 = vmatpush.bf16.msrb.mxu2 %v5987_v8  ;;  %v5680_v39 = vld [vmem:[#allocation5 + $0x490] sm:$0xf0]  ;;  %v6083_v44 = vor.u32 %v7840_v28, %v6080_v29  ;;  %v7804_v46 = vld [vmem:[#allocation5 + $0x684] sm:$0xf] }
  0x91   :  { %1951 = vmatpush.bf16.msrb.mxu3 %v6115_v12  ;;  %1881 = vmatmul.bf16.vlgmr.msra.gmra.mxu1 %v8624_v42  ;;  %v5808_v45 = vld [vmem:[#allocation5 + $0x590] sm:$0xf0]  ;;  %v7836_v48 = vld [vmem:[#allocation5 + $0x784] sm:$0xf]  ;;  %v5683_v50 = vor.u32 %v7740_v36, %v5680_v39  ;;  %v5222_v39 = vld [vmem:[#allocation5 + $0xe8] sm:$0xf] }
  0x92   :  { %1907 = vmatmul.bf16.vlgmr.msra.gmra.mxu3 %v8622_v41  ;;  %v5936_v47 = vld [vmem:[#allocation5 + $0x690] sm:$0xf0]  ;;  %v5811_v51 = vor.u32 %v7772_v43, %v5808_v45  ;;  %v7736_v53 = vld [vmem:[#allocation5 + $0x464] sm:$0xf]  ;;  %v7627_v43 = vld [vmem:[#allocation5 + $0xf4] sm:$0xf0] }
  0x93   :  { %1913 = vmatpush.bf16.msrb.mxu0 %v5715_v18  ;;  %v6064_v49 = vld [vmem:[#allocation5 + $0x790] sm:$0xf0]  ;;  %v5939_v52 = vor.u32 %v7804_v46, %v5936_v47  ;;  %v7768_v55 = vld [vmem:[#allocation5 + $0x564] sm:$0xf]  ;;  %v7659_v46 = vld [vmem:[#allocation5 + $0x1f4] sm:$0xf0] }
  0x94   :  { %1926 = vmatpush.bf16.msrb.mxu1 %v5843_v19  ;;  %1939 = vmatpush.bf16.msrb.mxu2 %v5971_v20  ;;  %v5664_v54 = vld [vmem:[#allocation5 + $0x470] sm:$0xf0]  ;;  %v6067_v56 = vor.u32 %v7836_v48, %v6064_v49  ;;  %v7800_v58 = vld [vmem:[#allocation5 + $0x664] sm:$0xf]  ;;  %v5478_v47 = vld [vmem:[#allocation5 + $0x2e8] sm:$0xf] }
  0x95   :  { %1952 = vmatpush.bf16.msrb.mxu3 %v6099_v24  ;;  %v5792_v57 = vld [vmem:[#allocation5 + $0x570] sm:$0xf0]  ;;  %v7832_v60 = vld [vmem:[#allocation5 + $0x764] sm:$0xf]  ;;  %v5667_v62 = vor.u32 %v7736_v53, %v5664_v54  ;;  %v7691_v48 = vld [vmem:[#allocation5 + $0x2f4] sm:$0xf0]  ;;  %v5223_v54 = vor.u32 %v7627_v43, %v5222_v39 }
  0x96   :  { %v5920_v59 = vld [vmem:[#allocation5 + $0x670] sm:$0xf0]  ;;  %v5795_v63 = vor.u32 %v7768_v55, %v5792_v57  ;;  %v7732_v1 = vld [vmem:[#allocation5 + $0x444] sm:$0xf]  ;;  %v5206_v57 = vld [vmem:[#allocation5 + $0xc8] sm:$0xf] }
  0x97   :  { %1914 = vmatpush.bf16.msrb.mxu0 %v5699_v30  ;;  %v6048_v61 = vld [vmem:[#allocation5 + $0x770] sm:$0xf0]  ;;  %v5923_v0 = vor.u32 %v7800_v58, %v5920_v59  ;;  %v7764_v3 = vld [vmem:[#allocation5 + $0x544] sm:$0xf]  ;;  %v7623_v58 = vld [vmem:[#allocation5 + $0xd4] sm:$0xf0] }
  0x98   :  { %1927 = vmatpush.bf16.msrb.mxu1 %v5827_v31  ;;  %1940 = vmatpush.bf16.msrb.mxu2 %v5955_v35  ;;  %v5648_v2 = vld [vmem:[#allocation5 + $0x450] sm:$0xf0]  ;;  %v6051_v4 = vor.u32 %v7832_v60, %v6048_v61  ;;  %v7796_v6 = vld [vmem:[#allocation5 + $0x644] sm:$0xf]  ;;  %v5334_v59 = vld [vmem:[#allocation5 + $0x1c8] sm:$0xf] }
  0x99   :  { %1953 = vmatpush.bf16.msrb.mxu3 %v6083_v44  ;;  %v5776_v5 = vld [vmem:[#allocation5 + $0x550] sm:$0xf0]  ;;  %v7828_v8 = vld [vmem:[#allocation5 + $0x744] sm:$0xf]  ;;  %v5651_v10 = vor.u32 %v7732_v1, %v5648_v2  ;;  %v5350_v44 = vld [vmem:[#allocation5 + $0x1e8] sm:$0xf]  ;;  %v5207_v2 = vor.u32 %v7623_v58, %v5206_v57 }
  0x9a   :  { %v5904_v7 = vld [vmem:[#allocation5 + $0x650] sm:$0xf0]  ;;  %v5779_v11 = vor.u32 %v7764_v3, %v5776_v5  ;;  %v7728_v13 = vld [vmem:[#allocation5 + $0x424] sm:$0xf]  ;;  %v5351_v55 = vor.u32 %v7659_v46, %v5350_v44  ;;  %v7655_v61 = vld [vmem:[#allocation5 + $0x1d4] sm:$0xf0] }
  0x9b   :  { %1915 = vmatpush.bf16.msrb.mxu0 %v5683_v50  ;;  %v6032_v9 = vld [vmem:[#allocation5 + $0x750] sm:$0xf0]  ;;  %v5907_v12 = vor.u32 %v7796_v6, %v5904_v7  ;;  %v7760_v15 = vld [vmem:[#allocation5 + $0x524] sm:$0xf]  ;;  %v7719_v1 = vld [vmem:[#allocation5 + $0x3d4] sm:$0xf0]  ;;  %v5335_v3 = vor.u32 %v7655_v61, %v5334_v59 }
  0x9c   :  { %1928 = vmatpush.bf16.msrb.mxu1 %v5811_v51  ;;  %1941 = vmatpush.bf16.msrb.mxu2 %v5939_v52  ;;  %v5632_v14 = vld [vmem:[#allocation5 + $0x430] sm:$0xf0]  ;;  %v6035_v16 = vor.u32 %v7828_v8, %v6032_v9  ;;  %v7792_v18 = vld [vmem:[#allocation5 + $0x624] sm:$0xf]  ;;  %v5606_v51 = vld [vmem:[#allocation5 + $0x3e8] sm:$0xf] }
  0x9d   :  { %1954 = vmatpush.bf16.msrb.mxu3 %v6067_v56  ;;  %v5760_v17 = vld [vmem:[#allocation5 + $0x530] sm:$0xf0]  ;;  %v7824_v20 = vld [vmem:[#allocation5 + $0x724] sm:$0xf]  ;;  %v5635_v22 = vor.u32 %v7728_v13, %v5632_v14  ;;  %v7723_v52 = vld [vmem:[#allocation5 + $0x3f4] sm:$0xf0]  ;;  %v5479_v56 = vor.u32 %v7691_v48, %v5478_v47 }
  0x9e   :  { %v5888_v19 = vld [vmem:[#allocation5 + $0x630] sm:$0xf0]  ;;  %v7724_v23 = vld [vmem:[#allocation5 + $0x404] sm:$0xf]  ;;  %v5763_v25 = vor.u32 %v7760_v15, %v5760_v17  ;;  %v5607_v60 = vor.u32 %v7723_v52, %v5606_v51  ;;  %v5190_v5 = vld [vmem:[#allocation5 + $0xa8] sm:$0xf] }
  0x9f   :  { %1916 = vmatpush.bf16.msrb.mxu0 %v5667_v62  ;;  %v6016_v21 = vld [vmem:[#allocation5 + $0x730] sm:$0xf0]  ;;  %v5891_v26 = vor.u32 %v7792_v18, %v5888_v19  ;;  %v7756_v27 = vld [vmem:[#allocation5 + $0x504] sm:$0xf]  ;;  %v5462_v62 = vld [vmem:[#allocation5 + $0x2c8] sm:$0xf] }
  0xa0   :  { %1929 = vmatpush.bf16.msrb.mxu1 %v5795_v63  ;;  %1942 = vmatpush.bf16.msrb.mxu2 %v5923_v0  ;;  %v5616_v24 = vld [vmem:[#allocation5 + $0x410] sm:$0xf0]  ;;  %v7788_v29 = vld [vmem:[#allocation5 + $0x604] sm:$0xf]  ;;  %v6019_v30 = vor.u32 %v7824_v20, %v6016_v21  ;;  %v7687_v63 = vld [vmem:[#allocation5 + $0x2d4] sm:$0xf0] }
  0xa1   :  { %1955 = vmatpush.bf16.msrb.mxu3 %v6051_v4  ;;  %v5744_v28 = vld [vmem:[#allocation5 + $0x510] sm:$0xf0]  ;;  %v7820_v35 = vld [vmem:[#allocation5 + $0x704] sm:$0xf]  ;;  %v5619_v45 = vor.u32 %v7724_v23, %v5616_v24  ;;  %v5590_v0 = vld [vmem:[#allocation5 + $0x3c8] sm:$0xf]  ;;  %v5463_v4 = vor.u32 %v7687_v63, %v5462_v62 }
  0xa2   :  { %v5872_v31 = vld [vmem:[#allocation5 + $0x610] sm:$0xf0]  ;;  %v5747_v49 = vor.u32 %v7756_v27, %v5744_v28  ;;  %v7619_v6 = vld [vmem:[#allocation5 + $0xb4] sm:$0xf0]  ;;  %v5318_v7 = vld [vmem:[#allocation5 + $0x1a8] sm:$0xf]  ;;  %v5591_v8 = vor.u32 %v7719_v1, %v5590_v0 }
  0xa3   :  { %1917 = vmatpush.bf16.msrb.mxu0 %v5651_v10  ;;  %v6000_v36 = vld [vmem:[#allocation5 + $0x710] sm:$0xf0]  ;;  %v5875_v50 = vor.u32 %v7788_v29, %v5872_v31  ;;  %v7651_v9 = vld [vmem:[#allocation5 + $0x1b4] sm:$0xf0]  ;;  %v5446_v10 = vld [vmem:[#allocation5 + $0x2a8] sm:$0xf]  ;;  %v5191_v14 = vor.u32 %v7619_v6, %v5190_v5 }
  0xa4   :  { %1930 = vmatpush.bf16.msrb.mxu1 %v5779_v11  ;;  %1943 = vmatpush.bf16.msrb.mxu2 %v5907_v12  ;;  %v6003_v53 = vor.u32 %v7820_v35, %v6000_v36  ;;  %v7683_v11 = vld [vmem:[#allocation5 + $0x2b4] sm:$0xf0]  ;;  %v5574_v12 = vld [vmem:[#allocation5 + $0x3a8] sm:$0xf]  ;;  %v5319_v15 = vor.u32 %v7651_v9, %v5318_v7 }
  0xa5   :  { %1956 = vmatpush.bf16.msrb.mxu3 %v6035_v16  ;;  %v7715_v13 = vld [vmem:[#allocation5 + $0x3b4] sm:$0xf0]  ;;  %v5447_v16 = vor.u32 %v7683_v11, %v5446_v10  ;;  %v5174_v17 = vld [vmem:[#allocation5 + $0x88] sm:$0xf] }
  0xa6   :  { %v7615_v18 = vld [vmem:[#allocation5 + $0x94] sm:$0xf0]  ;;  %v5302_v19 = vld [vmem:[#allocation5 + $0x188] sm:$0xf]  ;;  %v5575_v20 = vor.u32 %v7715_v13, %v5574_v12 }
  0xa7   :  { %1918 = vmatpush.bf16.msrb.mxu0 %v5635_v22  ;;  %v7647_v21 = vld [vmem:[#allocation5 + $0x194] sm:$0xf0]  ;;  %v5430_v22 = vld [vmem:[#allocation5 + $0x288] sm:$0xf] }
  0xa8   :  { %1931 = vmatpush.bf16.msrb.mxu1 %v5763_v25  ;;  %1944 = vmatpush.bf16.msrb.mxu2 %v5891_v26  ;;  %v7679_v23 = vld [vmem:[#allocation5 + $0x294] sm:$0xf0]  ;;  %v5558_v24 = vld [vmem:[#allocation5 + $0x388] sm:$0xf]  ;;  %v5175_v26 = vor.u32 %v7615_v18, %v5174_v17  ;;  %v5303_v27 = vor.u32 %v7647_v21, %v5302_v19 }
  0xa9   :  { %1957 = vmatpush.bf16.msrb.mxu3 %v6019_v30  ;;  %v7711_v25 = vld [vmem:[#allocation5 + $0x394] sm:$0xf0]  ;;  %v5431_v28 = vor.u32 %v7679_v23, %v5430_v22  ;;  %v5158_v29 = vld [vmem:[#allocation5 + $0x68] sm:$0xf] }
  0xaa   :  { %v7611_v30 = vld [vmem:[#allocation5 + $0x74] sm:$0xf0]  ;;  %v5286_v31 = vld [vmem:[#allocation5 + $0x168] sm:$0xf]  ;;  %v5559_v35 = vor.u32 %v7711_v25, %v5558_v24 }
  0xab   :  { %1919 = vmatpush.bf16.msrb.mxu0 %v5619_v45  ;;  %v7643_v36 = vld [vmem:[#allocation5 + $0x174] sm:$0xf0]  ;;  %v5414_v39 = vld [vmem:[#allocation5 + $0x268] sm:$0xf]  ;;  %v5159_v46 = vor.u32 %v7611_v30, %v5158_v29 }
  0xac   :  { %1932 = vmatpush.bf16.msrb.mxu1 %v5747_v49  ;;  %1945 = vmatpush.bf16.msrb.mxu2 %v5875_v50  ;;  %v7675_v43 = vld [vmem:[#allocation5 + $0x274] sm:$0xf0]  ;;  %v5542_v44 = vld [vmem:[#allocation5 + $0x368] sm:$0xf]  ;;  %v5287_v47 = vor.u32 %v7643_v36, %v5286_v31 }
  0xad   :  { %1958 = vmatpush.bf16.msrb.mxu3 %v6003_v53  ;;  %v7707_v45 = vld [vmem:[#allocation5 + $0x374] sm:$0xf0]  ;;  %v5415_v48 = vor.u32 %v7675_v43, %v5414_v39  ;;  %v5142_v49 = vld [vmem:[#allocation5 + $0x48] sm:$0xf] }
  0xae   :  { %1920 = vmatmul.bf16.vlgmr.msrb.gmra.mxu0 %v8632_v37  ;;  %v7607_v50 = vld [vmem:[#allocation5 + $0x54] sm:$0xf0]  ;;  %v5270_v51 = vld [vmem:[#allocation5 + $0x148] sm:$0xf]  ;;  %v5543_v52 = vor.u32 %v7707_v45, %v5542_v44 }
  0xaf   :  { %1964 = vmatpush.bf16.msra.mxu0 %v5223_v54  ;;  %1946 = vmatmul.bf16.vlgmr.msrb.gmra.mxu2 %v8630_v32  ;;  %v7639_v53 = vld [vmem:[#allocation5 + $0x154] sm:$0xf0]  ;;  %v5398_v54 = vld [vmem:[#allocation5 + $0x248] sm:$0xf]  ;;  %v5143_v58 = vor.u32 %v7607_v50, %v5142_v49 }
  0xb0   :  { %1977 = vmatpush.bf16.msra.mxu1 %v5351_v55  ;;  %1990 = vmatpush.bf16.msra.mxu2 %v5479_v56  ;;  %v7671_v55 = vld [vmem:[#allocation5 + $0x254] sm:$0xf0]  ;;  %v5526_v56 = vld [vmem:[#allocation5 + $0x348] sm:$0xf]  ;;  %v5271_v59 = vor.u32 %v7639_v53, %v5270_v51 }
  0xb1   :  { %2003 = vmatpush.bf16.msra.mxu3 %v5607_v60  ;;  %1933 = vmatmul.bf16.vlgmr.msrb.gmra.mxu1 %v8636_v40  ;;  %v7703_v57 = vld [vmem:[#allocation5 + $0x354] sm:$0xf0]  ;;  %v5399_v60 = vor.u32 %v7671_v55, %v5398_v54  ;;  %v5126_v61 = vld [vmem:[#allocation5 + $0x28] sm:$0xf] }
  0xb2   :  { %1959 = vmatmul.bf16.vlgmr.msrb.gmra.mxu3 %v8634_v38  ;;  %v7603_v62 = vld [vmem:[#allocation5 + $0x34] sm:$0xf0]  ;;  %v5254_v63 = vld [vmem:[#allocation5 + $0x128] sm:$0xf]  ;;  %v5527_v0 = vor.u32 %v7703_v57, %v5526_v56 }
  0xb3   :  { %1965 = vmatpush.bf16.msra.mxu0 %v5207_v2  ;;  %v7635_v1 = vld [vmem:[#allocation5 + $0x134] sm:$0xf0]  ;;  %v5382_v2 = vld [vmem:[#allocation5 + $0x228] sm:$0xf]  ;;  %v5127_v6 = vor.u32 %v7603_v62, %v5126_v61 }
  0xb4   :  { %1978 = vmatpush.bf16.msra.mxu1 %v5335_v3  ;;  %1991 = vmatpush.bf16.msra.mxu2 %v5463_v4  ;;  %v7667_v3 = vld [vmem:[#allocation5 + $0x234] sm:$0xf0]  ;;  %v5510_v4 = vld [vmem:[#allocation5 + $0x328] sm:$0xf]  ;;  %v5255_v9 = vor.u32 %v7635_v1, %v5254_v63 }
  0xb5   :  { %2004 = vmatpush.bf16.msra.mxu3 %v5591_v8  ;;  %v7699_v5 = vld [vmem:[#allocation5 + $0x334] sm:$0xf0]  ;;  %v5110_v7 = vld [vmem:[#allocation5 + $0x8] sm:$0xf]  ;;  %v5383_v10 = vor.u32 %v7667_v3, %v5382_v2 }
  0xb6   :  { %v7599_v8 = vld [vmem:[#allocation5 + $0x14] sm:$0xf0]  ;;  %v5238_v11 = vld [vmem:[#allocation5 + $0x108] sm:$0xf] }
  0xb7   :  { %1966 = vmatpush.bf16.msra.mxu0 %v5191_v14  ;;  %v7631_v12 = vld [vmem:[#allocation5 + $0x114] sm:$0xf0]  ;;  %v5366_v13 = vld [vmem:[#allocation5 + $0x208] sm:$0xf]  ;;  %v5511_v14 = vor.u32 %v7699_v5, %v5510_v4  ;;  %v5111_v21 = vor.u32 %v7599_v8, %v5110_v7 }
  0xb8   :  { %1979 = vmatpush.bf16.msra.mxu1 %v5319_v15  ;;  %1992 = vmatpush.bf16.msra.mxu2 %v5447_v16  ;;  %v7663_v15 = vld [vmem:[#allocation5 + $0x214] sm:$0xf0]  ;;  %v5494_v16 = vld [vmem:[#allocation5 + $0x308] sm:$0xf]  ;;  %v5239_v25 = vor.u32 %v7631_v12, %v5238_v11 }
  0xb9   :  { %2005 = vmatpush.bf16.msra.mxu3 %v5575_v20  ;;  %v7695_v17 = vld [vmem:[#allocation5 + $0x314] sm:$0xf0]  ;;  %v5734_v18 = vld [vmem:[#allocation5 + $0x4e8] sm:$0xf] }
  0xba   :  { %v7755_v19 = vld [vmem:[#allocation5 + $0x4f4] sm:$0xf0]  ;;  %v5862_v20 = vld [vmem:[#allocation5 + $0x5e8] sm:$0xf]  ;;  %v5495_v29 = vor.u32 %v7695_v17, %v5494_v16 }
  0xbb   :  { %1967 = vmatpush.bf16.msra.mxu0 %v5175_v26  ;;  %v7787_v22 = vld [vmem:[#allocation5 + $0x5f4] sm:$0xf0]  ;;  %v5990_v23 = vld [vmem:[#allocation5 + $0x6e8] sm:$0xf]  ;;  %v5367_v26 = vor.u32 %v7663_v15, %v5366_v13  ;;  %v5735_v30 = vor.u32 %v7755_v19, %v5734_v18 }
  0xbc   :  { %1980 = vmatpush.bf16.msra.mxu1 %v5303_v27  ;;  %1993 = vmatpush.bf16.msra.mxu2 %v5431_v28  ;;  %v7819_v24 = vld [vmem:[#allocation5 + $0x6f4] sm:$0xf0]  ;;  %v6118_v27 = vld [vmem:[#allocation5 + $0x7e8] sm:$0xf]  ;;  %v5863_v31 = vor.u32 %v7787_v22, %v5862_v20 }
  0xbd   :  { %2006 = vmatpush.bf16.msra.mxu3 %v5559_v35  ;;  %v7851_v28 = vld [vmem:[#allocation5 + $0x7f4] sm:$0xf0]  ;;  %v5991_v35 = vor.u32 %v7819_v24, %v5990_v23  ;;  %v5718_v36 = vld [vmem:[#allocation5 + $0x4c8] sm:$0xf] }
  0xbe   :  { %v7751_v39 = vld [vmem:[#allocation5 + $0x4d4] sm:$0xf0]  ;;  %v5846_v43 = vld [vmem:[#allocation5 + $0x5c8] sm:$0xf]  ;;  %v6119_v44 = vor.u32 %v7851_v28, %v6118_v27 }
  0xbf   :  { %1968 = vmatpush.bf16.msra.mxu0 %v5159_v46  ;;  %v7783_v45 = vld [vmem:[#allocation5 + $0x5d4] sm:$0xf0]  ;;  %v5974_v46 = vld [vmem:[#allocation5 + $0x6c8] sm:$0xf]  ;;  %v5719_v50 = vor.u32 %v7751_v39, %v5718_v36 }
  0xc0   :  { %1981 = vmatpush.bf16.msra.mxu1 %v5287_v47  ;;  %1994 = vmatpush.bf16.msra.mxu2 %v5415_v48  ;;  %v7815_v47 = vld [vmem:[#allocation5 + $0x6d4] sm:$0xf0]  ;;  %v6102_v48 = vld [vmem:[#allocation5 + $0x7c8] sm:$0xf]  ;;  %v5847_v51 = vor.u32 %v7783_v45, %v5846_v43 }
  0xc1   :  { %2007 = vmatpush.bf16.msra.mxu3 %v5543_v52  ;;  %v7847_v49 = vld [vmem:[#allocation5 + $0x7d4] sm:$0xf0]  ;;  %v5975_v52 = vor.u32 %v7815_v47, %v5974_v46  ;;  %v5702_v53 = vld [vmem:[#allocation5 + $0x4a8] sm:$0xf] }
  0xc2   :  { %v7747_v54 = vld [vmem:[#allocation5 + $0x4b4] sm:$0xf0]  ;;  %v5830_v55 = vld [vmem:[#allocation5 + $0x5a8] sm:$0xf]  ;;  %v6103_v56 = vor.u32 %v7847_v49, %v6102_v48 }
  0xc3   :  { %1969 = vmatpush.bf16.msra.mxu0 %v5143_v58  ;;  %v7779_v57 = vld [vmem:[#allocation5 + $0x5b4] sm:$0xf0]  ;;  %v5958_v58 = vld [vmem:[#allocation5 + $0x6a8] sm:$0xf]  ;;  %v5703_v62 = vor.u32 %v7747_v54, %v5702_v53 }
  0xc4   :  { %1982 = vmatpush.bf16.msra.mxu1 %v5271_v59  ;;  %1995 = vmatpush.bf16.msra.mxu2 %v5399_v60  ;;  %v7811_v59 = vld [vmem:[#allocation5 + $0x6b4] sm:$0xf0]  ;;  %v6086_v60 = vld [vmem:[#allocation5 + $0x7a8] sm:$0xf]  ;;  %v5831_v63 = vor.u32 %v7779_v57, %v5830_v55 }
  0xc5   :  { %2008 = vmatpush.bf16.msra.mxu3 %v5527_v0  ;;  %v7843_v61 = vld [vmem:[#allocation5 + $0x7b4] sm:$0xf0]  ;;  %v5959_v0 = vor.u32 %v7811_v59, %v5958_v58  ;;  %v5686_v1 = vld [vmem:[#allocation5 + $0x488] sm:$0xf] }
  0xc6   :  { %v7743_v2 = vld [vmem:[#allocation5 + $0x494] sm:$0xf0]  ;;  %v5814_v3 = vld [vmem:[#allocation5 + $0x588] sm:$0xf]  ;;  %v6087_v4 = vor.u32 %v7843_v61, %v6086_v60 }
  0xc7   :  { %1970 = vmatpush.bf16.msra.mxu0 %v5127_v6  ;;  %v7775_v5 = vld [vmem:[#allocation5 + $0x594] sm:$0xf0]  ;;  %v5942_v6 = vld [vmem:[#allocation5 + $0x688] sm:$0xf] }
  0xc8   :  { %1983 = vmatpush.bf16.msra.mxu1 %v5255_v9  ;;  %1996 = vmatpush.bf16.msra.mxu2 %v5383_v10  ;;  %v7807_v7 = vld [vmem:[#allocation5 + $0x694] sm:$0xf0]  ;;  %v6070_v8 = vld [vmem:[#allocation5 + $0x788] sm:$0xf]  ;;  %v5687_v10 = vor.u32 %v7743_v2, %v5686_v1  ;;  %v5815_v11 = vor.u32 %v7775_v5, %v5814_v3 }
  0xc9   :  { %2009 = vmatpush.bf16.msra.mxu3 %v5511_v14  ;;  %v7839_v9 = vld [vmem:[#allocation5 + $0x794] sm:$0xf0]  ;;  %v5943_v12 = vor.u32 %v7807_v7, %v5942_v6  ;;  %v5670_v13 = vld [vmem:[#allocation5 + $0x468] sm:$0xf]  ;;  %v7625_v6 = vld [vmem:[#allocation5 + $0xec] sm:$0xf] }
  0xca   :  { %v7739_v14 = vld [vmem:[#allocation5 + $0x474] sm:$0xf0]  ;;  %v5798_v15 = vld [vmem:[#allocation5 + $0x568] sm:$0xf]  ;;  %v6071_v16 = vor.u32 %v7839_v9, %v6070_v8  ;;  %v5224_v7 = vld [vmem:[#allocation5 + $0xf8] sm:$0xf0] }
  0xcb   :  { %1971 = vmatpush.bf16.msra.mxu0 %v5111_v21  ;;  %v7771_v17 = vld [vmem:[#allocation5 + $0x574] sm:$0xf0]  ;;  %v5926_v18 = vld [vmem:[#allocation5 + $0x668] sm:$0xf]  ;;  %v5671_v22 = vor.u32 %v7739_v14, %v5670_v13  ;;  %v7657_v8 = vld [vmem:[#allocation5 + $0x1ec] sm:$0xf] }
  0xcc   :  { %1984 = vmatpush.bf16.msra.mxu1 %v5239_v25  ;;  %1997 = vmatpush.bf16.msra.mxu2 %v5367_v26  ;;  %v7803_v19 = vld [vmem:[#allocation5 + $0x674] sm:$0xf0]  ;;  %v6054_v20 = vld [vmem:[#allocation5 + $0x768] sm:$0xf]  ;;  %v5799_v24 = vor.u32 %v7771_v17, %v5798_v15  ;;  %v5480_v13 = vld [vmem:[#allocation5 + $0x2f8] sm:$0xf0] }
  0xcd   :  { %2010 = vmatpush.bf16.msra.mxu3 %v5495_v29  ;;  %v7835_v21 = vld [vmem:[#allocation5 + $0x774] sm:$0xf0]  ;;  %v5654_v23 = vld [vmem:[#allocation5 + $0x448] sm:$0xf]  ;;  %v5927_v25 = vor.u32 %v7803_v19, %v5926_v18  ;;  %v7721_v17 = vld [vmem:[#allocation5 + $0x3ec] sm:$0xf] }
  0xce   :  { %1972 = vmatmul.bf16.vlgmr.msra.gmra.mxu0 %v8620_v34  ;;  %v7735_v26 = vld [vmem:[#allocation5 + $0x454] sm:$0xf0]  ;;  %v5782_v27 = vld [vmem:[#allocation5 + $0x548] sm:$0xf]  ;;  %v6055_v29 = vor.u32 %v7835_v21, %v6054_v20  ;;  %v5608_v18 = vld [vmem:[#allocation5 + $0x3f8] sm:$0xf0]  ;;  %v5227_v20 = vor.u32 %v7625_v6, %v5224_v7 }
  0xcf   :  { %2016 = vmatpush.bf16.msrb.mxu0 %v5735_v30  ;;  %1998 = vmatmul.bf16.vlgmr.msra.gmra.mxu2 %v8618_v33  ;;  %v7767_v28 = vld [vmem:[#allocation5 + $0x554] sm:$0xf0]  ;;  %v5910_v30 = vld [vmem:[#allocation5 + $0x648] sm:$0xf]  ;;  %v5655_v43 = vor.u32 %v7735_v26, %v5654_v23  ;;  %v7653_v26 = vld [vmem:[#allocation5 + $0x1cc] sm:$0xf] }
  0xd0   :  { %2029 = vmatpush.bf16.msrb.mxu1 %v5863_v31  ;;  %2042 = vmatpush.bf16.msrb.mxu2 %v5991_v35  ;;  %v7799_v31 = vld [vmem:[#allocation5 + $0x654] sm:$0xf0]  ;;  %v8657_v35 = vld [vmem:[%s8861_s7] sm:$0xf]  ;;  %v5783_v45 = vor.u32 %v7767_v28, %v5782_v27  ;;  %v5432_v6 = vld [vmem:[#allocation5 + $0x298] sm:$0xf0] }
  0xd1   :  { %2055 = vmatpush.bf16.msrb.mxu3 %v6119_v44  ;;  %1985 = vmatmul.bf16.vlgmr.msra.gmra.mxu1 %v8624_v42  ;;  %v6038_v36 = vld [vmem:[#allocation5 + $0x748] sm:$0xf]  ;;  %v7831_v39 = vld [vmem:[#allocation5 + $0x754] sm:$0xf0]  ;;  %v5911_v46 = vor.u32 %v7799_v31, %v5910_v30  ;;  %v468_v49 = vperm.slane %v8657_v35, 0 }
  0xd2   :  { %2011 = vmatmul.bf16.vlgmr.msra.gmra.mxu3 %v8622_v41  ;;  %v5638_v44 = vld [vmem:[#allocation5 + $0x428] sm:$0xf]  ;;  %v7731_v47 = vld [vmem:[#allocation5 + $0x434] sm:$0xf0]  ;;  %v5336_v30 = vld [vmem:[#allocation5 + $0x1d8] sm:$0xf0] }
  0xd3   :  { %2017 = vmatpush.bf16.msrb.mxu0 %v5719_v50  ;;  %v5766_v48 = vld [vmem:[#allocation5 + $0x528] sm:$0xf]  ;;  %v6039_v50 = vor.u32 %v7831_v39, %v6038_v36  ;;  %v7795_v53 = vld [vmem:[#allocation5 + $0x634] sm:$0xf0]  ;;  %v7685_v31 = vld [vmem:[#allocation5 + $0x2cc] sm:$0xf] }
  0xd4   :  { %2030 = vmatpush.bf16.msrb.mxu1 %v5847_v51  ;;  %2043 = vmatpush.bf16.msrb.mxu2 %v5975_v52  ;;  %v7763_v51 = vld [vmem:[#allocation5 + $0x534] sm:$0xf0]  ;;  %v5894_v52 = vld [vmem:[#allocation5 + $0x628] sm:$0xf]  ;;  %v5464_v36 = vld [vmem:[#allocation5 + $0x2d8] sm:$0xf0] }
  0xd5   :  { %2056 = vmatpush.bf16.msrb.mxu3 %v6103_v56  ;;  %v6022_v54 = vld [vmem:[#allocation5 + $0x728] sm:$0xf]  ;;  %v7827_v55 = vld [vmem:[#allocation5 + $0x734] sm:$0xf0]  ;;  %v5639_v56 = vor.u32 %v7731_v47, %v5638_v44  ;;  %v5767_v60 = vor.u32 %v7763_v51, %v5766_v48  ;;  %v5895_v61 = vor.u32 %v7795_v53, %v5894_v52  ;;  %v5592_v44 = vld [vmem:[#allocation5 + $0x3d8] sm:$0xf0]  ;;  %v5339_v47 = vor.u32 %v7653_v26, %v5336_v30 }
  0xd6   :  { %v5622_v57 = vld [vmem:[#allocation5 + $0x408] sm:$0xf]  ;;  %v7727_v58 = vld [vmem:[#allocation5 + $0x414] sm:$0xf0]  ;;  %v6023_v2 = vor.u32 %v7827_v55, %v6022_v54  ;;  %v5467_v48 = vor.u32 %v7685_v31, %v5464_v36  ;;  %v7649_v51 = vld [vmem:[#allocation5 + $0x1ac] sm:$0xf] }
  0xd7   :  { %2018 = vmatpush.bf16.msrb.mxu0 %v5703_v62  ;;  %v5750_v62 = vld [vmem:[#allocation5 + $0x508] sm:$0xf]  ;;  %v7791_v3 = vld [vmem:[#allocation5 + $0x614] sm:$0xf0]  ;;  %v5320_v54 = vld [vmem:[#allocation5 + $0x1b8] sm:$0xf0] }
  0xd8   :  { %2031 = vmatpush.bf16.msrb.mxu1 %v5831_v63  ;;  %2044 = vmatpush.bf16.msrb.mxu2 %v5959_v0  ;;  %v7759_v63 = vld [vmem:[#allocation5 + $0x514] sm:$0xf0]  ;;  %v5878_v0 = vld [vmem:[#allocation5 + $0x608] sm:$0xf]  ;;  %v7681_v55 = vld [vmem:[#allocation5 + $0x2ac] sm:$0xf] }
  0xd9   :  { %2057 = vmatpush.bf16.msrb.mxu3 %v6087_v4  ;;  %v6006_v4 = vld [vmem:[#allocation5 + $0x708] sm:$0xf]  ;;  %v7823_v5 = vld [vmem:[#allocation5 + $0x714] sm:$0xf0]  ;;  %v5751_v15 = vor.u32 %v7759_v63, %v5750_v62  ;;  %v7613_v63 = vld [vmem:[#allocation5 + $0x8c] sm:$0xf] }
  0xda   :  { %v6007_v19 = vor.u32 %v7823_v5, %v6006_v4  ;;  %v5304_v4 = vld [vmem:[#allocation5 + $0x198] sm:$0xf0]  ;;  %v7677_v5 = vld [vmem:[#allocation5 + $0x28c] sm:$0xf] }
  0xdb   :  { %2019 = vmatpush.bf16.msrb.mxu0 %v5687_v10  ;;  %v5623_v10 = vor.u32 %v7727_v58, %v5622_v57  ;;  %v7713_v57 = vld [vmem:[#allocation5 + $0x3ac] sm:$0xf]  ;;  %v5576_v58 = vld [vmem:[#allocation5 + $0x3b8] sm:$0xf0] }
  0xdc   :  { %2032 = vmatpush.bf16.msrb.mxu1 %v5815_v11  ;;  %2045 = vmatpush.bf16.msrb.mxu2 %v5943_v12  ;;  %v5352_v11 = vld [vmem:[#allocation5 + $0x1f8] sm:$0xf0]  ;;  %v7689_v12 = vld [vmem:[#allocation5 + $0x2ec] sm:$0xf] }
  0xdd   :  { %2058 = vmatpush.bf16.msrb.mxu3 %v6071_v16  ;;  %v5879_v16 = vor.u32 %v7791_v3, %v5878_v0  ;;  %v5483_v23 = vor.u32 %v7689_v12, %v5480_v13  ;;  %v5176_v0 = vld [vmem:[#allocation5 + $0x98] sm:$0xf0]  ;;  %v5579_v3 = vor.u32 %v7713_v57, %v5576_v58  ;;  %v7709_v7 = vld [vmem:[#allocation5 + $0x38c] sm:$0xf]  ;;  %v5435_v12 = vor.u32 %v7677_v5, %v5432_v6 }
  0xde   :  { %v1765_v59 = vpop.f32.mrf.mxu0  ;;  %v7609_v13 = vld [vmem:[#allocation5 + $0x6c] sm:$0xf]  ;;  %v5240_v6 = vld [vmem:[#allocation5 + $0x118] sm:$0xf0] }
  0xdf   :  { %2020 = vmatpush.bf16.msrb.mxu0 %v5671_v22  ;;  %v1766_v1 = vadd.f32 %v1765_v59, %v468_v49  ;;  %v1778_v9 = vpop.f32.mrf.mxu1  ;;  %v5355_v22 = vor.u32 %v7657_v8, %v5352_v11  ;;  %v7617_v49 = vld [vmem:[#allocation5 + $0xac] sm:$0xf]  ;;  %v5560_v8 = vld [vmem:[#allocation5 + $0x398] sm:$0xf0] }
  0xe0   :  { %2033 = vmatpush.bf16.msrb.mxu1 %v5799_v24  ;;  %2046 = vmatpush.bf16.msrb.mxu2 %v5927_v25  ;;  %v7621_v24 = vld [vmem:[#allocation5 + $0xcc] sm:$0xf]  ;;  %v5208_v25 = vld [vmem:[#allocation5 + $0xd8] sm:$0xf0] }
  0xe1   :  { %2059 = vmatpush.bf16.msrb.mxu3 %v6055_v29  ;;  %v1779_v14 = vadd.f32 %v1778_v9, %v1766_v1  ;;  %v5611_v29 = vor.u32 %v7721_v17, %v5608_v18  ;;  %v7645_v1 = vld [vmem:[#allocation5 + $0x18c] sm:$0xf]  ;;  %v5179_v9 = vor.u32 %v7613_v63, %v5176_v0  ;;  %v5563_v18 = vor.u32 %v7709_v7, %v5560_v8  ;;  %v5512_v63 = vld [vmem:[#allocation5 + $0x338] sm:$0xf0] }
  0xe2   :  { %v5307_v11 = vor.u32 %v7645_v1, %v5304_v4  ;;  %v7637_v30 = vld [vmem:[#allocation5 + $0x14c] sm:$0xf] }
  0xe3   :  { %2021 = vmatpush.bf16.msrb.mxu0 %v5655_v43  ;;  %v7717_v43 = vld [vmem:[#allocation5 + $0x3cc] sm:$0xf] }
  0xe4   :  { %2034 = vmatpush.bf16.msrb.mxu1 %v5783_v45  ;;  %2047 = vmatpush.bf16.msrb.mxu2 %v5911_v46  ;;  %v1791_v21 = vpop.f32.mrf.mxu2  ;;  %v5211_v46 = vor.u32 %v7621_v24, %v5208_v25  ;;  %v5595_v53 = vor.u32 %v7717_v43, %v5592_v44  ;;  %v7669_v43 = vld [vmem:[#allocation5 + $0x24c] sm:$0xf]  ;;  %v5400_v44 = vld [vmem:[#allocation5 + $0x258] sm:$0xf0] }
  0xe5   :  { %2060 = vmatpush.bf16.msrb.mxu3 %v6039_v50  ;;  %v1792_v27 = vadd.f32 %v1791_v21, %v1779_v14  ;;  %v1804_v28 = vpop.f32.mrf.mxu3  ;;  %v5192_v50 = vld [vmem:[#allocation5 + $0xb8] sm:$0xf0]  ;;  %v7597_v1 = vld [vmem:[#allocation5 + $0xc] sm:$0xf] }
  0xe6   :  { %v1767_v39 = vpop.f32.mrf.mxu0  ;;  %v5195_v59 = vor.u32 %v7617_v49, %v5192_v50  ;;  %v5160_v14 = vld [vmem:[#allocation5 + $0x78] sm:$0xf0]  ;;  %v7629_v5 = vld [vmem:[#allocation5 + $0x10c] sm:$0xf] }
  0xe7   :  { %2022 = vmatpush.bf16.msrb.mxu0 %v5639_v56  ;;  %v1805_v45 = vadd.f32 %v1804_v28, %v1792_v27  ;;  %v1780_v52 = vpop.f32.mrf.mxu1  ;;  %v5448_v56 = vld [vmem:[#allocation5 + $0x2b8] sm:$0xf0]  ;;  %v5163_v25 = vor.u32 %v7609_v13, %v5160_v14  ;;  %v7605_v28 = vld [vmem:[#allocation5 + $0x4c] sm:$0xf] }
  0xe8   :  { %2035 = vmatpush.bf16.msrb.mxu1 %v5767_v60  ;;  %2048 = vmatpush.bf16.msrb.mxu2 %v5895_v61  ;;  %v5323_v61 = vor.u32 %v7649_v51, %v5320_v54  ;;  %v5451_v62 = vor.u32 %v7681_v55, %v5448_v56  ;;  %v5416_v21 = vld [vmem:[#allocation5 + $0x278] sm:$0xf0]  ;;  %v7601_v54 = vld [vmem:[#allocation5 + $0x2c] sm:$0xf] }
  0xe9   :  { %2061 = vmatpush.bf16.msrb.mxu3 %v6023_v2  ;;  %v5272_v39 = vld [vmem:[#allocation5 + $0x158] sm:$0xf0]  ;;  %v7633_v56 = vld [vmem:[#allocation5 + $0x12c] sm:$0xf] }
  0xea   :  { %v5275_v52 = vor.u32 %v7637_v30, %v5272_v39  ;;  %v5128_v55 = vld [vmem:[#allocation5 + $0x38] sm:$0xf0]  ;;  %v7661_v7 = vld [vmem:[#allocation5 + $0x20c] sm:$0xf] }
  0xeb   :  { %2023 = vmatpush.bf16.msrb.mxu0 %v5623_v10  ;;  %v5131_v0 = vor.u32 %v7601_v54, %v5128_v55  ;;  %v7753_v14 = vld [vmem:[#allocation5 + $0x4ec] sm:$0xf]  ;;  %v5720_v30 = vld [vmem:[#allocation5 + $0x4d8] sm:$0xf0] }
  0xec   :  { %2036 = vmatpush.bf16.msrb.mxu1 %v5751_v15  ;;  %2049 = vmatpush.bf16.msrb.mxu2 %v5879_v16  ;;  %v1793_v60 = vpop.f32.mrf.mxu2  ;;  %v7641_v15 = vld [vmem:[#allocation5 + $0x16c] sm:$0xf]  ;;  %v5848_v39 = vld [vmem:[#allocation5 + $0x5d8] sm:$0xf0] }
  0xed   :  { %2062 = vmatpush.bf16.msrb.mxu3 %v6007_v19  ;;  %v1806_v2 = vpop.f32.mrf.mxu3  ;;  %v5288_v19 = vld [vmem:[#allocation5 + $0x178] sm:$0xf0]  ;;  %v7665_v60 = vld [vmem:[#allocation5 + $0x22c] sm:$0xf] }
  0xee   :  { %2024 = vmatmul.bf16.vlgmr.msrb.gmra.mxu0 %v8632_v37  ;;  %v5291_v26 = vor.u32 %v7641_v15, %v5288_v19  ;;  %v5112_v2 = vld [vmem:[#allocation5 + $0x18] sm:$0xf0]  ;;  %v7817_v19 = vld [vmem:[#allocation5 + $0x6ec] sm:$0xf] }
  0xef   :  { %2068 = vmatpush.bf16.msra.mxu0 %v5227_v20  ;;  %2050 = vmatmul.bf16.vlgmr.msrb.gmra.mxu2 %v8630_v32  ;;  %v1817_v10 = vpop.f32.mrf.mxu0  ;;  %v7673_v20 = vld [vmem:[#allocation5 + $0x26c] sm:$0xf]  ;;  %v5736_v15 = vld [vmem:[#allocation5 + $0x4f8] sm:$0xf0] }
  0xf0   :  { %2081 = vmatpush.bf16.msra.mxu1 %v5355_v22  ;;  %2094 = vmatpush.bf16.msra.mxu2 %v5483_v23  ;;  %v1818_v16 = vadd.f32 %v1817_v10, %v1805_v45  ;;  %v1830_v17 = vpop.f32.mrf.mxu1  ;;  %v7705_v22 = vld [vmem:[#allocation5 + $0x36c] sm:$0xf]  ;;  %v5544_v23 = vld [vmem:[#allocation5 + $0x378] sm:$0xf0]  ;;  %v5419_v27 = vor.u32 %v7673_v20, %v5416_v21  ;;  %v5243_v21 = vor.u32 %v7629_v5, %v5240_v6 }
  0xf1   :  { %2107 = vmatpush.bf16.msra.mxu3 %v5611_v29  ;;  %2037 = vmatmul.bf16.vlgmr.msrb.gmra.mxu1 %v8636_v40  ;;  %v5144_v29 = vld [vmem:[#allocation5 + $0x58] sm:$0xf0]  ;;  %v5547_v36 = vor.u32 %v7705_v22, %v5544_v23  ;;  %v7849_v23 = vld [vmem:[#allocation5 + $0x7ec] sm:$0xf] }
  0xf2   :  { %2063 = vmatmul.bf16.vlgmr.msrb.gmra.mxu3 %v8634_v38  ;;  %v1831_v24 = vadd.f32 %v1830_v17, %v1818_v16  ;;  %v5147_v49 = vor.u32 %v7605_v28, %v5144_v29  ;;  %v5368_v10 = vld [vmem:[#allocation5 + $0x218] sm:$0xf0]  ;;  %v7785_v16 = vld [vmem:[#allocation5 + $0x5ec] sm:$0xf]  ;;  %v5115_v17 = vor.u32 %v7597_v1, %v5112_v2 }
  0xf3   :  { %2069 = vmatpush.bf16.msra.mxu0 %v5211_v46  ;;  %v5992_v20 = vld [vmem:[#allocation5 + $0x6f8] sm:$0xf0]  ;;  %v5371_v22 = vor.u32 %v7661_v7, %v5368_v10  ;;  %v7749_v29 = vld [vmem:[#allocation5 + $0x4cc] sm:$0xf] }
  0xf4   :  { %2082 = vmatpush.bf16.msra.mxu1 %v5339_v47  ;;  %2095 = vmatpush.bf16.msra.mxu2 %v5467_v48  ;;  %v1843_v31 = vpop.f32.mrf.mxu2  ;;  %v7701_v47 = vld [vmem:[#allocation5 + $0x34c] sm:$0xf]  ;;  %v5528_v48 = vld [vmem:[#allocation5 + $0x358] sm:$0xf0]  ;;  %v5995_v28 = vor.u32 %v7817_v19, %v5992_v20 }
  0xf5   :  { %2108 = vmatpush.bf16.msra.mxu3 %v5595_v53  ;;  %v1844_v45 = vadd.f32 %v1843_v31, %v1831_v24  ;;  %v1856_v46 = vpop.f32.mrf.mxu3  ;;  %v5403_v53 = vor.u32 %v7669_v43, %v5400_v44  ;;  %v5531_v58 = vor.u32 %v7701_v47, %v5528_v48  ;;  %v6120_v24 = vld [vmem:[#allocation5 + $0x7f8] sm:$0xf0]  ;;  %v7781_v31 = vld [vmem:[#allocation5 + $0x5cc] sm:$0xf]  ;;  %v5723_v47 = vor.u32 %v7749_v29, %v5720_v30 }
  0xf6   :  { %v7813_v43 = vld [vmem:[#allocation5 + $0x6cc] sm:$0xf]  ;;  %v5976_v44 = vld [vmem:[#allocation5 + $0x6d8] sm:$0xf0]  ;;  %v5851_v48 = vor.u32 %v7781_v31, %v5848_v39 }
  0xf7   :  { %2070 = vmatpush.bf16.msra.mxu0 %v5195_v59  ;;  %v8664_v50 = vadd.f32 %v1856_v46, %v1844_v45  ;;  %v1819_v51 = vpop.f32.mrf.mxu0  ;;  %v5256_v59 = vld [vmem:[#allocation5 + $0x138] sm:$0xf0]  ;;  %v7845_v45 = vld [vmem:[#allocation5 + $0x7cc] sm:$0xf] }
  0xf8   :  { %2083 = vmatpush.bf16.msra.mxu1 %v5323_v61  ;;  %2096 = vmatpush.bf16.msra.mxu2 %v5451_v62  ;;  %v1832_v57 = vpop.f32.mrf.mxu1  ;;  %v5384_v61 = vld [vmem:[#allocation5 + $0x238] sm:$0xf0]  ;;  %v7697_v62 = vld [vmem:[#allocation5 + $0x32c] sm:$0xf] }
  0xf9   :  { %2109 = vmatpush.bf16.msra.mxu3 %v5579_v3  ;;  %v5259_v3 = vor.u32 %v7633_v56, %v5256_v59  ;;  %v5387_v4 = vor.u32 %v7665_v60, %v5384_v61  ;;  %v6104_v46 = vld [vmem:[#allocation5 + $0x7d8] sm:$0xf0]  ;;  %v7745_v51 = vld [vmem:[#allocation5 + $0x4ac] sm:$0xf] }
  0xfa   :  { %v6107_v54 = vor.u32 %v7845_v45, %v6104_v46  ;;  %v5832_v55 = vld [vmem:[#allocation5 + $0x5b8] sm:$0xf0]  ;;  %v7809_v56 = vld [vmem:[#allocation5 + $0x6ac] sm:$0xf] }
  0xfb   :  { %2071 = vmatpush.bf16.msra.mxu0 %v5179_v9  ;;  %v5515_v9 = vor.u32 %v7697_v62, %v5512_v63  ;;  %v5960_v57 = vld [vmem:[#allocation5 + $0x6b8] sm:$0xf0]  ;;  %v7741_v63 = vld [vmem:[#allocation5 + $0x48c] sm:$0xf] }
  0xfc   :  { %2084 = vmatpush.bf16.msra.mxu1 %v5307_v11  ;;  %2097 = vmatpush.bf16.msra.mxu2 %v5435_v12  ;;  %v1845_v8 = vpop.f32.mrf.mxu2  ;;  %v7693_v11 = vld [vmem:[#allocation5 + $0x30c] sm:$0xf]  ;;  %v5496_v12 = vld [vmem:[#allocation5 + $0x318] sm:$0xf0]  ;;  %v5963_v62 = vor.u32 %v7809_v56, %v5960_v57  ;;  %v469_v56 = vperm.slane %v8657_v35, 1 }
  0xfd   :  { %2110 = vmatpush.bf16.msra.mxu3 %v5563_v18  ;;  %v1858_v13 = vpop.f32.mrf.mxu3  ;;  %v5864_v18 = vld [vmem:[#allocation5 + $0x5f8] sm:$0xf0]  ;;  %v7837_v5 = vld [vmem:[#allocation5 + $0x78c] sm:$0xf]  ;;  %v7882_v35 = vld [vmem:[#allocation7 + $0xec] sm:$0xf0] }
  0xfe   :  { %v6088_v59 = vld [vmem:[#allocation5 + $0x7b8] sm:$0xf0]  ;;  %v7737_v8 = vld [vmem:[#allocation5 + $0x46c] sm:$0xf] }
  0xff   :  { %2072 = vmatpush.bf16.msra.mxu0 %v5163_v25  ;;  %v5499_v25 = vor.u32 %v7693_v11, %v5496_v12  ;;  %v5816_v2 = vld [vmem:[#allocation5 + $0x598] sm:$0xf0]  ;;  %v7769_v10 = vld [vmem:[#allocation5 + $0x56c] sm:$0xf] }
 0x100   :  { %2085 = vmatpush.bf16.msra.mxu1 %v5291_v26  ;;  %2098 = vmatpush.bf16.msra.mxu2 %v5419_v27  ;;  %v5739_v26 = vor.u32 %v7753_v14, %v5736_v15  ;;  %v5867_v27 = vor.u32 %v7785_v16, %v5864_v18  ;;  %v5800_v13 = vld [vmem:[#allocation5 + $0x578] sm:$0xf0]  ;;  %v7801_v14 = vld [vmem:[#allocation5 + $0x66c] sm:$0xf] }
 0x101   :  { %2111 = vmatpush.bf16.msra.mxu3 %v5547_v36  ;;  %v6123_v36 = vor.u32 %v7849_v23, %v6120_v24  ;;  %v5928_v15 = vld [vmem:[#allocation5 + $0x678] sm:$0xf0]  ;;  %v7833_v16 = vld [vmem:[#allocation5 + $0x76c] sm:$0xf]  ;;  %v5803_v19 = vor.u32 %v7769_v10, %v5800_v13 }
 0x102   :  { %v5931_v20 = vor.u32 %v7801_v14, %v5928_v15  ;;  %v7765_v23 = vld [vmem:[#allocation5 + $0x54c] sm:$0xf]  ;;  %v6040_v31 = vld [vmem:[#allocation5 + $0x758] sm:$0xf0]  ;;  %v6494_v14 = vld [vmem:[#allocation7 + $0x2e0] sm:$0xf] }
 0x103   :  { %2073 = vmatpush.bf16.msra.mxu0 %v5147_v49  ;;  %v5979_v49 = vor.u32 %v7813_v43, %v5976_v44  ;;  %v7829_v30 = vld [vmem:[#allocation5 + $0x74c] sm:$0xf]  ;;  %v5640_v46 = vld [vmem:[#allocation5 + $0x438] sm:$0xf0]  ;;  %v7946_v15 = vld [vmem:[#allocation7 + $0x2ec] sm:$0xf0] }
 0x104   :  { %2086 = vmatpush.bf16.msra.mxu1 %v5275_v52  ;;  %2099 = vmatpush.bf16.msra.mxu2 %v5403_v53  ;;  %v5704_v52 = vld [vmem:[#allocation5 + $0x4b8] sm:$0xf0]  ;;  %v7777_v53 = vld [vmem:[#allocation5 + $0x5ac] sm:$0xf] }
 0x105   :  { %2112 = vmatpush.bf16.msra.mxu3 %v5531_v58  ;;  %v7841_v58 = vld [vmem:[#allocation5 + $0x7ac] sm:$0xf]  ;;  %v5707_v60 = vor.u32 %v7745_v51, %v5704_v52  ;;  %v5835_v61 = vor.u32 %v7777_v53, %v5832_v55  ;;  %v5768_v51 = vld [vmem:[#allocation5 + $0x538] sm:$0xf0] }
 0x106   :  { %v6091_v1 = vor.u32 %v7841_v58, %v6088_v59  ;;  %v7729_v45 = vld [vmem:[#allocation5 + $0x42c] sm:$0xf]  ;;  %v5896_v53 = vld [vmem:[#allocation5 + $0x638] sm:$0xf0] }
 0x107   :  { %2074 = vmatpush.bf16.msra.mxu0 %v5131_v0  ;;  %v5688_v0 = vld [vmem:[#allocation5 + $0x498] sm:$0xf0]  ;;  %v7793_v52 = vld [vmem:[#allocation5 + $0x62c] sm:$0xf]  ;;  %v5643_v57 = vor.u32 %v7729_v45, %v5640_v46  ;;  %v6190_v45 = vld [vmem:[#allocation7 + $0x80] sm:$0xf] }
 0x108   :  { %2087 = vmatpush.bf16.msra.mxu1 %v5259_v3  ;;  %2100 = vmatpush.bf16.msra.mxu2 %v5387_v4  ;;  %v7805_v3 = vld [vmem:[#allocation5 + $0x68c] sm:$0xf]  ;;  %v5944_v4 = vld [vmem:[#allocation5 + $0x698] sm:$0xf0]  ;;  %v7870_v46 = vld [vmem:[#allocation7 + $0x8c] sm:$0xf0] }
 0x109   :  { %2113 = vmatpush.bf16.msra.mxu3 %v5515_v9  ;;  %v5947_v7 = vor.u32 %v7805_v3, %v5944_v4  ;;  %v5672_v9 = vld [vmem:[#allocation5 + $0x478] sm:$0xf0]  ;;  %v7725_v58 = vld [vmem:[#allocation5 + $0x40c] sm:$0xf] }
 0x10a   :  { %v5675_v18 = vor.u32 %v7737_v8, %v5672_v9  ;;  %v6024_v55 = vld [vmem:[#allocation5 + $0x738] sm:$0xf0]  ;;  %v7821_v3 = vld [vmem:[#allocation5 + $0x70c] sm:$0xf]  ;;  %v7914_v8 = vld [vmem:[#allocation7 + $0x1ec] sm:$0xf0] }
 0x10b   :  { %2075 = vmatpush.bf16.msra.mxu0 %v5115_v17  ;;  %v8670_v6 = vpop.f32.mrf.mxu0  ;;  %v6056_v17 = vld [vmem:[#allocation5 + $0x778] sm:$0xf0] }
 0x10c   :  { %2088 = vmatpush.bf16.msra.mxu1 %v5243_v21  ;;  %2101 = vmatpush.bf16.msra.mxu2 %v5371_v22  ;;  %v7733_v21 = vld [vmem:[#allocation5 + $0x44c] sm:$0xf]  ;;  %v5656_v22 = vld [vmem:[#allocation5 + $0x458] sm:$0xf0] }
 0x10d   :  { %2114 = vmatpush.bf16.msra.mxu3 %v5499_v25  ;;  %v6059_v25 = vor.u32 %v7833_v16, %v6056_v17 }
 0x10e   :  { %2076 = vmatmul.bf16.vlgmr.msra.gmra.mxu0 %v8620_v34  ;;  %v6072_v34 = vld [vmem:[#allocation5 + $0x798] sm:$0xf0]  ;;  %v8672_v11 = vpop.f32.mrf.mxu1 }
 0x10f   :  { %2120 = vmatpush.bf16.msrb.mxu0 %v5739_v26  ;;  %2102 = vmatmul.bf16.vlgmr.msra.gmra.mxu2 %v8618_v33  ;;  %v7773_v33 = vld [vmem:[#allocation5 + $0x58c] sm:$0xf]  ;;  %v6075_v12 = vor.u32 %v7837_v5, %v6072_v34  ;;  %v5784_v26 = vld [vmem:[#allocation5 + $0x558] sm:$0xf0]  ;;  %v6238_v34 = vld [vmem:[#allocation7 + $0xe0] sm:$0xf] }
 0x110   :  { %2133 = vmatpush.bf16.msrb.mxu1 %v5867_v27  ;;  %2146 = vmatpush.bf16.msrb.mxu2 %v5995_v28  ;;  %v7797_v27 = vld [vmem:[#allocation5 + $0x64c] sm:$0xf]  ;;  %v5912_v28 = vld [vmem:[#allocation5 + $0x658] sm:$0xf0]  ;;  %v5787_v43 = vor.u32 %v7765_v23, %v5784_v26  ;;  %v6239_v13 = vor.u32 %v7882_v35, %v6238_v34  ;;  %v6478_v23 = vld [vmem:[#allocation7 + $0x2c0] sm:$0xf] }
 0x111   :  { %2159 = vmatpush.bf16.msrb.mxu3 %v6123_v36  ;;  %2089 = vmatmul.bf16.vlgmr.msra.gmra.mxu1 %v8624_v42  ;;  %v5819_v42 = vor.u32 %v7773_v33, %v5816_v2  ;;  %v5659_v36 = vor.u32 %v7733_v21, %v5656_v22  ;;  %v5915_v44 = vor.u32 %v7797_v27, %v5912_v28  ;;  %v5880_v2 = vld [vmem:[#allocation5 + $0x618] sm:$0xf0]  ;;  %v7874_v28 = vld [vmem:[#allocation7 + $0xac] sm:$0xf0] }
 0x112   :  { %2115 = vmatmul.bf16.vlgmr.msra.gmra.mxu3 %v8622_v41  ;;  %v5691_v41 = vor.u32 %v7741_v63, %v5688_v0  ;;  %v8674_v24 = vpop.f32.mrf.mxu2  ;;  %v5752_v63 = vld [vmem:[#allocation5 + $0x518] sm:$0xf0]  ;;  %v6495_v21 = vor.u32 %v7946_v15, %v6494_v14  ;;  %v7890_v14 = vld [vmem:[#allocation7 + $0x12c] sm:$0xf0] }
 0x113   :  { %2121 = vmatpush.bf16.msrb.mxu0 %v5723_v47  ;;  %v1871_v39 = vpop.f32.mrf.mxu0  ;;  %v7761_v47 = vld [vmem:[#allocation5 + $0x52c] sm:$0xf]  ;;  %v6008_v5 = vld [vmem:[#allocation5 + $0x718] sm:$0xf0] }
 0x114   :  { %2134 = vmatpush.bf16.msrb.mxu1 %v5851_v48  ;;  %2147 = vmatpush.bf16.msrb.mxu2 %v5979_v49  ;;  %v6043_v49 = vor.u32 %v7829_v30, %v6040_v31  ;;  %v5771_v59 = vor.u32 %v7761_v47, %v5768_v51  ;;  %v6334_v30 = vld [vmem:[#allocation7 + $0x1a0] sm:$0xf]  ;;  %v7906_v31 = vld [vmem:[#allocation7 + $0x1ac] sm:$0xf0] }
 0x115   :  { %2160 = vmatpush.bf16.msrb.mxu3 %v6107_v54  ;;  %v8676_v29 = vpop.f32.mrf.mxu3  ;;  %v7825_v54 = vld [vmem:[#allocation5 + $0x72c] sm:$0xf]  ;;  %v6318_v47 = vld [vmem:[#allocation7 + $0x180] sm:$0xf]  ;;  %v7934_v51 = vld [vmem:[#allocation7 + $0x28c] sm:$0xf0] }
 0x116   :  { %v1884_v48 = vpop.f32.mrf.mxu1  ;;  %v6027_v33 = vor.u32 %v7825_v54, %v6024_v55  ;;  %v7866_v54 = vld [vmem:[#allocation7 + $0x6c] sm:$0xf0] }
 0x117   :  { %2122 = vmatpush.bf16.msrb.mxu0 %v5707_v60  ;;  %v5899_v60 = vor.u32 %v7793_v52, %v5896_v53  ;;  %v6191_v48 = vor.u32 %v7870_v46, %v6190_v45  ;;  %v6174_v53 = vld [vmem:[#allocation7 + $0x60] sm:$0xf]  ;;  %v7944_v46 = vld [vmem:[#allocation7 + $0x2e4] sm:$0xf] }
 0x118   :  { %2135 = vmatpush.bf16.msrb.mxu1 %v5835_v61  ;;  %2148 = vmatpush.bf16.msrb.mxu2 %v5963_v62  ;;  %v5624_v61 = vld [vmem:[#allocation5 + $0x418] sm:$0xf0]  ;;  %v7757_v62 = vld [vmem:[#allocation5 + $0x50c] sm:$0xf] }
 0x119   :  { %2161 = vmatpush.bf16.msrb.mxu3 %v6091_v1  ;;  %v7789_v1 = vld [vmem:[#allocation5 + $0x60c] sm:$0xf]  ;;  %v5755_v9 = vor.u32 %v7757_v62, %v5752_v63  ;;  %v7930_v62 = vld [vmem:[#allocation7 + $0x26c] sm:$0xf0] }
 0x11a   :  { %v1897_v0 = vpop.f32.mrf.mxu2  ;;  %v5883_v10 = vor.u32 %v7789_v1, %v5880_v2  ;;  %v6286_v2 = vld [vmem:[#allocation7 + $0x140] sm:$0xf] }
 0x11b   :  { %2123 = vmatpush.bf16.msrb.mxu0 %v5691_v41  ;;  %v1870_v41 = vadd.f32 %v8670_v6, %v469_v56  ;;  %v6350_v6 = vld [vmem:[#allocation7 + $0x1c0] sm:$0xf] }
 0x11c   :  { %2136 = vmatpush.bf16.msrb.mxu1 %v5819_v42  ;;  %2149 = vmatpush.bf16.msrb.mxu2 %v5947_v7  ;;  %v5627_v42 = vor.u32 %v7725_v58, %v5624_v61  ;;  %v6366_v7 = vld [vmem:[#allocation7 + $0x1e0] sm:$0xf] }
 0x11d   :  { %2162 = vmatpush.bf16.msrb.mxu3 %v6075_v12  ;;  %v1910_v4 = vpop.f32.mrf.mxu3  ;;  %v6011_v12 = vor.u32 %v7821_v3, %v6008_v5  ;;  %v6367_v16 = vor.u32 %v7914_v8, %v6366_v7  ;;  %v1883_v17 = vadd.f32 %v8672_v11, %v1870_v41  ;;  %v6206_v11 = vld [vmem:[#allocation7 + $0xa0] sm:$0xf]  ;;  %v7894_v3 = vld [vmem:[#allocation7 + $0x14c] sm:$0xf0] }
 0x11e   :  { %v6207_v39 = vor.u32 %v7874_v28, %v6206_v11  ;;  %v6430_v61 = vld [vmem:[#allocation7 + $0x260] sm:$0xf]  ;;  %v7926_v7 = vld [vmem:[#allocation7 + $0x24c] sm:$0xf0]  ;;  %v6287_v8 = vor.u32 %v7894_v3, %v6286_v2  ;;  %v7912_v28 = vld [vmem:[#allocation7 + $0x1e4] sm:$0xf] }
 0x11f   :  { %2124 = vmatpush.bf16.msrb.mxu0 %v5675_v18  ;;  %v6222_v18 = vld [vmem:[#allocation7 + $0xc0] sm:$0xf]  ;;  %v1896_v27 = vadd.f32 %v8674_v24, %v1883_v17  ;;  %v6335_v24 = vor.u32 %v7906_v31, %v6334_v30  ;;  %v6431_v5 = vor.u32 %v7930_v62, %v6430_v61  ;;  %v6368_v30 = vld [vmem:[#allocation7 + $0x1f0] sm:$0xf0]  ;;  %v7900_v3 = vld [vmem:[#allocation7 + $0x184] sm:$0xf] }
 0x120   :  { %2137 = vmatpush.bf16.msrb.mxu1 %v5803_v19  ;;  %2150 = vmatpush.bf16.msrb.mxu2 %v5931_v20  ;;  %v7878_v19 = vld [vmem:[#allocation7 + $0xcc] sm:$0xf0]  ;;  %v6158_v0 = vld [vmem:[#allocation7 + $0x40] sm:$0xf]  ;;  %v6192_v2 = vld [vmem:[#allocation7 + $0x90] sm:$0xf0] }
 0x121   :  { %2163 = vmatpush.bf16.msrb.mxu3 %v6059_v25  ;;  %v7910_v20 = vld [vmem:[#allocation7 + $0x1cc] sm:$0xf0]  ;;  %v6223_v22 = vor.u32 %v7878_v19, %v6222_v18  ;;  %v6398_v18 = vld [vmem:[#allocation7 + $0x220] sm:$0xf] }
 0x122   :  { %v7942_v25 = vld [vmem:[#allocation7 + $0x2cc] sm:$0xf0]  ;;  %v6351_v26 = vor.u32 %v7910_v20, %v6350_v6  ;;  %v6126_v20 = vld [vmem:[#allocation7] sm:$0xf] }
 0x123   :  { %2125 = vmatpush.bf16.msrb.mxu0 %v5659_v36  ;;  %v6479_v36 = vor.u32 %v7942_v25, %v6478_v23  ;;  %v7922_v19 = vld [vmem:[#allocation7 + $0x22c] sm:$0xf0] }
 0x124   :  { %2138 = vmatpush.bf16.msrb.mxu1 %v5787_v43  ;;  %2151 = vmatpush.bf16.msrb.mxu2 %v5915_v44  ;;  %v6462_v43 = vld [vmem:[#allocation7 + $0x2a0] sm:$0xf]  ;;  %v7938_v44 = vld [vmem:[#allocation7 + $0x2ac] sm:$0xf0]  ;;  %v6399_v31 = vor.u32 %v7922_v19, %v6398_v18  ;;  %v7860_v19 = vld [vmem:[#allocation7 + $0x44] sm:$0xf] }
 0x125   :  { %2164 = vmatpush.bf16.msrb.mxu3 %v6043_v49  ;;  %v7886_v25 = vld [vmem:[#allocation7 + $0x10c] sm:$0xf0] }
 0x127   :  { %2126 = vmatpush.bf16.msrb.mxu0 %v5643_v57  ;;  %v6302_v57 = vld [vmem:[#allocation7 + $0x160] sm:$0xf] }
 0x128   :  { %2139 = vmatpush.bf16.msrb.mxu1 %v5771_v59  ;;  %2152 = vmatpush.bf16.msrb.mxu2 %v5899_v60  ;;  %v6175_v59 = vor.u32 %v7866_v54, %v6174_v53 }
 0x129   :  { %2165 = vmatpush.bf16.msrb.mxu3 %v6027_v33  ;;  %v7862_v33 = vld [vmem:[#allocation7 + $0x4c] sm:$0xf0] }
 0x12a   :  { %v6159_v34 = vor.u32 %v7862_v33, %v6158_v0  ;;  %v6464_v0 = vld [vmem:[#allocation7 + $0x2b0] sm:$0xf0] }
 0x12b   :  { %2127 = vmatpush.bf16.msrb.mxu0 %v5627_v42  ;;  %v1921_v49 = vpop.f32.mrf.mxu0  ;;  %v6414_v42 = vld [vmem:[#allocation7 + $0x240] sm:$0xf] }
 0x12c   :  { %2140 = vmatpush.bf16.msrb.mxu1 %v5755_v9  ;;  %2153 = vmatpush.bf16.msrb.mxu2 %v5883_v10  ;;  %v6142_v9 = vld [vmem:[#allocation7 + $0x20] sm:$0xf]  ;;  %v7858_v10 = vld [vmem:[#allocation7 + $0x2c] sm:$0xf0]  ;;  %v6415_v15 = vor.u32 %v7926_v7, %v6414_v42  ;;  %v7864_v7 = vld [vmem:[#allocation7 + $0x64] sm:$0xf] }
 0x12d   :  { %2166 = vmatpush.bf16.msrb.mxu3 %v6011_v12  ;;  %v6143_v17 = vor.u32 %v7858_v10, %v6142_v9  ;;  %v7896_v10 = vld [vmem:[#allocation7 + $0x164] sm:$0xf] }
 0x12e   :  { %2128 = vmatmul.bf16.vlgmr.msrb.gmra.mxu0 %v8632_v37  ;;  %v1909_v37 = vadd.f32 %v8676_v29, %v1896_v27  ;;  %v1934_v56 = vpop.f32.mrf.mxu1  ;;  %v7898_v29 = vld [vmem:[#allocation7 + $0x16c] sm:$0xf0]  ;;  %v6240_v27 = vld [vmem:[#allocation7 + $0xf0] sm:$0xf0] }
 0x12f   :  { %2958 = vmatpush.bf16.msra.mxu0 %v6239_v13  ;;  %2141 = vmatmul.bf16.vlgmr.msrb.gmra.mxu1 %v8636_v40  ;;  %v7902_v40 = vld [vmem:[#allocation7 + $0x18c] sm:$0xf0]  ;;  %v6303_v63 = vor.u32 %v7898_v29, %v6302_v57  ;;  %v6270_v13 = vld [vmem:[#allocation7 + $0x120] sm:$0xf]  ;;  %v7872_v29 = vld [vmem:[#allocation7 + $0xa4] sm:$0xf] }
 0x130   :  { %2971 = vmatpush.bf16.msra.mxu1 %v6367_v16  ;;  %2154 = vmatmul.bf16.vlgmr.msrb.gmra.mxu2 %v8630_v32  ;;  %v6463_v32 = vor.u32 %v7938_v44, %v6462_v43  ;;  %v6319_v52 = vor.u32 %v7902_v40, %v6318_v47  ;;  %v1922_v55 = vadd.f32 %v1921_v49, %v1909_v37  ;;  %v6382_v43 = vld [vmem:[#allocation7 + $0x200] sm:$0xf]  ;;  %v7918_v44 = vld [vmem:[#allocation7 + $0x20c] sm:$0xf0]  ;;  %v2172_v37 = vmax.f32 %v8664_v50, 0.0 }
 0x131   :  { %2167 = vmatmul.bf16.vlgmr.msrb.gmra.mxu3 %v8634_v38  ;;  %2984 = vmatpush.bf16.msra.mxu2 %v6495_v21  ;;  %v6446_v38 = vld [vmem:[#allocation7 + $0x280] sm:$0xf]  ;;  %v6271_v6 = vor.u32 %v7890_v14, %v6270_v13  ;;  %v7854_v21 = vld [vmem:[#allocation7 + $0xc] sm:$0xf0]  ;;  %v6496_v47 = vld [vmem:[#allocation7 + $0x2f0] sm:$0xf0]  ;;  %v6371_v40 = vor.u32 %v7912_v28, %v6368_v30 }
 0x132   :  { %v6447_v58 = vor.u32 %v7934_v51, %v6446_v38  ;;  %v1935_v60 = vadd.f32 %v1934_v56, %v1922_v55  ;;  %v1947_v1 = vpop.f32.mrf.mxu2  ;;  %v7908_v49 = vld [vmem:[#allocation7 + $0x1c4] sm:$0xf]  ;;  %v6352_v38 = vld [vmem:[#allocation7 + $0x1d0] sm:$0xf0]  ;;  %v6383_v51 = vor.u32 %v7918_v44, %v6382_v43  ;;  %v6499_v53 = vor.u32 %v7944_v46, %v6496_v47 }
 0x133   :  { %2959 = vmatpush.bf16.msra.mxu0 %v6223_v22  ;;  %v1923_v41 = vpop.f32.mrf.mxu0  ;;  %v6254_v22 = vld [vmem:[#allocation7 + $0x100] sm:$0xf]  ;;  %v8690_v54 = vpack.c.bf16 %v2172_v37, %v2172_v37  ;;  %v7940_v55 = vld [vmem:[#allocation7 + $0x2c4] sm:$0xf]  ;;  %v6480_v56 = vld [vmem:[#allocation7 + $0x2d0] sm:$0xf0]  ;;  %v6355_v57 = vor.u32 %v7908_v49, %v6352_v38 }
 0x134   :  { %2972 = vmatpush.bf16.msra.mxu1 %v6351_v26  ;;  %v1948_v35 = vadd.f32 %v1947_v1, %v1935_v60  ;;  %v7880_v26 = vld [vmem:[#allocation7 + $0xe4] sm:$0xf]  ;;  %v6336_v60 = vld [vmem:[#allocation7 + $0x1b0] sm:$0xf0]  ;;  %v6483_v61 = vor.u32 %v7940_v55, %v6480_v56  ;;  %v8703_v37 = vld [vmem:[%s8861_s7] sm:$0xf] }
 0x135   :  { %2985 = vmatpush.bf16.msra.mxu2 %v6479_v36  ;;  %v1960_v4 = vpop.f32.mrf.mxu3  ;;  %v6243_v45 = vor.u32 %v7880_v26, %v6240_v27  ;;  %v7868_v1 = vld [vmem:[#allocation7 + $0x84] sm:$0xf]  ;;  %v6448_v41 = vld [vmem:[#allocation7 + $0x290] sm:$0xf0]  ;;  %v6246_v55 = vld [vmem:[#allocation7 + $0xe8] sm:$0xf] }
 0x136   :  { %v1936_v12 = vpop.f32.mrf.mxu1  ;;  %v1961_v16 = vadd.f32 %v1960_v4, %v1948_v35  ;;  %v6320_v4 = vld [vmem:[#allocation7 + $0x190] sm:$0xf0]  ;;  %v7932_v35 = vld [vmem:[#allocation7 + $0x284] sm:$0xf]  ;;  %v7883_v56 = vld [vmem:[#allocation7 + $0xf4] sm:$0xf0] }
 0x137   :  { %2960 = vmatpush.bf16.msra.mxu0 %v6207_v39  ;;  %v6127_v39 = vor.u32 %v7854_v21, %v6126_v20  ;;  %v6323_v42 = vor.u32 %v7900_v3, %v6320_v4  ;;  %v6304_v12 = vld [vmem:[#allocation7 + $0x170] sm:$0xf0]  ;;  %v6451_v14 = vor.u32 %v7932_v35, %v6448_v41  ;;  %v7892_v20 = vld [vmem:[#allocation7 + $0x144] sm:$0xf]  ;;  %v6606_v3 = vld [vmem:[#allocation7 + $0x3c0] sm:$0xf] }
 0x138   :  { %2973 = vmatpush.bf16.msra.mxu1 %v6335_v24  ;;  %v2173_v36 = vmax.f32 %v1961_v16, 0.0  ;;  %v6255_v24 = vor.u32 %v7886_v25, %v6254_v22  ;;  %v7928_v16 = vld [vmem:[#allocation7 + $0x264] sm:$0xf]  ;;  %v6307_v18 = vor.u32 %v7896_v10, %v6304_v12  ;;  %v6288_v21 = vld [vmem:[#allocation7 + $0x150] sm:$0xf0] }
 0x139   :  { %2986 = vmatpush.bf16.msra.mxu2 %v6463_v32  ;;  %v7876_v32 = vld [vmem:[#allocation7 + $0xc4] sm:$0xf]  ;;  %v6291_v28 = vor.u32 %v7892_v20, %v6288_v21  ;;  %v6272_v43 = vld [vmem:[#allocation7 + $0x130] sm:$0xf0]  ;;  %v7974_v4 = vld [vmem:[#allocation7 + $0x3cc] sm:$0xf0] }
 0x13a   :  { %v1949_v23 = vpop.f32.mrf.mxu2  ;;  %v7924_v27 = vld [vmem:[#allocation7 + $0x244] sm:$0xf]  ;;  %v7879_v35 = vld [vmem:[#allocation7 + $0xd4] sm:$0xf0]  ;;  %v6607_v41 = vor.u32 %v7974_v4, %v6606_v3  ;;  %v6590_v12 = vld [vmem:[#allocation7 + $0x3a0] sm:$0xf] }
 0x13b   :  { %2961 = vmatpush.bf16.msra.mxu0 %v6191_v48  ;;  %v6224_v48 = vld [vmem:[#allocation7 + $0xd0] sm:$0xf0]  ;;  %v7856_v30 = vld [vmem:[#allocation7 + $0x24] sm:$0xf]  ;;  %v6574_v21 = vld [vmem:[#allocation7 + $0x380] sm:$0xf] }
 0x13c   :  { %2974 = vmatpush.bf16.msra.mxu1 %v6319_v52  ;;  %v8688_v52 = vpack.c.bf16 %v2173_v36, %v2173_v36  ;;  %v6227_v50 = vor.u32 %v7876_v32, %v6224_v48  ;;  %v7920_v32 = vld [vmem:[#allocation7 + $0x224] sm:$0xf]  ;;  %v6400_v48 = vld [vmem:[#allocation7 + $0x230] sm:$0xf0]  ;;  %v6278_v3 = vld [vmem:[#allocation7 + $0x128] sm:$0xf] }
 0x13d   :  { %2987 = vmatpush.bf16.msra.mxu2 %v6447_v58  ;;  %v1962_v11 = vpop.f32.mrf.mxu3  ;;  %v6208_v58 = vld [vmem:[#allocation7 + $0xb0] sm:$0xf0]  ;;  %v7884_v38 = vld [vmem:[#allocation7 + $0x104] sm:$0xf] }
 0x13e   :  { %v6211_v62 = vor.u32 %v7872_v29, %v6208_v58  ;;  %v6416_v11 = vld [vmem:[#allocation7 + $0x250] sm:$0xf0]  ;;  %v6374_v58 = vld [vmem:[#allocation7 + $0x1e8] sm:$0xf] }
 0x13f   :  { %2962 = vmatpush.bf16.msra.mxu0 %v6175_v59  ;;  %v7904_v59 = vld [vmem:[#allocation7 + $0x1a4] sm:$0xf]  ;;  %v6419_v46 = vor.u32 %v7924_v27, %v6416_v11  ;;  %v6198_v27 = vld [vmem:[#allocation7 + $0x88] sm:$0xf]  ;;  %v7871_v11 = vld [vmem:[#allocation7 + $0x94] sm:$0xf0] }
 0x140   :  { %2975 = vmatpush.bf16.msra.mxu1 %v6303_v63  ;;  %v7936_v63 = vld [vmem:[#allocation7 + $0x2a4] sm:$0xf]  ;;  %v6339_v33 = vor.u32 %v7904_v59, %v6336_v60  ;;  %v7915_v59 = vld [vmem:[#allocation7 + $0x1f4] sm:$0xf0] }
 0x141   :  { %2988 = vmatpush.bf16.msra.mxu2 %v6431_v5  ;;  %v6467_v5 = vor.u32 %v7936_v63, %v6464_v0  ;;  %v7916_v0 = vld [vmem:[#allocation7 + $0x204] sm:$0xf] }
 0x143   :  { %2963 = vmatpush.bf16.msra.mxu0 %v6159_v34  ;;  %v6195_v34 = vor.u32 %v7868_v1, %v6192_v2  ;;  %v6247_v2 = vor.u32 %v7883_v56, %v6246_v55  ;;  %v6166_v55 = vld [vmem:[#allocation7 + $0x48] sm:$0xf]  ;;  %v7863_v56 = vld [vmem:[#allocation7 + $0x54] sm:$0xf0] }
 0x144   :  { %2976 = vmatpush.bf16.msra.mxu1 %v6287_v8  ;;  %v6176_v8 = vld [vmem:[#allocation7 + $0x70] sm:$0xf0] }
 0x145   :  { %2989 = vmatpush.bf16.msra.mxu2 %v6415_v15  ;;  %v6179_v15 = vor.u32 %v7864_v7, %v6176_v8  ;;  %v7911_v7 = vld [vmem:[#allocation7 + $0x1d4] sm:$0xf0] }
 0x147   :  { %2964 = vmatpush.bf16.msra.mxu0 %v6143_v17  ;;  %v6432_v17 = vld [vmem:[#allocation7 + $0x270] sm:$0xf0] }
 0x148   :  { %2977 = vmatpush.bf16.msra.mxu1 %v6271_v6  ;;  %v6160_v6 = vld [vmem:[#allocation7 + $0x50] sm:$0xf0]  ;;  %v6435_v25 = vor.u32 %v7928_v16, %v6432_v17  ;;  %v6214_v16 = vld [vmem:[#allocation7 + $0xa8] sm:$0xf]  ;;  %v7875_v17 = vld [vmem:[#allocation7 + $0xb4] sm:$0xf0] }
 0x149   :  { %2990 = vmatpush.bf16.msra.mxu2 %v6399_v31  ;;  %v6163_v26 = vor.u32 %v7860_v19, %v6160_v6  ;;  %v6144_v31 = vld [vmem:[#allocation7 + $0x30] sm:$0xf0]  ;;  %v6342_v19 = vld [vmem:[#allocation7 + $0x1a8] sm:$0xf]  ;;  %v7907_v6 = vld [vmem:[#allocation7 + $0x1b4] sm:$0xf0] }
 0x14a   :  { %v6147_v47 = vor.u32 %v7856_v30, %v6144_v31  ;;  %v6326_v30 = vld [vmem:[#allocation7 + $0x188] sm:$0xf]  ;;  %v7903_v31 = vld [vmem:[#allocation7 + $0x194] sm:$0xf0] }
 0x14b   :  { %2965 = vmatpush.bf16.msra.mxu0 %v6127_v39  ;;  %v1973_v9 = vpop.f32.mrf.mxu0  ;;  %v7888_v39 = vld [vmem:[#allocation7 + $0x124] sm:$0xf] }
 0x14c   :  { %2978 = vmatpush.bf16.msra.mxu1 %v6255_v24  ;;  %v470_v24 = vperm.slane %v8703_v37, 2  ;;  %v6275_v49 = vor.u32 %v7888_v39, %v6272_v43  ;;  %v6199_v39 = vor.u32 %v7871_v11, %v6198_v27  ;;  %v7962_v43 = vld [vmem:[#allocation7 + $0x36c] sm:$0xf0]  ;;  %v6624_v27 = vld [vmem:[#allocation7 + $0x3f0] sm:$0xf0] }
 0x14d   :  { %2991 = vmatpush.bf16.msra.mxu2 %v6383_v51  ;;  %v6622_v51 = vld [vmem:[#allocation7 + $0x3e0] sm:$0xf]  ;;  %v6376_v11 = vld [vmem:[#allocation7 + $0x1f8] sm:$0xf0] }
 0x14e   :  { %2966 = vmatmul.bf16.vlgmr.msra.gmra.mxu0 %v8690_v54  ;;  %v8694_v13 = vpop.f32.mrf.mxu1 }
 0x14f   :  { %3010 = vmatpush.bf16.msrb.mxu0 %v6243_v45  ;;  %2979 = vmatmul.bf16.vlgmr.msra.gmra.mxu1 %v8688_v52  ;;  %v7852_v45 = vld [vmem:[#allocation7 + $0x4] sm:$0xf] }
 0x150   :  { %3023 = vmatpush.bf16.msrb.mxu1 %v6371_v40  ;;  %v6128_v40 = vld [vmem:[#allocation7 + $0x10] sm:$0xf0] }
 0x151   :  { %3036 = vmatpush.bf16.msrb.mxu2 %v6499_v53  ;;  %v7978_v53 = vld [vmem:[#allocation7 + $0x3ec] sm:$0xf0]  ;;  %v6131_v63 = vor.u32 %v7852_v45, %v6128_v40  ;;  %v7867_v45 = vld [vmem:[#allocation7 + $0x74] sm:$0xf0]  ;;  %v6310_v40 = vld [vmem:[#allocation7 + $0x168] sm:$0xf] }
 0x152   :  { %v8696_v22 = vpop.f32.mrf.mxu2  ;;  %v6623_v29 = vor.u32 %v7978_v53, %v6622_v51  ;;  %v6542_v51 = vld [vmem:[#allocation7 + $0x340] sm:$0xf] }
 0x153   :  { %3011 = vmatpush.bf16.msrb.mxu0 %v6227_v50  ;;  %v1975_v36 = vpop.f32.mrf.mxu0  ;;  %v6256_v50 = vld [vmem:[#allocation7 + $0x110] sm:$0xf0] }
 0x154   :  { %3024 = vmatpush.bf16.msrb.mxu1 %v6355_v57  ;;  %2997 = vmatpush.bf16.msra.mxu3 %v6623_v29  ;;  %v6259_v1 = vor.u32 %v7884_v38, %v6256_v50  ;;  %v6294_v29 = vld [vmem:[#allocation7 + $0x148] sm:$0xf] }
 0x155   :  { %3037 = vmatpush.bf16.msrb.mxu2 %v6483_v61  ;;  %v8698_v23 = vpop.f32.mrf.mxu3  ;;  %v6403_v61 = vor.u32 %v7920_v32, %v6400_v48  ;;  %v7899_v32 = vld [vmem:[#allocation7 + $0x174] sm:$0xf0] }
 0x156   :  { %v1988_v44 = vpop.f32.mrf.mxu1  ;;  %v6311_v50 = vor.u32 %v7899_v32, %v6310_v40  ;;  %v7877_v40 = vld [vmem:[#allocation7 + $0xcc] sm:$0xf]  ;;  %v6232_v32 = vld [vmem:[#allocation7 + $0xd8] sm:$0xf0] }
 0x157   :  { %3012 = vmatpush.bf16.msrb.mxu0 %v6211_v62  ;;  %v1974_v62 = vadd.f32 %v1973_v9, %v470_v24  ;;  %v6327_v44 = vor.u32 %v7903_v31, %v6326_v30  ;;  %v6182_v24 = vld [vmem:[#allocation7 + $0x68] sm:$0xf]  ;;  %v7943_v30 = vld [vmem:[#allocation7 + $0x2d4] sm:$0xf0] }
 0x158   :  { %3025 = vmatpush.bf16.msrb.mxu1 %v6339_v33  ;;  %v6384_v33 = vld [vmem:[#allocation7 + $0x210] sm:$0xf0]  ;;  %2998 = vmatpush.bf16.msra.mxu3 %v6607_v41  ;;  %v6183_v38 = vor.u32 %v7867_v45, %v6182_v24  ;;  %v7947_v41 = vld [vmem:[#allocation7 + $0x2f4] sm:$0xf0]  ;;  %v7972_v24 = vld [vmem:[#allocation7 + $0x3c4] sm:$0xf] }
 0x159   :  { %3038 = vmatpush.bf16.msrb.mxu2 %v6467_v5  ;;  %v6375_v5 = vor.u32 %v7915_v59, %v6374_v58  ;;  %v6387_v8 = vor.u32 %v7916_v0, %v6384_v33  ;;  %v1987_v10 = vadd.f32 %v8694_v13, %v1974_v62  ;;  %v6215_v13 = vor.u32 %v7875_v17, %v6214_v16  ;;  %v7895_v58 = vld [vmem:[#allocation7 + $0x154] sm:$0xf0]  ;;  %v7954_v0 = vld [vmem:[#allocation7 + $0x32c] sm:$0xf0]  ;;  %v6608_v45 = vld [vmem:[#allocation7 + $0x3d0] sm:$0xf0] }
 0x15a   :  { %v2001_v57 = vpop.f32.mrf.mxu2  ;;  %v6167_v62 = vor.u32 %v7863_v56, %v6166_v55  ;;  %v6295_v33 = vor.u32 %v7895_v58, %v6294_v29  ;;  %v7950_v16 = vld [vmem:[#allocation7 + $0x30c] sm:$0xf0]  ;;  %v6592_v55 = vld [vmem:[#allocation7 + $0x3b0] sm:$0xf0]  ;;  %v7873_v29 = vld [vmem:[#allocation7 + $0xac] sm:$0xf] }
 0x15b   :  { %3013 = vmatpush.bf16.msrb.mxu0 %v6195_v34  ;;  %v6230_v34 = vld [vmem:[#allocation7 + $0xc8] sm:$0xf]  ;;  %v2000_v20 = vadd.f32 %v8696_v22, %v1987_v10  ;;  %v6558_v22 = vld [vmem:[#allocation7 + $0x360] sm:$0xf]  ;;  %v6216_v58 = vld [vmem:[#allocation7 + $0xb8] sm:$0xf0] }
 0x15c   :  { %3026 = vmatpush.bf16.msrb.mxu1 %v6323_v42  ;;  %v6358_v42 = vld [vmem:[#allocation7 + $0x1c8] sm:$0xf]  ;;  %v6231_v9 = vor.u32 %v7879_v35, %v6230_v34  ;;  %v7891_v34 = vld [vmem:[#allocation7 + $0x134] sm:$0xf0] }
 0x15d   :  { %3039 = vmatpush.bf16.msrb.mxu2 %v6451_v14  ;;  %v2014_v60 = vpop.f32.mrf.mxu3  ;;  %v7970_v14 = vld [vmem:[#allocation7 + $0x3ac] sm:$0xf0]  ;;  %v2013_v36 = vadd.f32 %v8698_v23, %v2000_v20  ;;  %v6502_v35 = vld [vmem:[#allocation7 + $0x2e8] sm:$0xf]  ;;  %v6279_v17 = vor.u32 %v7891_v34, %v6278_v3  ;;  %v7901_v34 = vld [vmem:[#allocation7 + $0x18c] sm:$0xf] }
 0x15e   :  { %v7958_v23 = vld [vmem:[#allocation7 + $0x34c] sm:$0xf0] }
 0x15f   :  { %3014 = vmatpush.bf16.msrb.mxu0 %v6179_v15  ;;  %v6359_v15 = vor.u32 %v7911_v7, %v6358_v42  ;;  %v6543_v57 = vor.u32 %v7958_v23, %v6542_v51  ;;  %v6134_v7 = vld [vmem:[#allocation7 + $0x8] sm:$0xf]  ;;  %v7939_v51 = vld [vmem:[#allocation7 + $0x2b4] sm:$0xf0]  ;;  %v6611_v23 = vor.u32 %v7972_v24, %v6608_v45 }
 0x160   :  { %3027 = vmatpush.bf16.msrb.mxu1 %v6307_v18  ;;  %v6591_v18 = vor.u32 %v7970_v14, %v6590_v12  ;;  %v6262_v14 = vld [vmem:[#allocation7 + $0x108] sm:$0xf] }
 0x161   :  { %3040 = vmatpush.bf16.msrb.mxu2 %v6435_v25  ;;  %v7966_v25 = vld [vmem:[#allocation7 + $0x38c] sm:$0xf0] }
 0x162   :  { %2999 = vmatpush.bf16.msra.mxu3 %v6591_v18  ;;  %v6503_v18 = vor.u32 %v7947_v41, %v6502_v35  ;;  %v6328_v35 = vld [vmem:[#allocation7 + $0x198] sm:$0xf0]  ;;  %v6438_v41 = vld [vmem:[#allocation7 + $0x268] sm:$0xf] }
 0x163   :  { %3015 = vmatpush.bf16.msrb.mxu0 %v6163_v26  ;;  %v6343_v26 = vor.u32 %v7907_v6, %v6342_v19  ;;  %v7887_v19 = vld [vmem:[#allocation7 + $0x114] sm:$0xf0]  ;;  %v7881_v6 = vld [vmem:[#allocation7 + $0xec] sm:$0xf] }
 0x164   :  { %3028 = vmatpush.bf16.msrb.mxu1 %v6291_v28  ;;  %v6575_v28 = vor.u32 %v7966_v25, %v6574_v21  ;;  %v6248_v25 = vld [vmem:[#allocation7 + $0xf8] sm:$0xf0] }
 0x165   :  { %3041 = vmatpush.bf16.msrb.mxu2 %v6419_v46  ;;  %v6559_v46 = vor.u32 %v7962_v43, %v6558_v22  ;;  %v6263_v43 = vor.u32 %v7887_v19, %v6262_v14  ;;  %v6422_v19 = vld [vmem:[#allocation7 + $0x248] sm:$0xf] }
 0x166   :  { %3000 = vmatpush.bf16.msra.mxu3 %v6575_v28  ;;  %v6486_v28 = vld [vmem:[#allocation7 + $0x2c8] sm:$0xf] }
 0x167   :  { %3016 = vmatpush.bf16.msrb.mxu0 %v6147_v47 }
 0x168   :  { %3029 = vmatpush.bf16.msrb.mxu1 %v6275_v49 }
 0x169   :  { %3042 = vmatpush.bf16.msrb.mxu2 %v6403_v61 }
 0x16a   :  { %3001 = vmatpush.bf16.msra.mxu3 %v6559_v46 }
 0x16b   :  { %3017 = vmatpush.bf16.msrb.mxu0 %v6131_v63  ;;  %v2025_v47 = vpop.f32.mrf.mxu0  ;;  %v6526_v63 = vld [vmem:[#allocation7 + $0x320] sm:$0xf] }
 0x16c   :  { %3030 = vmatpush.bf16.msrb.mxu1 %v6259_v1  ;;  %v2026_v48 = vadd.f32 %v2025_v47, %v2013_v36  ;;  %v6150_v1 = vld [vmem:[#allocation7 + $0x28] sm:$0xf]  ;;  %v6527_v4 = vor.u32 %v7954_v0, %v6526_v63  ;;  %v6487_v47 = vor.u32 %v7943_v30, %v6486_v28  ;;  %v7964_v0 = vld [vmem:[#allocation7 + $0x384] sm:$0xf] }
 0x16d   :  { %3043 = vmatpush.bf16.msrb.mxu2 %v6387_v8  ;;  %v7855_v8 = vld [vmem:[#allocation7 + $0x14] sm:$0xf0] }
 0x16e   :  { %3018 = vmatmul.bf16.vlgmr.msrb.gmra.mxu0 %v8690_v54  ;;  %v2038_v49 = vpop.f32.mrf.mxu1  ;;  %3002 = vmatpush.bf16.msra.mxu3 %v6543_v57 }
 0x16f   :  { %3062 = vmatpush.bf16.msra.mxu0 %v6247_v2  ;;  %3031 = vmatmul.bf16.vlgmr.msrb.gmra.mxu1 %v8688_v52  ;;  %v2039_v53 = vadd.f32 %v2038_v49, %v2026_v48  ;;  %v7859_v2 = vld [vmem:[#allocation7 + $0x34] sm:$0xf0]  ;;  %v7909_v48 = vld [vmem:[#allocation7 + $0x1cc] sm:$0xf]  ;;  %v6360_v49 = vld [vmem:[#allocation7 + $0x1d8] sm:$0xf0] }
 0x170   :  { %3075 = vmatpush.bf16.msra.mxu1 %v6375_v5  ;;  %v6151_v12 = vor.u32 %v7859_v2, %v6150_v1  ;;  %v6363_v56 = vor.u32 %v7909_v48, %v6360_v49  ;;  %v6219_v1 = vor.u32 %v7873_v29, %v6216_v58  ;;  %v7945_v29 = vld [vmem:[#allocation7 + $0x2ec] sm:$0xf]  ;;  %v6504_v58 = vld [vmem:[#allocation7 + $0x2f8] sm:$0xf0] }
 0x172   :  { %v2051_v59 = vpop.f32.mrf.mxu2  ;;  %3003 = vmatpush.bf16.msra.mxu3 %v6527_v4  ;;  %v7869_v4 = vld [vmem:[#allocation7 + $0x8c] sm:$0xf] }
 0x173   :  { %3063 = vmatpush.bf16.msra.mxu0 %v6231_v9  ;;  %v2052_v60 = vadd.f32 %v2051_v59, %v2039_v53  ;;  %v2027_v42 = vpop.f32.mrf.mxu0  ;;  %v6235_v53 = vor.u32 %v7877_v40, %v6232_v32  ;;  %v7905_v59 = vld [vmem:[#allocation7 + $0x1ac] sm:$0xf]  ;;  %v6528_v40 = vld [vmem:[#allocation7 + $0x330] sm:$0xf0] }
 0x174   :  { %3076 = vmatpush.bf16.msra.mxu1 %v6359_v15  ;;  %v6510_v15 = vld [vmem:[#allocation7 + $0x300] sm:$0xf]  ;;  %v7931_v42 = vld [vmem:[#allocation7 + $0x274] sm:$0xf0] }
 0x175   :  { %v2064_v61 = vpop.f32.mrf.mxu3  ;;  %v6511_v20 = vor.u32 %v7950_v16, %v6510_v15  ;;  %v6439_v14 = vor.u32 %v7931_v42, %v6438_v41  ;;  %v7865_v15 = vld [vmem:[#allocation7 + $0x6c] sm:$0xf]  ;;  %v6184_v16 = vld [vmem:[#allocation7 + $0x78] sm:$0xf0] }
 0x176   :  { %v2065_v5 = vadd.f32 %v2064_v61, %v2052_v60  ;;  %v2040_v10 = vpop.f32.mrf.mxu1  ;;  %v6344_v60 = vld [vmem:[#allocation7 + $0x1b8] sm:$0xf0]  ;;  %v6454_v61 = vld [vmem:[#allocation7 + $0x288] sm:$0xf] }
 0x177   :  { %3064 = vmatpush.bf16.msra.mxu0 %v6215_v13  ;;  %v7976_v13 = vld [vmem:[#allocation7 + $0x3e4] sm:$0xf]  ;;  %3004 = vmatpush.bf16.msra.mxu3 %v6511_v20  ;;  %v6347_v2 = vor.u32 %v7905_v59, %v6344_v60  ;;  %v6488_v41 = vld [vmem:[#allocation7 + $0x2d8] sm:$0xf0] }
 0x178   :  { %3077 = vmatpush.bf16.msra.mxu1 %v6343_v26  ;;  %v2174_v9 = vmax.f32 %v2065_v5, 0.0  ;;  %v7913_v26 = vld [vmem:[#allocation7 + $0x1ec] sm:$0xf]  ;;  %v6627_v36 = vor.u32 %v7976_v13, %v6624_v27  ;;  %v6200_v5 = vld [vmem:[#allocation7 + $0x98] sm:$0xf0] }
 0x179   :  { %v6379_v46 = vor.u32 %v7913_v26, %v6376_v11  ;;  %v7960_v10 = vld [vmem:[#allocation7 + $0x364] sm:$0xf]  ;;  %v6544_v11 = vld [vmem:[#allocation7 + $0x350] sm:$0xf0] }
 0x17a   :  { %v8711_v21 = vpack.c.bf16 %v2174_v9, %v2174_v9  ;;  %v2053_v31 = vpop.f32.mrf.mxu2  ;;  %v6560_v9 = vld [vmem:[#allocation7 + $0x370] sm:$0xf0]  ;;  %v7956_v27 = vld [vmem:[#allocation7 + $0x344] sm:$0xf] }
 0x17b   :  { %3065 = vmatpush.bf16.msra.mxu0 %v6199_v39  ;;  %v6135_v39 = vor.u32 %v7855_v8, %v6134_v7  ;;  %3049 = vmatpush.bf16.msrb.mxu3 %v6627_v36  ;;  %v6203_v8 = vor.u32 %v7869_v4, %v6200_v5  ;;  %v6563_v20 = vor.u32 %v7960_v10, %v6560_v9  ;;  %v7861_v31 = vld [vmem:[#allocation7 + $0x4c] sm:$0xf]  ;;  %v6168_v36 = vld [vmem:[#allocation7 + $0x58] sm:$0xf0] }
 0x17c   :  { %3078 = vmatpush.bf16.msra.mxu1 %v6327_v44  ;;  %2992 = vmatmul.bf16.vlgmr.msra.gmra.mxu2 %v8711_v21  ;;  %v6251_v44 = vor.u32 %v7881_v6, %v6248_v25  ;;  %v7927_v6 = vld [vmem:[#allocation7 + $0x254] sm:$0xf0]  ;;  %v6187_v25 = vor.u32 %v7865_v15, %v6184_v16  ;;  %v6547_v24 = vor.u32 %v7956_v27, %v6544_v11  ;;  %v6264_v4 = vld [vmem:[#allocation7 + $0x118] sm:$0xf0] }
 0x17d   :  { %v2066_v22 = vpop.f32.mrf.mxu3  ;;  %3088 = vmatpush.bf16.msra.mxu2 %v6503_v18  ;;  %v6312_v18 = vld [vmem:[#allocation7 + $0x178] sm:$0xf0]  ;;  %v6423_v30 = vor.u32 %v7927_v6, %v6422_v19  ;;  %v6171_v45 = vor.u32 %v7861_v31, %v6168_v36  ;;  %v7921_v36 = vld [vmem:[#allocation7 + $0x22c] sm:$0xf] }
 0x17e   :  { %v6296_v22 = vld [vmem:[#allocation7 + $0x158] sm:$0xf0] }
 0x17f   :  { %3066 = vmatpush.bf16.msra.mxu0 %v6183_v38  ;;  %v6470_v38 = vld [vmem:[#allocation7 + $0x2a8] sm:$0xf]  ;;  %3050 = vmatpush.bf16.msrb.mxu3 %v6611_v23  ;;  %v7889_v23 = vld [vmem:[#allocation7 + $0x12c] sm:$0xf]  ;;  %v6472_v15 = vld [vmem:[#allocation7 + $0x2b8] sm:$0xf0] }
 0x180   :  { %3079 = vmatpush.bf16.msra.mxu1 %v6311_v50  ;;  %v7968_v50 = vld [vmem:[#allocation7 + $0x3a4] sm:$0xf]  ;;  %v6471_v57 = vor.u32 %v7939_v51, %v6470_v38  ;;  %v7857_v38 = vld [vmem:[#allocation7 + $0x2c] sm:$0xf]  ;;  %v6152_v51 = vld [vmem:[#allocation7 + $0x38] sm:$0xf0] }
 0x181   :  { %3089 = vmatpush.bf16.msra.mxu2 %v6487_v47  ;;  %v6595_v63 = vor.u32 %v7968_v50, %v6592_v55  ;;  %v7952_v47 = vld [vmem:[#allocation7 + $0x324] sm:$0xf]  ;;  %v6390_v50 = vld [vmem:[#allocation7 + $0x208] sm:$0xf]  ;;  %v7919_v55 = vld [vmem:[#allocation7 + $0x214] sm:$0xf0]  ;;  %v6155_v59 = vor.u32 %v7857_v38, %v6152_v51 }
 0x183   :  { %3067 = vmatpush.bf16.msra.mxu0 %v6167_v62  ;;  %v7935_v62 = vld [vmem:[#allocation7 + $0x294] sm:$0xf0]  ;;  %3051 = vmatpush.bf16.msrb.mxu3 %v6595_v63 }
 0x184   :  { %3080 = vmatpush.bf16.msra.mxu1 %v6295_v33  ;;  %v6576_v33 = vld [vmem:[#allocation7 + $0x390] sm:$0xf0]  ;;  %v6455_v3 = vor.u32 %v7935_v62, %v6454_v61  ;;  %v7948_v61 = vld [vmem:[#allocation7 + $0x304] sm:$0xf] }
 0x185   :  { %3090 = vmatpush.bf16.msra.mxu2 %v6471_v57  ;;  %v6579_v7 = vor.u32 %v7964_v0, %v6576_v33  ;;  %v6512_v62 = vld [vmem:[#allocation7 + $0x310] sm:$0xf0]  ;;  %v6391_v0 = vor.u32 %v7919_v55, %v6390_v50  ;;  %v7853_v33 = vld [vmem:[#allocation7 + $0xc] sm:$0xf]  ;;  %v6614_v50 = vld [vmem:[#allocation7 + $0x3c8] sm:$0xf] }
 0x186   :  { %v6515_v5 = vor.u32 %v7948_v61, %v6512_v62  ;;  %v7975_v55 = vld [vmem:[#allocation7 + $0x3d4] sm:$0xf0]  ;;  %v6582_v61 = vld [vmem:[#allocation7 + $0x388] sm:$0xf] }
 0x187   :  { %3068 = vmatpush.bf16.msra.mxu0 %v6151_v12  ;;  %v6331_v12 = vor.u32 %v7901_v34, %v6328_v35  ;;  %3052 = vmatpush.bf16.msrb.mxu3 %v6579_v7  ;;  %v471_v34 = vperm.slane %v8703_v37, 3  ;;  %v7941_v35 = vld [vmem:[#allocation7 + $0x2cc] sm:$0xf]  ;;  %v7967_v62 = vld [vmem:[#allocation7 + $0x394] sm:$0xf0] }
 0x188   :  { %3081 = vmatpush.bf16.msra.mxu1 %v6279_v17  ;;  %v7897_v17 = vld [vmem:[#allocation7 + $0x16c] sm:$0xf]  ;;  %v6491_v9 = vor.u32 %v7941_v35, %v6488_v41 }
 0x189   :  { %3091 = vmatpush.bf16.msra.mxu2 %v6455_v3  ;;  %v6315_v28 = vor.u32 %v7897_v17, %v6312_v18  ;;  %v7885_v3 = vld [vmem:[#allocation7 + $0x10c] sm:$0xf]  ;;  %v6456_v18 = vld [vmem:[#allocation7 + $0x298] sm:$0xf0] }
 0x18a   :  { %v7933_v17 = vld [vmem:[#allocation7 + $0x28c] sm:$0xf] }
 0x18b   :  { %3069 = vmatpush.bf16.msra.mxu0 %v6135_v39  ;;  %v8717_v13 = vpop.f32.mrf.mxu0  ;;  %v7893_v39 = vld [vmem:[#allocation7 + $0x14c] sm:$0xf]  ;;  %3053 = vmatpush.bf16.msrb.mxu3 %v6563_v20  ;;  %v6459_v19 = vor.u32 %v7933_v17, %v6456_v18 }
 0x18c   :  { %3082 = vmatpush.bf16.msra.mxu1 %v6263_v43  ;;  %3044 = vmatmul.bf16.vlgmr.msrb.gmra.mxu2 %v8711_v21  ;;  %v6406_v43 = vld [vmem:[#allocation7 + $0x228] sm:$0xf]  ;;  %v6299_v32 = vor.u32 %v7893_v39, %v6296_v22  ;;  %v7929_v20 = vld [vmem:[#allocation7 + $0x26c] sm:$0xf]  ;;  %v6408_v39 = vld [vmem:[#allocation7 + $0x238] sm:$0xf0] }
 0x18d   :  { %3092 = vmatpush.bf16.msra.mxu2 %v6439_v14  ;;  %v7937_v14 = vld [vmem:[#allocation7 + $0x2ac] sm:$0xf] }
 0x18e   :  { %3070 = vmatmul.bf16.vlgmr.msra.gmra.mxu0 %v8690_v54  ;;  %v8719_v26 = vpop.f32.mrf.mxu1  ;;  %v6475_v37 = vor.u32 %v7937_v14, %v6472_v15  ;;  %v7951_v14 = vld [vmem:[#allocation7 + $0x314] sm:$0xf0] }
 0x18f   :  { %3114 = vmatpush.bf16.msrb.mxu0 %v6251_v44  ;;  %3083 = vmatmul.bf16.vlgmr.msra.gmra.mxu1 %v8688_v52  ;;  %v7923_v44 = vld [vmem:[#allocation7 + $0x234] sm:$0xf0] }
 0x190   :  { %3127 = vmatpush.bf16.msrb.mxu1 %v6379_v46  ;;  %v6407_v48 = vor.u32 %v7923_v44, %v6406_v43  ;;  %3054 = vmatpush.bf16.msrb.mxu3 %v6547_v24  ;;  %v6411_v43 = vor.u32 %v7921_v36, %v6408_v39 }
 0x191   :  { %3093 = vmatpush.bf16.msra.mxu2 %v6423_v30  ;;  %v6424_v30 = vld [vmem:[#allocation7 + $0x258] sm:$0xf0] }
 0x192   :  { %v8721_v46 = vpop.f32.mrf.mxu2 }
 0x193   :  { %3115 = vmatpush.bf16.msrb.mxu0 %v6235_v53  ;;  %v6280_v53 = vld [vmem:[#allocation7 + $0x138] sm:$0xf0]  ;;  %v2079_v57 = vpop.f32.mrf.mxu0 }
 0x194   :  { %3128 = vmatpush.bf16.msrb.mxu1 %v6363_v56  ;;  %v6531_v56 = vor.u32 %v7952_v47, %v6528_v40  ;;  %v6283_v63 = vor.u32 %v7889_v23, %v6280_v53  ;;  %v6392_v47 = vld [vmem:[#allocation7 + $0x218] sm:$0xf0] }
 0x195   :  { %v2116_v49 = vpop.f32.mrf.mxu3  ;;  %3094 = vmatpush.bf16.msra.mxu2 %v6407_v48  ;;  %v6630_v48 = vld [vmem:[#allocation7 + $0x3e8] sm:$0xf] }
 0x196   :  { %v2092_v60 = vpop.f32.mrf.mxu1  ;;  %3055 = vmatpush.bf16.msrb.mxu3 %v6531_v56 }
 0x197   :  { %3116 = vmatpush.bf16.msrb.mxu0 %v6219_v1  ;;  %v6136_v1 = vld [vmem:[#allocation7 + $0x18] sm:$0xf0] }
 0x198   :  { %3129 = vmatpush.bf16.msrb.mxu1 %v6347_v2  ;;  %v6507_v2 = vor.u32 %v7945_v29, %v6504_v58  ;;  %v6139_v42 = vor.u32 %v7853_v33, %v6136_v1  ;;  %v6615_v29 = vor.u32 %v7975_v55, %v6614_v50  ;;  %v6598_v58 = vld [vmem:[#allocation7 + $0x3a8] sm:$0xf]  ;;  %v7963_v1 = vld [vmem:[#allocation7 + $0x374] sm:$0xf0]  ;;  %v6718_v50 = vld [vmem:[#allocation8 + $0xa0] sm:$0xf] }
 0x199   :  { %3095 = vmatpush.bf16.msra.mxu2 %v6391_v0  ;;  %v6583_v0 = vor.u32 %v7967_v62, %v6582_v61  ;;  %v6566_v33 = vld [vmem:[#allocation7 + $0x368] sm:$0xf]  ;;  %v8002_v55 = vld [vmem:[#allocation8 + $0xac] sm:$0xf0]  ;;  %v6702_v61 = vld [vmem:[#allocation8 + $0x80] sm:$0xf] }
 0x19a   :  { %v2105_v7 = vpop.f32.mrf.mxu2  ;;  %3056 = vmatpush.bf16.msrb.mxu3 %v6515_v5  ;;  %v6550_v5 = vld [vmem:[#allocation7 + $0x348] sm:$0xf]  ;;  %v7998_v62 = vld [vmem:[#allocation8 + $0x8c] sm:$0xf0] }
 0x19b   :  { %3117 = vmatpush.bf16.msrb.mxu0 %v6203_v8  ;;  %v6267_v8 = vor.u32 %v7885_v3, %v6264_v4  ;;  %v6567_v3 = vor.u32 %v7963_v1, %v6566_v33  ;;  %v6534_v7 = vld [vmem:[#allocation7 + $0x328] sm:$0xf]  ;;  %v6878_v33 = vld [vmem:[#allocation8 + $0x1e0] sm:$0xf]  ;;  %v8042_v1 = vld [vmem:[#allocation8 + $0x1ec] sm:$0xf0] }
 0x19c   :  { %3130 = vmatpush.bf16.msrb.mxu1 %v6331_v12  ;;  %v2078_v12 = vadd.f32 %v8717_v13, %v471_v34  ;;  %3096 = vmatmul.bf16.vlgmr.msra.gmra.mxu2 %v8711_v21  ;;  %v6440_v13 = vld [vmem:[#allocation7 + $0x278] sm:$0xf0]  ;;  %v7959_v34 = vld [vmem:[#allocation7 + $0x354] sm:$0xf0] }
 0x19d   :  { %v2118_v10 = vpop.f32.mrf.mxu3  ;;  %3140 = vmatpush.bf16.msrb.mxu2 %v6507_v2 }
 0x19e   :  { %v2091_v16 = vadd.f32 %v8719_v26, %v2078_v12  ;;  %v6518_v12 = vld [vmem:[#allocation7 + $0x308] sm:$0xf] }
 0x19f   :  { %3118 = vmatpush.bf16.msrb.mxu0 %v6187_v25  ;;  %v6443_v25 = vor.u32 %v7929_v20, %v6440_v13  ;;  %v6519_v17 = vor.u32 %v7951_v14, %v6518_v12  ;;  %v7969_v13 = vld [vmem:[#allocation7 + $0x3ac] sm:$0xf]  ;;  %v7986_v12 = vld [vmem:[#allocation8 + $0x2c] sm:$0xf0]  ;;  %v6846_v14 = vld [vmem:[#allocation8 + $0x1a0] sm:$0xf] }
 0x1a0   :  { %3131 = vmatpush.bf16.msrb.mxu1 %v6315_v28  ;;  %v2104_v6 = vadd.f32 %v8721_v46, %v2091_v16  ;;  %v7925_v28 = vld [vmem:[#allocation7 + $0x24c] sm:$0xf]  ;;  %v6632_v16 = vld [vmem:[#allocation7 + $0x3f8] sm:$0xf0] }
 0x1a1   :  { %3141 = vmatpush.bf16.msrb.mxu2 %v6491_v9  ;;  %v7917_v46 = vld [vmem:[#allocation7 + $0x20c] sm:$0xf] }
 0x1a2   :  { %v2117_v27 = vadd.f32 %v2116_v49, %v2104_v6  ;;  %v7979_v49 = vld [vmem:[#allocation7 + $0x3f4] sm:$0xf0]  ;;  %v6395_v38 = vor.u32 %v7917_v46, %v6392_v47  ;;  %v6616_v6 = vld [vmem:[#allocation7 + $0x3d8] sm:$0xf0]  ;;  %v6750_v46 = vld [vmem:[#allocation8 + $0xe0] sm:$0xf] }
 0x1a3   :  { %3119 = vmatpush.bf16.msrb.mxu0 %v6171_v45  ;;  %v6631_v23 = vor.u32 %v7979_v49, %v6630_v48  ;;  %v8010_v47 = vld [vmem:[#allocation8 + $0xec] sm:$0xf0]  ;;  %v6734_v49 = vld [vmem:[#allocation8 + $0xc0] sm:$0xf] }
 0x1a4   :  { %3132 = vmatpush.bf16.msrb.mxu1 %v6299_v32  ;;  %v6751_v48 = vor.u32 %v8010_v47, %v6750_v46 }
 0x1a5   :  { %3142 = vmatpush.bf16.msrb.mxu2 %v6475_v37  ;;  %v7977_v37 = vld [vmem:[#allocation7 + $0x3ec] sm:$0xf] }
 0x1a6   :  { %v6635_v18 = vor.u32 %v7977_v37, %v6632_v16 }
 0x1a7   :  { %3120 = vmatpush.bf16.msrb.mxu0 %v6155_v59  ;;  %v7971_v59 = vld [vmem:[#allocation7 + $0x3b4] sm:$0xf0] }
 0x1a8   :  { %3133 = vmatpush.bf16.msrb.mxu1 %v6283_v63  ;;  %v6599_v60 = vor.u32 %v7971_v59, %v6598_v58  ;;  %v8734_v63 = vld [vmem:[#allocation14] sm:$0xf]  ;;  %v6719_v59 = vor.u32 %v8002_v55, %v6718_v50  ;;  %v6720_v50 = vld [vmem:[#allocation8 + $0xb0] sm:$0xf0] }
 0x1a9   :  { %3143 = vmatpush.bf16.msrb.mxu2 %v6459_v19  ;;  %v2310_v2 = vperm.slane %v8734_v63, 0  ;;  %v7973_v19 = vld [vmem:[#allocation7 + $0x3cc] sm:$0xf] }
 0x1aa   :  { %v6619_v20 = vor.u32 %v7973_v19, %v6616_v6  ;;  %v6638_v6 = vld [vmem:[#allocation8] sm:$0xf] }
 0x1ab   :  { %3121 = vmatpush.bf16.msrb.mxu0 %v6139_v42  ;;  %v2129_v11 = vpop.f32.mrf.mxu0  ;;  %v6551_v42 = vor.u32 %v7959_v34, %v6550_v5  ;;  %v6670_v34 = vld [vmem:[#allocation8 + $0x40] sm:$0xf] }
 0x1ac   :  { %3134 = vmatpush.bf16.msrb.mxu1 %v6267_v8  ;;  %v2142_v31 = vpop.f32.mrf.mxu1  ;;  %v2130_v26 = vadd.f32 %v2129_v11, %v2117_v27  ;;  %v7955_v8 = vld [vmem:[#allocation7 + $0x334] sm:$0xf0]  ;;  %v7965_v11 = vld [vmem:[#allocation7 + $0x38c] sm:$0xf] }
 0x1ad   :  { %3144 = vmatpush.bf16.msrb.mxu2 %v6443_v25  ;;  %v6535_v10 = vor.u32 %v7955_v8, %v6534_v7  ;;  %v6600_v25 = vld [vmem:[#allocation7 + $0x3b8] sm:$0xf0] }
 0x1ae   :  { %3122 = vmatmul.bf16.vlgmr.msrb.gmra.mxu0 %v8690_v54  ;;  %v6427_v54 = vor.u32 %v7925_v28, %v6424_v30  ;;  %v2143_v22 = vadd.f32 %v2142_v31, %v2130_v26  ;;  %v6603_v27 = vor.u32 %v7969_v13, %v6600_v25  ;;  %v6584_v28 = vld [vmem:[#allocation7 + $0x398] sm:$0xf0]  ;;  %v7961_v31 = vld [vmem:[#allocation7 + $0x36c] sm:$0xf]  ;;  %v6830_v13 = vld [vmem:[#allocation8 + $0x180] sm:$0xf] }
 0x1af   :  { %3135 = vmatmul.bf16.vlgmr.msrb.gmra.mxu1 %v8688_v52  ;;  %v6587_v30 = vor.u32 %v7965_v11, %v6584_v28  ;;  %v6568_v26 = vld [vmem:[#allocation7 + $0x378] sm:$0xf0]  ;;  %3952 = vmatpush.bf16.msra.mxu0 %v6751_v48  ;;  %v8022_v48 = vld [vmem:[#allocation8 + $0x14c] sm:$0xf0] }
 0x1b0   :  { %v6571_v36 = vor.u32 %v7961_v31, %v6568_v26  ;;  %v6752_v31 = vld [vmem:[#allocation8 + $0xf0] sm:$0xf0] }
 0x1b1   :  { %3145 = vmatpush.bf16.msrb.mxu2 %v6427_v54  ;;  %v2311_v54 = vperm.slane %v8734_v63, 1 }
 0x1b3   :  { %v2155_v52 = vpop.f32.mrf.mxu2  ;;  %v2131_v45 = vpop.f32.mrf.mxu0 }
 0x1b4   :  { %v2156_v44 = vadd.f32 %v2155_v52, %v2143_v22  ;;  %v2168_v24 = vpop.f32.mrf.mxu3  ;;  %v2144_v40 = vpop.f32.mrf.mxu1  ;;  %v7957_v22 = vld [vmem:[#allocation7 + $0x34c] sm:$0xf]  ;;  %v6552_v52 = vld [vmem:[#allocation7 + $0x358] sm:$0xf0] }
 0x1b5   :  { %3146 = vmatpush.bf16.msrb.mxu2 %v6411_v43  ;;  %v6555_v45 = vor.u32 %v7957_v22, %v6552_v52  ;;  %v7953_v40 = vld [vmem:[#allocation7 + $0x32c] sm:$0xf] }
 0x1b6   :  { %v2169_v32 = vadd.f32 %v2168_v24, %v2156_v44 }
 0x1b8   :  { %v2175_v51 = vmax.f32 %v2169_v32, 0.0  ;;  %v6536_v32 = vld [vmem:[#allocation7 + $0x338] sm:$0xf0] }
 0x1b9   :  { %3147 = vmatpush.bf16.msrb.mxu2 %v6395_v38  ;;  %v8006_v38 = vld [vmem:[#allocation8 + $0xcc] sm:$0xf0] }
 0x1ba   :  { %v8730_v53 = vpack.c.bf16 %v2175_v51, %v2175_v51  ;;  %v6539_v51 = vor.u32 %v7953_v40, %v6536_v32  ;;  %v6798_v32 = vld [vmem:[#allocation8 + $0x140] sm:$0xf] }
 0x1bb   :  { %v2157_v56 = vpop.f32.mrf.mxu2  ;;  %v6799_v55 = vor.u32 %v8022_v48, %v6798_v32  ;;  %v8028_v32 = vld [vmem:[#allocation8 + $0x184] sm:$0xf] }
 0x1bc   :  { %v2170_v57 = vpop.f32.mrf.mxu3  ;;  %3005 = vmatmul.bf16.vlgmr.msra.gmra.mxu3 %v8730_v53  ;;  %3148 = vmatmul.bf16.vlgmr.msrb.gmra.mxu2 %v8711_v21 }
 0x1bd   :  { %3101 = vmatpush.bf16.msra.mxu3 %v6631_v23  ;;  %v6735_v23 = vor.u32 %v8006_v38, %v6734_v49  ;;  %v7949_v57 = vld [vmem:[#allocation7 + $0x30c] sm:$0xf]  ;;  %v6990_v49 = vld [vmem:[#allocation8 + $0x2c0] sm:$0xf] }
 0x1bf   :  { %3953 = vmatpush.bf16.msra.mxu0 %v6735_v23  ;;  %v8000_v23 = vld [vmem:[#allocation8 + $0xa4] sm:$0xf] }
 0x1c1   :  { %3102 = vmatpush.bf16.msra.mxu3 %v6615_v29  ;;  %v6520_v29 = vld [vmem:[#allocation7 + $0x318] sm:$0xf0] }
 0x1c3   :  { %3954 = vmatpush.bf16.msra.mxu0 %v6719_v59  ;;  %v6974_v59 = vld [vmem:[#allocation8 + $0x2a0] sm:$0xf] }
 0x1c5   :  { %3103 = vmatpush.bf16.msra.mxu3 %v6599_v60  ;;  %v6523_v60 = vor.u32 %v7949_v57, %v6520_v29  ;;  %v6782_v57 = vld [vmem:[#allocation8 + $0x120] sm:$0xf]  ;;  %v6723_v29 = vor.u32 %v8000_v23, %v6720_v50 }
 0x1c6   :  { %v6894_v50 = vld [vmem:[#allocation8 + $0x200] sm:$0xf] }
 0x1c9   :  { %3104 = vmatpush.bf16.msra.mxu3 %v6583_v0  ;;  %v6703_v0 = vor.u32 %v7998_v62, %v6702_v61  ;;  %v7996_v61 = vld [vmem:[#allocation8 + $0x84] sm:$0xf]  ;;  %v6704_v62 = vld [vmem:[#allocation8 + $0x90] sm:$0xf0] }
 0x1cb   :  { %v2967_v4 = vpop.f32.mrf.mxu0  ;;  %3955 = vmatpush.bf16.msra.mxu0 %v6703_v0 }
 0x1cc   :  { %v2968_v21 = vadd.f32 %v2967_v4, %v2310_v2  ;;  %v2980_v35 = vpop.f32.mrf.mxu1  ;;  %3057 = vmatmul.bf16.vlgmr.msrb.gmra.mxu3 %v8730_v53  ;;  %v6686_v2 = vld [vmem:[#allocation8 + $0x60] sm:$0xf]  ;;  %v6879_v4 = vor.u32 %v8042_v1, %v6878_v33 }
 0x1cd   :  { %3105 = vmatpush.bf16.msra.mxu3 %v6567_v3  ;;  %v7994_v3 = vld [vmem:[#allocation8 + $0x6c] sm:$0xf0]  ;;  %v6766_v1 = vld [vmem:[#allocation8 + $0x100] sm:$0xf] }
 0x1ce   :  { %v8738_v41 = vadd.f32 %v2980_v35, %v2968_v21  ;;  %3965 = vmatpush.bf16.msra.mxu1 %v6879_v4  ;;  %v6687_v5 = vor.u32 %v7994_v3, %v6686_v2  ;;  %v7990_v21 = vld [vmem:[#allocation8 + $0x4c] sm:$0xf0]  ;;  %v6862_v35 = vld [vmem:[#allocation8 + $0x1c0] sm:$0xf]  ;;  %v6707_v4 = vor.u32 %v7996_v61, %v6704_v62  ;;  %v8072_v62 = vld [vmem:[#allocation8 + $0x2e4] sm:$0xf] }
 0x1cf   :  { %v6671_v7 = vor.u32 %v7990_v21, %v6670_v34  ;;  %v8014_v2 = vld [vmem:[#allocation8 + $0x10c] sm:$0xf0]  ;;  %v7992_v21 = vld [vmem:[#allocation8 + $0x64] sm:$0xf] }
 0x1d0   :  { %3956 = vmatpush.bf16.msra.mxu0 %v6687_v5  ;;  %v6958_v5 = vld [vmem:[#allocation8 + $0x280] sm:$0xf]  ;;  %v8062_v34 = vld [vmem:[#allocation8 + $0x28c] sm:$0xf0] }
 0x1d1   :  { %3106 = vmatpush.bf16.msra.mxu3 %v6551_v42  ;;  %v8038_v42 = vld [vmem:[#allocation8 + $0x1cc] sm:$0xf0] }
 0x1d2   :  { %v6863_v8 = vor.u32 %v8038_v42, %v6862_v35  ;;  %v6688_v35 = vld [vmem:[#allocation8 + $0x70] sm:$0xf0]  ;;  %v8040_v42 = vld [vmem:[#allocation8 + $0x1e4] sm:$0xf] }
 0x1d3   :  { %v2969_v9 = vpop.f32.mrf.mxu0 }
 0x1d4   :  { %v2982_v15 = vpop.f32.mrf.mxu1  ;;  %3966 = vmatpush.bf16.msra.mxu1 %v6863_v8  ;;  %3957 = vmatpush.bf16.msra.mxu0 %v6671_v7  ;;  %v6654_v9 = vld [vmem:[#allocation8 + $0x20] sm:$0xf]  ;;  %v6880_v7 = vld [vmem:[#allocation8 + $0x1f0] sm:$0xf0]  ;;  %v6767_v8 = vor.u32 %v8014_v2, %v6766_v1 }
 0x1d5   :  { %3107 = vmatpush.bf16.msra.mxu3 %v6535_v10  ;;  %v2312_v10 = vperm.slane %v8734_v63, 2  ;;  %v6655_v37 = vor.u32 %v7986_v12, %v6654_v9  ;;  %v6691_v9 = vor.u32 %v7992_v21, %v6688_v35  ;;  %v6883_v12 = vor.u32 %v8040_v42, %v6880_v7  ;;  %v8020_v21 = vld [vmem:[#allocation8 + $0x144] sm:$0xf]  ;;  %v6800_v35 = vld [vmem:[#allocation8 + $0x150] sm:$0xf0] }
 0x1d6   :  { %v8068_v42 = vld [vmem:[#allocation8 + $0x2c4] sm:$0xf] }
 0x1d8   :  { %3958 = vmatpush.bf16.msra.mxu0 %v6655_v37  ;;  %v8058_v37 = vld [vmem:[#allocation8 + $0x26c] sm:$0xf0] }
 0x1d9   :  { %3108 = vmatpush.bf16.msra.mxu3 %v6519_v17 }
 0x1dc   :  { %3109 = vmatmul.bf16.vlgmr.msra.gmra.mxu3 %v8730_v53 }
 0x1dd   :  { %3153 = vmatpush.bf16.msrb.mxu3 %v6635_v18 }
 0x1e1   :  { %3154 = vmatpush.bf16.msrb.mxu3 %v6619_v20  ;;  %v7982_v20 = vld [vmem:[#allocation8 + $0xc] sm:$0xf0] }
 0x1e2   :  { %v6639_v25 = vor.u32 %v7982_v20, %v6638_v6 }
 0x1e4   :  { %3959 = vmatpush.bf16.msra.mxu0 %v6639_v25  ;;  %v2313_v25 = vperm.slane %v8734_v63, 3 }
 0x1e5   :  { %3155 = vmatpush.bf16.msrb.mxu3 %v6603_v27  ;;  %v8030_v27 = vld [vmem:[#allocation8 + $0x18c] sm:$0xf0] }
 0x1e6   :  { %v6831_v28 = vor.u32 %v8030_v27, %v6830_v13  ;;  %v6926_v27 = vld [vmem:[#allocation8 + $0x240] sm:$0xf] }
 0x1e9   :  { %3156 = vmatpush.bf16.msrb.mxu3 %v6587_v30  ;;  %v8008_v30 = vld [vmem:[#allocation8 + $0xe4] sm:$0xf] }
 0x1ea   :  { %v6755_v26 = vor.u32 %v8008_v30, %v6752_v31  ;;  %v7984_v31 = vld [vmem:[#allocation8 + $0x24] sm:$0xf] }
 0x1eb   :  { %v3019_v39 = vpop.f32.mrf.mxu0 }
 0x1ec   :  { %v3020_v43 = vadd.f32 %v3019_v39, %v2311_v54  ;;  %v3032_v44 = vpop.f32.mrf.mxu1  ;;  %4004 = vmatpush.bf16.msrb.mxu0 %v6755_v26  ;;  %v6814_v54 = vld [vmem:[#allocation8 + $0x160] sm:$0xf]  ;;  %v6656_v26 = vld [vmem:[#allocation8 + $0x30] sm:$0xf0] }
 0x1ed   :  { %3157 = vmatpush.bf16.msrb.mxu3 %v6571_v36  ;;  %v8026_v36 = vld [vmem:[#allocation8 + $0x16c] sm:$0xf0]  ;;  %v7006_v39 = vld [vmem:[#allocation8 + $0x2e0] sm:$0xf] }
 0x1ee   :  { %v8742_v24 = vadd.f32 %v3032_v44, %v3020_v43  ;;  %v6815_v52 = vor.u32 %v8026_v36, %v6814_v54  ;;  %v8074_v43 = vld [vmem:[#allocation8 + $0x2ec] sm:$0xf0]  ;;  %v8004_v44 = vld [vmem:[#allocation8 + $0xc4] sm:$0xf]  ;;  %v6659_v36 = vor.u32 %v7984_v31, %v6656_v26  ;;  %v6960_v26 = vld [vmem:[#allocation8 + $0x290] sm:$0xf0] }
 0x1ef   :  { %v7007_v47 = vor.u32 %v8074_v43, %v7006_v39  ;;  %v8032_v54 = vld [vmem:[#allocation8 + $0x1a4] sm:$0xf]  ;;  %v6848_v39 = vld [vmem:[#allocation8 + $0x1b0] sm:$0xf0] }
 0x1f1   :  { %3158 = vmatpush.bf16.msrb.mxu3 %v6555_v45  ;;  %v6736_v45 = vld [vmem:[#allocation8 + $0xd0] sm:$0xf0]  ;;  %3978 = vmatpush.bf16.msra.mxu2 %v7007_v47  ;;  %v7980_v47 = vld [vmem:[#allocation8 + $0x4] sm:$0xf] }
 0x1f2   :  { %v6739_v40 = vor.u32 %v8004_v44, %v6736_v45  ;;  %v6910_v45 = vld [vmem:[#allocation8 + $0x220] sm:$0xf] }
 0x1f3   :  { %v3021_v56 = vpop.f32.mrf.mxu0 }
 0x1f4   :  { %v3034_v58 = vpop.f32.mrf.mxu1  ;;  %4005 = vmatpush.bf16.msrb.mxu0 %v6739_v40  ;;  %v6640_v40 = vld [vmem:[#allocation8 + $0x10] sm:$0xf0] }
 0x1f5   :  { %3159 = vmatpush.bf16.msrb.mxu3 %v6539_v51  ;;  %v8070_v51 = vld [vmem:[#allocation8 + $0x2cc] sm:$0xf0] }
 0x1f6   :  { %v6991_v56 = vor.u32 %v8070_v51, %v6990_v49  ;;  %v8018_v58 = vld [vmem:[#allocation8 + $0x12c] sm:$0xf0]  ;;  %v6832_v51 = vld [vmem:[#allocation8 + $0x190] sm:$0xf0] }
 0x1f7   :  { %v6783_v0 = vor.u32 %v8018_v58, %v6782_v57  ;;  %v6835_v23 = vor.u32 %v8028_v32, %v6832_v51  ;;  %v8024_v58 = vld [vmem:[#allocation8 + $0x164] sm:$0xf]  ;;  %v7038_v51 = vld [vmem:[#allocation8 + $0x320] sm:$0xf] }
 0x1f8   :  { %3979 = vmatpush.bf16.msra.mxu2 %v6991_v56  ;;  %4006 = vmatpush.bf16.msrb.mxu0 %v6723_v29  ;;  %v7134_v56 = vld [vmem:[#allocation8 + $0x3e0] sm:$0xf]  ;;  %v8106_v29 = vld [vmem:[#allocation8 + $0x3ec] sm:$0xf0] }
 0x1f9   :  { %3160 = vmatpush.bf16.msrb.mxu3 %v6523_v60  ;;  %v8066_v60 = vld [vmem:[#allocation8 + $0x2ac] sm:$0xf0] }
 0x1fa   :  { %v6975_v33 = vor.u32 %v8066_v60, %v6974_v59  ;;  %v6816_v59 = vld [vmem:[#allocation8 + $0x170] sm:$0xf0]  ;;  %v7135_v60 = vor.u32 %v8106_v29, %v7134_v56  ;;  %v8048_v56 = vld [vmem:[#allocation8 + $0x224] sm:$0xf] }
 0x1fb   :  { %v6819_v61 = vor.u32 %v8024_v58, %v6816_v59  ;;  %v6758_v58 = vld [vmem:[#allocation8 + $0xe8] sm:$0xf]  ;;  %v8011_v59 = vld [vmem:[#allocation8 + $0xf4] sm:$0xf0] }
 0x1fc   :  { %3161 = vmatmul.bf16.vlgmr.msrb.gmra.mxu3 %v8730_v53  ;;  %v8034_v53 = vld [vmem:[#allocation8 + $0x1ac] sm:$0xf0]  ;;  %3980 = vmatpush.bf16.msra.mxu2 %v6975_v33 }
 0x1fd   :  { %v6847_v17 = vor.u32 %v8034_v53, %v6846_v14  ;;  %4007 = vmatpush.bf16.msrb.mxu0 %v6707_v4  ;;  %v6942_v14 = vld [vmem:[#allocation8 + $0x260] sm:$0xf]  ;;  %v7988_v53 = vld [vmem:[#allocation8 + $0x44] sm:$0xf]  ;;  %3991 = vmatpush.bf16.msra.mxu3 %v7135_v60 }
 0x1fe   :  { %v7118_v4 = vld [vmem:[#allocation8 + $0x3c0] sm:$0xf] }
 0x1ff   :  { %v8746_v15 = vpop.f32.mrf.mxu2  ;;  %3967 = vmatpush.bf16.msra.mxu1 %v6847_v17  ;;  %v8036_v17 = vld [vmem:[#allocation8 + $0x1c4] sm:$0xf] }
 0x201   :  { %4008 = vmatpush.bf16.msrb.mxu0 %v6691_v9 }
 0x203   :  { %3968 = vmatpush.bf16.msra.mxu1 %v6831_v28  ;;  %v8054_v28 = vld [vmem:[#allocation8 + $0x24c] sm:$0xf0] }
 0x204   :  { %v6927_v30 = vor.u32 %v8054_v28, %v6926_v27  ;;  %v8012_v27 = vld [vmem:[#allocation8 + $0x104] sm:$0xf]  ;;  %v6768_v28 = vld [vmem:[#allocation8 + $0x110] sm:$0xf0] }
 0x205   :  { %v6771_v31 = vor.u32 %v8012_v27, %v6768_v28 }
 0x207   :  { %v2995_v22 = vpop.f32.mrf.mxu2  ;;  %3969 = vmatpush.bf16.msra.mxu1 %v6815_v52  ;;  %v6851_v52 = vor.u32 %v8032_v54, %v6848_v39  ;;  %v8090_v39 = vld [vmem:[#allocation8 + $0x36c] sm:$0xf0] }
 0x20b   :  { %v3071_v16 = vpop.f32.mrf.mxu0  ;;  %3970 = vmatpush.bf16.msra.mxu1 %v6799_v55  ;;  %v8046_v55 = vld [vmem:[#allocation8 + $0x20c] sm:$0xf0] }
 0x20c   :  { %v3072_v18 = vadd.f32 %v3071_v16, %v2312_v10  ;;  %v3084_v19 = vpop.f32.mrf.mxu1  ;;  %v6959_v10 = vor.u32 %v8062_v34, %v6958_v5  ;;  %v6672_v16 = vld [vmem:[#allocation8 + $0x50] sm:$0xf0]  ;;  %v6895_v57 = vor.u32 %v8046_v55, %v6894_v50  ;;  %v8102_v5 = vld [vmem:[#allocation8 + $0x3cc] sm:$0xf0] }
 0x20d   :  { %v6675_v20 = vor.u32 %v7988_v53, %v6672_v16  ;;  %v7119_v34 = vor.u32 %v8102_v5, %v7118_v4  ;;  %v8016_v53 = vld [vmem:[#allocation8 + $0x124] sm:$0xf]  ;;  %v6784_v16 = vld [vmem:[#allocation8 + $0x130] sm:$0xf0] }
 0x20e   :  { %v8748_v11 = vadd.f32 %v3084_v19, %v3072_v18  ;;  %v6864_v18 = vld [vmem:[#allocation8 + $0x1d0] sm:$0xf0]  ;;  %3981 = vmatpush.bf16.msra.mxu2 %v6959_v10  ;;  %v6943_v19 = vor.u32 %v8058_v37, %v6942_v14  ;;  %v8098_v14 = vld [vmem:[#allocation8 + $0x3ac] sm:$0xf0]  ;;  %v8104_v4 = vld [vmem:[#allocation8 + $0x3e4] sm:$0xf] }
 0x20f   :  { %v8750_v3 = vpop.f32.mrf.mxu2  ;;  %3971 = vmatpush.bf16.msra.mxu1 %v6783_v0  ;;  %v6867_v13 = vor.u32 %v8036_v17, %v6864_v18  ;;  %4009 = vmatpush.bf16.msrb.mxu0 %v6675_v20  ;;  %v7008_v0 = vld [vmem:[#allocation8 + $0x2f0] sm:$0xf0]  ;;  %v8064_v17 = vld [vmem:[#allocation8 + $0x2a4] sm:$0xf]  ;;  %v6787_v18 = vor.u32 %v8016_v53, %v6784_v16  ;;  %v7086_v20 = vld [vmem:[#allocation8 + $0x380] sm:$0xf] }
 0x210   :  { %v7011_v1 = vor.u32 %v8072_v62, %v7008_v0  ;;  %v6992_v10 = vld [vmem:[#allocation8 + $0x2d0] sm:$0xf0]  ;;  %3992 = vmatpush.bf16.msra.mxu3 %v7119_v34  ;;  %v7022_v0 = vld [vmem:[#allocation8 + $0x300] sm:$0xf]  ;;  %v6742_v34 = vld [vmem:[#allocation8 + $0xc8] sm:$0xf] }
 0x211   :  { %v6995_v9 = vor.u32 %v8068_v42, %v6992_v10  ;;  %v7136_v42 = vld [vmem:[#allocation8 + $0x3f0] sm:$0xf0] }
 0x212   :  { %3982 = vmatpush.bf16.msra.mxu2 %v6943_v19  ;;  %v6976_v19 = vld [vmem:[#allocation8 + $0x2b0] sm:$0xf0] }
 0x213   :  { %v3073_v46 = vpop.f32.mrf.mxu0  ;;  %3972 = vmatpush.bf16.msra.mxu1 %v6767_v8  ;;  %4010 = vmatpush.bf16.msrb.mxu0 %v6659_v36  ;;  %v6803_v8 = vor.u32 %v8020_v21, %v6800_v35  ;;  %v7070_v36 = vld [vmem:[#allocation8 + $0x360] sm:$0xf]  ;;  %v8007_v21 = vld [vmem:[#allocation8 + $0xd4] sm:$0xf0] }
 0x214   :  { %v3086_v38 = vpop.f32.mrf.mxu1  ;;  %v8050_v46 = vld [vmem:[#allocation8 + $0x22c] sm:$0xf0]  ;;  %v6743_v10 = vor.u32 %v8007_v21, %v6742_v34  ;;  %v8009_v34 = vld [vmem:[#allocation8 + $0xec] sm:$0xf]  ;;  %v6760_v21 = vld [vmem:[#allocation8 + $0xf8] sm:$0xf0] }
 0x215   :  { %v6911_v63 = vor.u32 %v8050_v46, %v6910_v45  ;;  %v6643_v38 = vor.u32 %v7980_v47, %v6640_v40  ;;  %v7054_v45 = vld [vmem:[#allocation8 + $0x340] sm:$0xf]  ;;  %v8086_v46 = vld [vmem:[#allocation8 + $0x34c] sm:$0xf0]  ;;  %v8052_v47 = vld [vmem:[#allocation8 + $0x244] sm:$0xf] }
 0x216   :  { %3983 = vmatpush.bf16.msra.mxu2 %v6927_v30  ;;  %v8060_v30 = vld [vmem:[#allocation8 + $0x284] sm:$0xf]  ;;  %v6928_v40 = vld [vmem:[#allocation8 + $0x250] sm:$0xf0] }
 0x217   :  { %v3047_v6 = vpop.f32.mrf.mxu2  ;;  %4017 = vmatpush.bf16.msrb.mxu1 %v6883_v12  ;;  %4011 = vmatpush.bf16.msrb.mxu0 %v6643_v38  ;;  %v7102_v12 = vld [vmem:[#allocation8 + $0x3a0] sm:$0xf]  ;;  %v6963_v54 = vor.u32 %v8060_v30, %v6960_v26  ;;  %v6931_v32 = vor.u32 %v8052_v47, %v6928_v40  ;;  %v2994_v38 = vadd.f32 %v8746_v15, %v8738_v41  ;;  %v8044_v15 = vld [vmem:[#allocation8 + $0x204] sm:$0xf]  ;;  %v6694_v30 = vld [vmem:[#allocation8 + $0x68] sm:$0xf] }
 0x218   :  { %v7103_v37 = vor.u32 %v8098_v14, %v7102_v12  ;;  %v6979_v6 = vor.u32 %v8064_v17, %v6976_v19  ;;  %v8003_v12 = vld [vmem:[#allocation8 + $0xb4] sm:$0xf0]  ;;  %v8100_v14 = vld [vmem:[#allocation8 + $0x3c4] sm:$0xf]  ;;  %v6886_v26 = vld [vmem:[#allocation8 + $0x1e8] sm:$0xf] }
 0x219   :  { %v7999_v19 = vld [vmem:[#allocation8 + $0x94] sm:$0xf0]  ;;  %v6870_v47 = vld [vmem:[#allocation8 + $0x1c8] sm:$0xf]  ;;  %v8088_v40 = vld [vmem:[#allocation8 + $0x364] sm:$0xf] }
 0x21a   :  { %3984 = vmatpush.bf16.msra.mxu2 %v6911_v63  ;;  %3993 = vmatpush.bf16.msra.mxu3 %v7103_v37  ;;  %v7055_v63 = vor.u32 %v8086_v46, %v7054_v45  ;;  %v7120_v37 = vld [vmem:[#allocation8 + $0x3d0] sm:$0xf0]  ;;  %v6678_v46 = vld [vmem:[#allocation8 + $0x48] sm:$0xf] }
 0x21b   :  { %4018 = vmatpush.bf16.msrb.mxu1 %v6867_v13  ;;  %v8094_v13 = vld [vmem:[#allocation8 + $0x38c] sm:$0xf0]  ;;  %v7123_v16 = vor.u32 %v8100_v14, %v7120_v37  ;;  %v6763_v37 = vor.u32 %v8009_v34, %v6760_v21 }
 0x21e   :  { %3985 = vmatpush.bf16.msra.mxu2 %v6895_v57  ;;  %v6912_v57 = vld [vmem:[#allocation8 + $0x230] sm:$0xf0] }
 0x21f   :  { %4019 = vmatpush.bf16.msrb.mxu1 %v6851_v52  ;;  %v8755_v49 = vpop.f32.mrf.mxu2  ;;  %v8056_v52 = vld [vmem:[#allocation8 + $0x264] sm:$0xf]  ;;  %v6915_v60 = vor.u32 %v8048_v56, %v6912_v57  ;;  %v7987_v56 = vld [vmem:[#allocation8 + $0x34] sm:$0xf0]  ;;  %v6854_v57 = vld [vmem:[#allocation8 + $0x1a8] sm:$0xf] }
 0x222   :  { %4030 = vmatpush.bf16.msrb.mxu2 %v7011_v1  ;;  %v6759_v1 = vor.u32 %v8011_v59, %v6758_v58  ;;  %v8084_v58 = vld [vmem:[#allocation8 + $0x344] sm:$0xf]  ;;  %v7056_v59 = vld [vmem:[#allocation8 + $0x350] sm:$0xf0] }
 0x223   :  { %4020 = vmatpush.bf16.msrb.mxu1 %v6835_v23  ;;  %v8082_v23 = vld [vmem:[#allocation8 + $0x32c] sm:$0xf0] }
 0x224   :  { %v7039_v55 = vor.u32 %v8082_v23, %v7038_v51 }
 0x226   :  { %4031 = vmatpush.bf16.msrb.mxu2 %v6995_v9  ;;  %v6726_v9 = vld [vmem:[#allocation8 + $0xa8] sm:$0xf] }
 0x227   :  { %4021 = vmatpush.bf16.msrb.mxu1 %v6819_v61  ;;  %v3099_v7 = vpop.f32.mrf.mxu2  ;;  %v6727_v17 = vor.u32 %v8003_v12, %v6726_v9  ;;  %v6822_v9 = vld [vmem:[#allocation8 + $0x168] sm:$0xf]  ;;  %v8027_v12 = vld [vmem:[#allocation8 + $0x174] sm:$0xf0] }
 0x228   :  { %v7139_v7 = vor.u32 %v8104_v4, %v7136_v42  ;;  %v7040_v4 = vld [vmem:[#allocation8 + $0x330] sm:$0xf0]  ;;  %v3098_v42 = vadd.f32 %v8755_v49, %v8748_v11  ;;  %v6823_v11 = vor.u32 %v8027_v12, %v6822_v9  ;;  %v8033_v9 = vld [vmem:[#allocation8 + $0x1ac] sm:$0xf]  ;;  %v6856_v12 = vld [vmem:[#allocation8 + $0x1b8] sm:$0xf0] }
 0x22a   :  { %4032 = vmatpush.bf16.msrb.mxu2 %v6979_v6  ;;  %v8096_v6 = vld [vmem:[#allocation8 + $0x3a4] sm:$0xf] }
 0x22b   :  { %v3123_v22 = vpop.f32.mrf.mxu0  ;;  %4022 = vmatpush.bf16.msrb.mxu1 %v6803_v8 }
 0x22c   :  { %v3124_v43 = vadd.f32 %v3123_v22, %v2313_v25  ;;  %v3136_v44 = vpop.f32.mrf.mxu1  ;;  %v7087_v25 = vor.u32 %v8094_v13, %v7086_v20  ;;  %v7071_v22 = vor.u32 %v8090_v39, %v7070_v36  ;;  %v7104_v20 = vld [vmem:[#allocation8 + $0x3b0] sm:$0xf0]  ;;  %v8043_v36 = vld [vmem:[#allocation8 + $0x1f4] sm:$0xf0]  ;;  %v8092_v39 = vld [vmem:[#allocation8 + $0x384] sm:$0xf] }
 0x22d   :  { %v7107_v13 = vor.u32 %v8096_v6, %v7104_v20  ;;  %v6887_v45 = vor.u32 %v8043_v36, %v6886_v26  ;;  %v6744_v6 = vld [vmem:[#allocation8 + $0xd8] sm:$0xf0]  ;;  %v8071_v26 = vld [vmem:[#allocation8 + $0x2d4] sm:$0xf0] }
 0x22e   :  { %v8753_v48 = vadd.f32 %v3136_v44, %v3124_v43  ;;  %3994 = vmatpush.bf16.msra.mxu3 %v7087_v25  ;;  %4033 = vmatpush.bf16.msrb.mxu2 %v6963_v54  ;;  %v6944_v43 = vld [vmem:[#allocation8 + $0x270] sm:$0xf0]  ;;  %v3046_v25 = vadd.f32 %v8750_v3, %v8742_v24  ;;  %v8039_v3 = vld [vmem:[#allocation8 + $0x1d4] sm:$0xf0]  ;;  %v6728_v36 = vld [vmem:[#allocation8 + $0xb8] sm:$0xf0] }
 0x22f   :  { %4023 = vmatpush.bf16.msrb.mxu1 %v6787_v18  ;;  %v6947_v44 = vor.u32 %v8056_v52, %v6944_v43  ;;  %v6710_v18 = vld [vmem:[#allocation8 + $0x88] sm:$0xf] }
 0x230   :  { %v6711_v28 = vor.u32 %v7999_v19, %v6710_v18  ;;  %v8075_v18 = vld [vmem:[#allocation8 + $0x2f4] sm:$0xf0]  ;;  %v8005_v19 = vld [vmem:[#allocation8 + $0xcc] sm:$0xf] }
 0x232   :  { %3995 = vmatpush.bf16.msra.mxu3 %v7071_v22  ;;  %4034 = vmatpush.bf16.msrb.mxu2 %v6947_v44  ;;  %v7088_v22 = vld [vmem:[#allocation8 + $0x390] sm:$0xf0] }
 0x233   :  { %v3125_v33 = vpop.f32.mrf.mxu0  ;;  %4024 = vmatpush.bf16.msrb.mxu1 %v6771_v31  ;;  %v7995_v31 = vld [vmem:[#allocation8 + $0x74] sm:$0xf0]  ;;  %v7091_v52 = vor.u32 %v8092_v39, %v7088_v22 }
 0x234   :  { %v3138_v2 = vpop.f32.mrf.mxu1  ;;  %v8078_v33 = vld [vmem:[#allocation8 + $0x30c] sm:$0xf0]  ;;  %v6695_v44 = vor.u32 %v7995_v31, %v6694_v30  ;;  %v8023_v30 = vld [vmem:[#allocation8 + $0x154] sm:$0xf0]  ;;  %v6998_v31 = vld [vmem:[#allocation8 + $0x2c8] sm:$0xf] }
 0x235   :  { %v7023_v41 = vor.u32 %v8078_v33, %v7022_v0  ;;  %v6896_v2 = vld [vmem:[#allocation8 + $0x210] sm:$0xf0]  ;;  %v6646_v33 = vld [vmem:[#allocation8 + $0x8] sm:$0xf] }
 0x236   :  { %3996 = vmatpush.bf16.msra.mxu3 %v7055_v63  ;;  %4035 = vmatpush.bf16.msrb.mxu2 %v6931_v32  ;;  %v6899_v35 = vor.u32 %v8044_v15, %v6896_v2  ;;  %v7991_v63 = vld [vmem:[#allocation8 + $0x54] sm:$0xf0]  ;;  %v7072_v32 = vld [vmem:[#allocation8 + $0x370] sm:$0xf0]  ;;  %v8080_v2 = vld [vmem:[#allocation8 + $0x324] sm:$0xf] }
 0x237   :  { %v6679_v23 = vor.u32 %v7991_v63, %v6678_v46  ;;  %v8031_v15 = vld [vmem:[#allocation8 + $0x194] sm:$0xf0]  ;;  %v6982_v46 = vld [vmem:[#allocation8 + $0x2a8] sm:$0xf] }
 0x238   :  { %v8067_v63 = vld [vmem:[#allocation8 + $0x2b4] sm:$0xf0] }
 0x23a   :  { %3997 = vmatpush.bf16.msra.mxu3 %v7039_v55  ;;  %4036 = vmatpush.bf16.msrb.mxu2 %v6915_v60  ;;  %v6662_v55 = vld [vmem:[#allocation8 + $0x28] sm:$0xf]  ;;  %v7059_v60 = vor.u32 %v8084_v58, %v7056_v59  ;;  %v6888_v58 = vld [vmem:[#allocation8 + $0x1f8] sm:$0xf0] }
 0x23e   :  { %3998 = vmatpush.bf16.msra.mxu3 %v7023_v41  ;;  %4037 = vmatpush.bf16.msrb.mxu2 %v6899_v35  ;;  %v6838_v41 = vld [vmem:[#allocation8 + $0x188] sm:$0xf]  ;;  %v7043_v35 = vor.u32 %v8080_v2, %v7040_v4  ;;  %v8037_v2 = vld [vmem:[#allocation8 + $0x1cc] sm:$0xf]  ;;  %v6872_v4 = vld [vmem:[#allocation8 + $0x1d8] sm:$0xf0] }
 0x23f   :  { %v3006_v50 = vpop.f32.mrf.mxu3  ;;  %v8759_v61 = vpop.f32.mrf.mxu2 }
 0x240   :  { %v3007_v29 = vadd.f32 %v3006_v50, %v2994_v38  ;;  %v7075_v38 = vor.u32 %v8088_v40, %v7072_v32  ;;  %v6871_v50 = vor.u32 %v8039_v3, %v6870_v47  ;;  %v7997_v47 = vld [vmem:[#allocation8 + $0x8c] sm:$0xf]  ;;  %v6712_v3 = vld [vmem:[#allocation8 + $0x98] sm:$0xf0]  ;;  %v6983_v32 = vor.u32 %v8067_v63, %v6982_v46 }
 0x242   :  { %v3166_v62 = vmax.f32 %v3007_v29, 0.0  ;;  %4043 = vmatpush.bf16.msrb.mxu3 %v7139_v7  ;;  %v8035_v29 = vld [vmem:[#allocation8 + $0x1b4] sm:$0xf0] }
 0x243   :  { %v6855_v0 = vor.u32 %v8035_v29, %v6854_v57  ;;  %v6696_v57 = vld [vmem:[#allocation8 + $0x78] sm:$0xf0]  ;;  %v8041_v29 = vld [vmem:[#allocation8 + $0x1ec] sm:$0xf] }
 0x244   :  { %v8761_v5 = vpack.c.bf16 %v3166_v62, %v3166_v62  ;;  %v6663_v62 = vor.u32 %v7987_v56, %v6662_v55  ;;  %v8063_v55 = vld [vmem:[#allocation8 + $0x294] sm:$0xf0]  ;;  %v7993_v56 = vld [vmem:[#allocation8 + $0x6c] sm:$0xf] }
 0x246   :  { %3960 = vmatmul.bf16.vlgmr.msra.gmra.mxu0 %v8761_v5  ;;  %4044 = vmatpush.bf16.msrb.mxu3 %v7123_v16  ;;  %v8076_v16 = vld [vmem:[#allocation8 + $0x304] sm:$0xf] }
 0x247   :  { %4056 = vmatpush.bf16.msra.mxu0 %v6759_v1  ;;  %v3008_v8 = vpop.f32.mrf.mxu3  ;;  %v3151_v53 = vpop.f32.mrf.mxu2  ;;  %v7983_v1 = vld [vmem:[#allocation8 + $0x14] sm:$0xf0] }
 0x248   :  { %v6647_v8 = vor.u32 %v7983_v1, %v6646_v33  ;;  %v7014_v53 = vld [vmem:[#allocation8 + $0x2e8] sm:$0xf]  ;;  %v6891_v33 = vor.u32 %v8041_v29, %v6888_v58  ;;  %v8059_v1 = vld [vmem:[#allocation8 + $0x274] sm:$0xf0]  ;;  %v8017_v58 = vld [vmem:[#allocation8 + $0x12c] sm:$0xf] }
 0x249   :  { %v8099_v29 = vld [vmem:[#allocation8 + $0x3b4] sm:$0xf0] }
 0x24a   :  { %4045 = vmatpush.bf16.msrb.mxu3 %v7107_v13 }
 0x24b   :  { %4057 = vmatpush.bf16.msra.mxu0 %v6743_v10  ;;  %v6839_v10 = vor.u32 %v8031_v15, %v6838_v41  ;;  %v7989_v41 = vld [vmem:[#allocation8 + $0x4c] sm:$0xf]  ;;  %v6680_v15 = vld [vmem:[#allocation8 + $0x58] sm:$0xf0] }
 0x24c   :  { %v6683_v21 = vor.u32 %v7989_v41, %v6680_v15  ;;  %v8095_v41 = vld [vmem:[#allocation8 + $0x394] sm:$0xf0]  ;;  %v8013_v15 = vld [vmem:[#allocation8 + $0x10c] sm:$0xf] }
 0x24e   :  { %4046 = vmatpush.bf16.msrb.mxu3 %v7091_v52  ;;  %v6999_v52 = vor.u32 %v8071_v26, %v6998_v31 }
 0x24f   :  { %4058 = vmatpush.bf16.msra.mxu0 %v6727_v17  ;;  %v3058_v27 = vpop.f32.mrf.mxu3  ;;  %v7024_v17 = vld [vmem:[#allocation8 + $0x310] sm:$0xf0] }
 0x250   :  { %v3059_v54 = vadd.f32 %v3058_v27, %v3046_v25  ;;  %v7027_v20 = vor.u32 %v8076_v16, %v7024_v17  ;;  %v7015_v25 = vor.u32 %v8075_v18, %v7014_v53  ;;  %v6747_v27 = vor.u32 %v8005_v19, %v6744_v6  ;;  %v6918_v53 = vld [vmem:[#allocation8 + $0x228] sm:$0xf]  ;;  %v8051_v17 = vld [vmem:[#allocation8 + $0x234] sm:$0xf0]  ;;  %v7981_v18 = vld [vmem:[#allocation8 + $0xc] sm:$0xf] }
 0x251   :  { %v6859_v16 = vor.u32 %v8033_v9, %v6856_v12  ;;  %v6648_v19 = vld [vmem:[#allocation8 + $0x18] sm:$0xf0]  ;;  %v8029_v6 = vld [vmem:[#allocation8 + $0x18c] sm:$0xf] }
 0x252   :  { %v3167_v43 = vmax.f32 %v3059_v54, 0.0  ;;  %4047 = vmatpush.bf16.msrb.mxu3 %v7075_v38  ;;  %v8001_v54 = vld [vmem:[#allocation8 + $0xac] sm:$0xf]  ;;  %v6715_v38 = vor.u32 %v7997_v47, %v6712_v3  ;;  %v7126_v47 = vld [vmem:[#allocation8 + $0x3c8] sm:$0xf] }
 0x253   :  { %4059 = vmatpush.bf16.msra.mxu0 %v6711_v28  ;;  %v6806_v28 = vld [vmem:[#allocation8 + $0x148] sm:$0xf]  ;;  %v8103_v3 = vld [vmem:[#allocation8 + $0x3d4] sm:$0xf0]  ;;  %v6952_v9 = vld [vmem:[#allocation8 + $0x278] sm:$0xf0] }
 0x254   :  { %v8766_v24 = vpack.c.bf16 %v3167_v43, %v3167_v43  ;;  %v6807_v22 = vor.u32 %v8023_v30, %v6806_v28  ;;  %v6731_v43 = vor.u32 %v8001_v54, %v6728_v36  ;;  %v6902_v28 = vld [vmem:[#allocation8 + $0x208] sm:$0xf]  ;;  %v8047_v30 = vld [vmem:[#allocation8 + $0x214] sm:$0xf0] }
 0x255   :  { %v7142_v54 = vld [vmem:[#allocation8 + $0x3e8] sm:$0xf]  ;;  %v8107_v36 = vld [vmem:[#allocation8 + $0x3f4] sm:$0xf0] }
 0x256   :  { %3973 = vmatmul.bf16.vlgmr.msra.gmra.mxu1 %v8766_v24  ;;  %4012 = vmatmul.bf16.vlgmr.msrb.gmra.mxu0 %v8761_v5 }
 0x257   :  { %4060 = vmatpush.bf16.msra.mxu0 %v6695_v44  ;;  %4069 = vmatpush.bf16.msra.mxu1 %v6887_v45  ;;  %v3060_v51 = vpop.f32.mrf.mxu3  ;;  %v6790_v44 = vld [vmem:[#allocation8 + $0x128] sm:$0xf]  ;;  %v8019_v45 = vld [vmem:[#allocation8 + $0x134] sm:$0xf0] }
 0x258   :  { %4048 = vmatpush.bf16.msrb.mxu3 %v7059_v60  ;;  %v6791_v40 = vor.u32 %v8019_v45, %v6790_v44  ;;  %v6774_v51 = vld [vmem:[#allocation8 + $0x108] sm:$0xf] }
 0x25b   :  { %4061 = vmatpush.bf16.msra.mxu0 %v6679_v23  ;;  %4070 = vmatpush.bf16.msra.mxu1 %v6871_v50  ;;  %v8015_v23 = vld [vmem:[#allocation8 + $0x114] sm:$0xf0]  ;;  %v6966_v50 = vld [vmem:[#allocation8 + $0x288] sm:$0xf] }
 0x25c   :  { %4049 = vmatpush.bf16.msrb.mxu3 %v7043_v35  ;;  %v6775_v59 = vor.u32 %v8015_v23, %v6774_v51  ;;  %v6967_v60 = vor.u32 %v8063_v55, %v6966_v50  ;;  %v6934_v35 = vld [vmem:[#allocation8 + $0x248] sm:$0xf]  ;;  %v7000_v51 = vld [vmem:[#allocation8 + $0x2d8] sm:$0xf0]  ;;  %v7127_v50 = vor.u32 %v8103_v3, %v7126_v47 }
 0x25d   :  { %v7096_v47 = vld [vmem:[#allocation8 + $0x398] sm:$0xf0] }
 0x25f   :  { %4062 = vmatpush.bf16.msra.mxu0 %v6663_v62  ;;  %4071 = vmatpush.bf16.msra.mxu1 %v6855_v0  ;;  %v3110_v7 = vpop.f32.mrf.mxu3  ;;  %v6699_v62 = vor.u32 %v7993_v56, %v6696_v57  ;;  %v6950_v0 = vld [vmem:[#allocation8 + $0x268] sm:$0xf] }
 0x260   :  { %v3111_v14 = vadd.f32 %v3110_v7, %v3098_v42  ;;  %4050 = vmatpush.bf16.msrb.mxu3 %v7027_v20  ;;  %v6951_v34 = vor.u32 %v8059_v1, %v6950_v0  ;;  %v6875_v42 = vor.u32 %v8037_v2, %v6872_v4  ;;  %v8055_v7 = vld [vmem:[#allocation8 + $0x254] sm:$0xf0]  ;;  %v6840_v20 = vld [vmem:[#allocation8 + $0x198] sm:$0xf0]  ;;  %v7110_v57 = vld [vmem:[#allocation8 + $0x3a8] sm:$0xf] }
 0x261   :  { %v6843_v26 = vor.u32 %v8029_v6, %v6840_v20  ;;  %v7111_v0 = vor.u32 %v8099_v29, %v7110_v57  ;;  %v7094_v1 = vld [vmem:[#allocation8 + $0x388] sm:$0xf]  ;;  %v6776_v2 = vld [vmem:[#allocation8 + $0x118] sm:$0xf0]  ;;  %v8061_v4 = vld [vmem:[#allocation8 + $0x28c] sm:$0xf] }
 0x262   :  { %v3168_v13 = vmax.f32 %v3111_v14, 0.0  ;;  %v6935_v14 = vor.u32 %v8055_v7, %v6934_v35  ;;  %v6779_v35 = vor.u32 %v8013_v15, %v6776_v2  ;;  %v7078_v7 = vld [vmem:[#allocation8 + $0x368] sm:$0xf]  ;;  %v8083_v20 = vld [vmem:[#allocation8 + $0x334] sm:$0xf0] }
 0x263   :  { %4063 = vmatpush.bf16.msra.mxu0 %v6647_v8  ;;  %4072 = vmatpush.bf16.msra.mxu1 %v6839_v10  ;;  %v7985_v8 = vld [vmem:[#allocation8 + $0x2c] sm:$0xf]  ;;  %v6664_v10 = vld [vmem:[#allocation8 + $0x38] sm:$0xf0]  ;;  %v7046_v6 = vld [vmem:[#allocation8 + $0x328] sm:$0xf] }
 0x264   :  { %v8772_v49 = vpack.c.bf16 %v3168_v13, %v3168_v13  ;;  %v3150_v13 = vadd.f32 %v8759_v61, %v8753_v48  ;;  %v6903_v48 = vor.u32 %v8047_v30, %v6902_v28  ;;  %v7143_v61 = vor.u32 %v8107_v36, %v7142_v54  ;;  %v7030_v28 = vld [vmem:[#allocation8 + $0x308] sm:$0xf]  ;;  %v8079_v30 = vld [vmem:[#allocation8 + $0x314] sm:$0xf0]  ;;  %v8105_v54 = vld [vmem:[#allocation8 + $0x3ec] sm:$0xf] }
 0x265   :  { %v7144_v36 = vld [vmem:[#allocation8 + $0x3f8] sm:$0xf0]  ;;  %v8077_v29 = vld [vmem:[#allocation8 + $0x30c] sm:$0xf]  ;;  %v8119_v15 = vld [vmem:[#allocation10 + $0x54] sm:$0xf0] }
 0x266   :  { %3986 = vmatmul.bf16.vlgmr.msra.gmra.mxu2 %v8772_v49  ;;  %4025 = vmatmul.bf16.vlgmr.msrb.gmra.mxu1 %v8766_v24 }
 0x267   :  { %4108 = vmatpush.bf16.msrb.mxu0 %v6763_v37  ;;  %4073 = vmatpush.bf16.msra.mxu1 %v6823_v11  ;;  %v3112_v39 = vpop.f32.mrf.mxu3  ;;  %v6667_v37 = vor.u32 %v7985_v8, %v6664_v10  ;;  %v8091_v8 = vld [vmem:[#allocation8 + $0x374] sm:$0xf0]  ;;  %v8057_v10 = vld [vmem:[#allocation8 + $0x26c] sm:$0xf] }
 0x268   :  { %4064 = vmatmul.bf16.vlgmr.msra.gmra.mxu0 %v8761_v5  ;;  %4082 = vmatpush.bf16.msra.mxu2 %v7015_v25  ;;  %v6919_v25 = vor.u32 %v8051_v17, %v6918_v53  ;;  %v8025_v39 = vld [vmem:[#allocation8 + $0x16c] sm:$0xf]  ;;  %v7079_v12 = vor.u32 %v8091_v8, %v7078_v7  ;;  %v8087_v53 = vld [vmem:[#allocation8 + $0x354] sm:$0xf0]  ;;  %v6936_v17 = vld [vmem:[#allocation8 + $0x258] sm:$0xf0] }
 0x269   :  { %v8115_v7 = vld [vmem:[#allocation10 + $0x34] sm:$0xf0]  ;;  %v7270_v8 = vld [vmem:[#allocation10 + $0xf0] sm:$0xf] }
 0x26b   :  { %4109 = vmatpush.bf16.msrb.mxu0 %v6747_v27  ;;  %4074 = vmatpush.bf16.msra.mxu1 %v6807_v22  ;;  %v6651_v27 = vor.u32 %v7981_v18, %v6648_v19  ;;  %v6824_v22 = vld [vmem:[#allocation8 + $0x178] sm:$0xf0] }
 0x26c   :  { %4083 = vmatpush.bf16.msra.mxu2 %v6999_v52  ;;  %v8073_v52 = vld [vmem:[#allocation8 + $0x2ec] sm:$0xf]  ;;  %v6827_v46 = vor.u32 %v8025_v39, %v6824_v22  ;;  %v7031_v39 = vor.u32 %v8079_v30, %v7030_v28  ;;  %v7147_v22 = vor.u32 %v8105_v54, %v7144_v36  ;;  %v7246_v54 = vld [vmem:[#allocation10 + $0xc0] sm:$0xf] }
 0x26f   :  { %4110 = vmatpush.bf16.msrb.mxu0 %v6731_v43  ;;  %4075 = vmatpush.bf16.msra.mxu1 %v6791_v40  ;;  %v7016_v43 = vld [vmem:[#allocation8 + $0x2f8] sm:$0xf0]  ;;  %v8021_v40 = vld [vmem:[#allocation8 + $0x14c] sm:$0xf] }
 0x270   :  { %4084 = vmatpush.bf16.msra.mxu2 %v6983_v32  ;;  %v7019_v63 = vor.u32 %v8073_v52, %v7016_v43  ;;  %v6808_v32 = vld [vmem:[#allocation8 + $0x158] sm:$0xf0]  ;;  %v8101_v52 = vld [vmem:[#allocation8 + $0x3cc] sm:$0xf] }
 0x271   :  { %v6811_v55 = vor.u32 %v8021_v40, %v6808_v32  ;;  %v7128_v43 = vld [vmem:[#allocation8 + $0x3d8] sm:$0xf0]  ;;  %v8089_v40 = vld [vmem:[#allocation8 + $0x36c] sm:$0xf] }
 0x272   :  { %v7080_v32 = vld [vmem:[#allocation8 + $0x378] sm:$0xf0] }
 0x273   :  { %4111 = vmatpush.bf16.msrb.mxu0 %v6715_v38  ;;  %4076 = vmatpush.bf16.msra.mxu1 %v6775_v59  ;;  %v8069_v38 = vld [vmem:[#allocation8 + $0x2cc] sm:$0xf]  ;;  %v6792_v59 = vld [vmem:[#allocation8 + $0x138] sm:$0xf0] }
 0x274   :  { %4085 = vmatpush.bf16.msra.mxu2 %v6967_v60  ;;  %v7003_v56 = vor.u32 %v8069_v38, %v7000_v51  ;;  %v8065_v60 = vld [vmem:[#allocation8 + $0x2ac] sm:$0xf]  ;;  %v7083_v38 = vor.u32 %v8089_v40, %v7080_v32 }
 0x275   :  { %v8085_v51 = vld [vmem:[#allocation8 + $0x34c] sm:$0xf] }
 0x276   :  { %4038 = vmatmul.bf16.vlgmr.msrb.gmra.mxu2 %v8772_v49  ;;  %4077 = vmatmul.bf16.vlgmr.msra.gmra.mxu1 %v8766_v24 }
 0x277   :  { %4112 = vmatpush.bf16.msrb.mxu0 %v6699_v62  ;;  %4121 = vmatpush.bf16.msrb.mxu1 %v6891_v33  ;;  %v6984_v62 = vld [vmem:[#allocation8 + $0x2b8] sm:$0xf0] }
 0x278   :  { %4086 = vmatpush.bf16.msra.mxu2 %v6951_v34  ;;  %v6987_v33 = vor.u32 %v8065_v60, %v6984_v62  ;;  %v6968_v34 = vld [vmem:[#allocation8 + $0x298] sm:$0xf0]  ;;  %v8123_v60 = vld [vmem:[#allocation10 + $0x74] sm:$0xf0] }
 0x27b   :  { %4113 = vmatpush.bf16.msrb.mxu0 %v6683_v21  ;;  %4122 = vmatpush.bf16.msrb.mxu1 %v6875_v42  ;;  %v7095_v21 = vor.u32 %v8095_v41, %v7094_v1  ;;  %v6971_v42 = vor.u32 %v8061_v4, %v6968_v34  ;;  %v7190_v41 = vld [vmem:[#allocation10 + $0x50] sm:$0xf]  ;;  %v7182_v34 = vld [vmem:[#allocation10 + $0x40] sm:$0xf] }
 0x27c   :  { %4087 = vmatpush.bf16.msra.mxu2 %v6935_v14  ;;  %v6955_v14 = vor.u32 %v8057_v10, %v6952_v9  ;;  %v7191_v2 = vor.u32 %v8119_v15, %v7190_v41  ;;  %v8139_v10 = vld [vmem:[#allocation10 + $0xf4] sm:$0xf0]  ;;  %v8116_v41 = vld [vmem:[#allocation10 + $0x44] sm:$0xf]  ;;  %v7184_v15 = vld [vmem:[#allocation10 + $0x48] sm:$0xf0] }
 0x27d   :  { %v7271_v9 = vor.u32 %v8139_v10, %v7270_v8 }
 0x27f   :  { %v3162_v11 = vpop.f32.mrf.mxu3  ;;  %4114 = vmatpush.bf16.msrb.mxu0 %v6667_v37  ;;  %4123 = vmatpush.bf16.msrb.mxu1 %v6859_v16  ;;  %v7062_v37 = vld [vmem:[#allocation8 + $0x348] sm:$0xf]  ;;  %v8053_v16 = vld [vmem:[#allocation8 + $0x24c] sm:$0xf] }
 0x280   :  { %v3163_v31 = vadd.f32 %v3162_v11, %v3150_v13  ;;  %4088 = vmatpush.bf16.msra.mxu2 %v6919_v25  ;;  %v7063_v18 = vor.u32 %v8087_v53, %v7062_v37  ;;  %v6939_v19 = vor.u32 %v8053_v16, %v6936_v17  ;;  %v8049_v13 = vld [vmem:[#allocation8 + $0x22c] sm:$0xf]  ;;  %v6920_v11 = vld [vmem:[#allocation8 + $0x238] sm:$0xf0]  ;;  %v7047_v25 = vor.u32 %v8083_v20, %v7046_v6  ;;  %v7166_v37 = vld [vmem:[#allocation10 + $0x20] sm:$0xf] }
 0x281   :  { %v8113_v53 = vld [vmem:[#allocation10 + $0x24] sm:$0xf0]  ;;  %v7262_v16 = vld [vmem:[#allocation10 + $0xe0] sm:$0xf]  ;;  %v8111_v6 = vld [vmem:[#allocation10 + $0x14] sm:$0xf0] }
 0x282   :  { %v3169_v44 = vmax.f32 %v3163_v31, 0.0  ;;  %v8045_v31 = vld [vmem:[#allocation8 + $0x20c] sm:$0xf]  ;;  %v7167_v17 = vor.u32 %v8113_v53, %v7166_v37  ;;  %v7176_v37 = vld [vmem:[#allocation10 + $0x38] sm:$0xf0] }
 0x283   :  { %4115 = vmatpush.bf16.msrb.mxu0 %v6651_v27  ;;  %4124 = vmatpush.bf16.msrb.mxu1 %v6843_v26  ;;  %v6923_v27 = vor.u32 %v8049_v13, %v6920_v11  ;;  %v6904_v26 = vld [vmem:[#allocation8 + $0x218] sm:$0xf0]  ;;  %v7254_v13 = vld [vmem:[#allocation10 + $0xd0] sm:$0xf]  ;;  %v8135_v11 = vld [vmem:[#allocation10 + $0xd4] sm:$0xf0] }
 0x284   :  { %v8781_v45 = vpack.c.bf16 %v3169_v44, %v3169_v44  ;;  %4089 = vmatpush.bf16.msra.mxu2 %v6903_v48  ;;  %v7131_v44 = vor.u32 %v8101_v52, %v7128_v43  ;;  %v8097_v48 = vld [vmem:[#allocation8 + $0x3ac] sm:$0xf] }
 0x286   :  { %3999 = vmatmul.bf16.vlgmr.msra.gmra.mxu3 %v8781_v45  ;;  %4116 = vmatmul.bf16.vlgmr.msrb.gmra.mxu0 %v8761_v5  ;;  %v6795_v5 = vor.u32 %v8017_v58, %v6792_v59  ;;  %v7206_v59 = vld [vmem:[#allocation10 + $0x70] sm:$0xf] }
 0x287   :  { %4095 = vmatpush.bf16.msra.mxu3 %v7143_v61  ;;  %v3164_v23 = vpop.f32.mrf.mxu3  ;;  %4125 = vmatpush.bf16.msrb.mxu1 %v6827_v46  ;;  %v7112_v61 = vld [vmem:[#allocation8 + $0x3b8] sm:$0xf0]  ;;  %v7207_v62 = vor.u32 %v8123_v60, %v7206_v59  ;;  %v7222_v60 = vld [vmem:[#allocation10 + $0x90] sm:$0xf] }
 0x288   :  { %4134 = vmatpush.bf16.msrb.mxu2 %v7019_v63  ;;  %v7115_v46 = vor.u32 %v8097_v48, %v7112_v61  ;;  %v8093_v63 = vld [vmem:[#allocation8 + $0x38c] sm:$0xf]  ;;  %v7064_v23 = vld [vmem:[#allocation8 + $0x358] sm:$0xf0]  ;;  %v8131_v48 = vld [vmem:[#allocation10 + $0xb4] sm:$0xf0] }
 0x289   :  { %4090 = vmatmul.bf16.vlgmr.msra.gmra.mxu2 %v8772_v49  ;;  %v7099_v3 = vor.u32 %v8093_v63, %v7096_v47  ;;  %4558 = vmatpush.bf16.msra.mxu0 %v7207_v62  ;;  %v7334_v61 = vld [vmem:[#allocation10 + $0x170] sm:$0xf]  ;;  %v8155_v63 = vld [vmem:[#allocation10 + $0x174] sm:$0xf0]  ;;  %v8120_v47 = vld [vmem:[#allocation10 + $0x64] sm:$0xf] }
 0x28a   :  { %v7335_v40 = vor.u32 %v8155_v63, %v7334_v61  ;;  %v8127_v62 = vld [vmem:[#allocation10 + $0x94] sm:$0xf0] }
 0x28b   :  { %4096 = vmatpush.bf16.msra.mxu3 %v7127_v50  ;;  %4126 = vmatpush.bf16.msrb.mxu1 %v6811_v55  ;;  %v7067_v50 = vor.u32 %v8085_v51, %v7064_v23  ;;  %v8081_v55 = vld [vmem:[#allocation8 + $0x32c] sm:$0xf]  ;;  %v8129_v51 = vld [vmem:[#allocation10 + $0xa4] sm:$0xf0]  ;;  %v7326_v23 = vld [vmem:[#allocation10 + $0x160] sm:$0xf] }
 0x28c   :  { %4135 = vmatpush.bf16.msrb.mxu2 %v7003_v56  ;;  %v7048_v56 = vld [vmem:[#allocation8 + $0x338] sm:$0xf0]  ;;  %v8143_v63 = vld [vmem:[#allocation10 + $0x114] sm:$0xf0] }
 0x28d   :  { %v7051_v57 = vor.u32 %v8081_v55, %v7048_v56 }
 0x28f   :  { %4097 = vmatpush.bf16.msra.mxu3 %v7111_v0  ;;  %4127 = vmatpush.bf16.msrb.mxu1 %v6795_v5  ;;  %v7198_v5 = vld [vmem:[#allocation10 + $0x60] sm:$0xf] }
 0x290   :  { %4136 = vmatpush.bf16.msrb.mxu2 %v6987_v33  ;;  %v8121_v33 = vld [vmem:[#allocation10 + $0x64] sm:$0xf0] }
 0x291   :  { %v7199_v1 = vor.u32 %v8121_v33, %v7198_v5  ;;  %v7318_v5 = vld [vmem:[#allocation10 + $0x150] sm:$0xf]  ;;  %v7223_v33 = vor.u32 %v8127_v62, %v7222_v60  ;;  %v8171_v62 = vld [vmem:[#allocation10 + $0x1f4] sm:$0xf0] }
 0x293   :  { %4098 = vmatpush.bf16.msra.mxu3 %v7095_v21  ;;  %4128 = vmatpush.bf16.msrb.mxu1 %v6779_v35  ;;  %v8117_v21 = vld [vmem:[#allocation10 + $0x44] sm:$0xf0] }
 0x294   :  { %4137 = vmatpush.bf16.msrb.mxu2 %v6971_v42  ;;  %4559 = vmatpush.bf16.msra.mxu0 %v7199_v1  ;;  %v7183_v35 = vor.u32 %v8117_v21, %v7182_v34  ;;  %v7174_v42 = vld [vmem:[#allocation10 + $0x30] sm:$0xf]  ;;  %v8151_v1 = vld [vmem:[#allocation10 + $0x154] sm:$0xf0]  ;;  %v7187_v34 = vor.u32 %v8116_v41, %v7184_v15 }
 0x296   :  { %4051 = vmatmul.bf16.vlgmr.msrb.gmra.mxu3 %v8781_v45  ;;  %4129 = vmatmul.bf16.vlgmr.msrb.gmra.mxu1 %v8766_v24  ;;  %v6907_v24 = vor.u32 %v8045_v31, %v6904_v26  ;;  %v7150_v31 = vld [vmem:[#allocation10] sm:$0xf]  ;;  %v8109_v26 = vld [vmem:[#allocation10 + $0x4] sm:$0xf0] }
 0x297   :  { %4099 = vmatpush.bf16.msra.mxu3 %v7079_v12  ;;  %4571 = vmatpush.bf16.msra.mxu1 %v7271_v9  ;;  %v7151_v36 = vor.u32 %v8109_v26, %v7150_v31  ;;  %v8114_v9 = vld [vmem:[#allocation10 + $0x34] sm:$0xf]  ;;  %v7264_v31 = vld [vmem:[#allocation10 + $0xe8] sm:$0xf0] }
 0x298   :  { %4138 = vmatpush.bf16.msrb.mxu2 %v6955_v14  ;;  %4560 = vmatpush.bf16.msra.mxu0 %v7191_v2 }
 0x29b   :  { %4100 = vmatpush.bf16.msra.mxu3 %v7063_v18  ;;  %v8137_v18 = vld [vmem:[#allocation10 + $0xe4] sm:$0xf0] }
 0x29c   :  { %4139 = vmatpush.bf16.msrb.mxu2 %v6939_v19  ;;  %4561 = vmatpush.bf16.msra.mxu0 %v7183_v35  ;;  %v7158_v19 = vld [vmem:[#allocation10 + $0x10] sm:$0xf]  ;;  %v7263_v20 = vor.u32 %v8137_v18, %v7262_v16  ;;  %v7214_v35 = vld [vmem:[#allocation10 + $0x80] sm:$0xf]  ;;  %v7179_v16 = vor.u32 %v8114_v9, %v7176_v37  ;;  %v7272_v18 = vld [vmem:[#allocation10 + $0xf8] sm:$0xf0] }
 0x29d   :  { %v7328_v9 = vld [vmem:[#allocation10 + $0x168] sm:$0xf0] }
 0x29e   :  { %4572 = vmatpush.bf16.msra.mxu1 %v7263_v20  ;;  %v8147_v20 = vld [vmem:[#allocation10 + $0x134] sm:$0xf0] }
 0x29f   :  { %4101 = vmatpush.bf16.msra.mxu3 %v7047_v25  ;;  %v7159_v25 = vor.u32 %v8111_v6, %v7158_v19  ;;  %v7302_v6 = vld [vmem:[#allocation10 + $0x130] sm:$0xf] }
 0x2a0   :  { %4140 = vmatpush.bf16.msrb.mxu2 %v6923_v27  ;;  %v7255_v27 = vor.u32 %v8135_v11, %v7254_v13  ;;  %v7303_v13 = vor.u32 %v8147_v20, %v7302_v6  ;;  %v8112_v11 = vld [vmem:[#allocation10 + $0x24] sm:$0xf] }
 0x2a2   :  { %4573 = vmatpush.bf16.msra.mxu1 %v7255_v27  ;;  %v8136_v27 = vld [vmem:[#allocation10 + $0xe4] sm:$0xf] }
 0x2a3   :  { %4102 = vmatpush.bf16.msra.mxu3 %v7031_v39  ;;  %v8133_v39 = vld [vmem:[#allocation10 + $0xc4] sm:$0xf0]  ;;  %v7267_v26 = vor.u32 %v8136_v27, %v7264_v31  ;;  %v8150_v27 = vld [vmem:[#allocation10 + $0x154] sm:$0xf]  ;;  %v7320_v31 = vld [vmem:[#allocation10 + $0x158] sm:$0xf0] }
 0x2a4   :  { %4141 = vmatpush.bf16.msrb.mxu2 %v6907_v24  ;;  %v8122_v24 = vld [vmem:[#allocation10 + $0x74] sm:$0xf]  ;;  %v7247_v52 = vor.u32 %v8133_v39, %v7246_v54  ;;  %v7294_v54 = vld [vmem:[#allocation10 + $0x120] sm:$0xf] }
 0x2a6   :  { %4103 = vmatmul.bf16.vlgmr.msra.gmra.mxu3 %v8781_v45  ;;  %4574 = vmatpush.bf16.msra.mxu1 %v7247_v52  ;;  %v7160_v52 = vld [vmem:[#allocation10 + $0x18] sm:$0xf0] }
 0x2a7   :  { %4147 = vmatpush.bf16.msrb.mxu3 %v7147_v22  ;;  %4142 = vmatmul.bf16.vlgmr.msrb.gmra.mxu2 %v8772_v49  ;;  %v7032_v49 = vld [vmem:[#allocation8 + $0x318] sm:$0xf0] }
 0x2a8   :  { %v7035_v58 = vor.u32 %v8077_v29, %v7032_v49  ;;  %v7208_v22 = vld [vmem:[#allocation10 + $0x78] sm:$0xf0]  ;;  %4584 = vmatpush.bf16.msra.mxu2 %v7335_v40  ;;  %v8118_v49 = vld [vmem:[#allocation10 + $0x54] sm:$0xf]  ;;  %v7152_v40 = vld [vmem:[#allocation10 + $0x8] sm:$0xf0] }
 0x2a9   :  { %v7211_v43 = vor.u32 %v8122_v24, %v7208_v22  ;;  %v8110_v22 = vld [vmem:[#allocation10 + $0x14] sm:$0xf] }
 0x2ab   :  { %4148 = vmatpush.bf16.msrb.mxu3 %v7131_v44  ;;  %v7238_v44 = vld [vmem:[#allocation10 + $0xb0] sm:$0xf] }
 0x2af   :  { %4149 = vmatpush.bf16.msrb.mxu3 %v7115_v46  ;;  %v7239_v46 = vor.u32 %v8131_v48, %v7238_v44  ;;  %v7163_v44 = vor.u32 %v8110_v22, %v7160_v52  ;;  %v7256_v48 = vld [vmem:[#allocation10 + $0xd8] sm:$0xf0]  ;;  %v8124_v52 = vld [vmem:[#allocation10 + $0x84] sm:$0xf] }
 0x2b1   :  { %4575 = vmatpush.bf16.msra.mxu1 %v7239_v46  ;;  %v7286_v46 = vld [vmem:[#allocation10 + $0x110] sm:$0xf] }
 0x2b3   :  { %4150 = vmatpush.bf16.msrb.mxu3 %v7099_v3  ;;  %v7200_v3 = vld [vmem:[#allocation10 + $0x68] sm:$0xf0] }
 0x2b4   :  { %v7203_v32 = vor.u32 %v8120_v47, %v7200_v3  ;;  %v7287_v47 = vor.u32 %v8143_v63, %v7286_v46  ;;  %v8108_v3 = vld [vmem:[#allocation10 + $0x4] sm:$0xf]  ;;  %v7312_v46 = vld [vmem:[#allocation10 + $0x148] sm:$0xf0] }
 0x2b7   :  { %4151 = vmatpush.bf16.msrb.mxu3 %v7083_v38  ;;  %v7230_v38 = vld [vmem:[#allocation10 + $0xa0] sm:$0xf] }
 0x2b8   :  { %v7231_v56 = vor.u32 %v8129_v51, %v7230_v38  ;;  %v7155_v51 = vor.u32 %v8108_v3, %v7152_v40  ;;  %v7366_v3 = vld [vmem:[#allocation10 + $0x1b0] sm:$0xf]  ;;  %v8163_v40 = vld [vmem:[#allocation10 + $0x1b4] sm:$0xf0] }
 0x2ba   :  { %4576 = vmatpush.bf16.msra.mxu1 %v7231_v56 }
 0x2bb   :  { %4152 = vmatpush.bf16.msrb.mxu3 %v7067_v50  ;;  %v8153_v50 = vld [vmem:[#allocation10 + $0x164] sm:$0xf0] }
 0x2be   :  { %4577 = vmatpush.bf16.msra.mxu1 %v7223_v33  ;;  %v7240_v33 = vld [vmem:[#allocation10 + $0xb8] sm:$0xf0] }
 0x2bf   :  { %4153 = vmatpush.bf16.msrb.mxu3 %v7051_v57  ;;  %v7327_v57 = vor.u32 %v8153_v50, %v7326_v23  ;;  %v7248_v23 = vld [vmem:[#allocation10 + $0xc8] sm:$0xf0]  ;;  %v8810_v50 = vld [vmem:[%s8863_s9] sm:$0xf] }
 0x2c1   :  { %4585 = vmatpush.bf16.msra.mxu2 %v7327_v57 }
 0x2c3   :  { %4154 = vmatpush.bf16.msrb.mxu3 %v7035_v58  ;;  %v8791_v0 = vpop.f32.mrf.mxu0  ;;  %v7192_v58 = vld [vmem:[#allocation10 + $0x58] sm:$0xf0] }
 0x2c4   :  { %v7195_v59 = vor.u32 %v8118_v49, %v7192_v58  ;;  %v7278_v49 = vld [vmem:[#allocation10 + $0x100] sm:$0xf]  ;;  %v8141_v58 = vld [vmem:[#allocation10 + $0x104] sm:$0xf0] }
 0x2c5   :  { %v7279_v60 = vor.u32 %v8141_v58, %v7278_v49  ;;  %v7358_v58 = vld [vmem:[#allocation10 + $0x1a0] sm:$0xf] }
 0x2c6   :  { %4155 = vmatmul.bf16.vlgmr.msrb.gmra.mxu3 %v8781_v45  ;;  %v7175_v45 = vor.u32 %v8115_v7, %v7174_v42  ;;  %v8125_v42 = vld [vmem:[#allocation10 + $0x84] sm:$0xf0]  ;;  %v7310_v7 = vld [vmem:[#allocation10 + $0x140] sm:$0xf] }
 0x2c7   :  { %v7215_v10 = vor.u32 %v8125_v42, %v7214_v35  ;;  %v7390_v35 = vld [vmem:[#allocation10 + $0x1e0] sm:$0xf]  ;;  %v8169_v42 = vld [vmem:[#allocation10 + $0x1e4] sm:$0xf0] }
 0x2c8   :  { %4562 = vmatpush.bf16.msra.mxu0 %v7175_v45  ;;  %v8149_v45 = vld [vmem:[#allocation10 + $0x144] sm:$0xf0] }
 0x2c9   :  { %v7311_v53 = vor.u32 %v8149_v45, %v7310_v7  ;;  %4578 = vmatpush.bf16.msra.mxu1 %v7215_v10  ;;  %v8128_v7 = vld [vmem:[#allocation10 + $0xa4] sm:$0xf]  ;;  %v7232_v10 = vld [vmem:[#allocation10 + $0xa8] sm:$0xf0] }
 0x2ca   :  { %v8152_v45 = vld [vmem:[#allocation10 + $0x164] sm:$0xf] }
 0x2cb   :  { %v3963_v4 = vpop.f32.mrf.mxu0 }
 0x2cc   :  { %4563 = vmatpush.bf16.msra.mxu0 %v7167_v17  ;;  %v7319_v4 = vor.u32 %v8151_v1, %v7318_v5  ;;  %v8138_v17 = vld [vmem:[#allocation10 + $0xf4] sm:$0xf]  ;;  %v3304_v1 = vperm.slane %v8810_v50, 0 }
 0x2cd   :  { %v7275_v19 = vor.u32 %v8138_v17, %v7272_v18  ;;  %v8130_v5 = vld [vmem:[#allocation10 + $0xb4] sm:$0xf]  ;;  %v7382_v17 = vld [vmem:[#allocation10 + $0x1d0] sm:$0xf]  ;;  %v8167_v18 = vld [vmem:[#allocation10 + $0x1d4] sm:$0xf0] }
 0x2ce   :  { %4586 = vmatpush.bf16.msra.mxu2 %v7319_v4  ;;  %v7243_v15 = vor.u32 %v8130_v5, %v7240_v33  ;;  %v8154_v4 = vld [vmem:[#allocation10 + $0x174] sm:$0xf]  ;;  %v7296_v5 = vld [vmem:[#allocation10 + $0x128] sm:$0xf0]  ;;  %v7350_v33 = vld [vmem:[#allocation10 + $0x190] sm:$0xf] }
 0x2cf   :  { %4623 = vmatpush.bf16.msrb.mxu1 %v7275_v19  ;;  %v3962_v19 = vadd.f32 %v8791_v0, %v3304_v1  ;;  %v8165_v0 = vld [vmem:[#allocation10 + $0x1c4] sm:$0xf0]  ;;  %v8159_v1 = vld [vmem:[#allocation10 + $0x194] sm:$0xf0] }
 0x2d0   :  { %4564 = vmatpush.bf16.msra.mxu0 %v7159_v25  ;;  %v7168_v25 = vld [vmem:[#allocation10 + $0x28] sm:$0xf0] }
 0x2d2   :  { %4587 = vmatpush.bf16.msra.mxu2 %v7311_v53  ;;  %v7235_v53 = vor.u32 %v8128_v7, %v7232_v10  ;;  %v7351_v7 = vor.u32 %v8159_v1, %v7350_v33  ;;  %v7342_v10 = vld [vmem:[#allocation10 + $0x180] sm:$0xf] }
 0x2d3   :  { %v8793_v12 = vpop.f32.mrf.mxu1  ;;  %v8795_v14 = vpop.f32.mrf.mxu0  ;;  %4624 = vmatpush.bf16.msrb.mxu1 %v7267_v26 }
 0x2d4   :  { %4565 = vmatpush.bf16.msra.mxu0 %v7151_v36  ;;  %v8145_v36 = vld [vmem:[#allocation10 + $0x124] sm:$0xf0]  ;;  %v3975_v20 = vadd.f32 %v8793_v12, %v3962_v19 }
 0x2d5   :  { %v7295_v24 = vor.u32 %v8145_v36, %v7294_v54  ;;  %v7323_v54 = vor.u32 %v8150_v27, %v7320_v31  ;;  %v8168_v27 = vld [vmem:[#allocation10 + $0x1e4] sm:$0xf] }
 0x2d6   :  { %4588 = vmatpush.bf16.msra.mxu2 %v7303_v13  ;;  %v7383_v13 = vor.u32 %v8167_v18, %v7382_v17  ;;  %v8170_v17 = vld [vmem:[#allocation10 + $0x1f4] sm:$0xf] }
 0x2d8   :  { %4610 = vmatpush.bf16.msrb.mxu0 %v7211_v43  ;;  %v8134_v43 = vld [vmem:[#allocation10 + $0xd4] sm:$0xf] }
 0x2d9   :  { %v7259_v61 = vor.u32 %v8134_v43, %v7256_v48  ;;  %v7216_v43 = vld [vmem:[#allocation10 + $0x88] sm:$0xf0] }
 0x2da   :  { %4589 = vmatpush.bf16.msra.mxu2 %v7295_v24  ;;  %v7374_v24 = vld [vmem:[#allocation10 + $0x1c0] sm:$0xf] }
 0x2db   :  { %v3976_v28 = vpop.f32.mrf.mxu1  ;;  %v4015_v30 = vpop.f32.mrf.mxu0  ;;  %4625 = vmatpush.bf16.msrb.mxu1 %v7259_v61  ;;  %v7375_v12 = vor.u32 %v8165_v0, %v7374_v24  ;;  %v7219_v61 = vor.u32 %v8124_v52, %v7216_v43 }
 0x2dc   :  { %4611 = vmatpush.bf16.msrb.mxu0 %v7203_v32  ;;  %v7171_v30 = vor.u32 %v8112_v11, %v7168_v25  ;;  %v8132_v32 = vld [vmem:[#allocation10 + $0xc4] sm:$0xf]  ;;  %v8126_v11 = vld [vmem:[#allocation10 + $0x94] sm:$0xf]  ;;  %v7224_v25 = vld [vmem:[#allocation10 + $0x98] sm:$0xf0] }
 0x2dd   :  { %v7251_v56 = vor.u32 %v8132_v32, %v7248_v23  ;;  %v7367_v32 = vor.u32 %v8163_v40, %v7366_v3  ;;  %v7304_v23 = vld [vmem:[#allocation10 + $0x138] sm:$0xf0] }
 0x2de   :  { %4590 = vmatpush.bf16.msra.mxu2 %v7287_v47 }
 0x2df   :  { %4626 = vmatpush.bf16.msrb.mxu1 %v7251_v56  ;;  %v3305_v56 = vperm.slane %v8810_v50, 1 }
 0x2e0   :  { %4612 = vmatpush.bf16.msrb.mxu0 %v7195_v59  ;;  %v7398_v59 = vld [vmem:[#allocation10 + $0x1f0] sm:$0xf] }
 0x2e1   :  { %v7399_v41 = vor.u32 %v8171_v62, %v7398_v59  ;;  %v8161_v59 = vld [vmem:[#allocation10 + $0x1a4] sm:$0xf0] }
 0x2e2   :  { %4591 = vmatpush.bf16.msra.mxu2 %v7279_v60  ;;  %v8144_v60 = vld [vmem:[#allocation10 + $0x124] sm:$0xf]  ;;  %v7359_v62 = vor.u32 %v8161_v59, %v7358_v58  ;;  %v7344_v58 = vld [vmem:[#allocation10 + $0x188] sm:$0xf0] }
 0x2e3   :  { %v8797_v55 = vpop.f32.mrf.mxu1  ;;  %4597 = vmatpush.bf16.msra.mxu3 %v7399_v41  ;;  %4627 = vmatpush.bf16.msrb.mxu1 %v7243_v15  ;;  %v4014_v41 = vadd.f32 %v8795_v14, %v3305_v56  ;;  %v7400_v14 = vld [vmem:[#allocation10 + $0x1f8] sm:$0xf0] }
 0x2e4   :  { %4613 = vmatpush.bf16.msrb.mxu0 %v7187_v34  ;;  %v7336_v34 = vld [vmem:[#allocation10 + $0x178] sm:$0xf0] }
 0x2e5   :  { %v8799_v29 = vpop.f32.mrf.mxu0 }
 0x2e7   :  { %4628 = vmatpush.bf16.msrb.mxu1 %v7235_v53 }
 0x2e8   :  { %4614 = vmatpush.bf16.msrb.mxu0 %v7179_v16  ;;  %v7331_v16 = vor.u32 %v8152_v45, %v7328_v9  ;;  %v8157_v45 = vld [vmem:[#allocation10 + $0x184] sm:$0xf0]  ;;  %v8140_v9 = vld [vmem:[#allocation10 + $0x104] sm:$0xf] }
 0x2e9   :  { %v8801_v2 = vpop.f32.mrf.mxu2 }
 0x2eb   :  { %v4028_v21 = vpop.f32.mrf.mxu1 }
 0x2ec   :  { %4615 = vmatpush.bf16.msrb.mxu0 %v7171_v30  ;;  %v7339_v21 = vor.u32 %v8154_v4, %v7336_v34  ;;  %v7227_v30 = vor.u32 %v8126_v11, %v7224_v25  ;;  %v7299_v4 = vor.u32 %v8144_v60, %v7296_v5  ;;  %v8142_v34 = vld [vmem:[#allocation10 + $0x114] sm:$0xf]  ;;  %v3307_v60 = vperm.slane %v8810_v50, 3 }
 0x2ed   :  { %v4067_v8 = vpop.f32.mrf.mxu0 }
 0x2ee   :  { %v7391_v8 = vor.u32 %v8169_v42, %v7390_v35  ;;  %4636 = vmatpush.bf16.msrb.mxu2 %v7339_v21  ;;  %4629 = vmatpush.bf16.msrb.mxu1 %v7227_v30  ;;  %v7288_v21 = vld [vmem:[#allocation10 + $0x118] sm:$0xf0]  ;;  %v4027_v42 = vadd.f32 %v8797_v55, %v4014_v41 }
 0x2f0   :  { %4616 = vmatpush.bf16.msrb.mxu0 %v7163_v44  ;;  %4598 = vmatpush.bf16.msra.mxu3 %v7391_v8  ;;  %v8148_v44 = vld [vmem:[#allocation10 + $0x144] sm:$0xf]  ;;  %v7291_v8 = vor.u32 %v8142_v34, %v7288_v21 }
 0x2f1   :  { %v3989_v28 = vpop.f32.mrf.mxu2 }
 0x2f2   :  { %4637 = vmatpush.bf16.msrb.mxu2 %v7331_v16  ;;  %v3988_v28 = vadd.f32 %v8801_v2, %v3975_v20  ;;  %v7315_v2 = vor.u32 %v8148_v44, %v7312_v46  ;;  %4630 = vmatpush.bf16.msrb.mxu1 %v7219_v61  ;;  %v7280_v16 = vld [vmem:[#allocation10 + $0x108] sm:$0xf0]  ;;  %v8162_v46 = vld [vmem:[#allocation10 + $0x1b4] sm:$0xf] }
 0x2f3   :  { %v8803_v39 = vpop.f32.mrf.mxu1  ;;  %v7283_v20 = vor.u32 %v8140_v9, %v7280_v16 }
 0x2f4   :  { %4617 = vmatpush.bf16.msrb.mxu0 %v7155_v51  ;;  %4599 = vmatpush.bf16.msra.mxu3 %v7383_v13  ;;  %v8146_v51 = vld [vmem:[#allocation10 + $0x134] sm:$0xf]  ;;  %v7403_v13 = vor.u32 %v8170_v17, %v7400_v14  ;;  %v7456_v17 = vld [vmem:[#allocation11 + $0x68] sm:$0xf0] }
 0x2f6   :  { %4638 = vmatpush.bf16.msrb.mxu2 %v7323_v54  ;;  %v7384_v54 = vld [vmem:[#allocation10 + $0x1d8] sm:$0xf0] }
 0x2f8   :  { %4600 = vmatpush.bf16.msra.mxu3 %v7375_v12  ;;  %v7376_v12 = vld [vmem:[#allocation10 + $0x1c8] sm:$0xf0] }
 0x2f9   :  { %v8805_v38 = vpop.f32.mrf.mxu2 }
 0x2fa   :  { %4639 = vmatpush.bf16.msrb.mxu2 %v7315_v2  ;;  %v4040_v53 = vadd.f32 %v8805_v38, %v4027_v42  ;;  %v3306_v38 = vperm.slane %v8810_v50, 2  ;;  %v7368_v2 = vld [vmem:[#allocation10 + $0x1b8] sm:$0xf0] }
 0x2fb   :  { %v4080_v57 = vpop.f32.mrf.mxu1  ;;  %v7371_v3 = vor.u32 %v8162_v46, %v7368_v2  ;;  %v8202_v46 = vld [vmem:[#allocation11 + $0xf4] sm:$0xf]  ;;  %v7528_v2 = vld [vmem:[#allocation11 + $0xf8] sm:$0xf0] }
 0x2fc   :  { %v7307_v57 = vor.u32 %v8146_v51, %v7304_v23  ;;  %4601 = vmatpush.bf16.msra.mxu3 %v7367_v32  ;;  %v8160_v32 = vld [vmem:[#allocation10 + $0x1a4] sm:$0xf]  ;;  %v7352_v23 = vld [vmem:[#allocation10 + $0x198] sm:$0xf0] }
 0x2fe   :  { %4640 = vmatpush.bf16.msrb.mxu2 %v7307_v57 }
 0x300   :  { %4602 = vmatpush.bf16.msra.mxu3 %v7359_v62 }
 0x301   :  { %v4041_v6 = vpop.f32.mrf.mxu2 }
 0x302   :  { %4641 = vmatpush.bf16.msrb.mxu2 %v7299_v4  ;;  %v7343_v6 = vor.u32 %v8157_v45, %v7342_v10  ;;  %v8186_v10 = vld [vmem:[#allocation11 + $0x74] sm:$0xf]  ;;  %v7464_v45 = vld [vmem:[#allocation11 + $0x78] sm:$0xf0] }
 0x303   :  { %v8813_v37 = vpop.f32.mrf.mxu0  ;;  %v7467_v9 = vor.u32 %v8186_v10, %v7464_v45  ;;  %v7406_v10 = vld [vmem:[#allocation11] sm:$0xf] }
 0x304   :  { %4603 = vmatpush.bf16.msra.mxu3 %v7351_v7  ;;  %v4118_v62 = vadd.f32 %v8813_v37, %v3307_v60  ;;  %v7462_v7 = vld [vmem:[#allocation11 + $0x70] sm:$0xf]  ;;  %v7454_v37 = vld [vmem:[#allocation11 + $0x60] sm:$0xf] }
 0x305   :  { %v7414_v60 = vld [vmem:[#allocation11 + $0x10] sm:$0xf]  ;;  %v7502_v45 = vld [vmem:[#allocation11 + $0xc0] sm:$0xf] }
 0x306   :  { %4642 = vmatpush.bf16.msrb.mxu2 %v7291_v8  ;;  %v8187_v8 = vld [vmem:[#allocation11 + $0x74] sm:$0xf0] }
 0x307   :  { %v7463_v50 = vor.u32 %v8187_v8, %v7462_v7  ;;  %v7512_v7 = vld [vmem:[#allocation11 + $0xd8] sm:$0xf0] }
 0x308   :  { %4604 = vmatpush.bf16.msra.mxu3 %v7343_v6  ;;  %v8182_v6 = vld [vmem:[#allocation11 + $0x54] sm:$0xf] }
 0x309   :  { %v4000_v26 = vpop.f32.mrf.mxu3 }
 0x30a   :  { %v4001_v36 = vadd.f32 %v4000_v26, %v3988_v28  ;;  %4643 = vmatpush.bf16.msrb.mxu2 %v7283_v20  ;;  %v7392_v28 = vld [vmem:[#allocation10 + $0x1e8] sm:$0xf0]  ;;  %v8166_v26 = vld [vmem:[#allocation10 + $0x1d4] sm:$0xf] }
 0x30b   :  { %v4119_v22 = vpop.f32.mrf.mxu0  ;;  %v7395_v30 = vor.u32 %v8168_v27, %v7392_v28  ;;  %v7387_v24 = vor.u32 %v8166_v26, %v7384_v54  ;;  %v7438_v27 = vld [vmem:[#allocation11 + $0x40] sm:$0xf]  ;;  %v8181_v28 = vld [vmem:[#allocation11 + $0x44] sm:$0xf0]  ;;  %v7430_v54 = vld [vmem:[#allocation11 + $0x30] sm:$0xf] }
 0x30c   :  { %v4160_v48 = vmax.f32 %v4001_v36, 0.0  ;;  %v8818_v63 = vpop.f32.mrf.mxu2  ;;  %4649 = vmatpush.bf16.msrb.mxu3 %v7403_v13  ;;  %v4066_v36 = vadd.f32 %v8799_v29, %v3306_v38  ;;  %v8164_v22 = vld [vmem:[#allocation10 + $0x1c4] sm:$0xf]  ;;  %v7360_v29 = vld [vmem:[#allocation10 + $0x1a8] sm:$0xf0] }
 0x30d   :  { %v7379_v43 = vor.u32 %v8164_v22, %v7376_v12  ;;  %v7363_v51 = vor.u32 %v8160_v32, %v7360_v29  ;;  %v7448_v13 = vld [vmem:[#allocation11 + $0x58] sm:$0xf0]  ;;  %v8180_v38 = vld [vmem:[#allocation11 + $0x44] sm:$0xf]  ;;  %v7518_v32 = vld [vmem:[#allocation11 + $0xe0] sm:$0xf] }
 0x30e   :  { %v4164_v47 = vpack.c.bf16 %v4160_v48, %v4160_v48  ;;  %v4079_v0 = vadd.f32 %v8803_v39, %v4066_v36  ;;  %v8158_v39 = vld [vmem:[#allocation10 + $0x194] sm:$0xf]  ;;  %v8179_v36 = vld [vmem:[#allocation11 + $0x34] sm:$0xf0] }
 0x30f   :  { %v7355_v57 = vor.u32 %v8158_v39, %v7352_v23  ;;  %v7431_v12 = vor.u32 %v8179_v36, %v7430_v54  ;;  %v8176_v39 = vld [vmem:[#allocation11 + $0x24] sm:$0xf]  ;;  %v7424_v23 = vld [vmem:[#allocation11 + $0x28] sm:$0xf0] }
 0x310   :  { %4566 = vmatmul.bf16.vlgmr.msra.gmra.mxu0 %v4164_v47  ;;  %4650 = vmatpush.bf16.msrb.mxu3 %v7395_v30  ;;  %v4092_v52 = vadd.f32 %v8818_v63, %v4079_v0  ;;  %v7439_v30 = vor.u32 %v8181_v28, %v7438_v27  ;;  %v8194_v27 = vld [vmem:[#allocation11 + $0xb4] sm:$0xf]  ;;  %v8192_v54 = vld [vmem:[#allocation11 + $0xa4] sm:$0xf] }
 0x311   :  { %v4002_v49 = vpop.f32.mrf.mxu3  ;;  %4864 = vmatpush.bf16.msra.mxu0 %v7463_v50  ;;  %v8173_v50 = vld [vmem:[#allocation11 + $0x4] sm:$0xf0] }
 0x312   :  { %v8156_v49 = vld [vmem:[#allocation10 + $0x184] sm:$0xf] }
 0x313   :  { %v8822_v15 = vpop.f32.mrf.mxu1  ;;  %v7347_v59 = vor.u32 %v8156_v49, %v7344_v58  ;;  %v7520_v49 = vld [vmem:[#allocation11 + $0xe8] sm:$0xf0] }
 0x314   :  { %v4093_v35 = vpop.f32.mrf.mxu2  ;;  %4651 = vmatpush.bf16.msrb.mxu3 %v7387_v24  ;;  %v4131_v5 = vadd.f32 %v8822_v15, %v4118_v62  ;;  %v8185_v15 = vld [vmem:[#allocation11 + $0x64] sm:$0xf0]  ;;  %v7526_v24 = vld [vmem:[#allocation11 + $0xf0] sm:$0xf]  ;;  %v8175_v62 = vld [vmem:[#allocation11 + $0x14] sm:$0xf0] }
 0x315   :  { %v7455_v16 = vor.u32 %v8185_v15, %v7454_v37  ;;  %v8197_v37 = vld [vmem:[#allocation11 + $0xc4] sm:$0xf0]  ;;  %v8172_v15 = vld [vmem:[#allocation11 + $0x4] sm:$0xf] }
 0x317   :  { %4865 = vmatpush.bf16.msra.mxu0 %v7455_v16 }
 0x318   :  { %4652 = vmatpush.bf16.msrb.mxu3 %v7379_v43  ;;  %v8178_v43 = vld [vmem:[#allocation11 + $0x34] sm:$0xf] }
 0x319   :  { %v4052_v18 = vpop.f32.mrf.mxu3 }
 0x31a   :  { %v4053_v19 = vadd.f32 %v4052_v18, %v4040_v53  ;;  %v8184_v53 = vld [vmem:[#allocation11 + $0x64] sm:$0xf]  ;;  %v7446_v18 = vld [vmem:[#allocation11 + $0x50] sm:$0xf] }
 0x31b   :  { %v4132_v11 = vpop.f32.mrf.mxu1  ;;  %v7459_v14 = vor.u32 %v8184_v53, %v7456_v17  ;;  %v7408_v53 = vld [vmem:[#allocation11 + $0x8] sm:$0xf0]  ;;  %v7503_v17 = vor.u32 %v8197_v37, %v7502_v45  ;;  %v8218_v45 = vld [vmem:[#allocation13 + $0x70] sm:$0xff] }
 0x31c   :  { %v4161_v55 = vmax.f32 %v4053_v19, 0.0  ;;  %4653 = vmatpush.bf16.msrb.mxu3 %v7371_v3  ;;  %v8183_v19 = vld [vmem:[#allocation11 + $0x54] sm:$0xf0]  ;;  %v7422_v3 = vld [vmem:[#allocation11 + $0x20] sm:$0xf]  ;;  %v8217_v37 = vld [vmem:[#allocation13 + $0x68] sm:$0xff] }
 0x31d   :  { %v7447_v20 = vor.u32 %v8183_v19, %v7446_v18  ;;  %v8196_v18 = vld [vmem:[#allocation11 + $0xc4] sm:$0xf]  ;;  %v7504_v19 = vld [vmem:[#allocation11 + $0xc8] sm:$0xf0] }
 0x31e   :  { %v4165_v25 = vpack.c.bf16 %v4161_v55, %v4161_v55 }
 0x31f   :  { %4866 = vmatpush.bf16.msra.mxu0 %v7447_v20 }
 0x320   :  { %4579 = vmatmul.bf16.vlgmr.msra.gmra.mxu1 %v4165_v25  ;;  %4618 = vmatmul.bf16.vlgmr.msrb.gmra.mxu0 %v4164_v47 }
 0x321   :  { %v4054_v31 = vpop.f32.mrf.mxu3  ;;  %4654 = vmatpush.bf16.msrb.mxu3 %v7363_v51  ;;  %v8201_v51 = vld [vmem:[#allocation11 + $0xe4] sm:$0xf0] }
 0x322   :  { %v7440_v31 = vld [vmem:[#allocation11 + $0x48] sm:$0xf0] }
 0x323   :  { %v7443_v26 = vor.u32 %v8180_v38, %v7440_v31  ;;  %4867 = vmatpush.bf16.msra.mxu0 %v7439_v30  ;;  %v7496_v38 = vld [vmem:[#allocation11 + $0xb8] sm:$0xf0]  ;;  %v7486_v31 = vld [vmem:[#allocation11 + $0xa0] sm:$0xf] }
 0x324   :  { %v7499_v30 = vor.u32 %v8194_v27, %v7496_v38 }
 0x325   :  { %4655 = vmatpush.bf16.msrb.mxu3 %v7355_v57  ;;  %v8200_v57 = vld [vmem:[#allocation11 + $0xe4] sm:$0xf] }
 0x326   :  { %v7523_v58 = vor.u32 %v8200_v57, %v7520_v49 }
 0x327   :  { %4868 = vmatpush.bf16.msra.mxu0 %v7431_v12  ;;  %v7478_v12 = vld [vmem:[#allocation11 + $0x90] sm:$0xf] }
 0x329   :  { %v4104_v44 = vpop.f32.mrf.mxu3  ;;  %4656 = vmatpush.bf16.msrb.mxu3 %v7347_v59 }
 0x32a   :  { %v4105_v48 = vadd.f32 %v4104_v44, %v4092_v52  ;;  %v4143_v61 = vpop.f32.mrf.mxu2  ;;  %v8203_v52 = vld [vmem:[#allocation11 + $0xf4] sm:$0xf0]  ;;  %v7432_v44 = vld [vmem:[#allocation11 + $0x38] sm:$0xf0] }
 0x32b   :  { %v4144_v33 = vadd.f32 %v4143_v61, %v4131_v5  ;;  %v7435_v61 = vor.u32 %v8178_v43, %v7432_v44  ;;  %v7510_v5 = vld [vmem:[#allocation11 + $0xd0] sm:$0xf]  ;;  %v8190_v43 = vld [vmem:[#allocation11 + $0x94] sm:$0xf] }
 0x32c   :  { %v4162_v47 = vmax.f32 %v4105_v48, 0.0  ;;  %v7527_v48 = vor.u32 %v8203_v52, %v7526_v24  ;;  %v7488_v24 = vld [vmem:[#allocation11 + $0xa8] sm:$0xf0]  ;;  %v8191_v52 = vld [vmem:[#allocation11 + $0x94] sm:$0xf0] }
 0x32d   :  { %v7479_v44 = vor.u32 %v8191_v52, %v7478_v12 }
 0x32e   :  { %v4166_v40 = vpack.c.bf16 %v4162_v47, %v4162_v47  ;;  %v7531_v47 = vor.u32 %v8202_v46, %v7528_v2  ;;  %4877 = vmatpush.bf16.msra.mxu1 %v7527_v48  ;;  %v7480_v48 = vld [vmem:[#allocation11 + $0x98] sm:$0xf0]  ;;  %v7470_v46 = vld [vmem:[#allocation11 + $0x80] sm:$0xf]  ;;  %v8189_v2 = vld [vmem:[#allocation11 + $0x84] sm:$0xf0] }
 0x330   :  { %4592 = vmatmul.bf16.vlgmr.msra.gmra.mxu2 %v4166_v40  ;;  %4631 = vmatmul.bf16.vlgmr.msrb.gmra.mxu1 %v4165_v25  ;;  %v7451_v25 = vor.u32 %v8182_v6, %v7448_v13  ;;  %v7507_v6 = vor.u32 %v8196_v18, %v7504_v19  ;;  %v7494_v13 = vld [vmem:[#allocation11 + $0xb0] sm:$0xf]  ;;  %v8213_v18 = vld [vmem:[#allocation13 + $0x48] sm:$0xff]  ;;  %v8212_v19 = vld [vmem:[#allocation13 + $0x40] sm:$0xff] }
 0x331   :  { %v4106_v56 = vpop.f32.mrf.mxu3  ;;  %4890 = vmatpush.bf16.msra.mxu2 %v7467_v9  ;;  %v7407_v9 = vor.u32 %v8173_v50, %v7406_v10  ;;  %v8209_v50 = vld [vmem:[#allocation13 + $0x28] sm:$0xff] }
 0x332   :  { %v4145_v63 = vpop.f32.mrf.mxu2  ;;  %v7519_v56 = vor.u32 %v8201_v51, %v7518_v32  ;;  %v4232_v51 = vld [vmem:[#allocation16] sm:$0x3] }
 0x333   :  { %v7427_v63 = vor.u32 %v8176_v39, %v7424_v23  ;;  %v4234_v39 = vperm.slane %v4232_v51, 0  ;;  %v8211_v23 = vld [vmem:[#allocation13 + $0x38] sm:$0xff] }
 0x334   :  { %4878 = vmatpush.bf16.msra.mxu1 %v7519_v56  ;;  %v8219_v56 = vld [vmem:[#allocation13 + $0x78] sm:$0xff] }
 0x335   :  { %4891 = vmatpush.bf16.msra.mxu2 %v7459_v14  ;;  %v7411_v14 = vor.u32 %v8172_v15, %v7408_v53  ;;  %v8207_v15 = vld [vmem:[#allocation13 + $0x18] sm:$0xff] }
 0x336   :  { %v8215_v53 = vld [vmem:[#allocation13 + $0x58] sm:$0xff] }
 0x339   :  { %4892 = vmatpush.bf16.msra.mxu2 %v7451_v25  ;;  %v8195_v25 = vld [vmem:[#allocation11 + $0xb4] sm:$0xf0] }
 0x33a   :  { %v7495_v28 = vor.u32 %v8195_v25, %v7494_v13  ;;  %v4698_v13 = vld [vmem:[%s8865_s11] sm:$0x3] }
 0x33b   :  { %v4700_v27 = vperm.slane %v4698_v13, 0 }
 0x33d   :  { %4893 = vmatpush.bf16.msra.mxu2 %v7443_v26  ;;  %v8193_v26 = vld [vmem:[#allocation11 + $0xa4] sm:$0xf0] }
 0x33e   :  { %v7487_v36 = vor.u32 %v8193_v26, %v7486_v31  ;;  %v4701_v31 = vperm.slane %v4698_v13, 1 }
 0x340   :  { %4644 = vmatmul.bf16.vlgmr.msrb.gmra.mxu2 %v4166_v40  ;;  %v8177_v40 = vld [vmem:[#allocation11 + $0x24] sm:$0xf0] }
 0x341   :  { %4894 = vmatpush.bf16.msra.mxu2 %v7435_v61  ;;  %v7423_v29 = vor.u32 %v8177_v40, %v7422_v3  ;;  %v7483_v61 = vor.u32 %v8190_v43, %v7480_v48  ;;  %v7471_v3 = vor.u32 %v8189_v2, %v7470_v46  ;;  %v7472_v40 = vld [vmem:[#allocation11 + $0x88] sm:$0xf0] }
 0x343   :  { %4869 = vmatpush.bf16.msra.mxu0 %v7423_v29 }
 0x345   :  { %4895 = vmatpush.bf16.msra.mxu2 %v7427_v63  ;;  %v8210_v63 = vld [vmem:[#allocation13 + $0x30] sm:$0xff] }
 0x349   :  { %v4156_v1 = vpop.f32.mrf.mxu3 }
 0x34a   :  { %v4157_v41 = vadd.f32 %v4156_v1, %v4144_v33  ;;  %v7415_v33 = vor.u32 %v8175_v62, %v7414_v60  ;;  %v8199_v1 = vld [vmem:[#allocation11 + $0xd4] sm:$0xf0] }
 0x34c   :  { %v4163_v4 = vmax.f32 %v4157_v41, 0.0  ;;  %v8174_v41 = vld [vmem:[#allocation11 + $0x14] sm:$0xf]  ;;  %4870 = vmatpush.bf16.msra.mxu0 %v7415_v33 }
 0x34e   :  { %v4167_v34 = vpack.c.bf16 %v4163_v4, %v4163_v4  ;;  %v7416_v4 = vld [vmem:[#allocation11 + $0x18] sm:$0xf0] }
 0x350   :  { %4605 = vmatmul.bf16.vlgmr.msra.gmra.mxu3 %v4167_v34  ;;  %4871 = vmatpush.bf16.msra.mxu0 %v7407_v9  ;;  %v8208_v9 = vld [vmem:[#allocation13 + $0x20] sm:$0xff] }
 0x351   :  { %v4158_v21 = vpop.f32.mrf.mxu3  ;;  %4903 = vmatpush.bf16.msra.mxu3 %v7531_v47  ;;  %v8188_v47 = vld [vmem:[#allocation11 + $0x84] sm:$0xf] }
 0x352   :  { %v7419_v21 = vor.u32 %v8174_v41, %v7416_v4  ;;  %v7475_v29 = vor.u32 %v8188_v47, %v7472_v40  ;;  %v4235_v41 = vperm.slane %v4232_v51, 1 }
 0x354   :  { %4896 = vmatpush.bf16.msra.mxu2 %v7419_v21  ;;  %5052 = vmatpush.bf16.msrb.mxu0 %v8211_v23 }
 0x355   :  { %4904 = vmatpush.bf16.msra.mxu3 %v7523_v58 }
 0x358   :  { %4897 = vmatpush.bf16.msra.mxu2 %v7411_v14  ;;  %5053 = vmatpush.bf16.msrb.mxu0 %v8210_v63  ;;  %v8204_v14 = vld [vmem:[#allocation13] sm:$0xff] }
 0x35c   :  { %5054 = vmatpush.bf16.msrb.mxu0 %v8209_v50 }
 0x360   :  { %4657 = vmatmul.bf16.vlgmr.msrb.gmra.mxu3 %v4167_v34  ;;  %v7511_v34 = vor.u32 %v8199_v1, %v7510_v5  ;;  %5055 = vmatpush.bf16.msrb.mxu0 %v8208_v9 }
 0x362   :  { %4879 = vmatpush.bf16.msra.mxu1 %v7511_v34 }
 0x364   :  { %5056 = vmatpush.bf16.msrb.mxu0 %v8207_v15 }
 0x366   :  { %4880 = vmatpush.bf16.msra.mxu1 %v7503_v17  ;;  %v8214_v17 = vld [vmem:[#allocation13 + $0x50] sm:$0xff] }
 0x36a   :  { %4881 = vmatpush.bf16.msra.mxu1 %v7495_v28 }
 0x36e   :  { %4882 = vmatpush.bf16.msra.mxu1 %v7487_v36 }
 0x372   :  { %4883 = vmatpush.bf16.msra.mxu1 %v7479_v44 }
 0x376   :  { %4884 = vmatpush.bf16.msra.mxu1 %v7471_v3 }
 0x37a   :  { %5065 = vmatpush.bf16.msrb.mxu1 %v8219_v56 }
 0x37e   :  { %5066 = vmatpush.bf16.msrb.mxu1 %v8218_v45 }
 0x382   :  { %5067 = vmatpush.bf16.msrb.mxu1 %v8217_v37 }
 0x38d   :  { %v8833_v35 = vpop.f32.mrf.mxu0 }
 0x38e   :  { %v4568_v57 = vadd.f32 %v8833_v35, %v4234_v39 }
 0x395   :  { %v4569_v42 = vpop.f32.mrf.mxu0 }
 0x396   :  { %v8198_v42 = vld [vmem:[#allocation11 + $0xd4] sm:$0xf] }
 0x397   :  { %v7515_v8 = vor.u32 %v8198_v42, %v7512_v7 }
 0x399   :  { %4905 = vmatpush.bf16.msra.mxu3 %v7515_v8 }
 0x39d   :  { %v8835_v55 = vpop.f32.mrf.mxu1  ;;  %v8837_v11 = vpop.f32.mrf.mxu0  ;;  %4906 = vmatpush.bf16.msra.mxu3 %v7507_v6 }
 0x39e   :  { %v4581_v58 = vadd.f32 %v8835_v55, %v4568_v57  ;;  %v4620_v34 = vadd.f32 %v8837_v11, %v4235_v41  ;;  %v8216_v11 = vld [vmem:[#allocation13 + $0x60] sm:$0xff] }
 0x39f   :  { %5068 = vmatpush.bf16.msrb.mxu1 %v8216_v11 }
 0x3a1   :  { %4907 = vmatpush.bf16.msra.mxu3 %v7499_v30 }
 0x3a3   :  { %5069 = vmatpush.bf16.msrb.mxu1 %v8215_v53 }
 0x3a5   :  { %v4582_v0 = vpop.f32.mrf.mxu1  ;;  %v4621_v22 = vpop.f32.mrf.mxu0 }
 0x3a6   :  { %v7491_v0 = vor.u32 %v8192_v54, %v7488_v24 }
 0x3a7   :  { %5070 = vmatpush.bf16.msrb.mxu1 %v8214_v17 }
 0x3a8   :  { %4908 = vmatpush.bf16.msra.mxu3 %v7491_v0 }
 0x3ab   :  { %5071 = vmatpush.bf16.msrb.mxu1 %v8213_v18 }
 0x3ac   :  { %4909 = vmatpush.bf16.msra.mxu3 %v7483_v61  ;;  %v8236_v61 = vld [vmem:[%s8866_s12] ss:$0 sm:$0xff] }
 0x3ad   :  { %v8839_v59 = vpop.f32.mrf.mxu1 }
 0x3ae   :  { %v4633_v21 = vadd.f32 %v8839_v59, %v4620_v34  ;;  %v8206_v59 = vld [vmem:[#allocation13 + $0x10] sm:$0xff] }
 0x3af   :  { %5057 = vmatpush.bf16.msrb.mxu0 %v8206_v59  ;;  %5072 = vmatpush.bf16.msrb.mxu1 %v8212_v19 }
 0x3b0   :  { %4910 = vmatpush.bf16.msra.mxu3 %v7475_v29 }
 0x3b3   :  { %v4593_v16 = vpop.f32.mrf.mxu2 }
 0x3b4   :  { %v4594_v60 = vadd.f32 %v4593_v16, %v4581_v58  ;;  %v8205_v16 = vld [vmem:[#allocation13 + $0x8] sm:$0xff] }
 0x3b5   :  { %v4634_v20 = vpop.f32.mrf.mxu1  ;;  %5058 = vmatpush.bf16.msrb.mxu0 %v8205_v16 }
 0x3b9   :  { %5059 = vmatpush.bf16.msrb.mxu0 %v8204_v14 }
 0x3bb   :  { %v4595_v22 = vpop.f32.mrf.mxu2 }
 0x3c3   :  { %v4645_v32 = vpop.f32.mrf.mxu2 }
 0x3c4   :  { %v4646_v42 = vadd.f32 %v4645_v32, %v4633_v21 }
 0x3cb   :  { %v4647_v49 = vpop.f32.mrf.mxu2 }
 0x3d3   :  { %v4606_v62 = vpop.f32.mrf.mxu3 }
 0x3d4   :  { %v4607_v5 = vadd.f32 %v4606_v62, %v4594_v60 }
 0x3d6   :  { %v4662_v33 = vmax.f32 %v4607_v5, 0.0 }
 0x3d8   :  { %v4664_v1 = vpack.c.bf16 %v4662_v33, %v4662_v33 }
 0x3da   :  { %4872 = vmatmul.bf16.vlgmr.msra.gmra.mxu0 %v4664_v1  ;;  %4898 = vmatmul.bf16.vlgmr.msra.gmra.mxu2 %v4664_v1 }
 0x3db   :  { %v4608_v4 = vpop.f32.mrf.mxu3 }
 0x3e3   :  { %v4658_v7 = vpop.f32.mrf.mxu3 }
 0x3e4   :  { %v4659_v35 = vadd.f32 %v4658_v7, %v4646_v42 }
 0x3e6   :  { %v4663_v8 = vmax.f32 %v4659_v35, 0.0 }
 0x3e8   :  { %v4665_v10 = vpack.c.bf16 %v4663_v8, %v4663_v8 }
 0x3ea   :  { %4885 = vmatmul.bf16.vlgmr.msra.gmra.mxu1 %v4665_v10  ;;  %4911 = vmatmul.bf16.vlgmr.msra.gmra.mxu3 %v4665_v10 }
 0x3eb   :  { %v4660_v55 = vpop.f32.mrf.mxu3 }
 0x457   :  { %v4873_v6 = vpop.f32.mrf.mxu0 }
 0x458   :  { %v4874_v38 = vadd.f32 %v4873_v6, %v4700_v27 }
 0x45d   :  { %v4899_v20 = vpop.f32.mrf.mxu2 }
 0x45e   :  { %v4900_v36 = vadd.f32 %v4899_v20, %v4701_v31 }
 0x45f   :  { %v4875_v25 = vpop.f32.mrf.mxu0 }
 0x465   :  { %v4901_v28 = vpop.f32.mrf.mxu2 }
 0x467   :  { %v4886_v30 = vpop.f32.mrf.mxu1 }
 0x468   :  { %v4887_v26 = vadd.f32 %v4886_v30, %v4874_v38 }
 0x46a   :  { %v4916_v54 = vmax.f32 %v4887_v26, 0.0 }
 0x46c   :  { %v4918_v24 = vpack.c.bf16 %v4916_v54, %v4916_v54 }
 0x46d   :  { %v4912_v0 = vpop.f32.mrf.mxu3 }
 0x46e   :  { %v4913_v22 = vadd.f32 %v4912_v0, %v4900_v36  ;;  %5060 = vmatmul.bf16.vlgmr.msrb.gmra.mxu0 %v4918_v24 }
 0x46f   :  { %v4888_v12 = vpop.f32.mrf.mxu1 }
 0x470   :  { %v4917_v52 = vmax.f32 %v4913_v22, 0.0 }
 0x472   :  { %v4919_v43 = vpack.c.bf16 %v4917_v52, %v4917_v52 }
 0x474   :  { %5073 = vmatmul.bf16.vlgmr.msrb.gmra.mxu1 %v4919_v43 }
 0x475   :  { %v4914_v44 = vpop.f32.mrf.mxu3 }
 0x4eb   :  { %v5061_v48 = vpop.f32.mrf.mxu0 }
 0x4ec   :  { %v5062_v46 = vadd.f32 %v8236_v61, %v5061_v48 }
 0x4f1   :  { %v5074_v2 = vpop.f32.mrf.mxu1 }
 0x4f2   :  { %v5075_v47 = vadd.f32 %v5074_v2, %v5062_v46 }
 0x4f3   :  { %v5063_v3 = vpop.f32.mrf.mxu0 }
 0x4f4   :  { %5078 = vst [vmem:[#allocation17] sm:$0x3] %v5075_v47 }
 0x4f5   :  { %5089 = dma.vmem_to_hbm [thread:$0]  %s5085_s21, 32, %s5087_s23, [#allocation4]  }
 0x4f9   :  { %v5076_v40 = vpop.f32.mrf.mxu1 }
 0x4fa   :  { %8488 = dma.done.wait [#allocation4], 32  }
 0x4fb   :  { %8489 = vsyncadd [#allocation4], 4294967264 }
 0x4fc   :  { %5094 = vsyncpa [#allocation3], 1 }
 0x4fd   :  { %5095 = vsyncpa [#allocation6], 1 }
 0x4fe   :  { %5096 = vsyncpa [#allocation9], 1 }
 0x4ff   :  { %5097 = vsyncpa [#allocation12], 1 }
 0x500   :  { %5098 = vsyncpa [#allocation15], 1 }
 0x501   :  { %5099 = vsyncpa [#allocation4], 1 }

</bundles_post_ra>
